<compile_context>
chip_gen: v5e
topology: v5e:2x2
jax: 0.10.0
libtpu: 0.0.40
codegen_flags: <defaults>
</compile_context>

<pallas_src>
import numpy as np
import jax
import jax.numpy as jnp
from jax import lax
from jax.experimental import pallas as pl
from jax.experimental.pallas import tpu as pltpu

_LN_EPS = 1e-5


def _layer_norm(x, gamma, beta):
    mu = jnp.mean(x, axis=-1, keepdims=True)
    xc = x - mu
    var = jnp.mean(xc * xc, axis=-1, keepdims=True)
    inv = lax.rsqrt(var + _LN_EPS)          # EUP rsqrt: one op, off the VALU path
    return xc * inv * gamma + beta


def quantile_mlp_kernel(
    state_ref, action_ref, tau_ref, const_ref,
    w1s_ref, w1a_ref, b1_ref, g1_ref, be1_ref,
    wt_ref, bt_ref, gt_ref, bet_ref,
    wm_ref, bm_ref, gm_ref, bem_ref,
    wl_ref, bl_ref,
    out_ref,
):
    f32 = jnp.float32
    state = state_ref[...].astype(f32)
    action = action_ref[...].astype(f32)
    tau = tau_ref[...].astype(f32)

    tb, t = tau.shape
    e, h1 = wt_ref.shape
    h2 = wm_ref.shape[1]
    r = tb * t

    # --- base_fc: Linear(cat([state, action])) + LayerNorm + ReLU -> (TB, H1)
    # Concat is fused: x @ W1 == state @ W1[:Ds] + action @ W1[Ds:].
    h = (
        jnp.dot(state, w1s_ref[...], preferred_element_type=f32)
        + jnp.dot(action, w1a_ref[...], preferred_element_type=f32)
        + b1_ref[...]
    )
    h = jnp.maximum(_layer_norm(h, g1_ref[...], be1_ref[...]), 0.0)

    # --- quantile embedding: cos(tau[..., None] * arange(1..E) * pi) -> (R, E)
    # (TB, T, E) -> (R, E) only merges leading/sublane dims: no lane relayout.
    phi = jnp.cos(tau[:, :, None] * const_ref[...]).reshape(r, e)

    # --- tau_fc: Linear + LayerNorm + Sigmoid -> (R, H1)
    xt = jnp.dot(phi, wt_ref[...], preferred_element_type=f32) + bt_ref[...]
    xt = jax.nn.sigmoid(_layer_norm(xt, gt_ref[...], bet_ref[...]))

    # --- merge: broadcast h over the quantile axis inside the multiply -> (R, H1)
    merged = (xt.reshape(tb, t, h1) * h[:, None, :]).reshape(r, h1)

    # --- merge_fc: Linear + LayerNorm + ReLU -> (R, H2)
    m = jnp.dot(merged, wm_ref[...], preferred_element_type=f32) + bm_ref[...]
    m = jnp.maximum(_layer_norm(m, gm_ref[...], bem_ref[...]), 0.0)

    # --- last_fc (out_features=1): VPU multiply + lane reduction instead of a
    #     lane-sparse (R, H2) x (H2, 1) MXU matmul.
    out = jnp.sum(m.reshape(tb, t, h2) * wl_ref[...], axis=-1) + bl_ref[0, 0]
    out_ref[...] = out.astype(out_ref.dtype)


def _round_up(x, m):
    return (x + m - 1) // m * m


def quantile_mlp_forward(state, action, tau, params, *, tile_b=64):
    """Pallas-backed QuantileMlp.forward.  Returns (N, num_quantiles) f32."""
    (w1, b1, g1, be1, wt, bt, gt, bet, wm, bm, gm, bem, wl, bl) = params

    n, ds = state.shape
    da = action.shape[1]
    t = tau.shape[1]
    e, h1 = wt.shape
    h2 = wm.shape[1]

    assert tile_b % 8 == 0, "batch tile must be a multiple of 8 sublanes"
    if n <= tile_b:
        n_pad = _round_up(n, 8)
        tb = n_pad
    else:
        n_pad = _round_up(n, tile_b)
        tb = tile_b

    pad = n_pad - n
    if pad:
        state = jnp.pad(state, ((0, pad), (0, 0)))
        action = jnp.pad(action, ((0, pad), (0, 0)))
        tau = jnp.pad(tau, ((0, pad), (0, 0)))

    # Split W1 row-wise so the state/action concat fuses into the kernel.
    w1s = w1[:ds]
    w1a = w1[ds:]
    const_vec = (jnp.arange(1, e + 1, dtype=jnp.float32) * np.pi).reshape(1, e)
    wl_row = wl.reshape(1, h2)
    bl_s = jnp.asarray(bl, jnp.float32).reshape(1, 1)

    def batch_spec(cols):
        return pl.BlockSpec((tb, cols), lambda i: (i, 0))

    def resident(arr):
        # Whole-array block, constant index_map -> DMA'd once, stays in VMEM.
        return pl.BlockSpec(arr.shape, lambda i: (0, 0))

    weights = (const_vec, w1s, w1a, b1, g1, be1,
               wt, bt, gt, bet, wm, bm, gm, bem, wl_row)

    grid = (n_pad // tb,)
    out = pl.pallas_call(
        quantile_mlp_kernel,
        out_shape=jax.ShapeDtypeStruct((n_pad, t), jnp.float32),
        grid=grid,
        in_specs=(
            [batch_spec(ds), batch_spec(da), batch_spec(t)]
            + [resident(a) for a in weights]
            + [pl.BlockSpec(memory_space=pltpu.MemorySpace.SMEM)]  # scalar bias
        ),
        out_specs=pl.BlockSpec((tb, t), lambda i: (i, 0)),
        compiler_params=pltpu.CompilerParams(
            dimension_semantics=("parallel",)),
    )(state, action, tau, *weights, bl_s)
    return out[:n]


def init_params(key, input_size, hidden_dim, embedding_size=64):
    """PyTorch-default-style init; weights stored (in, out), biases/LN as (1, H)."""
    assert len(hidden_dim) == 2  # TODO(synk): support deeper base_fc stacks.
    h1, h2 = hidden_dim
    k1, k2, k3, k4 = jax.random.split(key, 4)

    def linear(k, fan_in, fan_out):
        kw, kb = jax.random.split(k)
        bound = 1.0 / float(np.sqrt(fan_in))
        w = jax.random.uniform(kw, (fan_in, fan_out), jnp.float32, -bound, bound)
        b = jax.random.uniform(kb, (1, fan_out), jnp.float32, -bound, bound)
        return w, b

    w1, b1 = linear(k1, input_size, h1)
    g1, be1 = jnp.ones((1, h1), jnp.float32), jnp.zeros((1, h1), jnp.float32)
    wt, bt = linear(k2, embedding_size, h1)
    gt, bet = jnp.ones((1, h1), jnp.float32), jnp.zeros((1, h1), jnp.float32)
    wm, bm = linear(k3, h1, h2)
    gm, bem = jnp.ones((1, h2), jnp.float32), jnp.zeros((1, h2), jnp.float32)
    wl, bl = linear(k4, h2, 1)  # wl: (h2, 1), bl: (1, 1)
    return (w1, b1, g1, be1, wt, bt, gt, bet, wm, bm, gm, bem, wl, bl)


def reference_forward(state, action, tau, params):
    """Pure-JAX mirror of QuantileMlp.forward (layer_norm=True) in f32."""
    (w1, b1, g1, be1, wt, bt, gt, bet, wm, bm, gm, bem, wl, bl) = params
    hi = jax.lax.Precision.HIGHEST

    def ln(x, g, b):
        mu = x.mean(-1, keepdims=True)
        var = ((x - mu) ** 2).mean(-1, keepdims=True)
        return (x - mu) / jnp.sqrt(var + _LN_EPS) * g + b

    h = jnp.concatenate([state, action], axis=-1)
    h = jnp.maximum(ln(jnp.dot(h, w1, precision=hi) + b1, g1, be1), 0.0)
    e = wt.shape[0]
    const = jnp.arange(1, e + 1, dtype=jnp.float32) * np.pi
    x = jnp.cos(tau[..., None] * const)
    x = jax.nn.sigmoid(ln(jnp.dot(x, wt, precision=hi) + bt, gt, bet))
    h = x * h[:, None, :]
    h = jnp.maximum(ln(jnp.dot(h, wm, precision=hi) + bm, gm, bem), 0.0)
    out = jnp.dot(h, wl, precision=hi)[..., 0] + bl.reshape(())
    return out


if __name__ == "__main__":
    # Small shapes consistent with the module's forward:
    #   state: (N, num_inputs), action: (N, num_actions), tau: (N, num_quantiles)
    B, num_inputs, num_actions = 6, 11, 3        # N=6 exercises the ragged-pad path
    hidden_dim = (64, 64)
    embedding_size = 64
    num_quantiles = 32

    key = jax.random.PRNGKey(0)
    ks, ka, kt, kp = jax.random.split(key, 4)
    state = jax.random.normal(ks, (B, num_inputs), dtype=jnp.float32)
    action = jax.random.normal(ka, (B, num_actions), dtype=jnp.float32)
    tau = jax.random.uniform(kt, (B, num_quantiles), dtype=jnp.float32)
    params = init_params(kp, num_inputs + num_actions, hidden_dim, embedding_size)

    out = quantile_mlp_forward(state, action, tau, params)
    jax.block_until_ready(out)

    ref = reference_forward(state, action, tau, params)
    assert out.shape == (B, num_quantiles)
    err = float(jnp.max(jnp.abs(out - ref)))
    assert jnp.allclose(out, ref, atol=1e-4, rtol=1e-4), f"max abs err {err}"

    print("KERNEL_OK")
</pallas_src>

<mosaic_0001>
module attributes {stable_mosaic.version = 11 : i64} {
  func.func @quantile_mlp_kernel(%arg0: i32, %arg1: memref<8x11xf32, #tpu.memory_space<vmem>>, %arg2: memref<8x3xf32, #tpu.memory_space<vmem>>, %arg3: memref<8x32xf32, #tpu.memory_space<vmem>>, %arg4: memref<1x64xf32, #tpu.memory_space<vmem>>, %arg5: memref<11x64xf32, #tpu.memory_space<vmem>>, %arg6: memref<3x64xf32, #tpu.memory_space<vmem>>, %arg7: memref<1x64xf32, #tpu.memory_space<vmem>>, %arg8: memref<1x64xf32, #tpu.memory_space<vmem>>, %arg9: memref<1x64xf32, #tpu.memory_space<vmem>>, %arg10: memref<64x64xf32, #tpu.memory_space<vmem>>, %arg11: memref<1x64xf32, #tpu.memory_space<vmem>>, %arg12: memref<1x64xf32, #tpu.memory_space<vmem>>, %arg13: memref<1x64xf32, #tpu.memory_space<vmem>>, %arg14: memref<64x64xf32, #tpu.memory_space<vmem>>, %arg15: memref<1x64xf32, #tpu.memory_space<vmem>>, %arg16: memref<1x64xf32, #tpu.memory_space<vmem>>, %arg17: memref<1x64xf32, #tpu.memory_space<vmem>>, %arg18: memref<1x64xf32, #tpu.memory_space<vmem>>, %arg19: memref<1x1xf32, #tpu.memory_space<smem>>, %arg20: memref<8x32xf32, #tpu.memory_space<vmem>>) attributes {dimension_semantics = [#tpu.dimension_semantics<parallel>], iteration_bounds = array<i64: 1>, scalar_prefetch = 0 : i64, scratch_operands = 0 : i64, tpu.core_type = #tpu.core_type<tc>, window_params = [{transform_indices = @transform_0, window_bounds = array<i64: 8, 11>}, {transform_indices = @transform_1, window_bounds = array<i64: 8, 3>}, {transform_indices = @transform_2, window_bounds = array<i64: 8, 32>}, {pipeline_mode = #tpu.pipeline_mode<synchronous>, transform_indices = @transform_3, window_bounds = array<i64: 1, 64>}, {pipeline_mode = #tpu.pipeline_mode<synchronous>, transform_indices = @transform_4, window_bounds = array<i64: 11, 64>}, {pipeline_mode = #tpu.pipeline_mode<synchronous>, transform_indices = @transform_5, window_bounds = array<i64: 3, 64>}, {pipeline_mode = #tpu.pipeline_mode<synchronous>, transform_indices = @transform_6, window_bounds = array<i64: 1, 64>}, {pipeline_mode = #tpu.pipeline_mode<synchronous>, transform_indices = @transform_7, window_bounds = array<i64: 1, 64>}, {pipeline_mode = #tpu.pipeline_mode<synchronous>, transform_indices = @transform_8, window_bounds = array<i64: 1, 64>}, {pipeline_mode = #tpu.pipeline_mode<synchronous>, transform_indices = @transform_9, window_bounds = array<i64: 64, 64>}, {pipeline_mode = #tpu.pipeline_mode<synchronous>, transform_indices = @transform_10, window_bounds = array<i64: 1, 64>}, {pipeline_mode = #tpu.pipeline_mode<synchronous>, transform_indices = @transform_11, window_bounds = array<i64: 1, 64>}, {pipeline_mode = #tpu.pipeline_mode<synchronous>, transform_indices = @transform_12, window_bounds = array<i64: 1, 64>}, {pipeline_mode = #tpu.pipeline_mode<synchronous>, transform_indices = @transform_13, window_bounds = array<i64: 64, 64>}, {pipeline_mode = #tpu.pipeline_mode<synchronous>, transform_indices = @transform_14, window_bounds = array<i64: 1, 64>}, {pipeline_mode = #tpu.pipeline_mode<synchronous>, transform_indices = @transform_15, window_bounds = array<i64: 1, 64>}, {pipeline_mode = #tpu.pipeline_mode<synchronous>, transform_indices = @transform_16, window_bounds = array<i64: 1, 64>}, {pipeline_mode = #tpu.pipeline_mode<synchronous>, transform_indices = @transform_17, window_bounds = array<i64: 1, 64>}, {transform_indices = @transform_18, window_bounds = array<i64: 1, 1>}, {transform_indices = @transform_19, window_bounds = array<i64: 8, 32>}]} {
    %c0 = arith.constant 0 : index
    %c0_0 = arith.constant 0 : index
    %0 = vector.load %arg1[%c0, %c0_0] : memref<8x11xf32, #tpu.memory_space<vmem>>, vector<8x11xf32>
    %c0_1 = arith.constant 0 : index
    %c0_2 = arith.constant 0 : index
    %1 = vector.load %arg2[%c0_1, %c0_2] : memref<8x3xf32, #tpu.memory_space<vmem>>, vector<8x3xf32>
    %c0_3 = arith.constant 0 : index
    %c0_4 = arith.constant 0 : index
    %2 = vector.load %arg3[%c0_3, %c0_4] : memref<8x32xf32, #tpu.memory_space<vmem>>, vector<8x32xf32>
    %c0_5 = arith.constant 0 : index
    %c0_6 = arith.constant 0 : index
    %3 = vector.load %arg5[%c0_5, %c0_6] : memref<11x64xf32, #tpu.memory_space<vmem>>, vector<11x64xf32>
    %cst = arith.constant dense<0.000000e+00> : vector<8x64xf32>
    %4 = tpu.matmul %0, %3, %cst {dimension_numbers = #tpu.dot_dimension_numbers<[1], [0], [0], [1], [0, 0, 1, 1], [], []>} : vector<8x11xf32>, vector<11x64xf32>, vector<8x64xf32> -> vector<8x64xf32>
    %c0_7 = arith.constant 0 : index
    %c0_8 = arith.constant 0 : index
    %5 = vector.load %arg6[%c0_7, %c0_8] : memref<3x64xf32, #tpu.memory_space<vmem>>, vector<3x64xf32>
    %cst_9 = arith.constant dense<0.000000e+00> : vector<8x64xf32>
    %6 = tpu.matmul %1, %5, %cst_9 {dimension_numbers = #tpu.dot_dimension_numbers<[1], [0], [0], [1], [0, 0, 1, 1], [], []>} : vector<8x3xf32>, vector<3x64xf32>, vector<8x64xf32> -> vector<8x64xf32>
    %7 = arith.addf %4, %6 : vector<8x64xf32>
    %c0_10 = arith.constant 0 : index
    %c0_11 = arith.constant 0 : index
    %8 = vector.load %arg7[%c0_10, %c0_11] : memref<1x64xf32, #tpu.memory_space<vmem>>, vector<1x64xf32>
    %9 = vector.broadcast %8 : vector<1x64xf32> to vector<8x64xf32>
    %10 = arith.addf %7, %9 : vector<8x64xf32>
    %c0_12 = arith.constant 0 : index
    %c0_13 = arith.constant 0 : index
    %11 = vector.load %arg8[%c0_12, %c0_13] : memref<1x64xf32, #tpu.memory_space<vmem>>, vector<1x64xf32>
    %c0_14 = arith.constant 0 : index
    %c0_15 = arith.constant 0 : index
    %12 = vector.load %arg9[%c0_14, %c0_15] : memref<1x64xf32, #tpu.memory_space<vmem>>, vector<1x64xf32>
    %cst_16 = arith.constant dense<0.000000e+00> : vector<8xf32>
    %13 = vector.multi_reduction <add>, %10, %cst_16 [1] : vector<8x64xf32> to vector<8xf32>
    %14 = vector.shape_cast %13 : vector<8xf32> to vector<8x1xf32>
    %cst_17 = arith.constant 6.400000e+01 : f32
    %15 = vector.broadcast %cst_17 : f32 to vector<8x1xf32>
    %16 = arith.divf %14, %15 : vector<8x1xf32>
    %17 = vector.broadcast %16 : vector<8x1xf32> to vector<8x64xf32>
    %18 = arith.subf %10, %17 : vector<8x64xf32>
    %19 = arith.mulf %18, %18 : vector<8x64xf32>
    %cst_18 = arith.constant dense<0.000000e+00> : vector<8xf32>
    %20 = vector.multi_reduction <add>, %19, %cst_18 [1] : vector<8x64xf32> to vector<8xf32>
    %21 = vector.shape_cast %20 : vector<8xf32> to vector<8x1xf32>
    %cst_19 = arith.constant 6.400000e+01 : f32
    %22 = vector.broadcast %cst_19 : f32 to vector<8x1xf32>
    %23 = arith.divf %21, %22 : vector<8x1xf32>
    %cst_20 = arith.constant 9.99999974E-6 : f32
    %24 = vector.broadcast %cst_20 : f32 to vector<8x1xf32>
    %25 = arith.addf %23, %24 : vector<8x1xf32>
    %26 = math.rsqrt %25 : vector<8x1xf32>
    %27 = vector.broadcast %26 : vector<8x1xf32> to vector<8x64xf32>
    %28 = arith.mulf %18, %27 : vector<8x64xf32>
    %29 = vector.broadcast %11 : vector<1x64xf32> to vector<8x64xf32>
    %30 = arith.mulf %28, %29 : vector<8x64xf32>
    %31 = vector.broadcast %12 : vector<1x64xf32> to vector<8x64xf32>
    %32 = arith.addf %30, %31 : vector<8x64xf32>
    %cst_21 = arith.constant 0.000000e+00 : f32
    %33 = vector.broadcast %cst_21 : f32 to vector<8x64xf32>
    %34 = arith.maximumf %32, %33 : vector<8x64xf32>
    %35 = vector.shape_cast %2 : vector<8x32xf32> to vector<8x32x1xf32>
    %c0_22 = arith.constant 0 : index
    %c0_23 = arith.constant 0 : index
    %36 = vector.load %arg4[%c0_22, %c0_23] : memref<1x64xf32, #tpu.memory_space<vmem>>, vector<1x64xf32>
    %37 = vector.shape_cast %36 : vector<1x64xf32> to vector<1x1x64xf32>
    %38 = vector.broadcast %35 : vector<8x32x1xf32> to vector<8x32x64xf32>
    %39 = vector.broadcast %37 : vector<1x1x64xf32> to vector<8x32x64xf32>
    %40 = arith.mulf %38, %39 : vector<8x32x64xf32>
    %41 = math.cos %40 : vector<8x32x64xf32>
    %42 = vector.shape_cast %41 : vector<8x32x64xf32> to vector<256x64xf32>
    %c0_24 = arith.constant 0 : index
    %c0_25 = arith.constant 0 : index
    %43 = vector.load %arg10[%c0_24, %c0_25] : memref<64x64xf32, #tpu.memory_space<vmem>>, vector<64x64xf32>
    %cst_26 = arith.constant dense<0.000000e+00> : vector<256x64xf32>
    %44 = tpu.matmul %42, %43, %cst_26 {dimension_numbers = #tpu.dot_dimension_numbers<[1], [0], [0], [1], [0, 0, 1, 1], [], []>} : vector<256x64xf32>, vector<64x64xf32>, vector<256x64xf32> -> vector<256x64xf32>
    %c0_27 = arith.constant 0 : index
    %c0_28 = arith.constant 0 : index
    %45 = vector.load %arg11[%c0_27, %c0_28] : memref<1x64xf32, #tpu.memory_space<vmem>>, vector<1x64xf32>
    %46 = vector.broadcast %45 : vector<1x64xf32> to vector<256x64xf32>
    %47 = arith.addf %44, %46 : vector<256x64xf32>
    %c0_29 = arith.constant 0 : index
    %c0_30 = arith.constant 0 : index
    %48 = vector.load %arg12[%c0_29, %c0_30] : memref<1x64xf32, #tpu.memory_space<vmem>>, vector<1x64xf32>
    %c0_31 = arith.constant 0 : index
    %c0_32 = arith.constant 0 : index
    %49 = vector.load %arg13[%c0_31, %c0_32] : memref<1x64xf32, #tpu.memory_space<vmem>>, vector<1x64xf32>
    %cst_33 = arith.constant dense<0.000000e+00> : vector<256xf32>
    %50 = vector.multi_reduction <add>, %47, %cst_33 [1] : vector<256x64xf32> to vector<256xf32>
    %51 = vector.shape_cast %50 : vector<256xf32> to vector<256x1xf32>
    %cst_34 = arith.constant 6.400000e+01 : f32
    %52 = vector.broadcast %cst_34 : f32 to vector<256x1xf32>
    %53 = arith.divf %51, %52 : vector<256x1xf32>
    %54 = vector.broadcast %53 : vector<256x1xf32> to vector<256x64xf32>
    %55 = arith.subf %47, %54 : vector<256x64xf32>
    %56 = arith.mulf %55, %55 : vector<256x64xf32>
    %cst_35 = arith.constant dense<0.000000e+00> : vector<256xf32>
    %57 = vector.multi_reduction <add>, %56, %cst_35 [1] : vector<256x64xf32> to vector<256xf32>
    %58 = vector.shape_cast %57 : vector<256xf32> to vector<256x1xf32>
    %cst_36 = arith.constant 6.400000e+01 : f32
    %59 = vector.broadcast %cst_36 : f32 to vector<256x1xf32>
    %60 = arith.divf %58, %59 : vector<256x1xf32>
    %cst_37 = arith.constant 9.99999974E-6 : f32
    %61 = vector.broadcast %cst_37 : f32 to vector<256x1xf32>
    %62 = arith.addf %60, %61 : vector<256x1xf32>
    %63 = math.rsqrt %62 : vector<256x1xf32>
    %64 = vector.broadcast %63 : vector<256x1xf32> to vector<256x64xf32>
    %65 = arith.mulf %55, %64 : vector<256x64xf32>
    %66 = vector.broadcast %48 : vector<1x64xf32> to vector<256x64xf32>
    %67 = arith.mulf %65, %66 : vector<256x64xf32>
    %68 = vector.broadcast %49 : vector<1x64xf32> to vector<256x64xf32>
    %69 = arith.addf %67, %68 : vector<256x64xf32>
    %70 = arith.negf %69 : vector<256x64xf32>
    %71 = math.exp %70 : vector<256x64xf32>
    %cst_38 = arith.constant 1.000000e+00 : f32
    %72 = vector.broadcast %cst_38 : f32 to vector<256x64xf32>
    %73 = arith.addf %72, %71 : vector<256x64xf32>
    %74 = arith.divf %72, %73 : vector<256x64xf32>
    %75 = vector.shape_cast %74 : vector<256x64xf32> to vector<8x32x64xf32>
    %76 = vector.shape_cast %34 : vector<8x64xf32> to vector<8x1x64xf32>
    %77 = vector.broadcast %76 : vector<8x1x64xf32> to vector<8x32x64xf32>
    %78 = arith.mulf %75, %77 : vector<8x32x64xf32>
    %79 = vector.shape_cast %78 : vector<8x32x64xf32> to vector<256x64xf32>
    %c0_39 = arith.constant 0 : index
    %c0_40 = arith.constant 0 : index
    %80 = vector.load %arg14[%c0_39, %c0_40] : memref<64x64xf32, #tpu.memory_space<vmem>>, vector<64x64xf32>
    %cst_41 = arith.constant dense<0.000000e+00> : vector<256x64xf32>
    %81 = tpu.matmul %79, %80, %cst_41 {dimension_numbers = #tpu.dot_dimension_numbers<[1], [0], [0], [1], [0, 0, 1, 1], [], []>} : vector<256x64xf32>, vector<64x64xf32>, vector<256x64xf32> -> vector<256x64xf32>
    %c0_42 = arith.constant 0 : index
    %c0_43 = arith.constant 0 : index
    %82 = vector.load %arg15[%c0_42, %c0_43] : memref<1x64xf32, #tpu.memory_space<vmem>>, vector<1x64xf32>
    %83 = vector.broadcast %82 : vector<1x64xf32> to vector<256x64xf32>
    %84 = arith.addf %81, %83 : vector<256x64xf32>
    %c0_44 = arith.constant 0 : index
    %c0_45 = arith.constant 0 : index
    %85 = vector.load %arg16[%c0_44, %c0_45] : memref<1x64xf32, #tpu.memory_space<vmem>>, vector<1x64xf32>
    %c0_46 = arith.constant 0 : index
    %c0_47 = arith.constant 0 : index
    %86 = vector.load %arg17[%c0_46, %c0_47] : memref<1x64xf32, #tpu.memory_space<vmem>>, vector<1x64xf32>
    %cst_48 = arith.constant dense<0.000000e+00> : vector<256xf32>
    %87 = vector.multi_reduction <add>, %84, %cst_48 [1] : vector<256x64xf32> to vector<256xf32>
    %88 = vector.shape_cast %87 : vector<256xf32> to vector<256x1xf32>
    %cst_49 = arith.constant 6.400000e+01 : f32
    %89 = vector.broadcast %cst_49 : f32 to vector<256x1xf32>
    %90 = arith.divf %88, %89 : vector<256x1xf32>
    %91 = vector.broadcast %90 : vector<256x1xf32> to vector<256x64xf32>
    %92 = arith.subf %84, %91 : vector<256x64xf32>
    %93 = arith.mulf %92, %92 : vector<256x64xf32>
    %cst_50 = arith.constant dense<0.000000e+00> : vector<256xf32>
    %94 = vector.multi_reduction <add>, %93, %cst_50 [1] : vector<256x64xf32> to vector<256xf32>
    %95 = vector.shape_cast %94 : vector<256xf32> to vector<256x1xf32>
    %cst_51 = arith.constant 6.400000e+01 : f32
    %96 = vector.broadcast %cst_51 : f32 to vector<256x1xf32>
    %97 = arith.divf %95, %96 : vector<256x1xf32>
    %cst_52 = arith.constant 9.99999974E-6 : f32
    %98 = vector.broadcast %cst_52 : f32 to vector<256x1xf32>
    %99 = arith.addf %97, %98 : vector<256x1xf32>
    %100 = math.rsqrt %99 : vector<256x1xf32>
    %101 = vector.broadcast %100 : vector<256x1xf32> to vector<256x64xf32>
    %102 = arith.mulf %92, %101 : vector<256x64xf32>
    %103 = vector.broadcast %85 : vector<1x64xf32> to vector<256x64xf32>
    %104 = arith.mulf %102, %103 : vector<256x64xf32>
    %105 = vector.broadcast %86 : vector<1x64xf32> to vector<256x64xf32>
    %106 = arith.addf %104, %105 : vector<256x64xf32>
    %cst_53 = arith.constant 0.000000e+00 : f32
    %107 = vector.broadcast %cst_53 : f32 to vector<256x64xf32>
    %108 = arith.maximumf %106, %107 : vector<256x64xf32>
    %109 = vector.shape_cast %108 : vector<256x64xf32> to vector<8x32x64xf32>
    %c0_54 = arith.constant 0 : index
    %c0_55 = arith.constant 0 : index
    %110 = vector.load %arg18[%c0_54, %c0_55] : memref<1x64xf32, #tpu.memory_space<vmem>>, vector<1x64xf32>
    %111 = vector.shape_cast %110 : vector<1x64xf32> to vector<1x1x64xf32>
    %112 = vector.broadcast %111 : vector<1x1x64xf32> to vector<8x32x64xf32>
    %113 = arith.mulf %109, %112 : vector<8x32x64xf32>
    %cst_56 = arith.constant dense<0.000000e+00> : vector<8x32xf32>
    %114 = vector.multi_reduction <add>, %113, %cst_56 [2] : vector<8x32x64xf32> to vector<8x32xf32>
    %c0_57 = arith.constant 0 : index
    %c0_58 = arith.constant 0 : index
    %115 = memref.load %arg19[%c0_57, %c0_58] : memref<1x1xf32, #tpu.memory_space<smem>>
    %116 = vector.broadcast %115 : f32 to vector<8x32xf32>
    %117 = arith.addf %114, %116 : vector<8x32xf32>
    %c0_59 = arith.constant 0 : index
    %c0_60 = arith.constant 0 : index
    %118 = vector.load %arg20[%c0_59, %c0_60] : memref<8x32xf32, #tpu.memory_space<vmem>>, vector<8x32xf32>
    tpu.vector_store %arg20[%c0_59, %c0_60], %117 {strides = array<i32>} : memref<8x32xf32, #tpu.memory_space<vmem>>, vector<8x32xf32>,
    return
  }
  func.func @transform_0(%arg0: i32) -> (i32, i32) {
    %c0_i32 = arith.constant 0 : i32
    %c0_i32_0 = arith.constant 0 : i32
    return %arg0, %c0_i32 : i32, i32
  }
  func.func @transform_1(%arg0: i32) -> (i32, i32) {
    %c0_i32 = arith.constant 0 : i32
    %c0_i32_0 = arith.constant 0 : i32
    return %arg0, %c0_i32 : i32, i32
  }
  func.func @transform_2(%arg0: i32) -> (i32, i32) {
    %c0_i32 = arith.constant 0 : i32
    %c0_i32_0 = arith.constant 0 : i32
    return %arg0, %c0_i32 : i32, i32
  }
  func.func @transform_3(%arg0: i32) -> (i32, i32) {
    %c0_i32 = arith.constant 0 : i32
    %c0_i32_0 = arith.constant 0 : i32
    %c0_i32_1 = arith.constant 0 : i32
    return %c0_i32, %c0_i32_0 : i32, i32
  }
  func.func @transform_4(%arg0: i32) -> (i32, i32) {
    %c0_i32 = arith.constant 0 : i32
    %c0_i32_0 = arith.constant 0 : i32
    %c0_i32_1 = arith.constant 0 : i32
    return %c0_i32, %c0_i32_0 : i32, i32
  }
  func.func @transform_5(%arg0: i32) -> (i32, i32) {
    %c0_i32 = arith.constant 0 : i32
    %c0_i32_0 = arith.constant 0 : i32
    %c0_i32_1 = arith.constant 0 : i32
    return %c0_i32, %c0_i32_0 : i32, i32
  }
  func.func @transform_6(%arg0: i32) -> (i32, i32) {
    %c0_i32 = arith.constant 0 : i32
    %c0_i32_0 = arith.constant 0 : i32
    %c0_i32_1 = arith.constant 0 : i32
    return %c0_i32, %c0_i32_0 : i32, i32
  }
  func.func @transform_7(%arg0: i32) -> (i32, i32) {
    %c0_i32 = arith.constant 0 : i32
    %c0_i32_0 = arith.constant 0 : i32
    %c0_i32_1 = arith.constant 0 : i32
    return %c0_i32, %c0_i32_0 : i32, i32
  }
  func.func @transform_8(%arg0: i32) -> (i32, i32) {
    %c0_i32 = arith.constant 0 : i32
    %c0_i32_0 = arith.constant 0 : i32
    %c0_i32_1 = arith.constant 0 : i32
    return %c0_i32, %c0_i32_0 : i32, i32
  }
  func.func @transform_9(%arg0: i32) -> (i32, i32) {
    %c0_i32 = arith.constant 0 : i32
    %c0_i32_0 = arith.constant 0 : i32
    %c0_i32_1 = arith.constant 0 : i32
    return %c0_i32, %c0_i32_0 : i32, i32
  }
  func.func @transform_10(%arg0: i32) -> (i32, i32) {
    %c0_i32 = arith.constant 0 : i32
    %c0_i32_0 = arith.constant 0 : i32
    %c0_i32_1 = arith.constant 0 : i32
    return %c0_i32, %c0_i32_0 : i32, i32
  }
  func.func @transform_11(%arg0: i32) -> (i32, i32) {
    %c0_i32 = arith.constant 0 : i32
    %c0_i32_0 = arith.constant 0 : i32
    %c0_i32_1 = arith.constant 0 : i32
    return %c0_i32, %c0_i32_0 : i32, i32
  }
  func.func @transform_12(%arg0: i32) -> (i32, i32) {
    %c0_i32 = arith.constant 0 : i32
    %c0_i32_0 = arith.constant 0 : i32
    %c0_i32_1 = arith.constant 0 : i32
    return %c0_i32, %c0_i32_0 : i32, i32
  }
  func.func @transform_13(%arg0: i32) -> (i32, i32) {
    %c0_i32 = arith.constant 0 : i32
    %c0_i32_0 = arith.constant 0 : i32
    %c0_i32_1 = arith.constant 0 : i32
    return %c0_i32, %c0_i32_0 : i32, i32
  }
  func.func @transform_14(%arg0: i32) -> (i32, i32) {
    %c0_i32 = arith.constant 0 : i32
    %c0_i32_0 = arith.constant 0 : i32
    %c0_i32_1 = arith.constant 0 : i32
    return %c0_i32, %c0_i32_0 : i32, i32
  }
  func.func @transform_15(%arg0: i32) -> (i32, i32) {
    %c0_i32 = arith.constant 0 : i32
    %c0_i32_0 = arith.constant 0 : i32
    %c0_i32_1 = arith.constant 0 : i32
    return %c0_i32, %c0_i32_0 : i32, i32
  }
  func.func @transform_16(%arg0: i32) -> (i32, i32) {
    %c0_i32 = arith.constant 0 : i32
    %c0_i32_0 = arith.constant 0 : i32
    %c0_i32_1 = arith.constant 0 : i32
    return %c0_i32, %c0_i32_0 : i32, i32
  }
  func.func @transform_17(%arg0: i32) -> (i32, i32) {
    %c0_i32 = arith.constant 0 : i32
    %c0_i32_0 = arith.constant 0 : i32
    %c0_i32_1 = arith.constant 0 : i32
    return %c0_i32, %c0_i32_0 : i32, i32
  }
  func.func @transform_18(%arg0: i32) -> (i32, i32) {
    %c0_i32 = arith.constant 0 : i32
    %c0_i32_0 = arith.constant 0 : i32
    %c0_i32_1 = arith.constant 0 : i32
    return %c0_i32, %c0_i32_0 : i32, i32
  }
  func.func @transform_19(%arg0: i32) -> (i32, i32) {
    %c0_i32 = arith.constant 0 : i32
    %c0_i32_0 = arith.constant 0 : i32
    return %arg0, %c0_i32 : i32, i32
  }
}

</mosaic_0001>

<bundles_post_ra>
// kernel: tpu_custom_call.1
= control target key start
LH: loop header
LB: loop body
LE: loop exit
PB: predicated region body
PF: predicated region fallthrough
CT: control target
= control target key end

     0   :  { %s16828_s0 = inlined_call_operand.hbm [shape: f32[8,11], index: 0, kind: input, shape index: {}]   ;;  %s16829_s1 = inlined_call_operand.vmem [shape: f32[8,3], index: 1, kind: input, shape index: {}]   ;;  %s16830_s2 = inlined_call_operand.hbm [shape: f32[8,32], index: 2, kind: input, shape index: {}]   ;;  %s16831_s3 = inlined_call_operand.vmem [shape: f32[1,64], index: 3, kind: input, shape index: {}]   ;;  %s16832_s4 = inlined_call_operand.vmem [shape: f32[11,64], index: 4, kind: input, shape index: {}]   ;;  %s16833_s5 = inlined_call_operand.hbm [shape: f32[3,64], index: 5, kind: input, shape index: {}]   ;;  %s16834_s6 = inlined_call_operand.vmem [shape: f32[1,64], index: 6, kind: input, shape index: {}]   ;;  %s16835_s7 = inlined_call_operand.vmem [shape: f32[1,64], index: 7, kind: input, shape index: {}]   ;;  %s16836_s8 = inlined_call_operand.vmem [shape: f32[1,64], index: 8, kind: input, shape index: {}]   ;;  %s16837_s9 = inlined_call_operand.hbm [shape: f32[64,64], index: 9, kind: input, shape index: {}]   ;;  %s16838_s10 = inlined_call_operand.vmem [shape: f32[1,64], index: 10, kind: input, shape index: {}]   ;;  %s16839_s11 = inlined_call_operand.vmem [shape: f32[1,64], index: 11, kind: input, shape index: {}]   ;;  %s16840_s12 = inlined_call_operand.vmem [shape: f32[1,64], index: 12, kind: input, shape index: {}]   ;;  %s16841_s13 = inlined_call_operand.hbm [shape: f32[64,64], index: 13, kind: input, shape index: {}]   ;;  %s16842_s14 = inlined_call_operand.vmem [shape: f32[1,64], index: 14, kind: input, shape index: {}]   ;;  %s16843_s15 = inlined_call_operand.vmem [shape: f32[1,64], index: 15, kind: input, shape index: {}]   ;;  %s16844_s16 = inlined_call_operand.vmem [shape: f32[1,64], index: 16, kind: input, shape index: {}]   ;;  %s16845_s17 = inlined_call_operand.vmem [shape: f32[1,64], index: 17, kind: input, shape index: {}]   ;;  %s16846_s18 = inlined_call_operand.<no memory space> [shape: f32[1,1], index: 18, kind: input, shape index: {}]   ;;  %s16847_s19 = inlined_call_operand.hbm [shape: f32[8,32], index: 19, kind: output, shape index: {}]  }
   0x1   :  { %17031 = sst [smem:[#allocation75_spill]] %s16828_s0 }
   0x2   :  { %17032 = sst [smem:[#allocation76_spill]] %s16829_s1 }
   0x3   :  { %17033 = sst [smem:[#allocation77_spill]] %s16830_s2 }
   0x4   :  { %17034 = sst [smem:[#allocation78_spill]] %s16831_s3 }
   0x5   :  { %17035 = sst [smem:[#allocation79_spill]] %s16846_s18 }
   0x6   :  { %17036 = sst [smem:[#allocation80_spill]] %s16847_s19 }
   0x7   :  { %25 = vsyncpa [#allocation4], 0 }
   0x8   :  { %26 = vsyncpa [#allocation7], 0 }
   0x9   :  { %27 = vsyncpa [#allocation10], 0  ;;  %s17037_s20 = sld [smem:[#allocation77_spill]] }
   0xf   :  { %s47_s21 = sshll.u32 %s17037_s20, 4  ;;  %s48_s21 = int_to_ptr.hbm [resolvable:$true] %s47_s21 }
  0x10   :  { %28 = vsyncpa [#allocation5], 0  ;;  %s9097_s1 = smov [#allocation6]   ;;  %s78_s24 = sshll.u32 %s16837_s9, 4  ;;  %s79_s24 = int_to_ptr.hbm [resolvable:$true] %s78_s24 }
  0x11   :  { %s49_s22 = sshll.u32 %s9097_s1, 4  ;;  %s9098_s25 = smov [#allocation9]   ;;  %s50_s22 = int_to_ptr.vmem [resolvable:$true] %s49_s22 }
  0x12   :  { %52 = dma.hbm_to_vmem [thread:$0]  %s48_s21, 128, %s50_s22, [#allocation7]  }
  0x13   :  { %s80_s3 = sshll.u32 %s9098_s25, 4  ;;  %s9099_s26 = smov 128   ;;  %s81_s3 = int_to_ptr.vmem [resolvable:$true] %s80_s3 }
  0x14   :  { %s9100_s27 = smov 8   ;;  %s17038_s0 = sld [smem:[#allocation75_spill]] }
  0x15   :  { %86 = dma.hbm_to_vmem [thread:$0]  %s79_s24, 1024, %s81_s3, [#allocation10], %s9099_s26, %s9099_s26, %s9100_s27  }
  0x16   :  { %s9101_s20 = smov [#allocation3]   ;;  %s62_s9 = sshll.u32 %s16833_s5, 4  ;;  %s63_s9 = int_to_ptr.hbm [resolvable:$true] %s62_s9 }
  0x17   :  { %s36_s1 = sshll.u32 %s9101_s20, 4  ;;  %s9102_s21 = smov [#allocation8]   ;;  %s37_s1 = int_to_ptr.vmem [resolvable:$true] %s36_s1 }
  0x18   :  { %s64_s22 = sshll.u32 %s9102_s21, 4  ;;  %s97_s24 = sshll.u32 %s16841_s13, 4  ;;  %s65_s22 = int_to_ptr.vmem [resolvable:$true] %s64_s22  ;;  %s98_s24 = int_to_ptr.hbm [resolvable:$true] %s97_s24 }
  0x19   :  { %67 = dma.hbm_to_vmem [thread:$0]  %s63_s9, 64, %s65_s22, [#allocation7]  }
  0x1a   :  { %s34_s30 = sshll.u32 %s17038_s0, 4  ;;  %s9103_s25 = smov [#allocation11]   ;;  %s35_s30 = int_to_ptr.hbm [resolvable:$true] %s34_s30 }
  0x1b   :  { %39 = dma.hbm_to_vmem [thread:$0]  %s35_s30, 128, %s37_s1, [#allocation4]  }
  0x1c   :  { %s99_s3 = sshll.u32 %s9103_s25, 4  ;;  %s100_s3 = int_to_ptr.vmem [resolvable:$true] %s99_s3 }
  0x1d   :  { %105 = dma.hbm_to_vmem [thread:$0]  %s98_s24, 1024, %s100_s3, [#allocation10], %s9099_s26, %s9099_s26, %s9100_s27  }
  0x1e   :  { %9089 = dma.done.wait [#allocation4], 128  }
  0x1f   :  { %9090 = vsyncadd [#allocation4], 4294967168 }
  0x20   :  { %9091 = dma.done.wait [#allocation7], 192  }
  0x21   :  { %9092 = vsyncadd [#allocation7], 4294967104 }
  0x22   :  { %9093 = dma.done.wait [#allocation10], 2048  }
  0x23   :  { %9094 = vsyncadd [#allocation10], 4294965248  ;;  %v16849_v0 = vlaneseq  ;;  %v9237_v3 = vld [vmem:[#allocation6] sm:$0xff]  ;;  %vm146_vm0 = vcmask 1042432   ;;  %v141_v11 = vld [vmem:[#allocation8] sm:$0x7] }
  0x24   :  { %v268_v4 = vperm.slane %v9237_v3, 1  ;;  %v243_v5 = vperm.slane %v9237_v3, 0  ;;  %v293_v8 = vperm.slane %v9237_v3, 2  ;;  %v318_v9 = vperm.slane %v9237_v3, 3  ;;  %v140_v10 = vld [vmem:[%s16832_s4 + $0x8] sm:$0x7]  ;;  %8395 = vmatpush.msk.msra.mxu0 %vm146_vm0, %v141_v11 }
  0x25   :  { %v9229_v1 = vshrl.u32 %v16849_v0, 7  ;;  %8397 = vmatpush.msk.msra.mxu1 %vm146_vm0, %v140_v10  ;;  %v139_v12 = vld [vmem:[%s16832_s4] sm:$0xff]  ;;  %s17039_s28 = sld [smem:[#allocation76_spill]]  ;;  %vm142_vm1 = vcmask 23552   ;;  %vm170_vm2 = vcmask 89088   ;;  %v343_v15 = vperm.slane %v9237_v3, 4 }
  0x26   :  { %v136_v14 = vld [vmem:[#allocation3] sm:$0xff]  ;;  %v368_v16 = vperm.slane %v9237_v3, 5  ;;  %s17040_s0 = sld [smem:[#allocation78_spill]]  ;;  %v393_v25 = vperm.slane %v9237_v3, 6  ;;  %v9317_v48 = vperm.slane %v9237_v3, 7 }
  0x27   :  { %8627 = vset.pattern.permute.xlu2 %v9229_v1  ;;  %8623 = vset.pattern.permute.xlu0 %v9229_v1  ;;  %v9234_v2 = vadd.s32 16, %v9229_v1  ;;  %v9242_v6 = vadd.s32 8, %v9229_v1  ;;  %v9245_v7 = vadd.s32 24, %v9229_v1  ;;  %v16867_v53 = vmov 2102212464  }
  0x28   :  { %192 = vmatpush.msra.mxu1 %v139_v12  ;;  %v16860_v55 = vmov 920167782   ;;  %v16855_v3 = vmov 1326507024  }
  0x29   :  { %8625 = vset.pattern.permute.xlu1 %v9234_v2  ;;  %8398 = vmatmul.msk.f32.vlgmr.msra.gmra.mxu1 %vm170_vm2, %v136_v14  ;;  %v16851_v14 = vmov 2131351028  }
  0x2b   :  { %v137_v13 = vld [vmem:[%s17039_s28] sm:$0xff] }
  0x2c   :  { %8396 = vmatmul.msk.f32.vlgmr.msra.gmra.mxu0 %vm142_vm1, %v137_v13  ;;  %v9285_v17 = vld [vmem:[%s17040_s0] ss:$0 sm:$0xff] }
  0x2f   :  { %273 = vperm.xlu2 %8627, %v268_v4   ;;  %248 = vperm.xlu0 %8623, %v243_v5  }
  0x31   :  { %260 = vperm.xlu1 %8625, %v243_v5  }
  0x37   :  { %8628 = vset.pattern.permute.xlu2 %v9242_v6  ;;  %8624 = vset.pattern.permute.xlu0 %v9242_v6 }
  0x39   :  { %8626 = vset.pattern.permute.xlu1 %v9245_v7 }
  0x3f   :  { %279 = vperm.xlu2 %8628, %v268_v4   ;;  %254 = vperm.xlu0 %8624, %v243_v5  }
  0x41   :  { %266 = vperm.xlu1 %8626, %v243_v5  }
  0x47   :  { %8630 = vset.pattern.permute.xlu2 %v9245_v7  ;;  %8631 = vset.pattern.permute.xlu0 %v9229_v1 }
  0x49   :  { %8629 = vset.pattern.permute.xlu1 %v9234_v2 }
  0x4f   :  { %291 = vperm.xlu2 %8630, %v268_v4   ;;  %298 = vperm.xlu0 %8631, %v293_v8  }
  0x51   :  { %285 = vperm.xlu1 %8629, %v268_v4  }
  0x57   :  { %8633 = vset.pattern.permute.xlu2 %v9234_v2  ;;  %8636 = vset.pattern.permute.xlu0 %v9242_v6 }
  0x59   :  { %8632 = vset.pattern.permute.xlu1 %v9242_v6 }
  0x5f   :  { %310 = vperm.xlu2 %8633, %v293_v8   ;;  %329 = vperm.xlu0 %8636, %v318_v9  }
  0x61   :  { %304 = vperm.xlu1 %8632, %v293_v8  }
  0x67   :  { %8635 = vset.pattern.permute.xlu2 %v9229_v1  ;;  %8641 = vset.pattern.permute.xlu0 %v9234_v2 }
  0x69   :  { %8634 = vset.pattern.permute.xlu1 %v9245_v7 }
  0x6f   :  { %323 = vperm.xlu2 %8635, %v318_v9   ;;  %360 = vperm.xlu0 %8641, %v343_v15  }
  0x71   :  { %316 = vperm.xlu1 %8634, %v293_v8  }
  0x77   :  { %8638 = vset.pattern.permute.xlu2 %v9245_v7  ;;  %8646 = vset.pattern.permute.xlu0 %v9245_v7 }
  0x79   :  { %8637 = vset.pattern.permute.xlu1 %v9234_v2 }
  0x7f   :  { %341 = vperm.xlu2 %8638, %v318_v9   ;;  %391 = vperm.xlu0 %8646, %v368_v16  }
  0x81   :  { %335 = vperm.xlu1 %8637, %v318_v9  }
  0x87   :  { %8640 = vset.pattern.permute.xlu2 %v9242_v6  ;;  %8651 = vset.pattern.permute.xlu0 %v9229_v1 }
  0x89   :  { %8639 = vset.pattern.permute.xlu1 %v9229_v1  ;;  %v274_v18 = vpop.permute.xlu2 %273 }
  0x8a   :  { %v9288_v19 = vmul.f32 %v9285_v17, %v274_v18 }
  0x8c   :  { %17041 = vst [vmem:[#allocation17_spill] sm:$0xff] %v9288_v19  ;;  %v1098_v22 = vand.u32 2139095040, %v9288_v19 }
  0x8e   :  { %v1099_v24 = vshrl.u32 %v1098_v22, 23 }
  0x8f   :  { %354 = vperm.xlu2 %8640, %v343_v15   ;;  %423 = vperm.xlu0 %8651, %v9317_v48  }
  0x90   :  { %v8411_v28 = vadd.s32 4294967169, %v1099_v24 }
  0x91   :  { %348 = vperm.xlu1 %8639, %v343_v15  }
  0x92   :  { %v1105_v31 = vadd.s32 1, %v8411_v28 }
  0x94   :  { %vm1106_vm3 = vcmp.gt.s32.totalorder %v1105_v31, 0 }
  0x95   :  { %v1107_v38 = vsel %vm1106_vm3, %v1105_v31, 0 }
  0x96   :  { %v9311_v42 = vand.u32 31, %v1107_v38  ;;  %v9331_v62 = vshrl.u32 %v1107_v38, 5 }
  0x97   :  { %8643 = vset.pattern.permute.xlu2 %v9229_v1  ;;  %8655 = vset.pattern.permute.xlu0 %v9245_v7 }
  0x98   :  { %17044 = vst [vmem:[#allocation20_spill] sm:$0xff] %v9311_v42  ;;  %v9320_v49 = vsub.s32 32, %v9311_v42  ;;  %v1121_v54 = vshll.u32 %v16867_v53, %v9311_v42  ;;  %vm1130_vm11 = vcmp.lt.s32.totalorder %v9331_v62, 4 }
  0x99   :  { %8642 = vset.pattern.permute.xlu1 %v9245_v7  ;;  %v280_v26 = vpop.permute.xlu2 %279  ;;  %17046 = vst [vmem:[#allocation22_spill] sm:$0xff] %v9331_v62 }
  0x9a   :  { %v9299_v29 = vmul.f32 %v9285_v17, %v280_v26  ;;  %17045 = vst [vmem:[#allocation21_spill] sm:$0xff] %v9320_v49  ;;  %v1122_v56 = vshrl.u32 %v16860_v55, %v9320_v49 }
  0x9c   :  { %17042 = vst [vmem:[#allocation18_spill] sm:$0xff] %v9299_v29  ;;  %v1252_v32 = vand.u32 2139095040, %v9299_v29  ;;  %v9346_v10 = vor.u32 %v1122_v56, %v1121_v54 }
  0x9e   :  { %v1253_v36 = vshrl.u32 %v1252_v32, 23  ;;  %17047 = vst [vmem:[#allocation23_spill] sm:$0xff] %v9346_v10 }
  0x9f   :  { %373 = vperm.xlu2 %8643, %v368_v16  }
  0xa0   :  { %v8414_v40 = vadd.s32 4294967169, %v1253_v36 }
  0xa1   :  { %366 = vperm.xlu1 %8642, %v343_v15   ;;  %v249_v20 = vpop.permute.xlu0 %248 }
  0xa2   :  { %v9291_v21 = vmul.f32 %v9285_v17, %v249_v20  ;;  %v1259_v45 = vadd.s32 1, %v8414_v40 }
  0xa3   :  { %v261_v33 = vpop.permute.xlu1 %260 }
  0xa4   :  { %v482_v23 = vand.u32 2139095040, %v9291_v21  ;;  %v9303_v35 = vmul.f32 %v9285_v17, %v261_v33  ;;  %vm1260_vm5 = vcmp.gt.s32.totalorder %v1259_v45, 0  ;;  %v16850_v57 = vand.u32 2147483647, %v9291_v21  ;;  %v5414_v33 = vld [vmem:[#allocation9 + $0x38] sm:$0xff] }
  0xa5   :  { %v1261_v60 = vsel %vm1260_vm5, %v1259_v45, 0  ;;  %5523 = vmatpush.msrb.mxu0 %v5414_v33  ;;  %8591 = vmatpush.msra.mxu2 %v5414_v33 }
  0xa6   :  { %v483_v27 = vshrl.u32 %v482_v23, 23  ;;  %v790_v39 = vand.u32 2139095040, %v9303_v35  ;;  %v9352_v11 = vand.u32 31, %v1261_v60  ;;  %v486_v12 = vand.u32 8388607, %v16850_v57 }
  0xa7   :  { %8645 = vset.pattern.permute.xlu2 %v9234_v2  ;;  %v16853_v23 = vmov 2475754826  }
  0xa8   :  { %v8399_v30 = vadd.s32 4294967169, %v483_v27  ;;  %v791_v44 = vshrl.u32 %v790_v39, 23  ;;  %17048 = vst [vmem:[#allocation24_spill] sm:$0xff] %v9352_v11  ;;  %v1278_v56 = vshll.u32 %v16860_v55, %v9352_v11 }
  0xa9   :  { %8644 = vset.pattern.permute.xlu1 %v9242_v6  ;;  %v292_v37 = vpop.permute.xlu2 %291 }
  0xaa   :  { %v489_v34 = vadd.s32 1, %v8399_v30  ;;  %v9309_v41 = vmul.f32 %v9285_v17, %v292_v37  ;;  %v8405_v50 = vadd.s32 4294967169, %v791_v44  ;;  %v9378_v30 = vsub.s32 32, %v9352_v11 }
  0xab   :  { %v487_v44 = vor.u32 8388608, %v486_v12 }
  0xac   :  { %vm490_vm4 = vcmp.gt.s32.totalorder %v489_v34, 0  ;;  %17043 = vst [vmem:[#allocation19_spill] sm:$0xff] %v9309_v41  ;;  %v1560_v46 = vand.u32 2139095040, %v9309_v41  ;;  %v797_v61 = vadd.s32 1, %v8405_v50  ;;  %v1276_v54 = vshrl.u32 %v16860_v55, %v9378_v30 }
  0xad   :  { %v491_v43 = vsel %vm490_vm4, %v489_v34, 0  ;;  %17050 = vst [vmem:[#allocation26_spill] sm:$0xff] %v9378_v30  ;;  %v9384_v34 = vshrl.u32 %v1261_v60, 5  ;;  %v9425_v12 = vshll.u32 %v487_v44, 8 }
  0xae   :  { %v9314_v47 = vand.u32 31, %v491_v43  ;;  %v1561_v51 = vshrl.u32 %v1560_v46, 23  ;;  %v9357_v13 = vshrl.u32 %v491_v43, 5  ;;  %vm798_vm6 = vcmp.gt.s32.totalorder %v797_v61, 0  ;;  %v5413_v43 = vld [vmem:[#allocation9 + $0x30] sm:$0xff] }
  0xaf   :  { %385 = vperm.xlu2 %8645, %v368_v16   ;;  %17051 = vst [vmem:[#allocation27_spill] sm:$0xff] %v9384_v34  ;;  %v9390_v37 = vsel %vm798_vm6, %v797_v61, 0  ;;  %5524 = vmatpush.msrb.mxu0 %v5413_v43  ;;  %vm1284_vm13 = vcmp.lt.s32.totalorder %v9384_v34, 4  ;;  %v9454_v44 = vand.u32 65535, %v9425_v12 }
  0xb0   :  { %v9324_v52 = vsub.s32 32, %v9314_v47  ;;  %v8420_v63 = vadd.s32 4294967169, %v1561_v51  ;;  %v499_v24 = vshll.u32 %v16853_v23, %v9314_v47  ;;  %v502_v31 = vshll.u32 %v16851_v14, %v9314_v47  ;;  %8592 = vmatpush.msra.mxu2 %v5413_v43  ;;  %v5409_v43 = vld [vmem:[#allocation9 + $0x10] sm:$0xff] }
  0xb1   :  { %379 = vperm.xlu1 %8644, %v368_v16   ;;  %v255_v58 = vpop.permute.xlu0 %254  ;;  %v508_v16 = vshll.u32 %v16860_v55, %v9314_v47  ;;  %v505_v32 = vshll.u32 %v16867_v53, %v9314_v47  ;;  %vm514_vm7 = vcmp.lt.s32.totalorder %v9357_v13, 4  ;;  %v1275_v51 = vshll.u32 %v16867_v53, %v9352_v11 }
  0xb2   :  { %v509_v4 = vshrl.u32 %v16855_v3, %v9324_v52  ;;  %v9341_v5 = vmul.f32 %v9285_v17, %v255_v58  ;;  %v500_v15 = vshrl.u32 %v16851_v14, %v9324_v52  ;;  %v503_v18 = vshrl.u32 %v16867_v53, %v9324_v52 }
  0xb3   :  { %v267_v59 = vpop.permute.xlu1 %266  ;;  %v506_v20 = vshrl.u32 %v16860_v55, %v9324_v52  ;;  %v1567_v22 = vadd.s32 1, %v8420_v63  ;;  %v1279_v58 = vshrl.u32 %v16855_v3, %v9378_v30  ;;  %vm511_vm9 = vcmp.lt.s32.totalorder %v9357_v13, 1 }
  0xb4   :  { %v9344_v8 = vmul.f32 %v9285_v17, %v267_v59  ;;  %v636_v26 = vand.u32 2139095040, %v9341_v5  ;;  %v9386_v36 = vor.u32 %v500_v15, %v499_v24  ;;  %v9392_v38 = vor.u32 %v503_v18, %v502_v31  ;;  %v5412_v59 = vld [vmem:[#allocation9 + $0x28] sm:$0xff] }
  0xb5   :  { %v9394_v39 = vor.u32 %v506_v20, %v505_v32  ;;  %vm1568_vm8 = vcmp.gt.s32.totalorder %v1567_v22, 0  ;;  %vm513_vm10 = vcmp.lt.s32.totalorder %v9357_v13, 3  ;;  %v9412_v60 = vand.u32 31, %v9390_v37  ;;  %5525 = vmatpush.msrb.mxu0 %v5412_v59  ;;  %8593 = vmatpush.msra.mxu2 %v5412_v59 }
  0xb6   :  { %v944_v27 = vand.u32 2139095040, %v9344_v8  ;;  %v637_v46 = vshrl.u32 %v636_v26, 23  ;;  %v1569_v61 = vsel %vm1568_vm8, %v1567_v22, 0  ;;  %v497_v63 = vshrl.u32 %v16853_v23, %v9324_v52 }
  0xb7   :  { %8648 = vset.pattern.permute.xlu2 %v9242_v6  ;;  %v9427_v18 = vor.u32 %v1276_v54, %v1275_v51  ;;  %v16857_v20 = vmov 683565275   ;;  %v9431_v24 = vand.u32 31, %v1569_v61  ;;  %vm512_vm12 = vcmp.lt.s32.totalorder %v9357_v13, 2 }
  0xb8   :  { %v945_v50 = vshrl.u32 %v944_v27, 23  ;;  %v8402_v15 = vadd.s32 4294967169, %v637_v46  ;;  %v496_v22 = vshll.u32 %v16857_v20, %v9314_v47  ;;  %v1280_v26 = vor.u32 %v1279_v58, %v1278_v56  ;;  %v5408_v56 = vld [vmem:[#allocation9 + $0x8] sm:$0xff] }
  0xb9   :  { %8647 = vset.pattern.permute.xlu1 %v9229_v1  ;;  %v9336_v1 = vshll.u32 %v16860_v55, %v9311_v42  ;;  %v311_v9 = vpop.permute.xlu2 %310  ;;  %17052 = vst [vmem:[#allocation28_spill] sm:$0xff] %v9427_v18  ;;  %v9436_v27 = vsub.s32 32, %v9412_v60  ;;  %v9445_v47 = vsel %vm1130_vm11, %v9346_v10, 920167782  ;;  %v9459_v51 = vsel %vm1284_vm13, %v9427_v18, 920167782 }
  0xba   :  { %17053 = vst [vmem:[#allocation29_spill] sm:$0xff] %v9431_v24  ;;  %v9451_v33 = vor.u32 %v497_v63, %v496_v22  ;;  %v9465_v54 = vsub.s32 32, %v9431_v24  ;;  %v9471_v59 = vsel %vm1284_vm13, %v1280_v26, 1326507024  ;;  %v9474_v63 = vshrl.u32 %v9390_v37, 5 }
  0xbb   :  { %17054 = vst [vmem:[#allocation30_spill] sm:$0xff] %v9445_v47  ;;  %v817_v22 = vshrl.u32 %v16855_v3, %v9436_v27  ;;  %v1583_v26 = vshll.u32 %v16867_v53, %v9431_v24 }
  0xbc   :  { %17056 = vst [vmem:[#allocation32_spill] sm:$0xff] %v9459_v51  ;;  %vm822_vm1 = vcmp.lt.s32.totalorder %v9474_v63, 4 }
  0xbd   :  { %17057 = vst [vmem:[#allocation33_spill] sm:$0xff] %v9465_v54 }
  0xbe   :  { %17058 = vst [vmem:[#allocation34_spill] sm:$0xff] %v9471_v59 }
  0xbf   :  { %404 = vperm.xlu2 %8648, %v393_v25  }
  0xc1   :  { %398 = vperm.xlu1 %8647, %v393_v25  }
  0xc7   :  { %8650 = vset.pattern.permute.xlu2 %v9245_v7 }
  0xc9   :  { %8649 = vset.pattern.permute.xlu1 %v9234_v2  ;;  %v324_v30 = vpop.permute.xlu2 %323 }
  0xcf   :  { %416 = vperm.xlu2 %8650, %v393_v25  }
  0xd1   :  { %410 = vperm.xlu1 %8649, %v393_v25   ;;  %v510_v25 = vor.u32 %v509_v4, %v508_v16  ;;  %v8408_v16 = vadd.s32 4294967169, %v945_v50  ;;  %v299_v50 = vpop.permute.xlu0 %298 }
  0xd2   :  { %v9487_v37 = vmul.f32 %v9285_v17, %v299_v50  ;;  %v1586_v50 = vshll.u32 %v16860_v55, %v9431_v24 }
  0xd3   :  { %v524_v45 = vsel %vm514_vm7, %v510_v25, 1326507024  ;;  %v5410_v25 = vld [vmem:[#allocation9 + $0x18] sm:$0xff]  ;;  %v951_v46 = vadd.s32 1, %v8408_v16  ;;  %v520_v16 = vsel %vm514_vm7, %v9394_v39, 920167782 }
  0xd4   :  { %v525_v4 = vsel %vm513_vm10, %v9394_v39, %v524_v45  ;;  %v643_v45 = vadd.s32 1, %v8402_v15  ;;  %17059 = vst [vmem:[#allocation35_spill] sm:$0xff] %v9487_v37  ;;  %v1714_v57 = vand.u32 2139095040, %v9487_v37  ;;  %v521_v14 = vsel %vm513_vm10, %v9392_v38, %v520_v16 }
  0xd5   :  { %vm952_vm15 = vcmp.gt.s32.totalorder %v951_v46, 0 }
  0xd6   :  { %vm644_vm14 = vcmp.gt.s32.totalorder %v643_v45, 0  ;;  %v953_v0 = vsel %vm952_vm15, %v951_v46, 0 }
  0xd7   :  { %8653 = vset.pattern.permute.xlu2 %v9234_v2  ;;  %v9350_v2 = vshrl.u32 %v16855_v3, %v9320_v49 }
  0xd9   :  { %8652 = vset.pattern.permute.xlu1 %v9242_v6  ;;  %v9369_v6 = vmul.f32 %v9285_v17, %v311_v9  ;;  %v1126_v28 = vor.u32 %v9350_v2, %v9336_v1  ;;  %v523_v1 = vsel %vm511_vm9, %v9386_v36, %v9392_v38  ;;  %v5411_v2 = vld [vmem:[#allocation9 + $0x20] sm:$0xff] }
  0xda   :  { %5526 = vmatpush.msrb.mxu0 %v5411_v2  ;;  %8594 = vmatpush.msra.mxu2 %v5411_v2  ;;  %v9440_v31 = vsel %vm512_vm12, %v523_v1, %v525_v4  ;;  %v813_v1 = vshll.u32 %v16867_v53, %v9412_v60  ;;  %v814_v4 = vshrl.u32 %v16860_v55, %v9436_v27 }
  0xdb   :  { %17049 = vst [vmem:[#allocation25_spill] sm:$0xff] %v9369_v6  ;;  %v2022_v40 = vand.u32 2139095040, %v9369_v6  ;;  %v9449_v32 = vsel %vm1130_vm11, %v1126_v28, 1326507024  ;;  %v9462_v28 = vshrl.u32 %v9425_v12, 16  ;;  %v16859_v58 = vshrl.u32 %v9440_v31, 16 }
  0xdc   :  { %5527 = vmatpush.msrb.mxu0 %v5410_v25  ;;  %8595 = vmatpush.msra.mxu2 %v5410_v25  ;;  %17055 = vst [vmem:[#allocation31_spill] sm:$0xff] %v9449_v32  ;;  %v816_v2 = vshll.u32 %v16860_v55, %v9412_v60  ;;  %v9494_v25 = vshrl.u32 %v1569_v61, 5  ;;  %v9505_v39 = vor.u32 %v814_v4, %v813_v1 }
  0xdd   :  { %v2023_v9 = vshrl.u32 %v2022_v40, 23  ;;  %v1587_v61 = vshrl.u32 %v16855_v3, %v9465_v54  ;;  %v495_v1 = vshrl.u32 %v16857_v20, %v9324_v52 }
  0xde   :  { %5528 = vmatpush.msrb.mxu0 %v5409_v43  ;;  %8596 = vmatpush.msra.mxu2 %v5409_v43  ;;  %17060 = vst [vmem:[#allocation36_spill] sm:$0xff] %v9494_v25  ;;  %v9503_v43 = vmul.u32 %v16859_v58, %v9454_v44  ;;  %v818_v23 = vor.u32 %v817_v22, %v816_v2  ;;  %vm16935_vm2 = vcmp.lt.s32.totalorder %v9494_v25, 4  ;;  %v9529_v2 = vand.u32 31, %v953_v0 }
  0xdf   :  { %435 = vperm.xlu2 %8653, %v9317_v48   ;;  %v8429_v40 = vadd.s32 4294967169, %v2023_v9  ;;  %v5407_v9 = vld [vmem:[#allocation9] sm:$0xff]  ;;  %v1588_v3 = vor.u32 %v1587_v61, %v1586_v50  ;;  %v9534_v52 = vsel %vm822_vm1, %v9505_v39, 920167782 }
  0xe0   :  { %5529 = vmatpush.msrb.mxu0 %v5408_v56  ;;  %8597 = vmatpush.msra.mxu2 %v5408_v56  ;;  %v530_v56 = vand.u32 65535, %v9440_v31  ;;  %v536_v46 = vshll.u32 %v9503_v43, 16 }
  0xe1   :  { %429 = vperm.xlu1 %8652, %v9317_v48   ;;  %v2029_v15 = vadd.s32 1, %v8429_v40  ;;  %v1584_v40 = vshrl.u32 %v16860_v55, %v9465_v54  ;;  %v16869_v55 = vmov 0  }
  0xe2   :  { %5530 = vmatpush.msrb.mxu0 %v5407_v9  ;;  %8598 = vmatpush.msra.mxu2 %v5407_v9  ;;  %v645_v9 = vsel %vm644_vm14, %v643_v45, 0  ;;  %v516_v45 = vsel %vm514_vm7, %v9392_v38, 2102212464  ;;  %v532_v20 = vmul.u32 %v530_v56, %v9454_v44  ;;  %v9538_v38 = vmul.u32 %v530_v56, %v9462_v28 }
  0xe3   :  { %vm2030_vm0 = vcmp.gt.s32.totalorder %v2029_v15, 0  ;;  %v9519_v4 = vor.u32 %v1584_v40, %v1583_v26  ;;  %v9527_v16 = vand.u32 31, %v645_v9  ;;  %v1715_v26 = vshrl.u32 %v1714_v57, 23  ;;  %v286_v40 = vpop.permute.xlu1 %285 }
  0xe4   :  { %v2031_v22 = vsel %vm2030_vm0, %v2029_v15, 0  ;;  %v9547_v15 = vsel %vm511_vm9, %v495_v1, %v9451_v33  ;;  %v9552_v50 = vsel %vm513_vm10, %v9386_v36, %v516_v45  ;;  %vm540_vm3 = vc.u32 %v532_v20, %v536_v46 }
  0xe5   :  { %17061 = vst [vmem:[#allocation37_spill] sm:$0xff] %v9519_v4  ;;  %v9559_v61 = vsel %vm16935_vm2, %v9519_v4, 920167782  ;;  %v542_v56 = vadd.s32 %v536_v46, %v532_v20  ;;  %v9568_v1 = vsub.s32 32, %v9527_v16  ;;  %v9578_v45 = vshrl.u32 %v953_v0, 5 }
  0xe6   :  { %17062 = vst [vmem:[#allocation38_spill] sm:$0xff] %v9559_v61  ;;  %v8423_v58 = vadd.s32 4294967169, %v1715_v26  ;;  %v538_v20 = vshll.u32 %v9538_v38, 16  ;;  %v967_v46 = vshll.u32 %v16867_v53, %v9529_v2  ;;  %v541_v6 = vsel %vm540_vm3, 1, %v16869_v55 }
  0xe7   :  { %17066 = vst [vmem:[#allocation42_spill] sm:$0xff] %v9578_v45  ;;  %v17069_v0 = vshrl.u32 %v9440_v31, 16  ;;  %vm976_vm6 = vcmp.lt.s32.totalorder %v9578_v45, 4  ;;  %v9609_v18 = vshrl.u32 %v2031_v22, 5 }
  0xe8   :  { %vm544_vm4 = vc.u32 %v542_v56, %v538_v20  ;;  %v1721_v24 = vadd.s32 1, %v8423_v58  ;;  %v17071_v56 = vmov 0  }
  0xe9   :  { %8654 = vset.pattern.permute.xlu1 %v9245_v7  ;;  %v519_v7 = vsel %vm511_vm9, %v9451_v33, %v9386_v36  ;;  %v9565_v33 = vsel %vm16935_vm2, %v1588_v3, 1326507024  ;;  %v9571_v36 = vsub.s32 32, %v9529_v2  ;;  %v659_v3 = vshll.u32 %v16867_v53, %v9527_v16  ;;  %17072 = vst [vmem:[#allocation44_spill] sm:$0xff] %v9609_v18 }
  0xea   :  { %v522_v57 = vsel %vm512_vm12, %v519_v7, %v521_v14  ;;  %17064 = vst [vmem:[#allocation40_spill] sm:$0xff] %v9565_v33  ;;  %v9574_v14 = vmul.f32 %v9285_v17, %v286_v40  ;;  %v9576_v7 = vshrl.u32 %v645_v9, 5  ;;  %v17067_v40 = vmov 920167782  }
  0xeb   :  { %v553_v37 = vshrl.u32 %v522_v57, 16  ;;  %v970_v61 = vshll.u32 %v17067_v40, %v9529_v2  ;;  %v535_v26 = vmul.u32 %v17069_v0, %v9462_v28  ;;  %v660_v4 = vshrl.u32 %v17067_v40, %v9568_v1 }
  0xec   :  { %17065 = vst [vmem:[#allocation41_spill] sm:$0xff] %v9574_v14  ;;  %v17070_v53 = vmov 1326507024   ;;  %v968_v55 = vshrl.u32 %v17067_v40, %v9571_v36  ;;  %v1406_v25 = vand.u32 2139095040, %v9574_v14  ;;  %v552_v51 = vand.u32 65535, %v522_v57 }
  0xed   :  { %v663_v33 = vshrl.u32 %v17070_v53, %v9568_v1  ;;  %v971_v54 = vshrl.u32 %v17070_v53, %v9571_v36  ;;  %v543_v41 = vadd.s32 %v541_v6, %v535_v26  ;;  %v662_v31 = vshll.u32 %v17067_v40, %v9527_v16 }
  0xee   :  { %vm668_vm5 = vcmp.lt.s32.totalorder %v9576_v7, 4  ;;  %v545_v20 = vsel %vm544_vm4, 1, %v17071_v56  ;;  %v555_v0 = vmul.u32 %v553_v37, %v9454_v44  ;;  %v17073_v14 = vmov 2102212464  }
  0xef   :  { %v9615_v58 = vor.u32 %v660_v4, %v659_v3  ;;  %v664_v57 = vor.u32 %v663_v33, %v662_v31  ;;  %v9617_v26 = vor.u32 %v968_v55, %v967_v46  ;;  %v1407_v34 = vshrl.u32 %v1406_v25, 23 }
  0xf0   :  { %v972_v11 = vor.u32 %v971_v54, %v970_v61  ;;  %vm1722_vm7 = vcmp.gt.s32.totalorder %v1721_v24, 0  ;;  %v547_v29 = vadd.s32 %v545_v20, %v543_v41  ;;  %v556_v47 = vmul.u32 %v552_v51, %v9462_v28  ;;  %v330_v20 = vpop.permute.xlu0 %329 }
  0xf1   :  { %441 = vperm.xlu1 %8654, %v9317_v48   ;;  %v9542_v48 = vsel %vm822_vm1, %v818_v23, 1326507024  ;;  %v9561_v23 = vand.u32 31, %v2031_v22  ;;  %17074 = vst [vmem:[#allocation45_spill] sm:$0xff] %v9617_v26  ;;  %v554_v32 = vmul.u32 %v552_v51, %v9454_v44  ;;  %v558_v4 = vshll.u32 %v555_v0, 16 }
  0xf2   :  { %vm16927_vm8 = vcmp.lt.s32.totalorder %v9609_v18, 4  ;;  %v9629_v55 = vmul.f32 %v9285_v17, %v324_v30  ;;  %v537_v41 = vshrl.u32 %v9503_v43, 16  ;;  %v1723_v54 = vsel %vm1722_vm7, %v1721_v24, 0 }
  0xf3   :  { %17063 = vst [vmem:[#allocation39_spill] sm:$0xff] %v9561_v23  ;;  %v9589_v9 = vsub.s32 32, %v9561_v23  ;;  %v2045_v59 = vshll.u32 %v17073_v14, %v9561_v23  ;;  %v2048_v22 = vshll.u32 %v17067_v40, %v9561_v23  ;;  %v8417_v25 = vadd.s32 4294967169, %v1407_v34 }
  0xf4   :  { %17076 = vst [vmem:[#allocation47_spill] sm:$0xff] %v9629_v55  ;;  %vm562_vm9 = vc.u32 %v554_v32, %v558_v4  ;;  %v564_v61 = vadd.s32 %v558_v4, %v554_v32  ;;  %v548_v33 = vadd.s32 %v547_v29, %v537_v41  ;;  %v557_v46 = vmul.u32 %v553_v37, %v9462_v28 }
  0xf5   :  { %17068 = vst [vmem:[#allocation43_spill] sm:$0xff] %v9589_v9  ;;  %v2046_v6 = vshrl.u32 %v17067_v40, %v9589_v9  ;;  %v2049_v10 = vshrl.u32 %v17070_v53, %v9589_v9  ;;  %v560_v31 = vshll.u32 %v556_v47, 16  ;;  %v563_v44 = vsel %vm562_vm9, 1, %v17071_v56 }
  0xf6   :  { %v9637_v51 = vsel %vm668_vm5, %v9615_v58, 920167782  ;;  %v678_v30 = vsel %vm668_vm5, %v664_v57, 1326507024  ;;  %v9644_v34 = vsel %vm976_vm6, %v9617_v26, 920167782  ;;  %v565_v28 = vadd.s32 %v563_v44, %v557_v46  ;;  %v305_v57 = vpop.permute.xlu1 %304 }
  0xf7   :  { %v9625_v3 = vor.u32 %v2046_v6, %v2045_v59  ;;  %17077 = vst [vmem:[#allocation48_spill] sm:$0xff] %v9644_v34  ;;  %v2050_v24 = vor.u32 %v2049_v10, %v2048_v22  ;;  %v9648_v29 = vsel %vm976_vm6, %v972_v11, 1326507024  ;;  %v539_v32 = vshrl.u32 %v9538_v38, 16 }
  0xf8   :  { %17078 = vst [vmem:[#allocation49_spill] sm:$0xff] %v9648_v29  ;;  %vm566_vm10 = vc.u32 %v564_v61, %v560_v31  ;;  %v9651_v59 = vand.u32 31, %v1723_v54  ;;  %v1413_v37 = vadd.s32 1, %v8417_v25  ;;  %v2330_v43 = vand.u32 2139095040, %v9629_v55 }
  0xf9   :  { %17075 = vst [vmem:[#allocation46_spill] sm:$0xff] %v9625_v3  ;;  %v567_v6 = vsel %vm566_vm10, 1, %v17071_v56  ;;  %v9658_v10 = vsel %vm16927_vm8, %v9625_v3, 920167782  ;;  %v9660_v11 = vadd.s32 %v548_v33, %v539_v32  ;;  %v559_v22 = vshrl.u32 %v555_v0, 16 }
  0xfa   :  { %17079 = vst [vmem:[#allocation50_spill] sm:$0xff] %v9651_v59  ;;  %v569_v38 = vadd.s32 %v567_v6, %v565_v28  ;;  %v9664_v4 = vsel %vm16927_vm8, %v2050_v24, 1326507024  ;;  %v9666_v41 = vshrl.u32 %v1723_v54, 5  ;;  %v518_v25 = vsel %vm512_vm12, %v9547_v15, %v9552_v50 }
  0xfb   :  { %17080 = vst [vmem:[#allocation51_spill] sm:$0xff] %v9658_v10  ;;  %v16891_v46 = vand.u32 2147483647, %v9341_v5  ;;  %v9674_v44 = vmul.f32 %v9285_v17, %v330_v20  ;;  %v561_v33 = vshrl.u32 %v556_v47, 16  ;;  %v9676_v32 = vadd.s32 %v564_v61, %v560_v31 }
  0xfc   :  { %17081 = vst [vmem:[#allocation52_spill] sm:$0xff] %v9664_v4  ;;  %v570_v0 = vadd.s32 %v569_v38, %v559_v22  ;;  %v9679_v28 = vsub.s32 32, %v9651_v59  ;;  %vm1414_vm14 = vcmp.gt.s32.totalorder %v1413_v37, 0  ;;  %v2331_v54 = vshrl.u32 %v2330_v43, 23 }
  0xfd   :  { %17082 = vst [vmem:[#allocation53_spill] sm:$0xff] %v9666_v41  ;;  %v9682_v24 = vmul.f32 %v9285_v17, %v305_v57  ;;  %vm574_vm12 = vc.u32 %v9660_v11, %v9676_v32  ;;  %v640_v13 = vand.u32 8388607, %v16891_v46  ;;  %v17086_v47 = vmov 2475754826  }
  0xfe   :  { %17083 = vst [vmem:[#allocation54_spill] sm:$0xff] %v9674_v44  ;;  %v571_v6 = vadd.s32 %v570_v0, %v561_v33  ;;  %v651_v15 = vshrl.u32 %v17086_v47, %v9568_v1  ;;  %v653_v50 = vshll.u32 %v17086_v47, %v9527_v16  ;;  %v17087_v61 = vmov 2131351028  }
  0xff   :  { %17084 = vst [vmem:[#allocation55_spill] sm:$0xff] %v9679_v28  ;;  %v654_v31 = vshrl.u32 %v17087_v61, %v9568_v1  ;;  %v656_v43 = vshll.u32 %v17087_v61, %v9527_v16  ;;  %v657_v20 = vshrl.u32 %v17073_v14, %v9568_v1  ;;  %v1737_v57 = vshll.u32 %v17073_v14, %v9651_v59 }
 0x100   :  { %17085 = vst [vmem:[#allocation56_spill] sm:$0xff] %v9682_v24  ;;  %v1740_v22 = vshll.u32 %v17067_v40, %v9651_v59  ;;  %v575_v38 = vadd.s32 1, %v571_v6  ;;  %v17088_v33 = vmov 683565275   ;;  %v8435_v46 = vadd.s32 4294967169, %v2331_v54 }
 0x101   :  { %v650_v0 = vshll.u32 %v17088_v33, %v9527_v16  ;;  %v572_v55 = vmul.u32 %v9425_v12, %v518_v25  ;;  %v9705_v10 = vor.u32 %v654_v31, %v653_v50  ;;  %v9707_v3 = vor.u32 %v657_v20, %v656_v43 }
 0x102   :  { %v1738_v4 = vshrl.u32 %v17067_v40, %v9679_v28  ;;  %v1415_v18 = vsel %vm1414_vm14, %v1413_v37, 0  ;;  %v576_v9 = vsel %vm574_vm12, %v575_v38, %v571_v6  ;;  %vm16929_vm15 = vcmp.lt.s32.totalorder %v9666_v41, 4 }
 0x103   :  { %v9715_v23 = vor.u32 %v651_v15, %v650_v0  ;;  %v577_v16 = vadd.s32 %v576_v9, %v572_v55  ;;  %v641_v54 = vor.u32 8388608, %v640_v13  ;;  %vm667_vm0 = vcmp.lt.s32.totalorder %v9576_v7, 3 }
 0x104   :  { %v1741_v12 = vshrl.u32 %v17070_v53, %v9679_v28  ;;  %v2484_v25 = vand.u32 2139095040, %v9674_v44  ;;  %vm665_vm3 = vcmp.lt.s32.totalorder %v9576_v7, 1  ;;  %v679_v37 = vsel %vm667_vm0, %v9615_v58, %v678_v30 }
 0x105   :  { %v9726_v6 = vand.u32 31, %v1415_v18  ;;  %v1868_v15 = vand.u32 2139095040, %v9682_v24  ;;  %v578_v50 = vadd.s32 536870912, %v577_v16  ;;  %v677_v9 = vsel %vm665_vm3, %v9705_v10, %v9707_v3 }
 0x106   :  { %v9733_v55 = vor.u32 %v1738_v4, %v1737_v57  ;;  %v2337_v13 = vadd.s32 1, %v8435_v46  ;;  %vm666_vm4 = vcmp.lt.s32.totalorder %v9576_v7, 2  ;;  %v673_v58 = vsel %vm665_vm3, %v9715_v23, %v9705_v10 }
 0x107   :  { %17089 = vst [vmem:[#allocation57_spill] sm:$0xff] %v9726_v6  ;;  %v9740_v30 = vshrl.u32 %v578_v50, 30  ;;  %v675_v31 = vsel %vm667_vm0, %v9707_v3, %v9637_v51  ;;  %v680_v43 = vsel %vm666_vm4, %v677_v9, %v679_v37  ;;  %v9748_v4 = vshll.u32 %v641_v54, 8 }
 0x108   :  { %17090 = vst [vmem:[#allocation58_spill] sm:$0xff] %v9733_v55  ;;  %v1742_v46 = vor.u32 %v1741_v12, %v1740_v22  ;;  %v2485_v20 = vshrl.u32 %v2484_v25, 23  ;;  %v684_v57 = vand.u32 65535, %v680_v43  ;;  %v685_v38 = vshrl.u32 %v680_v43, 16 }
 0x109   :  { %v9750_v0 = vshrl.u32 %v1415_v18, 5  ;;  %v1869_v44 = vshrl.u32 %v1868_v15, 23  ;;  %v580_v50 = vshll.u32 %v9740_v30, 30  ;;  %v682_v24 = vand.u32 65535, %v9748_v4 }
 0x10a   :  { %v9755_v28 = vsub.s32 32, %v9726_v6  ;;  %v9759_v51 = vshll.u32 %v17073_v14, %v9726_v6  ;;  %v676_v22 = vsel %vm666_vm4, %v673_v58, %v675_v31  ;;  %v683_v54 = vshrl.u32 %v9748_v4, 16 }
 0x10b   :  { %v9767_v18 = vsel %vm16929_vm15, %v9733_v55, 920167782  ;;  %v9771_v12 = vshll.u32 %v17067_v40, %v9726_v6  ;;  %v581_v25 = vsub.s32 %v577_v16, %v580_v50  ;;  %v687_v37 = vmul.u32 %v685_v38, %v682_v24 }
 0x10c   :  { %17091 = vst [vmem:[#allocation59_spill] sm:$0xff] %v9755_v28  ;;  %v9775_v15 = vsel %vm16929_vm15, %v1742_v46, 1326507024  ;;  %vm2338_vm7 = vcmp.gt.s32.totalorder %v2337_v13, 0  ;;  %v8438_v9 = vadd.s32 4294967169, %v2485_v20  ;;  %v9777_v58 = vmul.u32 %v684_v57, %v683_v54 }
 0x10d   :  { %17092 = vst [vmem:[#allocation60_spill] sm:$0xff] %v9767_v18  ;;  %vm582_vm9 = vcmp.lt.s32.totalorder %v581_v25, 0  ;;  %v583_v31 = vsub.s32 0, %v581_v25  ;;  %v706_v43 = vand.u32 65535, %v676_v22  ;;  %v707_v59 = vshrl.u32 %v676_v22, 16 }
 0x10e   :  { %17093 = vst [vmem:[#allocation61_spill] sm:$0xff] %v9775_v15  ;;  %v9781_v18 = vshrl.u32 %v17067_v40, %v9755_v28  ;;  %v9785_v16 = vshrl.u32 %v17070_v53, %v9755_v28  ;;  %v686_v50 = vmul.u32 %v684_v57, %v682_v24  ;;  %v690_v55 = vshll.u32 %v687_v37, 16 }
 0x10f   :  { %v2339_v46 = vsel %vm2338_vm7, %v2337_v13, 0  ;;  %v9787_v15 = vadd.s32 4294967169, %v1869_v44  ;;  %v584_v20 = vsel %vm582_vm9, %v583_v31, %v581_v25  ;;  %v689_v41 = vmul.u32 %v685_v38, %v683_v54 }
 0x110   :  { %v585_v6 = vclz %v584_v20  ;;  %v692_v62 = vshll.u32 %v9777_v58, 16  ;;  %vm694_vm10 = vc.u32 %v686_v50, %v690_v55  ;;  %v696_v22 = vadd.s32 %v690_v55, %v686_v50 }
 0x111   :  { %v9790_v49 = vshrl.u32 %v2339_v46, 5  ;;  %v695_v42 = vsel %vm694_vm10, 1, %v17071_v56  ;;  %v709_v19 = vmul.u32 %v707_v59, %v682_v24  ;;  %v710_v26 = vmul.u32 %v706_v43, %v683_v54 }
 0x112   :  { %v573_v57 = vadd.s32 %v9676_v32, %v9660_v11  ;;  %v8400_v28 = vadd.s32 4294967294, %v585_v6  ;;  %v697_v13 = vadd.s32 %v695_v42, %v689_v41  ;;  %vm698_vm14 = vc.u32 %v696_v22, %v692_v62 }
 0x113   :  { %17094 = vst [vmem:[#allocation62_spill] sm:$0xff] %v9790_v49  ;;  %v649_v44 = vshrl.u32 %v17088_v33, %v9568_v1  ;;  %v699_v38 = vsel %vm698_vm14, 1, %v17071_v56  ;;  %v708_v31 = vmul.u32 %v706_v43, %v682_v24  ;;  %v712_v20 = vshll.u32 %v709_v19, 16 }
 0x114   :  { %vm8401_vm12 = vcmp.lt.s32.totalorder %v8400_v28, 0  ;;  %v670_v55 = vsel %vm668_vm5, %v9707_v3, 2102212464  ;;  %v691_v50 = vshrl.u32 %v687_v37, 16  ;;  %v701_v29 = vadd.s32 %v699_v38, %v697_v13 }
 0x115   :  { %v588_v34 = vsel %vm8401_vm12, 0, %v8400_v28  ;;  %v714_v45 = vshll.u32 %v710_v26, 16  ;;  %vm716_vm7 = vc.u32 %v708_v31, %v712_v20  ;;  %v718_v11 = vadd.s32 %v712_v20, %v708_v31  ;;  %v194_v31 = vpop.f32.mrf.mxu1 }
 0x116   :  { %v589_v42 = vsub.s32 32, %v588_v34  ;;  %v593_v62 = vsub.s32 4294967266, %v588_v34  ;;  %v669_v1 = vsel %vm665_vm3, %v649_v44, %v9715_v23  ;;  %v711_v41 = vmul.u32 %v707_v59, %v683_v54 }
 0x117   :  { %v671_v32 = vsel %vm667_vm0, %v9705_v10, %v670_v55  ;;  %v702_v24 = vadd.s32 %v701_v29, %v691_v50  ;;  %v717_v3 = vsel %vm716_vm7, 1, %v17071_v56  ;;  %vm720_vm5 = vc.u32 %v718_v11, %v714_v45  ;;  %v167_v29 = vpop.f32.mrf.mxu0 }
 0x118   :  { %v590_v6 = vshll.u32 %v581_v25, %v588_v34  ;;  %v591_v28 = vshrl.u32 %v573_v57, %v589_v42  ;;  %v594_v37 = vadd.s32 127, %v593_v62  ;;  %v719_v43 = vadd.s32 %v717_v3, %v711_v41  ;;  %v8657_v34 = vld [vmem:[%s16834_s6] ss:$0 sm:$0xff]  ;;  %s17416_s6 = sld [smem:[#allocation79_spill]] }
 0x119   :  { %v9808_v22 = vand.u32 31, %v2339_v46  ;;  %v9810_v13 = vadd.s32 1, %v8438_v9  ;;  %v693_v38 = vshrl.u32 %v9777_v58, 16  ;;  %v721_v23 = vsel %vm720_vm5, 1, %v17071_v56 }
 0x11a   :  { %v592_v59 = vor.u32 %v591_v28, %v590_v6  ;;  %v595_v54 = vshll.u32 %v594_v37, 23  ;;  %v713_v44 = vshrl.u32 %v709_v19, 16  ;;  %v723_v10 = vadd.s32 %v721_v23, %v719_v43  ;;  %v342_v19 = vpop.permute.xlu2 %341 }
 0x11b   :  { %17095 = vst [vmem:[#allocation63_spill] sm:$0xff] %v9808_v22  ;;  %vm481_vm0 = vcmp.lt.s32.totalorder %v9291_v21, 0  ;;  %v672_v25 = vsel %vm666_vm4, %v669_v1, %v671_v32  ;;  %v9820_v9 = vadd.s32 %v702_v24, %v693_v38  ;;  %v715_v58 = vshrl.u32 %v710_v26, 16 }
 0x11c   :  { %v16928_v46 = vand.u32 2147483647, %v9303_v35  ;;  %vm16936_vm3 = vcmp.lt.s32.totalorder %v9750_v0, 4  ;;  %v17096_v57 = vand.u32 2147483647, %v9291_v21  ;;  %v195_v50 = vadd.f32 %v194_v31, %v167_v29 }
 0x11d   :  { %v596_v55 = vor.u32 4788187, %v595_v54  ;;  %v9830_v42 = vadd.s32 %v718_v11, %v714_v45  ;;  %v724_v7 = vadd.s32 %v723_v10, %v713_v44  ;;  %v599_v62 = vcvt.s32.f32 %v592_v59 }
 0x11e   :  { %vm9826_vm9 = vcmp.le.f32.partialorder %v17096_v57, 0.7853982  ;;  %v807_v26 = vshll.u32 %v17086_v47, %v9412_v60  ;;  %v808_v1 = vshrl.u32 %v17087_v61, %v9436_v27  ;;  %v810_v41 = vshll.u32 %v17087_v61, %v9412_v60 }
 0x11f   :  { %v597_v32 = vand.u32 2147483647, %v596_v55  ;;  %v9838_v24 = vadd.f32 %v8657_v34, %v195_v50  ;;  %v725_v3 = vadd.s32 %v724_v7, %v715_v58  ;;  %v811_v6 = vshrl.u32 %v17073_v14, %v9436_v27 }
 0x120   :  { %v9844_v45 = vor.u32 %v9781_v18, %v9759_v51  ;;  %v9847_v11 = vmul.f32 %v9285_v17, %v342_v19  ;;  %vm204_vm4 = vcmask 523264   ;;  %vm728_vm10 = vc.u32 %v9820_v9, %v9830_v42 }
 0x121   :  { %17099 = vst [vmem:[#allocation64_spill] sm:$0xff] %v9838_v24  ;;  %v600_v28 = vmul.f32 %v599_v62, %v597_v32  ;;  %v205_v37 = vsel %vm204_vm4, %v9838_v24, 0.0  ;;  %v729_v43 = vadd.s32 1, %v725_v3  ;;  %v794_v38 = vand.u32 8388607, %v16928_v46 }
 0x122   :  { %17100 = vst [vmem:[#allocation65_spill] sm:$0xff] %v9847_v11  ;;  %v1434_v23 = vor.u32 %v9785_v16, %v9771_v12  ;;  %206 = vadd.xlane.f32.xlu2 %v205_v37  ;;  %v726_v51 = vmul.u32 %v9748_v4, %v672_v25  ;;  %v9858_v17 = vor.u32 %v808_v1, %v807_v26  ;;  %vm819_vm14 = vcmp.lt.s32.totalorder %v9474_v63, 1 }
 0x123   :  { %v9860_v18 = vor.u32 %v811_v6, %v810_v41  ;;  %v601_v59 = vxor.u32 2147483648, %v600_v28  ;;  %v730_v54 = vsel %vm728_vm10, %v729_v43, %v725_v3  ;;  %vm821_vm12 = vcmp.lt.s32.totalorder %v9474_v63, 3 }
 0x124   :  { %v603_v44 = vsub.s32 4, %v9740_v30  ;;  %v731_v10 = vadd.s32 %v730_v54, %v726_v51  ;;  %v804_v29 = vshll.u32 %v17088_v33, %v9412_v60  ;;  %v805_v12 = vshrl.u32 %v17086_v47, %v9436_v27 }
 0x125   :  { %v1875_v4 = vadd.s32 1, %v9787_v15  ;;  %v602_v16 = vsel %vm481_vm0, %v601_v59, %v600_v28  ;;  %v795_v31 = vor.u32 8388608, %v794_v38  ;;  %vm820_vm7 = vcmp.lt.s32.totalorder %v9474_v63, 2 }
 0x126   :  { %v605_v34 = vsel %vm9826_vm9, %v9291_v21, %v602_v16  ;;  %v732_v25 = vadd.s32 536870912, %v731_v10  ;;  %v831_v60 = vsel %vm819_vm14, %v9858_v17, %v9860_v18  ;;  %v833_v15 = vsel %vm821_vm12, %v9505_v39, %v9542_v48 }
 0x127   :  { %v9885_v58 = vsub.s32 32, %v9808_v22  ;;  %v9889_v19 = vshll.u32 %v17073_v14, %v9808_v22  ;;  %v9893_v57 = vshll.u32 %v17067_v40, %v9808_v22  ;;  %v607_v55 = vmul.f32 %v605_v34, %v605_v34 }
 0x128   :  { %v9898_v50 = vsel %vm16936_vm3, %v9844_v45, 920167782  ;;  %v604_v39 = vsel %vm481_vm0, %v603_v44, %v9740_v30  ;;  %v9903_v48 = vshrl.u32 %v732_v25, 30  ;;  %v9905_v7 = vor.u32 %v805_v12, %v804_v29 }
 0x129   :  { %17101 = vst [vmem:[#allocation66_spill] sm:$0xff] %v9885_v58  ;;  %vm2492_vm5 = vcmp.gt.s32.totalorder %v9810_v13, 0  ;;  %v608_v62 = vmul.f32 -0.001358992, %v607_v55  ;;  %v615_v26 = vmul.f32 -0.00019511016, %v607_v55  ;;  %v834_v1 = vsel %vm820_vm7, %v831_v60, %v833_v15 }
 0x12a   :  { %v9912_v41 = vsel %vm16936_vm3, %v1434_v23, 1326507024  ;;  %vm1876_vm10 = vcmp.gt.s32.totalorder %v1875_v4, 0  ;;  %v734_v32 = vshll.u32 %v9903_v48, 30  ;;  %v9915_v3 = vshll.u32 %v795_v31, 8 }
 0x12b   :  { %v9919_v30 = vshrl.u32 %v17067_v40, %v9885_v58  ;;  %v606_v6 = vsel %vm9826_vm9, 0, %v604_v39  ;;  %v609_v28 = vadd.f32 0.041655596, %v608_v62  ;;  %v616_v37 = vadd.f32 0.008332121, %v615_v26 }
 0x12c   :  { %v9925_v43 = vshrl.u32 %v17070_v53, %v9885_v58  ;;  %v2493_v38 = vsel %vm2492_vm5, %v9810_v13, 0  ;;  %v827_v23 = vsel %vm819_vm14, %v9905_v7, %v9858_v17  ;;  %v839_v51 = vshrl.u32 %v834_v1, 16 }
 0x12d   :  { %v610_v59 = vmul.f32 %v609_v28, %v607_v55  ;;  %v617_v54 = vmul.f32 %v616_v37, %v607_v55  ;;  %v9932_v44 = vsub.s32 %v731_v10, %v734_v32  ;;  %v829_v20 = vsel %vm821_vm12, %v9860_v18, %v9534_v52 }
 0x12e   :  { %v9938_v29 = vsel %vm1876_vm10, %v1875_v4, 0  ;;  %v623_v12 = vand.u32 3, %v606_v6  ;;  %v836_v13 = vand.u32 65535, %v9915_v3  ;;  %v838_v16 = vand.u32 65535, %v834_v1 }
 0x12f   :  { %v611_v31 = vadd.f32 -0.4999988, %v610_v59  ;;  %v618_v25 = vadd.f32 -0.16666654, %v617_v54  ;;  %vm736_vm0 = vcmp.lt.s32.totalorder %v9932_v44, 0  ;;  %v737_v60 = vsub.s32 0, %v9932_v44 }
 0x130   :  { %v9943_v15 = vshrl.u32 %v2493_v38, 5  ;;  %v830_v10 = vsel %vm820_vm7, %v827_v23, %v829_v20  ;;  %v837_v39 = vshrl.u32 %v9915_v3, 16  ;;  %v841_v52 = vmul.u32 %v839_v51, %v836_v13 }
 0x131   :  { %v9948_v4 = vand.u32 31, %v2493_v38  ;;  %v612_v62 = vmul.f32 %v611_v31, %v607_v55  ;;  %v619_v26 = vmul.f32 %v618_v25, %v607_v55  ;;  %v738_v1 = vsel %vm736_vm0, %v737_v60, %v9932_v44 }
 0x132   :  { %17102 = vst [vmem:[#allocation67_spill] sm:$0xff] %v9943_v15  ;;  %vm622_vm9 = vweird.f32 %v9291_v21  ;;  %vm624_vm5 = vcmp.lt.s32.totalorder %v623_v12, 2  ;;  %vm625_vm10 = vcmp.eq.s32.totalorder %v623_v12, 0  ;;  %v739_v32 = vclz %v738_v1 }
 0x133   :  { %17103 = vst [vmem:[#allocation68_spill] sm:$0xff] %v9948_v4  ;;  %v9952_v6 = vmul.u32 %v838_v16, %v837_v39  ;;  %v613_v28 = vadd.f32 1.0, %v612_v62  ;;  %v620_v37 = vadd.f32 1.0, %v619_v26  ;;  %vm628_vm8 = vcmp.eq.s32.totalorder %v623_v12, 2 }
 0x134   :  { %v861_v23 = vshrl.u32 %v830_v10, 16  ;;  %v727_v59 = vadd.s32 %v9830_v42, %v9820_v9  ;;  %v8403_v38 = vadd.s32 4294967294, %v739_v32  ;;  %v840_v54 = vmul.u32 %v838_v16, %v836_v13 }
 0x135   :  { %v844_v20 = vshll.u32 %v841_v52, 16  ;;  %v621_v55 = vmul.f32 %v620_v37, %v605_v34  ;;  %v629_v31 = vxor.u32 2147483648, %v613_v28  ;;  %v843_v25 = vmul.u32 %v839_v51, %v837_v39 }
 0x136   :  { %v860_v60 = vand.u32 65535, %v830_v10  ;;  %vm8404_vm0 = vcmp.lt.s32.totalorder %v8403_v38, 0  ;;  %v846_v46 = vshll.u32 %v9952_v6, 16  ;;  %v863_v58 = vmul.u32 %v861_v23, %v836_v13 }
 0x137   :  { %vm848_vm15 = vc.u32 %v840_v54, %v844_v20  ;;  %v850_v1 = vadd.s32 %v844_v20, %v840_v54  ;;  %v626_v24 = vxor.u32 2147483648, %v621_v55  ;;  %v742_v62 = vsel %vm8404_vm0, 0, %v8403_v38 }
 0x138   :  { %v849_v26 = vsel %vm848_vm15, 1, %v17071_v56  ;;  %v630_v22 = vsel %vm628_vm8, %v629_v31, %v621_v55  ;;  %v743_v9 = vsub.s32 32, %v742_v62  ;;  %v747_v42 = vsub.s32 4294967266, %v742_v62 }
 0x139   :  { %v851_v16 = vadd.s32 %v849_v26, %v843_v25  ;;  %v627_v34 = vsel %vm625_vm10, %v613_v28, %v626_v24  ;;  %v744_v51 = vshll.u32 %v9932_v44, %v742_v62  ;;  %vm852_vm2 = vc.u32 %v850_v1, %v846_v46 }
 0x13a   :  { %v864_v10 = vmul.u32 %v860_v60, %v837_v39  ;;  %vm2362_vm3 = vcmp.lt.s32.totalorder %v9790_v49, 4  ;;  %v631_v32 = vsel %vm624_vm5, %v627_v34, %v630_v22  ;;  %v745_v37 = vshrl.u32 %v727_v59, %v743_v9 }
 0x13b   :  { %v748_v38 = vadd.s32 127, %v747_v42  ;;  %v853_v54 = vsel %vm852_vm2, 1, %v17071_v56  ;;  %v632_v20 = vsel %vm622_vm9, nan, %v631_v32  ;;  %v862_v31 = vmul.u32 %v860_v60, %v836_v13 }
 0x13c   :  { %v855_v55 = vadd.s32 %v853_v54, %v851_v16  ;;  %v866_v25 = vshll.u32 %v863_v58, 16  ;;  %v9967_v24 = vshrl.u32 %v9938_v29, 5  ;;  %8495 = vmatmul.msk.f32.vlgmr.msrb.gmra.mxu0 %vm204_vm4, %v632_v20  ;;  %v746_v46 = vor.u32 %v745_v37, %v744_v51 }
 0x13d   :  { %v749_v44 = vshll.u32 %v748_v38, 23  ;;  %v845_v28 = vshrl.u32 %v841_v52, 16  ;;  %v865_v12 = vmul.u32 %v861_v23, %v837_v39  ;;  %v868_v22 = vshll.u32 %v864_v10, 16 }
 0x13e   :  { %vm870_vm8 = vc.u32 %v862_v31, %v866_v25  ;;  %v872_v59 = vadd.s32 %v866_v25, %v862_v31  ;;  %v9971_v1 = vand.u32 31, %v9938_v29  ;;  %v803_v60 = vshrl.u32 %v17088_v33, %v9436_v27 }
 0x13f   :  { %v750_v21 = vor.u32 4788187, %v749_v44  ;;  %v856_v62 = vadd.s32 %v855_v55, %v845_v28  ;;  %v871_v13 = vsel %vm870_vm8, 1, %v17071_v56  ;;  %v824_v26 = vsel %vm822_vm1, %v9860_v18, 2102212464 }
 0x140   :  { %v873_v9 = vadd.s32 %v871_v13, %v865_v12  ;;  %vm874_vm2 = vc.u32 %v872_v59, %v868_v22  ;;  %v753_v52 = vcvt.s32.f32 %v746_v46  ;;  %v847_v23 = vshrl.u32 %v9952_v6, 16 }
 0x141   :  { %v751_v39 = vand.u32 2147483647, %v750_v21  ;;  %v875_v29 = vsel %vm874_vm2, 1, %v17071_v56  ;;  %v9983_v42 = vor.u32 %v9919_v30, %v9889_v19  ;;  %v2358_v16 = vor.u32 %v9925_v43, %v9893_v57 }
 0x142   :  { %v867_v27 = vshrl.u32 %v863_v58, 16  ;;  %v877_v34 = vadd.s32 %v875_v29, %v873_v9  ;;  %v757_v32 = vsub.s32 4, %v9903_v48  ;;  %v9989_v37 = vadd.s32 %v856_v62, %v847_v23 }
 0x143   :  { %17104 = vst [vmem:[#allocation69_spill] sm:$0xff] %v9983_v42  ;;  %v754_v18 = vmul.f32 %v753_v52, %v751_v39  ;;  %v823_v6 = vsel %vm819_vm14, %v803_v60, %v9905_v7  ;;  %v825_v19 = vsel %vm821_vm12, %v9858_v17, %v824_v26  ;;  %v869_v30 = vshrl.u32 %v864_v10, 16 }
 0x144   :  { %v878_v38 = vadd.s32 %v877_v34, %v867_v27  ;;  %v9998_v58 = vsub.s32 32, %v9948_v4  ;;  %v10002_v57 = vshll.u32 %v17073_v14, %v9948_v4  ;;  %v10004_v54 = vadd.s32 %v872_v59, %v868_v22 }
 0x145   :  { %v755_v43 = vxor.u32 2147483648, %v754_v18  ;;  %v10009_v7 = vsel %vm2362_vm3, %v9983_v42, 920167782  ;;  %v17107_v20 = vand.u32 2147483647, %v9341_v5  ;;  %vm635_vm15 = vcmp.lt.s32.totalorder %v9341_v5, 0 }
 0x146   :  { %17105 = vst [vmem:[#allocation70_spill] sm:$0xff] %v9998_v58  ;;  %v879_v10 = vadd.s32 %v878_v38, %v869_v30  ;;  %v758_v31 = vsel %vm635_vm15, %v757_v32, %v9903_v48  ;;  %v826_v25 = vsel %vm820_vm7, %v823_v6, %v825_v19  ;;  %vm882_vm14 = vc.u32 %v9989_v37, %v10004_v54  ;;  %v17111_v30 = vld [vmem:[#allocation42_spill] sm:$0xff] }
 0x147   :  { %17106 = vst [vmem:[#allocation71_spill] sm:$0xff] %v10009_v7  ;;  %vm10013_vm1 = vcmp.le.f32.partialorder %v17107_v20, 0.7853982  ;;  %v756_v55 = vsel %vm635_vm15, %v755_v43, %v754_v18  ;;  %v16937_v28 = vand.u32 2147483647, %v9344_v8  ;;  %v961_v12 = vshll.u32 %v17086_v47, %v9529_v2 }
 0x148   :  { %v759_v46 = vsel %vm10013_vm1, %v9341_v5, %v756_v55  ;;  %v883_v44 = vadd.s32 1, %v879_v10  ;;  %v962_v48 = vshrl.u32 %v17087_v61, %v9571_v36  ;;  %v964_v63 = vshll.u32 %v17087_v61, %v9529_v2 }
 0x149   :  { %v761_v22 = vmul.f32 %v759_v46, %v759_v46  ;;  %v965_v59 = vshrl.u32 %v17073_v14, %v9571_v36  ;;  %v880_v21 = vmul.u32 %v9915_v3, %v826_v25  ;;  %v958_v13 = vshll.u32 %v17088_v33, %v9529_v2 }
 0x14a   :  { %v884_v62 = vsel %vm882_vm14, %v883_v44, %v879_v10  ;;  %v959_v60 = vshrl.u32 %v17086_v47, %v9571_v36  ;;  %v10042_v26 = vsel %vm2362_vm3, %v2358_v16, 1326507024  ;;  %v10046_v9 = vshll.u32 %v17067_v40, %v9948_v4 }
 0x14b   :  { %17110 = vst [vmem:[#allocation72_spill] sm:$0xff] %v10042_v26  ;;  %v762_v39 = vmul.f32 -0.001358992, %v761_v22  ;;  %v769_v52 = vmul.f32 -0.00019511016, %v761_v22  ;;  %v10049_v23 = vsub.s32 32, %v9971_v1  ;;  %v885_v2 = vadd.s32 %v884_v62, %v880_v21 }
 0x14c   :  { %v760_v3 = vsel %vm10013_vm1, 0, %v758_v31  ;;  %v948_v29 = vand.u32 8388607, %v16937_v28  ;;  %v10055_v16 = vor.u32 %v962_v48, %v961_v12  ;;  %v10057_v18 = vor.u32 %v965_v59, %v964_v63  ;;  %v17112_v59 = vld [vmem:[#allocation48_spill] sm:$0xff]  ;;  %v17113_v62 = vld [vmem:[#allocation49_spill] sm:$0xff] }
 0x14d   :  { %v763_v27 = vadd.f32 0.041655596, %v762_v39  ;;  %v770_v34 = vadd.f32 0.008332121, %v769_v52  ;;  %v10061_v32 = vshll.u32 %v17073_v14, %v9971_v1  ;;  %v886_v6 = vadd.s32 536870912, %v885_v2 }
 0x14e   :  { %v10063_v19 = vor.u32 %v959_v60, %v958_v13  ;;  %vm973_vm12 = vcmp.lt.s32.totalorder %v17111_v30, 1  ;;  %v10068_v38 = vshrl.u32 %v17067_v40, %v9998_v58  ;;  %vm975_vm7 = vcmp.lt.s32.totalorder %v17111_v30, 3  ;;  %v17114_v13 = vld [vmem:[#allocation45_spill] sm:$0xff] }
 0x14f   :  { %v764_v43 = vmul.f32 %v763_v27, %v761_v22  ;;  %v771_v20 = vmul.f32 %v770_v34, %v761_v22  ;;  %v10073_v17 = vshrl.u32 %v17070_v53, %v9998_v58  ;;  %v777_v10 = vand.u32 3, %v760_v3 }
 0x150   :  { %v10075_v55 = vshrl.u32 %v886_v6, 30  ;;  %v949_v31 = vor.u32 8388608, %v948_v29  ;;  %vm974_vm9 = vcmp.lt.s32.totalorder %v17111_v30, 2  ;;  %v985_v12 = vsel %vm973_vm12, %v10055_v16, %v10057_v18 }
 0x151   :  { %v765_v25 = vadd.f32 -0.4999988, %v764_v43  ;;  %v772_v44 = vadd.f32 -0.16666654, %v771_v20  ;;  %v981_v63 = vsel %vm973_vm12, %v10063_v19, %v10055_v16  ;;  %v983_v21 = vsel %vm975_vm7, %v10057_v18, %v17112_v59 }
 0x152   :  { %v888_v48 = vshll.u32 %v10075_v55, 30  ;;  %v987_v60 = vsel %vm975_vm7, %v17114_v13, %v17113_v62  ;;  %v10097_v39 = vshrl.u32 %v17067_v40, %v10049_v23  ;;  %v10101_v52 = vshll.u32 %v17067_v40, %v9971_v1 }
 0x153   :  { %v766_v3 = vmul.f32 %v765_v25, %v761_v22  ;;  %v773_v29 = vmul.f32 %v772_v44, %v761_v22  ;;  %v10105_v27 = vshrl.u32 %v17070_v53, %v10049_v23  ;;  %v988_v6 = vsel %vm974_vm9, %v985_v12, %v987_v60 }
 0x154   :  { %v10107_v34 = vsub.s32 %v885_v2, %v888_v48  ;;  %v10111_v43 = vshll.u32 %v949_v31, 8  ;;  %vm776_vm5 = vweird.f32 %v9341_v5  ;;  %v984_v62 = vsel %vm974_vm9, %v981_v63, %v983_v21 }
 0x155   :  { %v767_v20 = vadd.f32 1.0, %v766_v3  ;;  %v774_v59 = vadd.f32 1.0, %v773_v29  ;;  %vm778_vm10 = vcmp.lt.s32.totalorder %v777_v10, 2  ;;  %v992_v25 = vand.u32 65535, %v988_v6 }
 0x156   :  { %vm890_vm0 = vcmp.lt.s32.totalorder %v10107_v34, 0  ;;  %v891_v22 = vsub.s32 0, %v10107_v34  ;;  %vm779_vm8 = vcmp.eq.s32.totalorder %v777_v10, 0  ;;  %v993_v48 = vshrl.u32 %v988_v6, 16 }
 0x157   :  { %v775_v2 = vmul.f32 %v774_v59, %v759_v46  ;;  %v783_v44 = vxor.u32 2147483648, %v767_v20  ;;  %v990_v12 = vand.u32 65535, %v10111_v43  ;;  %v991_v13 = vshrl.u32 %v10111_v43, 16 }
 0x158   :  { %v892_v31 = vsel %vm890_vm0, %v891_v22, %v10107_v34  ;;  %v1014_v60 = vand.u32 65535, %v984_v62  ;;  %vm782_vm2 = vcmp.eq.s32.totalorder %v777_v10, 2  ;;  %v881_v63 = vadd.s32 %v10004_v54, %v9989_v37 }
 0x159   :  { %v780_v3 = vxor.u32 2147483648, %v775_v2  ;;  %v893_v21 = vclz %v892_v31  ;;  %v957_v29 = vshrl.u32 %v17088_v33, %v9571_v36  ;;  %v995_v46 = vmul.u32 %v993_v48, %v990_v12 }
 0x15a   :  { %v996_v59 = vmul.u32 %v992_v25, %v991_v13  ;;  %v1015_v28 = vshrl.u32 %v984_v62, 16  ;;  %v784_v51 = vsel %vm782_vm2, %v783_v44, %v775_v2  ;;  %v994_v58 = vmul.u32 %v992_v25, %v990_v12 }
 0x15b   :  { %v781_v6 = vsel %vm779_vm8, %v767_v20, %v780_v3  ;;  %v8406_v22 = vadd.s32 4294967294, %v893_v21  ;;  %v997_v7 = vmul.u32 %v993_v48, %v991_v13  ;;  %v998_v42 = vshll.u32 %v995_v46, 16 }
 0x15c   :  { %v785_v4 = vsel %vm778_vm10, %v781_v6, %v784_v51  ;;  %v1016_v26 = vmul.u32 %v1014_v60, %v990_v12  ;;  %v1017_v37 = vmul.u32 %v1015_v28, %v990_v12  ;;  %v1018_v54 = vmul.u32 %v1014_v60, %v991_v13  ;;  %v317_v60 = vpop.permute.xlu1 %316 }
 0x15d   :  { %v786_v49 = vsel %vm776_vm5, nan, %v785_v4  ;;  %vm8407_vm1 = vcmp.lt.s32.totalorder %v8406_v22, 0  ;;  %v1000_v31 = vshll.u32 %v996_v59, 16  ;;  %vm1002_vm15 = vc.u32 %v994_v58, %v998_v42 }
 0x15e   :  { %8496 = vmatmul.msk.f32.gmra.mxu0 %vm204_vm4, %v786_v49  ;;  %v896_v36 = vsel %vm8407_vm1, 0, %v8406_v22  ;;  %v1004_v20 = vadd.s32 %v998_v42, %v994_v58  ;;  %v999_v25 = vshrl.u32 %v995_v46, 16  ;;  %v1003_v51 = vsel %vm1002_vm15, 1, %v17071_v56 }
 0x15f   :  { %v897_v62 = vsub.s32 32, %v896_v36  ;;  %v901_v2 = vsub.s32 4294967266, %v896_v36  ;;  %vm16983_vm14 = vcmp.lt.s32.totalorder %v9943_v15, 4  ;;  %v1005_v10 = vadd.s32 %v1003_v51, %v997_v7 }
 0x160   :  { %vm1006_vm10 = vc.u32 %v1004_v20, %v1000_v31  ;;  %v1019_v5 = vmul.u32 %v1015_v28, %v991_v13  ;;  %v1020_v4 = vshll.u32 %v1017_v37, 16  ;;  %v898_v44 = vshll.u32 %v10107_v34, %v896_v36 }
 0x161   :  { %v899_v48 = vshrl.u32 %v881_v63, %v897_v62  ;;  %v902_v12 = vadd.s32 127, %v901_v2  ;;  %v1007_v49 = vsel %vm1006_vm10, 1, %v17071_v56  ;;  %v1022_v42 = vshll.u32 %v1018_v54, 16 }
 0x162   :  { %v1009_v3 = vadd.s32 %v1007_v49, %v1005_v10  ;;  %vm1024_vm5 = vc.u32 %v1016_v26, %v1020_v4  ;;  %v1026_v58 = vadd.s32 %v1020_v4, %v1016_v26  ;;  %v978_v7 = vsel %vm976_vm6, %v10057_v18, 2102212464  ;;  %v10143_v26 = vld [vmem:[%s17040_s0] ss:$0 sm:$0xff] }
 0x163   :  { %v900_v21 = vor.u32 %v899_v48, %v898_v44  ;;  %v903_v46 = vshll.u32 %v902_v12, 23  ;;  %v1025_v28 = vsel %vm1024_vm5, 1, %v17071_v56  ;;  %v17115_v13 = vand.u32 2139095040, %v9847_v11 }
 0x164   :  { %v1010_v63 = vadd.s32 %v1009_v3, %v999_v25  ;;  %v1027_v6 = vadd.s32 %v1025_v28, %v1019_v5  ;;  %vm1028_vm0 = vc.u32 %v1026_v58, %v1022_v42  ;;  %vm1900_vm8 = vcmp.lt.s32.totalorder %v9967_v24, 4  ;;  %v17125_v28 = vld [vmem:[#allocation21_spill] sm:$0xff] }
 0x165   :  { %v2793_v34 = vshrl.u32 %v17115_v13, 23  ;;  %v10146_v22 = vmul.f32 %v10143_v26, %v317_v60  ;;  %v904_v36 = vor.u32 4788187, %v903_v46  ;;  %v1001_v18 = vshrl.u32 %v996_v59, 16  ;;  %v17124_v46 = vld [vmem:[#allocation20_spill] sm:$0xff] }
 0x166   :  { %v1029_v31 = vsel %vm1028_vm0, 1, %v17071_v56  ;;  %v977_v20 = vsel %vm973_vm12, %v957_v29, %v10063_v19  ;;  %v979_v62 = vsel %vm975_vm7, %v10055_v16, %v978_v7  ;;  %v1021_v2 = vshrl.u32 %v1017_v37, 16 }
 0x167   :  { %17116 = vst [vmem:[#allocation42_spill] sm:$0xff] %v10146_v22  ;;  %v1031_v25 = vadd.s32 %v1029_v31, %v1027_v6  ;;  %v10157_v51 = vor.u32 %v10068_v38, %v10002_v57  ;;  %v905_v10 = vand.u32 2147483647, %v904_v36  ;;  %v907_v5 = vcvt.s32.f32 %v900_v21  ;;  %v17119_v57 = vld [vmem:[#allocation17_spill] sm:$0xff] }
 0x168   :  { %v10159_v4 = vadd.s32 %v1010_v63, %v1001_v18  ;;  %v2512_v59 = vor.u32 %v10073_v17, %v10046_v9  ;;  %v10165_v19 = vor.u32 %v10097_v39, %v10061_v32  ;;  %v1023_v29 = vshrl.u32 %v1018_v54, 16  ;;  %v355_v39 = vpop.permute.xlu2 %354 }
 0x169   :  { %17117 = vst [vmem:[#allocation48_spill] sm:$0xff] %v10157_v51  ;;  %v1032_v44 = vadd.s32 %v1031_v25, %v1021_v2  ;;  %v908_v16 = vmul.f32 %v907_v5, %v905_v10  ;;  %v980_v37 = vsel %vm974_vm9, %v977_v20, %v979_v62  ;;  %v10169_v48 = vadd.s32 %v1026_v58, %v1022_v42  ;;  %v361_v42 = vpop.permute.xlu0 %360 }
 0x16a   :  { %17118 = vst [vmem:[#allocation49_spill] sm:$0xff] %v10165_v19  ;;  %v16945_v38 = vand.u32 2147483647, %v17119_v57  ;;  %v1896_v12 = vor.u32 %v10105_v27, %v10101_v52  ;;  %v8444_v49 = vadd.s32 4294967169, %v2793_v34  ;;  %v2176_v9 = vand.u32 2139095040, %v10146_v22 }
 0x16b   :  { %v1033_v17 = vadd.s32 %v1032_v44, %v1023_v29  ;;  %v10178_v32 = vsel %vm16983_vm14, %v10157_v51, 920167782  ;;  %vm789_vm6 = vcmp.lt.s32.totalorder %v9303_v35, 0  ;;  %v909_v30 = vxor.u32 2147483648, %v908_v16 }
 0x16c   :  { %17120 = vst [vmem:[#allocation45_spill] sm:$0xff] %v10178_v32  ;;  %vm1036_vm12 = vc.u32 %v10159_v4, %v10169_v48  ;;  %v17121_v54 = vand.u32 2147483647, %v9303_v35  ;;  %v911_v27 = vsub.s32 4, %v10075_v55  ;;  %v1034_v60 = vmul.u32 %v10111_v43, %v980_v37 }
 0x16d   :  { %v1037_v3 = vadd.s32 1, %v1033_v17  ;;  %v910_v58 = vsel %vm789_vm6, %v909_v30, %v908_v16  ;;  %v1102_v21 = vand.u32 8388607, %v16945_v38  ;;  %v1115_v7 = vshll.u32 %v17086_v47, %v17124_v46 }
 0x16e   :  { %vm10185_vm7 = vcmp.le.f32.partialorder %v17121_v54, 0.7853982  ;;  %v1116_v13 = vshrl.u32 %v17087_v61, %v17125_v28  ;;  %v1118_v43 = vshll.u32 %v17087_v61, %v17124_v46  ;;  %v1119_v6 = vshrl.u32 %v17073_v14, %v17125_v28 }
 0x16f   :  { %v913_v34 = vsel %vm10185_vm7, %v9303_v35, %v910_v58  ;;  %v1038_v63 = vsel %vm1036_vm12, %v1037_v3, %v1033_v17  ;;  %v10208_v36 = vsel %vm16983_vm14, %v2512_v59, 1326507024  ;;  %v10211_v18 = vmul.f32 %v10143_v26, %v355_v39 }
 0x170   :  { %17126 = vst [vmem:[#allocation17_spill] sm:$0xff] %v10208_v36  ;;  %v915_v31 = vmul.f32 %v913_v34, %v913_v34  ;;  %v1039_v20 = vadd.s32 %v1038_v63, %v1034_v60  ;;  %v10216_v62 = vsel %vm1900_vm8, %v10165_v19, 920167782  ;;  %v10219_v2 = vmul.f32 %v10143_v26, %v361_v42  ;;  %v17131_v60 = vld [vmem:[#allocation22_spill] sm:$0xff] }
 0x171   :  { %17127 = vst [vmem:[#allocation20_spill] sm:$0xff] %v10211_v18  ;;  %v1112_v25 = vshll.u32 %v17088_v33, %v17124_v46  ;;  %v1113_v10 = vshrl.u32 %v17086_v47, %v17125_v28  ;;  %v10227_v5 = vsel %vm1900_vm8, %v1896_v12, 1326507024  ;;  %v912_v59 = vsel %vm789_vm6, %v911_v27, %v10075_v55 }
 0x172   :  { %17128 = vst [vmem:[#allocation21_spill] sm:$0xff] %v10216_v62  ;;  %v916_v29 = vmul.f32 -0.001358992, %v915_v31  ;;  %v923_v44 = vmul.f32 -0.00019511016, %v915_v31  ;;  %v1040_v16 = vadd.s32 536870912, %v1039_v20  ;;  %v10232_v17 = vor.u32 %v1116_v13, %v1115_v7 }
 0x173   :  { %17129 = vst [vmem:[#allocation73_spill] sm:$0xff] %v10219_v2  ;;  %v1103_v37 = vor.u32 8388608, %v1102_v21  ;;  %v10234_v30 = vor.u32 %v1119_v6, %v1118_v43  ;;  %vm1127_vm9 = vcmp.lt.s32.totalorder %v17131_v60, 1  ;;  %vm1129_vm2 = vcmp.lt.s32.totalorder %v17131_v60, 3  ;;  %v17132_v7 = vld [vmem:[#allocation31_spill] sm:$0xff] }
 0x174   :  { %17130 = vst [vmem:[#allocation74_spill] sm:$0xff] %v10227_v5  ;;  %v917_v39 = vadd.f32 0.041655596, %v916_v29  ;;  %v924_v54 = vadd.f32 0.008332121, %v923_v44  ;;  %v10238_v12 = vadd.s32 1, %v8444_v49  ;;  %v10242_v55 = vor.u32 %v1113_v10, %v1112_v25 }
 0x175   :  { %v2177_v3 = vshrl.u32 %v2176_v9, 23  ;;  %v10240_v42 = vshrl.u32 %v1040_v16, 30  ;;  %v914_v27 = vsel %vm10185_vm7, 0, %v912_v59  ;;  %vm1128_vm1 = vcmp.lt.s32.totalorder %v17131_v60, 2  ;;  %v17133_v9 = vld [vmem:[#allocation23_spill] sm:$0xff] }
 0x176   :  { %v918_v58 = vmul.f32 %v917_v39, %v915_v31  ;;  %v925_v21 = vmul.f32 %v924_v54, %v915_v31  ;;  %v1139_v49 = vsel %vm1127_vm9, %v10232_v17, %v10234_v30  ;;  %v1141_v13 = vsel %vm1129_vm2, %v17133_v9, %v17132_v7  ;;  %v17134_v54 = vld [vmem:[#allocation30_spill] sm:$0xff] }
 0x177   :  { %v1042_v46 = vshll.u32 %v10240_v42, 30  ;;  %v10256_v63 = vshll.u32 %v1103_v37, 8  ;;  %v10260_v10 = vadd.s32 4294967169, %v2177_v3  ;;  %v931_v59 = vand.u32 3, %v914_v27 }
 0x178   :  { %v919_v6 = vadd.f32 -0.4999988, %v918_v58  ;;  %v926_v25 = vadd.f32 -0.16666654, %v925_v21  ;;  %v1135_v44 = vsel %vm1127_vm9, %v10242_v55, %v10232_v17  ;;  %v1137_v37 = vsel %vm1129_vm2, %v10234_v30, %v17134_v54 }
 0x179   :  { %v1043_v29 = vsub.s32 %v1039_v20, %v1042_v46  ;;  %v1142_v58 = vsel %vm1128_vm1, %v1139_v49, %v1141_v13  ;;  %vm930_vm15 = vweird.f32 %v9303_v35  ;;  %v1144_v20 = vand.u32 65535, %v10256_v63 }
 0x17a   :  { %v920_v16 = vmul.f32 %v919_v6, %v915_v31  ;;  %v927_v39 = vmul.f32 %v926_v25, %v915_v31  ;;  %vm2800_vm5 = vcmp.gt.s32.totalorder %v10238_v12, 0  ;;  %v1145_v31 = vshrl.u32 %v10256_v63, 16 }
 0x17b   :  { %vm1044_vm10 = vcmp.lt.s32.totalorder %v1043_v29, 0  ;;  %v1045_v3 = vsub.s32 0, %v1043_v29  ;;  %v1146_v46 = vand.u32 65535, %v1142_v58  ;;  %vm932_vm0 = vcmp.lt.s32.totalorder %v931_v59, 2 }
 0x17c   :  { %v921_v27 = vadd.f32 1.0, %v920_v16  ;;  %v928_v21 = vadd.f32 1.0, %v927_v39  ;;  %v1138_v9 = vsel %vm1128_vm1, %v1135_v44, %v1137_v37  ;;  %v1147_v6 = vshrl.u32 %v1142_v58, 16 }
 0x17d   :  { %v1046_v7 = vsel %vm1044_vm10, %v1045_v3, %v1043_v29  ;;  %v1168_v54 = vand.u32 65535, %v1138_v9  ;;  %vm933_vm6 = vcmp.eq.s32.totalorder %v931_v59, 0  ;;  %vm936_vm12 = vcmp.eq.s32.totalorder %v931_v59, 2 }
 0x17e   :  { %v929_v49 = vmul.f32 %v928_v21, %v913_v34  ;;  %v937_v13 = vxor.u32 2147483648, %v921_v27  ;;  %v1047_v25 = vclz %v1046_v7  ;;  %v1148_v38 = vmul.u32 %v1146_v46, %v1144_v20 }
 0x17f   :  { %v1149_v43 = vmul.u32 %v1147_v6, %v1144_v20  ;;  %v1035_v16 = vadd.s32 %v10169_v48, %v10159_v4  ;;  %v10280_v11 = vmul.u32 %v1146_v46, %v1145_v31  ;;  %v1151_v32 = vmul.u32 %v1147_v6, %v1145_v31 }
 0x180   :  { %v934_v52 = vxor.u32 2147483648, %v929_v49  ;;  %v8409_v39 = vadd.s32 4294967294, %v1047_v25  ;;  %v938_v3 = vsel %vm936_vm12, %v937_v13, %v929_v49  ;;  %v1169_v44 = vshrl.u32 %v1138_v9, 16 }
 0x181   :  { %v1152_v51 = vshll.u32 %v1149_v43, 16  ;;  %v1154_v34 = vshll.u32 %v10280_v11, 16  ;;  %v1170_v58 = vmul.u32 %v1168_v54, %v1144_v20  ;;  %v2801_v35 = vsel %vm2800_vm5, %v10238_v12, 0 }
 0x182   :  { %v935_v37 = vsel %vm933_vm6, %v921_v27, %v934_v52  ;;  %vm8410_vm7 = vcmp.lt.s32.totalorder %v8409_v39, 0  ;;  %v1171_v52 = vmul.u32 %v1169_v44, %v1144_v20  ;;  %v1172_v27 = vmul.u32 %v1168_v54, %v1145_v31 }
 0x183   :  { %v939_v21 = vsel %vm932_vm0, %v935_v37, %v938_v3  ;;  %v1050_v7 = vsel %vm8410_vm7, 0, %v8409_v39  ;;  %vm1156_vm10 = vc.u32 %v1148_v38, %v1152_v51  ;;  %v1158_v36 = vadd.s32 %v1152_v51, %v1148_v38 }
 0x184   :  { %v940_v4 = vsel %vm930_vm15, nan, %v939_v21  ;;  %v1051_v48 = vsub.s32 32, %v1050_v7  ;;  %v1052_v46 = vshll.u32 %v1043_v29, %v1050_v7  ;;  %v1055_v25 = vsub.s32 4294967266, %v1050_v7 }
 0x185   :  { %8497 = vmatmul.msk.f32.gmra.mxu0 %vm204_vm4, %v940_v4  ;;  %v1157_v9 = vsel %vm1156_vm10, 1, %v17071_v56  ;;  %vm1160_vm6 = vc.u32 %v1158_v36, %v1154_v34  ;;  %v1153_v51 = vshrl.u32 %v1149_v43, 16  ;;  %v1174_v38 = vshll.u32 %v1171_v52, 16 }
 0x186   :  { %v1053_v6 = vshrl.u32 %v1035_v16, %v1051_v48  ;;  %v1056_v49 = vadd.s32 127, %v1055_v25  ;;  %v1159_v59 = vadd.s32 %v1157_v9, %v1151_v32  ;;  %v1161_v13 = vsel %vm1160_vm6, 1, %v17071_v56 }
 0x187   :  { %v1176_v29 = vshll.u32 %v1172_v27, 16  ;;  %v1173_v21 = vmul.u32 %v1169_v44, %v1145_v31  ;;  %v17135_v36 = vand.u32 2139095040, %v10211_v18  ;;  %v1111_v54 = vshrl.u32 %v17088_v33, %v17125_v28 }
 0x188   :  { %v1054_v39 = vor.u32 %v1053_v6, %v1052_v46  ;;  %v1057_v3 = vshll.u32 %v1056_v49, 23  ;;  %v1163_v37 = vadd.s32 %v1161_v13, %v1159_v59  ;;  %vm1178_vm15 = vc.u32 %v1170_v58, %v1174_v38 }
 0x189   :  { %v3101_v20 = vshrl.u32 %v17135_v36, 23  ;;  %v1180_v32 = vadd.s32 %v1174_v38, %v1170_v58  ;;  %v10296_v16 = vshrl.u32 %v2801_v35, 5  ;;  %v17137_v34 = vand.u32 2139095040, %v10219_v2  ;;  %v17143_v36 = vld [vmem:[#allocation24_spill] sm:$0xff] }
 0x18a   :  { %v1058_v43 = vor.u32 4788187, %v1057_v3  ;;  %v1132_v7 = vsel %vm1130_vm11, %v10234_v30, 2102212464  ;;  %v1155_v31 = vshrl.u32 %v10280_v11, 16  ;;  %v1175_v44 = vshrl.u32 %v1171_v52, 16 }
 0x18b   :  { %17136 = vst [vmem:[#allocation22_spill] sm:$0xff] %v10296_v16  ;;  %v3255_v12 = vshrl.u32 %v17137_v34, 23  ;;  %v1179_v4 = vsel %vm1178_vm15, 1, %v17071_v56  ;;  %vm1182_vm5 = vc.u32 %v1180_v32, %v1176_v29  ;;  %v1061_v28 = vcvt.s32.f32 %v1054_v39 }
 0x18c   :  { %v1059_v48 = vand.u32 2147483647, %v1058_v43  ;;  %v1164_v46 = vadd.s32 %v1163_v37, %v1153_v51  ;;  %v1181_v58 = vadd.s32 %v1179_v4, %v1173_v21  ;;  %v10305_v25 = vand.u32 31, %v2801_v35  ;;  %v17142_v37 = vld [vmem:[#allocation18_spill] sm:$0xff] }
 0x18d   :  { %v10308_v9 = vadd.s32 1, %v10260_v10  ;;  %v1131_v6 = vsel %vm1127_vm9, %v1111_v54, %v10242_v55  ;;  %v1183_v30 = vsel %vm1182_vm5, 1, %v17071_v56  ;;  %v1133_v52 = vsel %vm1129_vm2, %v10232_v17, %v1132_v7  ;;  %v17149_v10 = vld [vmem:[#allocation32_spill] sm:$0xff] }
 0x18e   :  { %17138 = vst [vmem:[#allocation31_spill] sm:$0xff] %v10305_v25  ;;  %v1062_v11 = vmul.f32 %v1061_v28, %v1059_v48  ;;  %v1177_v49 = vshrl.u32 %v1172_v27, 16  ;;  %v1185_v59 = vadd.s32 %v1183_v30, %v1181_v58  ;;  %v8450_v13 = vadd.s32 4294967169, %v3101_v20 }
 0x18f   :  { %v8453_v51 = vadd.s32 4294967169, %v3255_v12  ;;  %v17139_v35 = vand.u32 2147483647, %v9344_v8  ;;  %vm943_vm0 = vcmp.lt.s32.totalorder %v9344_v8, 0  ;;  %v10324_v38 = vadd.s32 %v1164_v46, %v1155_v31  ;;  %v17144_v12 = vld [vmem:[#allocation26_spill] sm:$0xff] }
 0x190   :  { %v1063_v55 = vxor.u32 2147483648, %v1062_v11  ;;  %v10326_v39 = vadd.s32 %v1180_v32, %v1176_v29  ;;  %v1186_v3 = vadd.s32 %v1185_v59, %v1175_v44  ;;  %v1065_v17 = vsub.s32 4, %v10240_v42 }
 0x191   :  { %vm10319_vm11 = vcmp.le.f32.partialorder %v17139_v35, 0.7853982  ;;  %v1134_v27 = vsel %vm1128_vm1, %v1131_v6, %v1133_v52  ;;  %v16949_v21 = vand.u32 2147483647, %v17142_v37  ;;  %v1266_v20 = vshll.u32 %v17088_v33, %v17143_v36 }
 0x192   :  { %v1064_v54 = vsel %vm943_vm0, %v1063_v55, %v1062_v11  ;;  %v1187_v34 = vadd.s32 %v1186_v3, %v1177_v49  ;;  %v1267_v43 = vshrl.u32 %v17086_v47, %v17144_v12  ;;  %v1269_v29 = vshll.u32 %v17086_v47, %v17143_v36 }
 0x193   :  { %v1067_v60 = vsel %vm10319_vm11, %v9344_v8, %v1064_v54  ;;  %v1270_v32 = vshrl.u32 %v17087_v61, %v17144_v12  ;;  %v1272_v7 = vshll.u32 %v17087_v61, %v17143_v36  ;;  %v1273_v31 = vshrl.u32 %v17073_v14, %v17144_v12 }
 0x194   :  { %v10350_v44 = vsub.s32 32, %v10305_v25  ;;  %v1069_v4 = vmul.f32 %v1067_v60, %v1067_v60  ;;  %vm1190_vm9 = vc.u32 %v10324_v38, %v10326_v39  ;;  %v1191_v48 = vadd.s32 1, %v1187_v34 }
 0x195   :  { %v10356_v28 = vshll.u32 %v17073_v14, %v10305_v25  ;;  %v10360_v46 = vshll.u32 %v17067_v40, %v10305_v25  ;;  %v1188_v58 = vmul.u32 %v10256_v63, %v1134_v27  ;;  %v1256_v6 = vand.u32 8388607, %v16949_v21  ;;  %v17146_v27 = vld [vmem:[#allocation27_spill] sm:$0xff] }
 0x196   :  { %17145 = vst [vmem:[#allocation23_spill] sm:$0xff] %v10350_v44  ;;  %vm2184_vm2 = vcmp.gt.s32.totalorder %v10308_v9, 0  ;;  %v1066_v30 = vsel %vm943_vm0, %v1065_v17, %v10240_v42  ;;  %v1070_v11 = vmul.f32 -0.001358992, %v1069_v4  ;;  %v1077_v52 = vmul.f32 -0.00019511016, %v1069_v4 }
 0x197   :  { %v1192_v49 = vsel %vm1190_vm9, %v1191_v48, %v1187_v34  ;;  %v10369_v59 = vor.u32 %v1267_v43, %v1266_v20  ;;  %v10371_v35 = vor.u32 %v1270_v32, %v1269_v29  ;;  %v10373_v55 = vor.u32 %v1273_v31, %v1272_v7  ;;  %v17148_v7 = vld [vmem:[#allocation28_spill] sm:$0xff] }
 0x198   :  { %v1071_v3 = vadd.f32 0.041655596, %v1070_v11  ;;  %v1078_v63 = vadd.f32 0.008332121, %v1077_v52  ;;  %vm1281_vm1 = vcmp.lt.s32.totalorder %v17146_v27, 1  ;;  %vm1283_vm12 = vcmp.lt.s32.totalorder %v17146_v27, 3 }
 0x199   :  { %v10377_v36 = vadd.s32 1, %v8450_v13  ;;  %v10379_v54 = vadd.s32 1, %v8453_v51  ;;  %v1193_v42 = vadd.s32 %v1192_v49, %v1188_v58  ;;  %v1257_v17 = vor.u32 8388608, %v1256_v6  ;;  %v17147_v51 = vld [vmem:[#allocation34_spill] sm:$0xff] }
 0x19a   :  { %v10383_v20 = vshrl.u32 %v17067_v40, %v10350_v44  ;;  %v1072_v34 = vmul.f32 %v1071_v3, %v1069_v4  ;;  %v1079_v43 = vmul.f32 %v1078_v63, %v1069_v4  ;;  %vm1282_vm7 = vcmp.lt.s32.totalorder %v17146_v27, 2 }
 0x19b   :  { %v1068_v29 = vsel %vm10319_vm11, 0, %v1066_v30  ;;  %v1194_v32 = vadd.s32 536870912, %v1193_v42  ;;  %v1293_v13 = vsel %vm1281_vm1, %v10371_v35, %v10373_v55  ;;  %v1295_v31 = vsel %vm1283_vm12, %v17148_v7, %v17147_v51 }
 0x19c   :  { %v1073_v48 = vadd.f32 -0.4999988, %v1072_v34  ;;  %v1080_v58 = vadd.f32 -0.16666654, %v1079_v43  ;;  %v1289_v6 = vsel %vm1281_vm1, %v10369_v59, %v10371_v35  ;;  %v1291_v30 = vsel %vm1283_vm12, %v10373_v55, %v17149_v10 }
 0x19d   :  { %v10406_v11 = vshrl.u32 %v17070_v53, %v10350_v44  ;;  %v10408_v52 = vshrl.u32 %v1194_v32, 30  ;;  %v1296_v49 = vsel %vm1282_vm7, %v1293_v13, %v1295_v31  ;;  %v10412_v3 = vshll.u32 %v1257_v17, 8 }
 0x19e   :  { %v2185_v63 = vsel %vm2184_vm2, %v10308_v9, 0  ;;  %v1074_v34 = vmul.f32 %v1073_v48, %v1069_v4  ;;  %v1081_v43 = vmul.f32 %v1080_v58, %v1069_v4  ;;  %v1085_v51 = vand.u32 3, %v1068_v29 }
 0x19f   :  { %v1196_v7 = vshll.u32 %v10408_v52, 30  ;;  %v1292_v10 = vsel %vm1282_vm7, %v1289_v6, %v1291_v30  ;;  %v1298_v32 = vand.u32 65535, %v10412_v3  ;;  %v1299_v21 = vshrl.u32 %v10412_v3, 16 }
 0x1a0   :  { %v1075_v44 = vadd.f32 1.0, %v1074_v34  ;;  %v1082_v13 = vadd.f32 1.0, %v1081_v43  ;;  %v1300_v17 = vand.u32 65535, %v1296_v49  ;;  %v1301_v31 = vshrl.u32 %v1296_v49, 16 }
 0x1a1   :  { %v10422_v25 = vshrl.u32 %v2185_v63, 5  ;;  %v10424_v2 = vand.u32 31, %v2185_v63  ;;  %vm1084_vm10 = vweird.f32 %v9344_v8  ;;  %v1197_v9 = vsub.s32 %v1193_v42, %v1196_v7 }
 0x1a2   :  { %v1083_v4 = vmul.f32 %v1082_v13, %v1067_v60  ;;  %vm1086_vm6 = vcmp.lt.s32.totalorder %v1085_v51, 2  ;;  %vm1087_vm15 = vcmp.eq.s32.totalorder %v1085_v51, 0  ;;  %v1091_v29 = vxor.u32 2147483648, %v1075_v44 }
 0x1a3   :  { %vm1198_vm5 = vcmp.lt.s32.totalorder %v1197_v9, 0  ;;  %v1199_v48 = vsub.s32 0, %v1197_v9  ;;  %v1303_v58 = vmul.u32 %v1301_v31, %v1298_v32  ;;  %v1323_v6 = vshrl.u32 %v1292_v10, 16 }
 0x1a4   :  { %v1088_v30 = vxor.u32 2147483648, %v1083_v4  ;;  %vm1090_vm11 = vcmp.eq.s32.totalorder %v1085_v51, 2  ;;  %v1302_v34 = vmul.u32 %v1300_v17, %v1298_v32  ;;  %v1304_v43 = vmul.u32 %v1300_v17, %v1299_v21 }
 0x1a5   :  { %v1092_v49 = vsel %vm1090_vm11, %v1091_v29, %v1083_v4  ;;  %v1189_v63 = vadd.s32 %v10326_v39, %v10324_v38  ;;  %v1200_v15 = vsel %vm1198_vm5, %v1199_v48, %v1197_v9  ;;  %v1322_v18 = vand.u32 65535, %v1292_v10 }
 0x1a6   :  { %v1089_v22 = vsel %vm1087_vm15, %v1075_v44, %v1088_v30  ;;  %v1201_v42 = vclz %v1200_v15  ;;  %v1305_v60 = vmul.u32 %v1301_v31, %v1299_v21  ;;  %v1306_v7 = vshll.u32 %v1303_v58, 16 }
 0x1a7   :  { %v1093_v13 = vsel %vm1086_vm6, %v1089_v22, %v1092_v49  ;;  %v1265_v62 = vshrl.u32 %v17088_v33, %v17144_v12  ;;  %v1308_v19 = vshll.u32 %v1304_v43, 16  ;;  %v1325_v5 = vmul.u32 %v1323_v6, %v1298_v32 }
 0x1a8   :  { %v1094_v17 = vsel %vm1084_vm10, nan, %v1093_v13  ;;  %v8412_v4 = vadd.s32 4294967294, %v1201_v42  ;;  %vm1310_vm0 = vc.u32 %v1302_v34, %v1306_v7  ;;  %v1312_v29 = vadd.s32 %v1306_v7, %v1302_v34  ;;  %v336_v42 = vpop.permute.xlu1 %335 }
 0x1a9   :  { %8498 = vmatmul.msk.f32.gmra.mxu0 %vm204_vm4, %v1094_v17  ;;  %v1311_v38 = vsel %vm1310_vm0, 1, %v17071_v56  ;;  %v1324_v15 = vmul.u32 %v1322_v18, %v1298_v32  ;;  %v1326_v39 = vmul.u32 %v1322_v18, %v1299_v21  ;;  %v1328_v44 = vshll.u32 %v1325_v5, 16 }
 0x1aa   :  { %vm8413_vm9 = vcmp.lt.s32.totalorder %v8412_v4, 0  ;;  %v1307_v22 = vshrl.u32 %v1303_v58, 16  ;;  %v1313_v51 = vadd.s32 %v1311_v38, %v1305_v60  ;;  %vm1314_vm2 = vc.u32 %v1312_v29, %v1308_v19 }
 0x1ab   :  { %v1204_v12 = vsel %vm8413_vm9, 0, %v8412_v4  ;;  %v1315_v10 = vsel %vm1314_vm2, 1, %v17071_v56  ;;  %v1327_v31 = vmul.u32 %v1323_v6, %v1299_v21  ;;  %v1330_v8 = vshll.u32 %v1326_v39, 16 }
 0x1ac   :  { %v1205_v48 = vsub.s32 32, %v1204_v12  ;;  %v1209_v30 = vsub.s32 4294967266, %v1204_v12  ;;  %v1286_v34 = vsel %vm1284_vm13, %v10373_v55, 2102212464  ;;  %v1317_v49 = vadd.s32 %v1315_v10, %v1313_v51 }
 0x1ad   :  { %vm16982_vm10 = vcmp.lt.s32.totalorder %v10296_v16, 4  ;;  %v1206_v18 = vshll.u32 %v1197_v9, %v1204_v12  ;;  %v1309_v32 = vshrl.u32 %v1304_v43, 16  ;;  %vm1332_vm6 = vc.u32 %v1324_v15, %v1328_v44 }
 0x1ae   :  { %v1334_v58 = vadd.s32 %v1328_v44, %v1324_v15  ;;  %v1207_v19 = vshrl.u32 %v1189_v63, %v1205_v48  ;;  %v1210_v60 = vadd.s32 127, %v1209_v30  ;;  %v1318_v7 = vadd.s32 %v1317_v49, %v1307_v22  ;;  %v17154_v48 = vld [vmem:[#allocation59_spill] sm:$0xff] }
 0x1af   :  { %v1333_v21 = vsel %vm1332_vm6, 1, %v17071_v56  ;;  %v1285_v6 = vsel %vm1281_vm1, %v1265_v62, %v10369_v59  ;;  %v1329_v13 = vshrl.u32 %v1325_v5, 16  ;;  %v1287_v9 = vsel %vm1283_vm12, %v10371_v35, %v1286_v34 }
 0x1b0   :  { %v1335_v17 = vadd.s32 %v1333_v21, %v1327_v31  ;;  %vm1336_vm13 = vc.u32 %v1334_v58, %v1330_v8  ;;  %v1208_v55 = vor.u32 %v1207_v19, %v1206_v18  ;;  %v1211_v4 = vshll.u32 %v1210_v60, 23  ;;  %v17153_v31 = vld [vmem:[#allocation57_spill] sm:$0xff] }
 0x1b1   :  { %v1337_v43 = vsel %vm1336_vm13, 1, %v17071_v56  ;;  %vm3108_vm15 = vcmp.gt.s32.totalorder %v10377_v36, 0  ;;  %v10451_v63 = vmul.f32 %v10143_v26, %v336_v42  ;;  %v1331_v29 = vshrl.u32 %v1326_v39, 16  ;;  %v17152_v26 = vld [vmem:[#allocation41_spill] sm:$0xff] }
 0x1b2   :  { %v1339_v38 = vadd.s32 %v1337_v43, %v1335_v17  ;;  %v10455_v62 = vor.u32 %v10383_v20, %v10356_v28  ;;  %v1212_v5 = vor.u32 4788187, %v1211_v4  ;;  %v10457_v59 = vadd.s32 %v1318_v7, %v1309_v32 }
 0x1b3   :  { %17150 = vst [vmem:[#allocation30_spill] sm:$0xff] %v10451_v63  ;;  %v10459_v15 = vadd.s32 %v1334_v58, %v1330_v8  ;;  %v2820_v35 = vor.u32 %v10406_v11, %v10360_v46  ;;  %v1288_v44 = vsel %vm1282_vm7, %v1285_v6, %v1287_v9  ;;  %v16963_v51 = vand.u32 2147483647, %v17152_v26 }
 0x1b4   :  { %17151 = vst [vmem:[#allocation18_spill] sm:$0xff] %v10455_v62  ;;  %v1340_v22 = vadd.s32 %v1339_v38, %v1329_v13  ;;  %v10467_v39 = vsub.s32 32, %v10424_v2  ;;  %v3109_v28 = vsel %vm3108_vm15, %v10377_v36, 0  ;;  %v1213_v20 = vand.u32 2147483647, %v1212_v5 }
 0x1b5   :  { %v1215_v12 = vcvt.s32.f32 %v1208_v55  ;;  %v1423_v8 = vshll.u32 %v17086_v47, %v17153_v31  ;;  %v1424_v46 = vshrl.u32 %v17087_v61, %v17154_v48  ;;  %v1426_v27 = vshll.u32 %v17087_v61, %v17153_v31 }
 0x1b6   :  { %v1341_v10 = vadd.s32 %v1340_v22, %v1331_v29  ;;  %vm3262_vm1 = vcmp.gt.s32.totalorder %v10379_v54, 0  ;;  %v1342_v30 = vmul.u32 %v10412_v3, %v1288_v44  ;;  %vm1344_vm12 = vc.u32 %v10457_v59, %v10459_v15 }
 0x1b7   :  { %v1216_v11 = vmul.f32 %v1215_v12, %v1213_v20  ;;  %v1427_v36 = vshrl.u32 %v17073_v14, %v17154_v48  ;;  %v2199_v34 = vshll.u32 %v17073_v14, %v10424_v2  ;;  %v10486_v49 = vshll.u32 %v17067_v40, %v10424_v2 }
 0x1b8   :  { %v1345_v18 = vadd.s32 1, %v1341_v10  ;;  %v1410_v32 = vand.u32 8388607, %v16963_v51  ;;  %v10493_v3 = vsel %vm16982_vm10, %v10455_v62, 920167782  ;;  %vm1097_vm7 = vcmp.lt.s32.totalorder %v17119_v57, 0 }
 0x1b9   :  { %17155 = vst [vmem:[#allocation24_spill] sm:$0xff] %v10493_v3  ;;  %v1217_v58 = vxor.u32 2147483648, %v1216_v11  ;;  %v1219_v42 = vsub.s32 4, %v10408_v52  ;;  %v17156_v19 = vand.u32 2147483647, %v17119_v57  ;;  %v10503_v21 = vor.u32 %v1424_v46, %v1423_v8 }
 0x1ba   :  { %v1346_v7 = vsel %vm1344_vm12, %v1345_v18, %v1341_v10  ;;  %v10505_v6 = vor.u32 %v1427_v36, %v1426_v27  ;;  %vm1435_vm11 = vcmp.lt.s32.totalorder %v9750_v0, 1  ;;  %vm1437_vm0 = vcmp.lt.s32.totalorder %v9750_v0, 3 }
 0x1bb   :  { %vm10499_vm5 = vcmp.le.f32.partialorder %v17156_v19, 0.7853982  ;;  %v1218_v13 = vsel %vm1097_vm7, %v1217_v58, %v1216_v11  ;;  %v1347_v17 = vadd.s32 %v1346_v7, %v1342_v30  ;;  %v10513_v55 = vsel %vm16982_vm10, %v2820_v35, 1326507024 }
 0x1bc   :  { %17159 = vst [vmem:[#allocation26_spill] sm:$0xff] %v10513_v55  ;;  %v10515_v4 = vshrl.u32 %v3109_v28, 5  ;;  %v1221_v9 = vsel %vm10499_vm5, %v17119_v57, %v1218_v13  ;;  %v1411_v43 = vor.u32 8388608, %v1410_v32  ;;  %v10520_v29 = vand.u32 31, %v3109_v28 }
 0x1bd   :  { %v1220_v38 = vsel %vm1097_vm7, %v1219_v42, %v10408_v52  ;;  %v1223_v5 = vmul.f32 %v1221_v9, %v1221_v9  ;;  %v1348_v44 = vadd.s32 536870912, %v1347_v17  ;;  %v2200_v22 = vshrl.u32 %v17067_v40, %v10467_v39 }
 0x1be   :  { %17160 = vst [vmem:[#allocation27_spill] sm:$0xff] %v10515_v4  ;;  %vm1436_vm9 = vcmp.lt.s32.totalorder %v9750_v0, 2  ;;  %v1447_v35 = vsel %vm1435_vm11, %v10503_v21, %v10505_v6  ;;  %v1449_v28 = vsel %vm1437_vm0, %v9844_v45, %v9912_v41  ;;  %v1420_v52 = vshll.u32 %v17088_v33, %v17153_v31 }
 0x1bf   :  { %17161 = vst [vmem:[#allocation34_spill] sm:$0xff] %v10520_v29  ;;  %v1224_v20 = vmul.f32 -0.001358992, %v1223_v5  ;;  %v1231_v12 = vmul.f32 -0.00019511016, %v1223_v5  ;;  %v1421_v10 = vshrl.u32 %v17086_v47, %v17154_v48  ;;  %v10542_v8 = vshrl.u32 %v17070_v53, %v10467_v39 }
 0x1c0   :  { %v1222_v46 = vsel %vm10499_vm5, 0, %v1220_v38  ;;  %v10546_v27 = vshrl.u32 %v1348_v44, 30  ;;  %v10548_v11 = vshll.u32 %v1411_v43, 8  ;;  %v1450_v31 = vsel %vm1436_vm9, %v1447_v35, %v1449_v28 }
 0x1c1   :  { %v1225_v41 = vadd.f32 0.041655596, %v1224_v20  ;;  %v1232_v30 = vadd.f32 0.008332121, %v1231_v12  ;;  %v10554_v36 = vsub.s32 32, %v10520_v29  ;;  %v10558_v18 = vshll.u32 %v17073_v14, %v10520_v29 }
 0x1c2   :  { %v10563_v32 = vsel %vm3262_vm1, %v10379_v54, 0  ;;  %v1350_v58 = vshll.u32 %v10546_v27, 30  ;;  %v1239_v60 = vand.u32 3, %v1222_v46  ;;  %v1422_v7 = vor.u32 %v1421_v10, %v1420_v52 }
 0x1c3   :  { %17162 = vst [vmem:[#allocation28_spill] sm:$0xff] %v10554_v36  ;;  %v1226_v42 = vmul.f32 %v1225_v41, %v1223_v5  ;;  %v1233_v19 = vmul.f32 %v1232_v30, %v1223_v5  ;;  %v1452_v43 = vand.u32 65535, %v10548_v11  ;;  %v1454_v38 = vand.u32 65535, %v1450_v31 }
 0x1c4   :  { %v10566_v13 = vsub.s32 %v1347_v17, %v1350_v58  ;;  %v1455_v44 = vshrl.u32 %v1450_v31, 16  ;;  %v10569_v35 = vor.u32 %v2200_v22, %v2199_v34  ;;  %v10573_v28 = vshll.u32 %v17067_v40, %v10520_v29 }
 0x1c5   :  { %v1227_v54 = vadd.f32 -0.4999988, %v1226_v42  ;;  %v1234_v20 = vadd.f32 -0.16666654, %v1233_v19  ;;  %v1453_v52 = vshrl.u32 %v10548_v11, 16  ;;  %vm1240_vm6 = vcmp.lt.s32.totalorder %v1239_v60, 2 }
 0x1c6   :  { %vm1352_vm2 = vcmp.lt.s32.totalorder %v10566_v13, 0  ;;  %v1353_v12 = vsub.s32 0, %v10566_v13  ;;  %v10578_v17 = vmul.u32 %v1455_v44, %v1452_v43  ;;  %v1443_v34 = vsel %vm1435_vm11, %v1422_v7, %v10503_v21 }
 0x1c7   :  { %v1228_v10 = vmul.f32 %v1227_v54, %v1223_v5  ;;  %v1235_v46 = vmul.f32 %v1234_v20, %v1223_v5  ;;  %v1445_v22 = vsel %vm1437_vm0, %v10505_v6, %v9898_v50  ;;  %vm1238_vm13 = vweird.f32 %v17119_v57 }
 0x1c8   :  { %vm1241_vm15 = vcmp.eq.s32.totalorder %v1239_v60, 0  ;;  %vm1244_vm1 = vcmp.eq.s32.totalorder %v1239_v60, 2  ;;  %v1354_v41 = vsel %vm1352_vm2, %v1353_v12, %v10566_v13  ;;  %v10589_v30 = vmul.u32 %v1454_v38, %v1453_v52 }
 0x1c9   :  { %v1229_v31 = vadd.f32 1.0, %v1228_v10  ;;  %v1236_v5 = vadd.f32 1.0, %v1235_v46  ;;  %v1355_v58 = vclz %v1354_v41  ;;  %v1460_v42 = vshll.u32 %v10578_v17, 16 }
 0x1ca   :  { %v1343_v19 = vadd.s32 %v10459_v15, %v10457_v59  ;;  %v1419_v54 = vshrl.u32 %v17088_v33, %v17154_v48  ;;  %v1446_v50 = vsel %vm1436_vm9, %v1443_v34, %v1445_v22  ;;  %v1456_v20 = vmul.u32 %v1454_v38, %v1452_v43 }
 0x1cb   :  { %v1237_v51 = vmul.f32 %v1236_v5, %v1221_v9  ;;  %v1245_v45 = vxor.u32 2147483648, %v1229_v31  ;;  %v8415_v12 = vadd.s32 4294967294, %v1355_v58  ;;  %vm17163_vm12 = vcmp.lt.s32.totalorder %v9750_v0, 4 }
 0x1cc   :  { %v1440_v10 = vsel %vm17163_vm12, %v10505_v6, 2102212464  ;;  %v1459_v46 = vmul.u32 %v1455_v44, %v1453_v52  ;;  %v1462_v41 = vshll.u32 %v10589_v30, 16  ;;  %vm1464_vm7 = vc.u32 %v1456_v20, %v1460_v42 }
 0x1cd   :  { %v1466_v3 = vadd.s32 %v1460_v42, %v1456_v20  ;;  %v1242_v59 = vxor.u32 2147483648, %v1237_v51  ;;  %vm8416_vm5 = vcmp.lt.s32.totalorder %v8415_v12, 0  ;;  %v1465_v15 = vsel %vm1464_vm7, 1, %v17071_v56 }
 0x1ce   :  { %v1476_v48 = vand.u32 65535, %v1446_v50  ;;  %v1358_v62 = vsel %vm8416_vm5, 0, %v8415_v12  ;;  %v1467_v34 = vadd.s32 %v1465_v15, %v1459_v46  ;;  %v1477_v9 = vshrl.u32 %v1446_v50, 16 }
 0x1cf   :  { %vm1468_vm2 = vc.u32 %v1466_v3, %v1462_v41  ;;  %v1243_v38 = vsel %vm1241_vm15, %v1229_v31, %v1242_v59  ;;  %v1246_v22 = vsel %vm1244_vm1, %v1245_v45, %v1237_v51  ;;  %v1359_v5 = vsub.s32 32, %v1358_v62 }
 0x1d0   :  { %v1363_v6 = vsub.s32 4294967266, %v1358_v62  ;;  %v1247_v44 = vsel %vm1240_vm6, %v1243_v38, %v1246_v22  ;;  %v1360_v58 = vshll.u32 %v10566_v13, %v1358_v62  ;;  %v1469_v42 = vsel %vm1468_vm2, 1, %v17071_v56 }
 0x1d1   :  { %v1479_v20 = vmul.u32 %v1477_v9, %v1452_v43  ;;  %v1248_v55 = vsel %vm1238_vm13, nan, %v1247_v44  ;;  %v1361_v12 = vshrl.u32 %v1343_v19, %v1359_v5  ;;  %v1471_v3 = vadd.s32 %v1469_v42, %v1467_v34 }
 0x1d2   :  { %v1364_v46 = vadd.s32 127, %v1363_v6  ;;  %8499 = vmatmul.msk.f32.gmra.mxu0 %vm204_vm4, %v1248_v55  ;;  %v1439_v51 = vsel %vm1435_vm11, %v1419_v54, %v1422_v7  ;;  %v1478_v45 = vmul.u32 %v1476_v48, %v1452_v43  ;;  %v1480_v31 = vmul.u32 %v1476_v48, %v1453_v52 }
 0x1d3   :  { %v1482_v60 = vshll.u32 %v1479_v20, 16  ;;  %v1362_v50 = vor.u32 %v1361_v12, %v1360_v58  ;;  %v1441_v62 = vsel %vm1437_vm0, %v10503_v21, %v1440_v10  ;;  %v1461_v57 = vshrl.u32 %v10578_v17, 16 }
 0x1d4   :  { %v1365_v41 = vshll.u32 %v1364_v46, 23  ;;  %v1481_v13 = vmul.u32 %v1477_v9, %v1453_v52  ;;  %v1484_v19 = vshll.u32 %v1480_v31, 16  ;;  %v17164_v55 = vand.u32 2147483647, %v17142_v37  ;;  %v17167_v9 = vld [vmem:[#allocation19_spill] sm:$0xff] }
 0x1d5   :  { %vm1486_vm6 = vc.u32 %v1478_v45, %v1482_v60  ;;  %v1488_v59 = vadd.s32 %v1482_v60, %v1478_v45  ;;  %vm1251_vm11 = vcmp.lt.s32.totalorder %v17142_v37, 0  ;;  %v1472_v43 = vadd.s32 %v1471_v3, %v1461_v57  ;;  %v17169_v3 = vld [vmem:[#allocation33_spill] sm:$0xff] }
 0x1d6   :  { %vm10619_vm13 = vcmp.le.f32.partialorder %v17164_v55, 0.7853982  ;;  %v1366_v7 = vor.u32 4788187, %v1365_v41  ;;  %v1487_v54 = vsel %vm1486_vm6, 1, %v17071_v56  ;;  %v1442_v21 = vsel %vm1436_vm9, %v1439_v51, %v1441_v62  ;;  %v17170_v55 = vld [vmem:[#allocation36_spill] sm:$0xff] }
 0x1d7   :  { %v1463_v52 = vshrl.u32 %v10589_v30, 16  ;;  %v1489_v17 = vadd.s32 %v1487_v54, %v1481_v13  ;;  %vm1490_vm0 = vc.u32 %v1488_v59, %v1484_v19  ;;  %v1369_v48 = vcvt.s32.f32 %v1362_v50  ;;  %v17168_v30 = vld [vmem:[#allocation29_spill] sm:$0xff] }
 0x1d8   :  { %v1367_v10 = vand.u32 2147483647, %v1366_v7  ;;  %v1491_v34 = vsel %vm1490_vm0, 1, %v17071_v56  ;;  %v16965_v38 = vand.u32 2147483647, %v17167_v9  ;;  %v1373_v22 = vsub.s32 4, %v10546_v27 }
 0x1d9   :  { %v1483_v5 = vshrl.u32 %v1479_v20, 16  ;;  %v1485_v6 = vshrl.u32 %v1480_v31, 16  ;;  %v1493_v44 = vadd.s32 %v1491_v34, %v1489_v17  ;;  %v10631_v42 = vadd.s32 %v1472_v43, %v1463_v52 }
 0x1da   :  { %v1370_v58 = vmul.f32 %v1369_v48, %v1367_v10  ;;  %v1564_v0 = vand.u32 8388607, %v16965_v38  ;;  %v1574_v12 = vshll.u32 %v17088_v33, %v17168_v30  ;;  %v1575_v51 = vshrl.u32 %v17086_v47, %v17169_v3 }
 0x1db   :  { %v1494_v46 = vadd.s32 %v1493_v44, %v1483_v5  ;;  %v1577_v45 = vshll.u32 %v17086_v47, %v17168_v30  ;;  %v1578_v20 = vshrl.u32 %v17087_v61, %v17169_v3  ;;  %v10643_v60 = vadd.s32 %v1488_v59, %v1484_v19  ;;  %v17173_v44 = vld [vmem:[#allocation37_spill] sm:$0xff] }
 0x1dc   :  { %v1371_v31 = vxor.u32 2147483648, %v1370_v58  ;;  %v1580_v50 = vshll.u32 %v17087_v61, %v17168_v30  ;;  %v1581_v41 = vshrl.u32 %v17073_v14, %v17169_v3  ;;  %v1374_v62 = vsel %vm1251_vm11, %v1373_v22, %v10546_v27 }
 0x1dd   :  { %v1495_v57 = vadd.s32 %v1494_v46, %v1485_v6  ;;  %v10652_v13 = vor.u32 %v1578_v20, %v1577_v45  ;;  %vm1589_vm9 = vcmp.lt.s32.totalorder %v17170_v55, 1  ;;  %vm1498_vm15 = vc.u32 %v10631_v42, %v10643_v60  ;;  %v17172_v6 = vld [vmem:[#allocation40_spill] sm:$0xff]  ;;  %v17174_v46 = vld [vmem:[#allocation38_spill] sm:$0xff] }
 0x1de   :  { %v1372_v7 = vsel %vm1251_vm11, %v1371_v31, %v1370_v58  ;;  %v10659_v19 = vor.u32 %v1581_v41, %v1580_v50  ;;  %vm1591_vm1 = vcmp.lt.s32.totalorder %v17170_v55, 3  ;;  %v1565_v43 = vor.u32 8388608, %v1564_v0 }
 0x1df   :  { %v1375_v59 = vsel %vm10619_vm13, %v17142_v37, %v1372_v7  ;;  %v1499_v27 = vadd.s32 1, %v1495_v57  ;;  %v10665_v54 = vor.u32 %v1575_v51, %v1574_v12  ;;  %v1496_v17 = vmul.u32 %v10548_v11, %v1442_v21 }
 0x1e0   :  { %v1377_v52 = vmul.f32 %v1375_v59, %v1375_v59  ;;  %vm1590_vm12 = vcmp.lt.s32.totalorder %v17170_v55, 2  ;;  %v1601_v10 = vsel %vm1589_vm9, %v10652_v13, %v10659_v19  ;;  %v17171_v34 = vand.u32 2139095040, %v10451_v63 }
 0x1e1   :  { %v1500_v5 = vsel %vm1498_vm15, %v1499_v27, %v1495_v57  ;;  %v1603_v11 = vsel %vm1591_vm1, %v17173_v44, %v17172_v6  ;;  %v1376_v21 = vsel %vm10619_vm13, 0, %v1374_v62  ;;  %v1597_v12 = vsel %vm1589_vm9, %v10665_v54, %v10652_v13 }
 0x1e2   :  { %v10677_v22 = vshrl.u32 %v17171_v34, 23  ;;  %v1378_v58 = vmul.f32 -0.001358992, %v1377_v52  ;;  %v1385_v0 = vmul.f32 -0.00019511016, %v1377_v52  ;;  %v1501_v30 = vadd.s32 %v1500_v5, %v1496_v17 }
 0x1e3   :  { %v1599_v51 = vsel %vm1591_vm1, %v10659_v19, %v17174_v46  ;;  %v1604_v45 = vsel %vm1590_vm12, %v1601_v10, %v1603_v11  ;;  %v10695_v20 = vshll.u32 %v1565_v43, 8  ;;  %v1393_v62 = vand.u32 3, %v1376_v21 }
 0x1e4   :  { %v1379_v15 = vadd.f32 0.041655596, %v1378_v58  ;;  %v1386_v31 = vadd.f32 0.008332121, %v1385_v0  ;;  %v1502_v50 = vadd.s32 536870912, %v1501_v30  ;;  %v1608_v41 = vand.u32 65535, %v1604_v45 }
 0x1e5   :  { %v1606_v57 = vand.u32 65535, %v10695_v20  ;;  %v1607_v7 = vshrl.u32 %v10695_v20, 16  ;;  %v1609_v27 = vshrl.u32 %v1604_v45, 16  ;;  %v1600_v6 = vsel %vm1590_vm12, %v1597_v12, %v1599_v51 }
 0x1e6   :  { %v1380_v17 = vmul.f32 %v1379_v15, %v1377_v52  ;;  %v1387_v34 = vmul.f32 %v1386_v31, %v1377_v52  ;;  %v10699_v5 = vshrl.u32 %v1502_v50, 30  ;;  %v10704_v43 = vshrl.u32 %v10563_v32, 5 }
 0x1e7   :  { %v1610_v10 = vmul.u32 %v1608_v41, %v1606_v57  ;;  %v1611_v44 = vmul.u32 %v1609_v27, %v1606_v57  ;;  %v10706_v11 = vmul.u32 %v1608_v41, %v1607_v7  ;;  %v10710_v21 = vshrl.u32 %v17067_v40, %v10554_v36 }
 0x1e8   :  { %v1381_v58 = vadd.f32 -0.4999988, %v1380_v17  ;;  %v1388_v0 = vadd.f32 -0.16666654, %v1387_v34  ;;  %v1504_v46 = vshll.u32 %v10699_v5, 30  ;;  %vm1395_vm7 = vcmp.eq.s32.totalorder %v1393_v62, 0 }
 0x1e9   :  { %v1614_v45 = vshll.u32 %v1611_v44, 16  ;;  %v1616_v15 = vshll.u32 %v10706_v11, 16  ;;  %v1631_v12 = vshrl.u32 %v1600_v6, 16  ;;  %vm1394_vm5 = vcmp.lt.s32.totalorder %v1393_v62, 2 }
 0x1ea   :  { %v1382_v51 = vmul.f32 %v1381_v58, %v1377_v52  ;;  %v1389_v31 = vmul.f32 %v1388_v0, %v1377_v52  ;;  %v10714_v50 = vsub.s32 %v1501_v30, %v1504_v46  ;;  %v1613_v41 = vmul.u32 %v1609_v27, %v1607_v7 }
 0x1eb   :  { %vm1392_vm2 = vweird.f32 %v17142_v37  ;;  %v1573_v38 = vshrl.u32 %v17088_v33, %v17169_v3  ;;  %vm1618_vm6 = vc.u32 %v1610_v10, %v1614_v45  ;;  %v1620_v17 = vadd.s32 %v1614_v45, %v1610_v10 }
 0x1ec   :  { %v1630_v34 = vand.u32 65535, %v1600_v6  ;;  %v1383_v48 = vadd.f32 1.0, %v1382_v51  ;;  %v1390_v16 = vadd.f32 1.0, %v1389_v31  ;;  %vm1506_vm13 = vcmp.lt.s32.totalorder %v10714_v50, 0 }
 0x1ed   :  { %v1507_v63 = vsub.s32 0, %v10714_v50  ;;  %vm1398_vm11 = vcmp.eq.s32.totalorder %v1393_v62, 2  ;;  %v1619_v52 = vsel %vm1618_vm6, 1, %v17071_v56  ;;  %vm1622_vm0 = vc.u32 %v1620_v17, %v1616_v15 }
 0x1ee   :  { %v1633_v30 = vmul.u32 %v1631_v12, %v1606_v57  ;;  %v1391_v27 = vmul.f32 %v1390_v16, %v1375_v59  ;;  %v1399_v58 = vxor.u32 2147483648, %v1383_v48  ;;  %v1621_v46 = vadd.s32 %v1619_v52, %v1613_v41 }
 0x1ef   :  { %v1508_v0 = vsel %vm1506_vm13, %v1507_v63, %v10714_v50  ;;  %v1497_v3 = vadd.s32 %v10643_v60, %v10631_v42  ;;  %v1593_v10 = vsel %vm1589_vm9, %v1573_v38, %v10665_v54  ;;  %v1632_v45 = vmul.u32 %v1630_v34, %v1606_v57 }
 0x1f0   :  { %v1509_v6 = vclz %v1508_v0  ;;  %vm2208_vm15 = vcmp.lt.s32.totalorder %v10422_v25, 4  ;;  %v1396_v51 = vxor.u32 2147483648, %v1391_v27  ;;  %vm17175_vm6 = vcmp.lt.s32.totalorder %v17170_v55, 4 }
 0x1f1   :  { %v1594_v16 = vsel %vm17175_vm6, %v10659_v19, 2102212464  ;;  %v1623_v59 = vsel %vm1622_vm0, 1, %v17071_v56  ;;  %v1634_v63 = vmul.u32 %v1630_v34, %v1607_v7  ;;  %v1615_v31 = vshrl.u32 %v1611_v44, 16 }
 0x1f2   :  { %v8418_v15 = vadd.s32 4294967294, %v1509_v6  ;;  %v1625_v41 = vadd.s32 %v1623_v59, %v1621_v46  ;;  %v1636_v42 = vshll.u32 %v1633_v30, 16  ;;  %v1397_v60 = vsel %vm1395_vm7, %v1383_v48, %v1396_v51  ;;  %v17176_v46 = vld [vmem:[#allocation35_spill] sm:$0xff] }
 0x1f3   :  { %v1400_v17 = vsel %vm1398_vm11, %v1399_v58, %v1391_v27  ;;  %v1635_v38 = vmul.u32 %v1631_v12, %v1607_v7  ;;  %v1638_v54 = vshll.u32 %v1634_v63, 16  ;;  %v1595_v19 = vsel %vm1591_vm1, %v10652_v13, %v1594_v16 }
 0x1f4   :  { %v1401_v57 = vsel %vm1394_vm5, %v1397_v60, %v1400_v17  ;;  %vm8419_vm9 = vcmp.lt.s32.totalorder %v8418_v15, 0  ;;  %vm1640_vm13 = vc.u32 %v1632_v45, %v1636_v42  ;;  %v1642_v0 = vadd.s32 %v1636_v42, %v1632_v45  ;;  %v17178_v17 = vld [vmem:[#allocation50_spill] sm:$0xff] }
 0x1f5   :  { %v1402_v34 = vsel %vm1392_vm2, nan, %v1401_v57  ;;  %v1512_v44 = vsel %vm8419_vm9, 0, %v8418_v15  ;;  %v1641_v52 = vsel %vm1640_vm13, 1, %v17071_v56  ;;  %v1617_v62 = vshrl.u32 %v10706_v11, 16 }
 0x1f6   :  { %8500 = vmatmul.msk.f32.gmra.mxu0 %vm204_vm4, %v1402_v34  ;;  %v1513_v48 = vsub.s32 32, %v1512_v44  ;;  %v1517_v7 = vsub.s32 4294967266, %v1512_v44  ;;  %v1626_v12 = vadd.s32 %v1625_v41, %v1615_v31  ;;  %v1637_v27 = vshrl.u32 %v1633_v30, 16  ;;  %v349_v31 = vpop.permute.xlu1 %348  ;;  %v10781_v34 = vld [vmem:[%s17040_s0] ss:$0 sm:$0xff] }
 0x1f7   :  { %v1643_v58 = vadd.s32 %v1641_v52, %v1635_v38  ;;  %vm1644_vm7 = vc.u32 %v1642_v0, %v1638_v54  ;;  %v16970_v13 = vand.u32 2147483647, %v17176_v46  ;;  %v1514_v6 = vshll.u32 %v10714_v50, %v1512_v44  ;;  %v17179_v38 = vld [vmem:[#allocation55_spill] sm:$0xff] }
 0x1f8   :  { %v1515_v37 = vshrl.u32 %v1497_v3, %v1513_v48  ;;  %v1518_v51 = vadd.s32 127, %v1517_v7  ;;  %v1645_v16 = vsel %vm1644_vm7, 1, %v17071_v56  ;;  %v10748_v45 = vand.u32 31, %v10563_v32 }
 0x1f9   :  { %v1596_v59 = vsel %vm1590_vm12, %v1593_v10, %v1595_v19  ;;  %v1639_v15 = vshrl.u32 %v1634_v63, 16  ;;  %v1647_v11 = vadd.s32 %v1645_v16, %v1643_v58  ;;  %v10752_v42 = vadd.s32 %v1626_v12, %v1617_v62  ;;  %v17182_v58 = vld [vmem:[#allocation53_spill] sm:$0xff] }
 0x1fa   :  { %17177 = vst [vmem:[#allocation32_spill] sm:$0xff] %v10748_v45  ;;  %v1516_v30 = vor.u32 %v1515_v37, %v1514_v6  ;;  %v1519_v41 = vshll.u32 %v1518_v51, 23  ;;  %v10754_v60 = vadd.s32 %v1642_v0, %v1638_v54  ;;  %v1718_v3 = vand.u32 8388607, %v16970_v13 }
 0x1fb   :  { %v1648_v50 = vadd.s32 %v1647_v11, %v1637_v27  ;;  %v1731_v32 = vshll.u32 %v17086_v47, %v17178_v17  ;;  %v1732_v55 = vshrl.u32 %v17087_v61, %v17179_v38  ;;  %v10765_v10 = vsel %vm2208_vm15, %v10569_v35, 920167782 }
 0x1fc   :  { %v17180_v63 = vor.u32 %v10542_v8, %v10486_v49  ;;  %v10776_v57 = vshrl.u32 %v17070_v53, %v10554_v36  ;;  %v1520_v19 = vor.u32 4788187, %v1519_v41  ;;  %v10784_v44 = vmul.f32 %v10781_v34, %v349_v31  ;;  %v17183_v31 = vld [vmem:[#allocation61_spill] sm:$0xff] }
 0x1fd   :  { %v1649_v52 = vadd.s32 %v1648_v50, %v1639_v15  ;;  %v1650_v49 = vmul.u32 %v10695_v20, %v1596_v59  ;;  %v1734_v8 = vshll.u32 %v17087_v61, %v17178_v17  ;;  %vm3132_vm1 = vcmp.lt.s32.totalorder %v10515_v4, 4 }
 0x1fe   :  { %v10772_v54 = vsel %vm2208_vm15, %v17180_v63, 1326507024  ;;  %17181 = vst [vmem:[#allocation41_spill] sm:$0xff] %v10784_v44  ;;  %v1521_v0 = vand.u32 2147483647, %v1520_v19  ;;  %v1523_v48 = vcvt.s32.f32 %v1516_v30  ;;  %vm1652_vm12 = vc.u32 %v10752_v42, %v10754_v60  ;;  %v17184_v30 = vld [vmem:[#allocation58_spill] sm:$0xff] }
 0x1ff   :  { %v1735_v7 = vshrl.u32 %v17073_v14, %v17179_v38  ;;  %v1653_v62 = vadd.s32 1, %v1649_v52  ;;  %v1719_v12 = vor.u32 8388608, %v1718_v3  ;;  %v10794_v27 = vor.u32 %v1732_v55, %v1731_v32 }
 0x200   :  { %vm1745_vm5 = vcmp.lt.s32.totalorder %v17182_v58, 3  ;;  %v8441_v20 = vadd.s32 4294967169, %v10677_v22  ;;  %v1524_v6 = vmul.f32 %v1523_v48, %v1521_v0  ;;  %vm1743_vm2 = vcmp.lt.s32.totalorder %v17182_v58, 1 }
 0x201   :  { %v10798_v37 = vor.u32 %v1735_v7, %v1734_v8  ;;  %v2946_v51 = vand.u32 2139095040, %v10784_v44  ;;  %vm1405_vm11 = vcmp.lt.s32.totalorder %v17152_v26, 0  ;;  %v1527_v16 = vsub.s32 4, %v10699_v5 }
 0x202   :  { %v1654_v59 = vsel %vm1652_vm12, %v1653_v62, %v1649_v52  ;;  %v1525_v15 = vxor.u32 2147483648, %v1524_v6  ;;  %vm1744_vm0 = vcmp.lt.s32.totalorder %v17182_v58, 2  ;;  %v1757_v22 = vsel %vm1745_vm5, %v17184_v30, %v17183_v31 }
 0x203   :  { %v1655_v11 = vadd.s32 %v1654_v59, %v1650_v49  ;;  %v1728_v41 = vshll.u32 %v17088_v33, %v17178_v17  ;;  %v1729_v50 = vshrl.u32 %v17086_v47, %v17179_v38  ;;  %v1755_v3 = vsel %vm1743_vm2, %v10794_v27, %v10798_v37 }
 0x204   :  { %v10817_v32 = vshll.u32 %v1719_v12, 8  ;;  %v10821_v55 = vor.u32 %v10710_v21, %v10558_v18  ;;  %v17186_v63 = vand.u32 2147483647, %v17152_v26  ;;  %v1526_v17 = vsel %vm1405_vm11, %v1525_v15, %v1524_v6 }
 0x205   :  { %v1656_v52 = vadd.s32 536870912, %v1655_v11  ;;  %v3128_v49 = vor.u32 %v10776_v57, %v10573_v28  ;;  %v2947_v8 = vshrl.u32 %v2946_v51, 23  ;;  %v1758_v18 = vsel %vm1744_vm0, %v1755_v3, %v1757_v22 }
 0x206   :  { %17185 = vst [vmem:[#allocation57_spill] sm:$0xff] %v10821_v55  ;;  %vm10825_vm6 = vcmp.le.f32.partialorder %v17186_v63, 0.7853982  ;;  %v10839_v21 = vsub.s32 32, %v10748_v45  ;;  %v1528_v48 = vsel %vm1405_vm11, %v1527_v16, %v10699_v5  ;;  %v10848_v28 = vshll.u32 %v17073_v14, %v10748_v45 }
 0x207   :  { %v1529_v0 = vsel %vm10825_vm6, %v17152_v26, %v1526_v17  ;;  %v10844_v62 = vshrl.u32 %v1656_v52, 30  ;;  %v10850_v57 = vor.u32 %v1729_v50, %v1728_v41  ;;  %v10853_v12 = vand.u32 65535, %v10817_v32  ;;  %v17191_v52 = vld [vmem:[#allocation60_spill] sm:$0xff] }
 0x208   :  { %17189 = vst [vmem:[#allocation59_spill] sm:$0xff] %v10839_v21  ;;  %v1531_v7 = vmul.f32 %v1529_v0, %v1529_v0  ;;  %v1763_v6 = vshrl.u32 %v1758_v18, 16  ;;  %v10855_v51 = vadd.s32 1, %v8441_v20  ;;  %v10859_v59 = vshll.u32 %v17067_v40, %v10748_v45 }
 0x209   :  { %v10864_v15 = vsel %vm3132_vm1, %v10821_v55, 920167782  ;;  %v8447_v31 = vadd.s32 4294967169, %v2947_v8  ;;  %v1530_v30 = vsel %vm10825_vm6, 0, %v1528_v48  ;;  %v1658_v22 = vshll.u32 %v10844_v62, 30 }
 0x20a   :  { %v1532_v5 = vmul.f32 -0.001358992, %v1531_v7  ;;  %v1539_v16 = vmul.f32 -0.00019511016, %v1531_v7  ;;  %17190 = vst [vmem:[#allocation19_spill] sm:$0xff] %v10864_v15  ;;  %v10870_v50 = vshrl.u32 %v10817_v32, 16  ;;  %v1751_v17 = vsel %vm1743_vm2, %v10850_v57, %v10794_v27 }
 0x20b   :  { %v1762_v3 = vand.u32 65535, %v1758_v18  ;;  %v10872_v63 = vsub.s32 %v1655_v11, %v1658_v22  ;;  %v1753_v19 = vsel %vm1745_vm5, %v10798_v37, %v17191_v52  ;;  %v10883_v8 = vmul.u32 %v1763_v6, %v10853_v12 }
 0x20c   :  { %v1533_v41 = vadd.f32 0.041655596, %v1532_v5  ;;  %v1540_v20 = vadd.f32 0.008332121, %v1539_v16  ;;  %v10887_v48 = vsel %vm3132_vm1, %v3128_v49, 1326507024  ;;  %v10891_v16 = vshrl.u32 %v17067_v40, %v10839_v21 }
 0x20d   :  { %17192 = vst [vmem:[#allocation29_spill] sm:$0xff] %v10887_v48  ;;  %v1547_v5 = vand.u32 3, %v1530_v30  ;;  %v10895_v22 = vshrl.u32 %v17070_v53, %v10839_v21  ;;  %vm1660_vm9 = vcmp.lt.s32.totalorder %v10872_v63, 0  ;;  %v1661_v52 = vsub.s32 0, %v10872_v63 }
 0x20e   :  { %v1534_v18 = vmul.f32 %v1533_v41, %v1531_v7  ;;  %v1541_v11 = vmul.f32 %v1540_v20, %v1531_v7  ;;  %v1754_v49 = vsel %vm1744_vm0, %v1751_v17, %v1753_v19  ;;  %v10902_v41 = vmul.u32 %v1762_v3, %v10870_v50 }
 0x20f   :  { %vm2646_vm13 = vcmp.gt.s32.totalorder %v10855_v51, 0  ;;  %v10905_v30 = vadd.s32 1, %v8447_v31  ;;  %v1662_v20 = vsel %vm1660_vm9, %v1661_v52, %v10872_v63  ;;  %v1764_v21 = vmul.u32 %v1762_v3, %v10853_v12 }
 0x210   :  { %v1535_v13 = vadd.f32 -0.4999988, %v1534_v18  ;;  %v1542_v45 = vadd.f32 -0.16666654, %v1541_v11  ;;  %v1768_v15 = vshll.u32 %v10883_v8, 16  ;;  %vm1548_vm7 = vcmp.lt.s32.totalorder %v1547_v5, 2 }
 0x211   :  { %vm1549_vm12 = vcmp.eq.s32.totalorder %v1547_v5, 0  ;;  %vm1546_vm11 = vweird.f32 %v17152_v26  ;;  %vm1552_vm6 = vcmp.eq.s32.totalorder %v1547_v5, 2  ;;  %v1663_v17 = vclz %v1662_v20 }
 0x212   :  { %v1536_v55 = vmul.f32 %v1535_v13, %v1531_v7  ;;  %v1543_v48 = vmul.f32 %v1542_v45, %v1531_v7  ;;  %v1767_v19 = vmul.u32 %v1763_v6, %v10870_v50  ;;  %v1785_v18 = vshrl.u32 %v1754_v49, 16 }
 0x213   :  { %v1770_v4 = vshll.u32 %v10902_v41, 16  ;;  %v1784_v52 = vand.u32 65535, %v1754_v49  ;;  %v1651_v3 = vadd.s32 %v10754_v60, %v10752_v42  ;;  %v8421_v36 = vadd.s32 4294967294, %v1663_v17 }
 0x214   :  { %v1537_v11 = vadd.f32 1.0, %v1536_v55  ;;  %v1544_v31 = vadd.f32 1.0, %v1543_v48  ;;  %vm1772_vm9 = vc.u32 %v1764_v21, %v1768_v15  ;;  %v1774_v13 = vadd.s32 %v1768_v15, %v1764_v21 }
 0x215   :  { %v1769_v29 = vshrl.u32 %v10883_v8, 16  ;;  %v1773_v20 = vsel %vm1772_vm9, 1, %v17071_v56  ;;  %vm8422_vm10 = vcmp.lt.s32.totalorder %v8421_v36, 0  ;;  %v1787_v55 = vmul.u32 %v1785_v18, %v10853_v12 }
 0x216   :  { %v1545_v45 = vmul.f32 %v1544_v31, %v1529_v0  ;;  %v1553_v7 = vxor.u32 2147483648, %v1537_v11  ;;  %v1775_v6 = vadd.s32 %v1773_v20, %v1767_v19  ;;  %vm1776_vm14 = vc.u32 %v1774_v13, %v1770_v4 }
 0x217   :  { %v1666_v44 = vsel %vm8422_vm10, 0, %v8421_v36  ;;  %v1777_v49 = vsel %vm1776_vm14, 1, %v17071_v56  ;;  %v1786_v42 = vmul.u32 %v1784_v52, %v10853_v12  ;;  %v1788_v19 = vmul.u32 %v1784_v52, %v10870_v50 }
 0x218   :  { %v1550_v48 = vxor.u32 2147483648, %v1545_v45  ;;  %v1554_v60 = vsel %vm1552_vm6, %v1553_v7, %v1545_v45  ;;  %v1667_v21 = vsub.s32 32, %v1666_v44  ;;  %v1668_v0 = vshll.u32 %v10872_v63, %v1666_v44 }
 0x219   :  { %v1671_v15 = vsub.s32 4294967266, %v1666_v44  ;;  %v1779_v17 = vadd.s32 %v1777_v49, %v1775_v6  ;;  %v1790_v4 = vshll.u32 %v1787_v55, 16  ;;  %v1789_v20 = vmul.u32 %v1785_v18, %v10870_v50 }
 0x21a   :  { %v1551_v8 = vsel %vm1549_vm12, %v1537_v11, %v1550_v48  ;;  %v1669_v13 = vshrl.u32 %v1651_v3, %v1667_v21  ;;  %v2647_v12 = vsel %vm2646_vm13, %v10855_v51, 0  ;;  %v1727_v44 = vshrl.u32 %v17088_v33, %v17179_v38 }
 0x21b   :  { %v1555_v31 = vsel %vm1548_vm7, %v1551_v8, %v1554_v60  ;;  %v1672_v36 = vadd.s32 127, %v1671_v15  ;;  %v1792_v11 = vshll.u32 %v1788_v19, 16  ;;  %vm3286_vm14 = vcmp.lt.s32.totalorder %v10704_v43, 4 }
 0x21c   :  { %v1556_v63 = vsel %vm1546_vm11, nan, %v1555_v31  ;;  %v1670_v5 = vor.u32 %v1669_v13, %v1668_v0  ;;  %vm17193_vm10 = vcmp.lt.s32.totalorder %v17182_v58, 4  ;;  %vm1794_vm7 = vc.u32 %v1786_v42, %v1790_v4 }
 0x21d   :  { %8501 = vmatmul.msk.f32.gmra.mxu0 %vm204_vm4, %v1556_v63  ;;  %v1673_v52 = vshll.u32 %v1672_v36, 23  ;;  %v1748_v50 = vsel %vm17193_vm10, %v10798_v37, 2102212464  ;;  %v1771_v51 = vshrl.u32 %v10902_v41, 16  ;;  %v1780_v18 = vadd.s32 %v1779_v17, %v1769_v29 }
 0x21e   :  { %v1795_v26 = vsel %vm1794_vm7, 1, %v17071_v56  ;;  %v1796_v3 = vadd.s32 %v1790_v4, %v1786_v42  ;;  %v10940_v45 = vand.u32 31, %v2647_v12  ;;  %vm2954_vm13 = vcmp.gt.s32.totalorder %v10905_v30, 0 }
 0x21f   :  { %v1674_v38 = vor.u32 4788187, %v1673_v52  ;;  %v1797_v7 = vadd.s32 %v1795_v26, %v1789_v20  ;;  %v1747_v6 = vsel %vm1743_vm2, %v1727_v44, %v10850_v57  ;;  %v1749_v37 = vsel %vm1745_vm5, %v10794_v27, %v1748_v50 }
 0x220   :  { %17194 = vst [vmem:[#allocation33_spill] sm:$0xff] %v10940_v45  ;;  %v1791_v48 = vshrl.u32 %v1787_v55, 16  ;;  %vm1798_vm12 = vc.u32 %v1796_v3, %v1792_v11  ;;  %v1677_v41 = vcvt.s32.f32 %v1670_v5  ;;  %v1681_v49 = vsub.s32 4, %v10844_v62 }
 0x221   :  { %v1675_v29 = vand.u32 2147483647, %v1674_v38  ;;  %v1799_v42 = vsel %vm1798_vm12, 1, %v17071_v56  ;;  %v10951_v60 = vadd.s32 %v1780_v18, %v1771_v51  ;;  %v1793_v21 = vshrl.u32 %v1788_v19, 16 }
 0x222   :  { %v10953_v0 = vadd.s32 %v1796_v3, %v1792_v11  ;;  %v1801_v15 = vadd.s32 %v1799_v42, %v1797_v7  ;;  %v10955_v8 = vshrl.u32 %v2647_v12, 5  ;;  %v10959_v57 = vor.u32 %v10891_v16, %v10848_v28 }
 0x223   :  { %v3282_v27 = vor.u32 %v10895_v22, %v10859_v59  ;;  %v1678_v55 = vmul.f32 %v1677_v41, %v1675_v29  ;;  %v10964_v17 = vsub.s32 32, %v10940_v45  ;;  %v10969_v19 = vsel %vm2954_vm13, %v10905_v30, 0  ;;  %v17200_v22 = vld [vmem:[#allocation56_spill] sm:$0xff] }
 0x224   :  { %17195 = vst [vmem:[#allocation36_spill] sm:$0xff] %v10959_v57  ;;  %vm1559_vm5 = vcmp.lt.s32.totalorder %v17167_v9, 0  ;;  %v1802_v4 = vadd.s32 %v1801_v15, %v1791_v48  ;;  %v17197_v31 = vand.u32 2147483647, %v17167_v9  ;;  %v1750_v59 = vsel %vm1744_vm0, %v1747_v6, %v1749_v37 }
 0x225   :  { %17196 = vst [vmem:[#allocation40_spill] sm:$0xff] %v10964_v17  ;;  %v1679_v16 = vxor.u32 2147483648, %v1678_v55  ;;  %v16986_v13 = vand.u32 2147483647, %v17200_v22  ;;  %v1682_v36 = vsel %vm1559_vm5, %v1681_v49, %v10844_v62  ;;  %vm1806_vm11 = vc.u32 %v10951_v60, %v10953_v0 }
 0x226   :  { %vm10974_vm2 = vcmp.le.f32.partialorder %v17197_v31, 0.7853982  ;;  %v1803_v20 = vadd.s32 %v1802_v4, %v1793_v21  ;;  %v1885_v30 = vshll.u32 %v17086_v47, %v9971_v1  ;;  %v1886_v63 = vshrl.u32 %v17087_v61, %v10049_v23 }
 0x227   :  { %v1680_v12 = vsel %vm1559_vm5, %v1679_v16, %v1678_v55  ;;  %v1888_v44 = vshll.u32 %v17087_v61, %v9971_v1  ;;  %v1889_v58 = vshrl.u32 %v17073_v14, %v10049_v23  ;;  %v10995_v62 = vsel %vm3286_vm14, %v10959_v57, 920167782 }
 0x228   :  { %17201 = vst [vmem:[#allocation37_spill] sm:$0xff] %v10995_v62  ;;  %v1683_v11 = vsel %vm10974_vm2, %v17167_v9, %v1680_v12  ;;  %v1804_v5 = vmul.u32 %v10817_v32, %v1750_v59  ;;  %v1807_v52 = vadd.s32 1, %v1803_v20  ;;  %v2661_v50 = vshll.u32 %v17073_v14, %v10940_v45  ;;  %v17202_v12 = vld [vmem:[#allocation74_spill] sm:$0xff] }
 0x229   :  { %v11005_v51 = vsel %vm3286_vm14, %v3282_v27, 1326507024  ;;  %v1685_v18 = vmul.f32 %v1683_v11, %v1683_v11  ;;  %v1872_v26 = vand.u32 8388607, %v16986_v13  ;;  %v2662_v3 = vshrl.u32 %v17067_v40, %v10964_v17 }
 0x22a   :  { %v11012_v38 = vand.u32 31, %v10969_v19  ;;  %v1684_v32 = vsel %vm10974_vm2, 0, %v1682_v36  ;;  %v1808_v7 = vsel %vm1806_vm11, %v1807_v52, %v1803_v20  ;;  %v11019_v48 = vor.u32 %v1886_v63, %v1885_v30  ;;  %v17203_v63 = vld [vmem:[#allocation49_spill] sm:$0xff] }
 0x22b   :  { %v1686_v6 = vmul.f32 -0.001358992, %v1685_v18  ;;  %v1693_v37 = vmul.f32 -0.00019511016, %v1685_v18  ;;  %v1890_v29 = vor.u32 %v1889_v58, %v1888_v44  ;;  %v1809_v41 = vadd.s32 %v1808_v7, %v1804_v5 }
 0x22c   :  { %v1882_v49 = vshll.u32 %v17088_v33, %v9971_v1  ;;  %v1883_v42 = vshrl.u32 %v17086_v47, %v10049_v23  ;;  %vm1897_vm0 = vcmp.lt.s32.totalorder %v9967_v24, 1  ;;  %v1873_v27 = vor.u32 8388608, %v1872_v26 }
 0x22d   :  { %v1687_v21 = vadd.f32 0.041655596, %v1686_v6  ;;  %v1694_v15 = vadd.f32 0.008332121, %v1693_v37  ;;  %vm1899_vm6 = vcmp.lt.s32.totalorder %v9967_v24, 3  ;;  %v11029_v55 = vshll.u32 %v17067_v40, %v10940_v45 }
 0x22e   :  { %v11033_v4 = vshrl.u32 %v17070_v53, %v10964_v17  ;;  %v1701_v31 = vand.u32 3, %v1684_v32  ;;  %v1810_v1 = vadd.s32 536870912, %v1809_v41  ;;  %vm1898_vm9 = vcmp.lt.s32.totalorder %v9967_v24, 2 }
 0x22f   :  { %v1688_v28 = vmul.f32 %v1687_v21, %v1685_v18  ;;  %v1695_v16 = vmul.f32 %v1694_v15, %v1685_v18  ;;  %v1909_v59 = vsel %vm1897_vm0, %v11019_v48, %v1890_v29  ;;  %v11039_v36 = vor.u32 %v2662_v3, %v2661_v50  ;;  %v17204_v15 = vld [vmem:[#allocation21_spill] sm:$0xff] }
 0x230   :  { %v11041_v20 = vshrl.u32 %v1810_v1, 30  ;;  %v1884_v30 = vor.u32 %v1883_v42, %v1882_v49  ;;  %v1911_v44 = vsel %vm1899_vm6, %v17203_v63, %v17202_v12  ;;  %v11048_v58 = vsub.s32 32, %v11012_v38 }
 0x231   :  { %v1689_v5 = vadd.f32 -0.4999988, %v1688_v28  ;;  %v1696_v52 = vadd.f32 -0.16666654, %v1695_v16  ;;  %v11050_v26 = vshll.u32 %v1873_v27, 8  ;;  %v11054_v32 = vshll.u32 %v17073_v14, %v11012_v38 }
 0x232   :  { %v11058_v50 = vshll.u32 %v17067_v40, %v11012_v38  ;;  %v1812_v3 = vshll.u32 %v11041_v20, 30  ;;  %v1912_v7 = vsel %vm1898_vm9, %v1909_v59, %v1911_v44  ;;  %vm1702_vm10 = vcmp.lt.s32.totalorder %v1701_v31, 2 }
 0x233   :  { %v1690_v6 = vmul.f32 %v1689_v5, %v1685_v18  ;;  %v1697_v37 = vmul.f32 %v1696_v52, %v1685_v18  ;;  %v1881_v49 = vshrl.u32 %v17088_v33, %v10049_v23  ;;  %vm1700_vm7 = vweird.f32 %v17167_v9 }
 0x234   :  { %v11066_v42 = vsub.s32 %v1809_v41, %v1812_v3  ;;  %v1905_v21 = vsel %vm1897_vm0, %v1884_v30, %v11019_v48  ;;  %v1907_v27 = vsel %vm1899_vm6, %v1890_v29, %v17204_v15  ;;  %v1916_v1 = vand.u32 65535, %v1912_v7 }
 0x235   :  { %v1691_v28 = vadd.f32 1.0, %v1690_v6  ;;  %v1698_v16 = vadd.f32 1.0, %v1697_v37  ;;  %v1914_v18 = vand.u32 65535, %v11050_v26  ;;  %v1917_v59 = vshrl.u32 %v1912_v7, 16 }
 0x236   :  { %vm1703_vm13 = vcmp.eq.s32.totalorder %v1701_v31, 0  ;;  %vm1814_vm12 = vcmp.lt.s32.totalorder %v11066_v42, 0  ;;  %v1815_v23 = vsub.s32 0, %v11066_v42  ;;  %v1915_v41 = vshrl.u32 %v11050_v26, 16 }
 0x237   :  { %v1699_v12 = vmul.f32 %v1698_v16, %v1683_v11  ;;  %v1707_v63 = vxor.u32 2147483648, %v1691_v28  ;;  %v1908_v44 = vsel %vm1898_vm9, %v1905_v21, %v1907_v27  ;;  %v1919_v5 = vmul.u32 %v1917_v59, %v1914_v18 }
 0x238   :  { %vm1706_vm5 = vcmp.eq.s32.totalorder %v1701_v31, 2  ;;  %v1805_v52 = vadd.s32 %v10953_v0, %v10951_v60  ;;  %v1816_v3 = vsel %vm1814_vm12, %v1815_v23, %v11066_v42  ;;  %v1920_v7 = vmul.u32 %v1916_v1, %v1915_v41 }
 0x239   :  { %v1704_v6 = vxor.u32 2147483648, %v1699_v12  ;;  %v1817_v37 = vclz %v1816_v3  ;;  %v1901_v15 = vsel %vm1897_vm0, %v1881_v49, %v1884_v30  ;;  %v1902_v11 = vsel %vm1900_vm8, %v1890_v29, 2102212464 }
 0x23a   :  { %v1708_v16 = vsel %vm1706_vm5, %v1707_v63, %v1699_v12  ;;  %v1918_v13 = vmul.u32 %v1916_v1, %v1914_v18  ;;  %v1922_v17 = vshll.u32 %v1919_v5, 16  ;;  %v1938_v21 = vand.u32 65535, %v1908_v44 }
 0x23b   :  { %v1705_v27 = vsel %vm1703_vm13, %v1691_v28, %v1704_v6  ;;  %v8424_v45 = vadd.s32 4294967294, %v1817_v37  ;;  %v1921_v62 = vmul.u32 %v1917_v59, %v1915_v41  ;;  %v1939_v60 = vshrl.u32 %v1908_v44, 16 }
 0x23c   :  { %v1709_v0 = vsel %vm1702_vm10, %v1705_v27, %v1708_v16  ;;  %v1924_v23 = vshll.u32 %v1920_v7, 16  ;;  %vm1926_vm2 = vc.u32 %v1918_v13, %v1922_v17  ;;  %v1928_v3 = vadd.s32 %v1922_v17, %v1918_v13 }
 0x23d   :  { %v1710_v30 = vsel %vm1700_vm7, nan, %v1709_v0  ;;  %vm8425_vm11 = vcmp.lt.s32.totalorder %v8424_v45, 0  ;;  %v1927_v29 = vsel %vm1926_vm2, 1, %v17071_v56  ;;  %v1941_v49 = vmul.u32 %v1939_v60, %v1914_v18 }
 0x23e   :  { %8502 = vmatmul.msk.f32.gmra.mxu0 %vm204_vm4, %v1710_v30  ;;  %v1820_v1 = vsel %vm8425_vm11, 0, %v8424_v45  ;;  %v1929_v12 = vadd.s32 %v1927_v29, %v1921_v62  ;;  %vm1930_vm8 = vc.u32 %v1928_v3, %v1924_v23  ;;  %v1942_v28 = vmul.u32 %v1938_v21, %v1915_v41 }
 0x23f   :  { %v1821_v59 = vsub.s32 32, %v1820_v1  ;;  %v1825_v63 = vsub.s32 4294967266, %v1820_v1  ;;  %v1903_v31 = vsel %vm1899_vm6, %v11019_v48, %v1902_v11  ;;  %v1931_v17 = vsel %vm1930_vm8, 1, %v17071_v56  ;;  %v17205_v11 = vld [vmem:[#allocation25_spill] sm:$0xff] }
 0x240   :  { %vm1713_vm0 = vcmp.lt.s32.totalorder %v17176_v46, 0  ;;  %v1923_v9 = vshrl.u32 %v1919_v5, 16  ;;  %v1933_v13 = vadd.s32 %v1931_v17, %v1929_v12  ;;  %v1940_v44 = vmul.u32 %v1938_v21, %v1914_v18 }
 0x241   :  { %v1944_v6 = vshll.u32 %v1941_v49, 16  ;;  %v1822_v37 = vshll.u32 %v11066_v42, %v1820_v1  ;;  %v1823_v45 = vshrl.u32 %v1805_v52, %v1821_v59  ;;  %v1826_v62 = vadd.s32 127, %v1825_v63 }
 0x242   :  { %v1943_v16 = vmul.u32 %v1939_v60, %v1915_v41  ;;  %v1934_v27 = vadd.s32 %v1933_v13, %v1923_v9  ;;  %v1946_v0 = vshll.u32 %v1942_v28, 16  ;;  %v16991_v29 = vand.u32 2147483647, %v17205_v11  ;;  %v17207_v13 = vld [vmem:[#allocation43_spill] sm:$0xff] }
 0x243   :  { %vm1948_vm10 = vc.u32 %v1940_v44, %v1944_v6  ;;  %v1950_v23 = vadd.s32 %v1944_v6, %v1940_v44  ;;  %v1824_v3 = vor.u32 %v1823_v45, %v1822_v37  ;;  %v1827_v30 = vshll.u32 %v1826_v62, 23 }
 0x244   :  { %v1949_v48 = vsel %vm1948_vm10, 1, %v17071_v56  ;;  %v1904_v5 = vsel %vm1898_vm9, %v1901_v15, %v1903_v31  ;;  %v1925_v18 = vshrl.u32 %v1920_v7, 16  ;;  %v1835_v52 = vsub.s32 4, %v11041_v20  ;;  %v17206_v7 = vld [vmem:[#allocation39_spill] sm:$0xff] }
 0x245   :  { %v1951_v21 = vadd.s32 %v1949_v48, %v1943_v16  ;;  %vm1952_vm6 = vc.u32 %v1950_v23, %v1946_v0  ;;  %v1828_v42 = vor.u32 4788187, %v1827_v30  ;;  %v1945_v41 = vshrl.u32 %v1941_v49, 16 }
 0x246   :  { %v1953_v60 = vsel %vm1952_vm6, 1, %v17071_v56  ;;  %v11105_v1 = vadd.s32 %v1934_v27, %v1925_v18  ;;  %v1947_v12 = vshrl.u32 %v1942_v28, 16  ;;  %v11107_v59 = vadd.s32 %v1950_v23, %v1946_v0  ;;  %v17208_v0 = vld [vmem:[#allocation44_spill] sm:$0xff] }
 0x247   :  { %v1955_v63 = vadd.s32 %v1953_v60, %v1951_v21  ;;  %v1829_v17 = vand.u32 2147483647, %v1828_v42  ;;  %v1831_v9 = vcvt.s32.f32 %v1824_v3  ;;  %v2026_v24 = vand.u32 8388607, %v16991_v29  ;;  %v17209_v18 = vld [vmem:[#allocation52_spill] sm:$0xff]  ;;  %v17210_v21 = vld [vmem:[#allocation46_spill] sm:$0xff] }
 0x248   :  { %v2036_v15 = vshll.u32 %v17088_v33, %v17206_v7  ;;  %v2037_v49 = vshrl.u32 %v17086_v47, %v17207_v13  ;;  %v2039_v44 = vshll.u32 %v17086_v47, %v17206_v7  ;;  %v2040_v28 = vshrl.u32 %v17087_v61, %v17207_v13 }
 0x249   :  { %v1956_v31 = vadd.s32 %v1955_v63, %v1945_v41  ;;  %v1832_v6 = vmul.f32 %v1831_v9, %v1829_v17  ;;  %v1836_v37 = vsel %vm1713_vm0, %v1835_v52, %v11041_v20  ;;  %v2042_v45 = vshll.u32 %v17087_v61, %v17206_v7 }
 0x24a   :  { %v2043_v62 = vshrl.u32 %v17073_v14, %v17207_v13  ;;  %vm1960_vm9 = vc.u32 %v11105_v1, %v11107_v59  ;;  %v11128_v27 = vor.u32 %v2040_v28, %v2039_v44  ;;  %vm2051_vm7 = vcmp.lt.s32.totalorder %v17208_v0, 1 }
 0x24b   :  { %v1957_v16 = vadd.s32 %v1956_v31, %v1947_v12  ;;  %v1833_v23 = vxor.u32 2147483648, %v1832_v6  ;;  %v11131_v3 = vor.u32 %v2037_v49, %v2036_v15  ;;  %vm2053_vm13 = vcmp.lt.s32.totalorder %v17208_v0, 3  ;;  %v17214_v49 = vld [vmem:[#allocation51_spill] sm:$0xff] }
 0x24c   :  { %v2044_v30 = vor.u32 %v2043_v62, %v2042_v45  ;;  %v2027_v48 = vor.u32 8388608, %v2026_v24  ;;  %vm2052_vm12 = vcmp.lt.s32.totalorder %v17208_v0, 2  ;;  %v2065_v42 = vsel %vm2053_vm13, %v17210_v21, %v17209_v18 }
 0x24d   :  { %v1961_v20 = vadd.s32 1, %v1957_v16  ;;  %v17211_v52 = vand.u32 2147483647, %v17176_v46  ;;  %v1834_v60 = vsel %vm1713_vm0, %v1833_v23, %v1832_v6  ;;  %v1958_v12 = vmul.u32 %v11050_v26, %v1904_v5 }
 0x24e   :  { %v2063_v63 = vsel %vm2051_vm7, %v11128_v27, %v2044_v30  ;;  %v2970_v17 = vshrl.u32 %v17067_v40, %v11048_v58  ;;  %v2059_v15 = vsel %vm2051_vm7, %v11131_v3, %v11128_v27  ;;  %v2061_v44 = vsel %vm2053_vm13, %v2044_v30, %v17214_v49 }
 0x24f   :  { %vm11141_vm5 = vcmp.le.f32.partialorder %v17211_v52, 0.7853982  ;;  %v1962_v7 = vsel %vm1960_vm9, %v1961_v20, %v1957_v16  ;;  %v2066_v31 = vsel %vm2052_vm12, %v2063_v63, %v2065_v42  ;;  %v11174_v28 = vshll.u32 %v2027_v48, 8 }
 0x250   :  { %v11156_v9 = vsel %vm11141_vm5, %v17176_v46, %v1834_v60  ;;  %v1838_v24 = vsel %vm11141_vm5, 0, %v1836_v37  ;;  %v1963_v5 = vadd.s32 %v1962_v7, %v1958_v12  ;;  %v2070_v6 = vand.u32 65535, %v2066_v31 }
 0x251   :  { %v1839_v26 = vmul.f32 %v11156_v9, %v11156_v9  ;;  %v2071_v37 = vshrl.u32 %v2066_v31, 16  ;;  %v11178_v45 = vshrl.u32 %v17070_v53, %v11048_v58  ;;  %v11181_v20 = vshrl.u32 %v10969_v19, 5 }
 0x252   :  { %v1964_v23 = vadd.s32 536870912, %v1963_v5  ;;  %v11183_v18 = vand.u32 3, %v1838_v24  ;;  %v2068_v21 = vand.u32 65535, %v11174_v28  ;;  %v2069_v42 = vshrl.u32 %v11174_v28, 16 }
 0x253   :  { %v1840_v62 = vmul.f32 -0.001358992, %v1839_v26  ;;  %v1847_v16 = vmul.f32 -0.00019511016, %v1839_v26  ;;  %v2062_v60 = vsel %vm2052_vm12, %v2059_v15, %v2061_v44  ;;  %v11192_v12 = vor.u32 %v2970_v17, %v11054_v32 }
 0x254   :  { %v11187_v41 = vshrl.u32 %v1964_v23, 30  ;;  %v2072_v63 = vmul.u32 %v2070_v6, %v2068_v21  ;;  %v2073_v7 = vmul.u32 %v2071_v37, %v2068_v21  ;;  %v11194_v19 = vmul.u32 %v2070_v6, %v2069_v42 }
 0x255   :  { %v1841_v48 = vadd.f32 0.041655596, %v1840_v62  ;;  %v1848_v52 = vadd.f32 0.008332121, %v1847_v16  ;;  %v2035_v16 = vshrl.u32 %v17088_v33, %v17207_v13  ;;  %v2093_v44 = vshrl.u32 %v2062_v60, 16 }
 0x256   :  { %v1966_v62 = vshll.u32 %v11187_v41, 30  ;;  %v2076_v23 = vshll.u32 %v2073_v7, 16  ;;  %v2078_v15 = vshll.u32 %v11194_v19, 16  ;;  %vm1860_vm2 = vcmp.eq.s32.totalorder %v11183_v18, 2 }
 0x257   :  { %v1842_v31 = vmul.f32 %v1841_v48, %v1839_v26  ;;  %v1849_v49 = vmul.f32 %v1848_v52, %v1839_v26  ;;  %v2075_v29 = vmul.u32 %v2071_v37, %v2069_v42  ;;  %vm1857_vm11 = vcmp.eq.s32.totalorder %v11183_v18, 0 }
 0x258   :  { %v11203_v6 = vsub.s32 %v1963_v5, %v1966_v62  ;;  %vm17215_vm8 = vcmp.lt.s32.totalorder %v17208_v0, 4  ;;  %vm2080_vm0 = vc.u32 %v2072_v63, %v2076_v23  ;;  %v2082_v52 = vadd.s32 %v2076_v23, %v2072_v63 }
 0x259   :  { %v1843_v32 = vadd.f32 -0.4999988, %v1842_v31  ;;  %v1850_v17 = vadd.f32 -0.16666654, %v1849_v49  ;;  %v2056_v48 = vsel %vm17215_vm8, %v2044_v30, 2102212464  ;;  %vm1854_vm9 = vweird.f32 %v17176_v46 }
 0x25a   :  { %v2092_v24 = vand.u32 65535, %v2062_v60  ;;  %vm1856_vm10 = vcmp.lt.s32.totalorder %v11183_v18, 2  ;;  %vm1968_vm6 = vcmp.lt.s32.totalorder %v11203_v6, 0  ;;  %v1969_v31 = vsub.s32 0, %v11203_v6 }
 0x25b   :  { %v1844_v13 = vmul.f32 %v1843_v32, %v1839_v26  ;;  %v1851_v57 = vmul.f32 %v1850_v17, %v1839_v26  ;;  %v1959_v5 = vadd.s32 %v11107_v59, %v11105_v1  ;;  %v2081_v37 = vsel %vm2080_vm0, 1, %v17071_v56 }
 0x25c   :  { %vm2084_vm5 = vc.u32 %v2082_v52, %v2078_v15  ;;  %v2095_v30 = vmul.u32 %v2093_v44, %v2068_v21  ;;  %v1970_v60 = vsel %vm1968_vm6, %v1969_v31, %v11203_v6  ;;  %v2083_v26 = vadd.s32 %v2081_v37, %v2075_v29 }
 0x25d   :  { %v1845_v49 = vadd.f32 1.0, %v1844_v13  ;;  %v1852_v63 = vadd.f32 1.0, %v1851_v57  ;;  %v1971_v62 = vclz %v1970_v60  ;;  %v2055_v23 = vsel %vm2051_vm7, %v2035_v16, %v11131_v3 }
 0x25e   :  { %v2057_v32 = vsel %vm2053_vm13, %v11128_v27, %v2056_v48  ;;  %v2094_v17 = vmul.u32 %v2092_v24, %v2068_v21  ;;  %v2085_v15 = vsel %vm2084_vm5, 1, %v17071_v56  ;;  %v2096_v52 = vmul.u32 %v2092_v24, %v2069_v42 }
 0x25f   :  { %v1853_v1 = vmul.f32 %v1852_v63, %v11156_v9  ;;  %v1861_v59 = vxor.u32 2147483648, %v1845_v49  ;;  %v8427_v57 = vadd.s32 4294967294, %v1971_v62  ;;  %v2077_v13 = vshrl.u32 %v2073_v7, 16 }
 0x260   :  { %v2087_v31 = vadd.s32 %v2085_v15, %v2083_v26  ;;  %v2098_v29 = vshll.u32 %v2095_v30, 16  ;;  %v11226_v60 = vsel %vm2052_vm12, %v2055_v23, %v2057_v32  ;;  %v2097_v3 = vmul.u32 %v2093_v44, %v2069_v42 }
 0x261   :  { %v1858_v37 = vxor.u32 2147483648, %v1853_v1  ;;  %v2100_v16 = vshll.u32 %v2096_v52, 16  ;;  %v1862_v27 = vsel %vm1860_vm2, %v1861_v59, %v1853_v1  ;;  %vm8428_vm7 = vcmp.lt.s32.totalorder %v8427_v57, 0  ;;  %v17216_v59 = vld [vmem:[#allocation42_spill] sm:$0xff] }
 0x262   :  { %v2079_v9 = vshrl.u32 %v11194_v19, 16  ;;  %vm2102_vm13 = vc.u32 %v2094_v17, %v2098_v29  ;;  %v1974_v7 = vsel %vm8428_vm7, 0, %v8427_v57  ;;  %v2104_v48 = vadd.s32 %v2098_v29, %v2094_v17 }
 0x263   :  { %v1859_v21 = vsel %vm1857_vm11, %v1845_v49, %v1858_v37  ;;  %v2103_v24 = vsel %vm2102_vm13, 1, %v17071_v56  ;;  %v1975_v63 = vsub.s32 32, %v1974_v7  ;;  %v1979_v42 = vsub.s32 4294967266, %v1974_v7 }
 0x264   :  { %v1863_v0 = vsel %vm1856_vm10, %v1859_v21, %v1862_v27  ;;  %v2088_v44 = vadd.s32 %v2087_v31, %v2077_v13  ;;  %v2099_v62 = vshrl.u32 %v2095_v30, 16  ;;  %v2105_v23 = vadd.s32 %v2103_v24, %v2097_v3 }
 0x265   :  { %v1864_v26 = vsel %vm1854_vm9, nan, %v1863_v0  ;;  %vm2106_vm12 = vc.u32 %v2104_v48, %v2100_v16  ;;  %v1976_v19 = vshll.u32 %v11203_v6, %v1974_v7  ;;  %v1977_v49 = vshrl.u32 %v1959_v5, %v1975_v63 }
 0x266   :  { %8503 = vmatmul.msk.f32.gmra.mxu0 %vm204_vm4, %v1864_v26  ;;  %v1980_v32 = vadd.s32 127, %v1979_v42  ;;  %v2107_v17 = vsel %vm2106_vm12, 1, %v17071_v56  ;;  %vm1867_vm2 = vcmp.lt.s32.totalorder %v17200_v22, 0  ;;  %v2101_v18 = vshrl.u32 %v2096_v52, 16 }
 0x267   :  { %v2109_v1 = vadd.s32 %v2107_v17, %v2105_v23  ;;  %v2173_v15 = vand.u32 2147483647, %v17216_v59  ;;  %v1978_v57 = vor.u32 %v1977_v49, %v1976_v19  ;;  %v11243_v13 = vadd.s32 %v2088_v44, %v2079_v9 }
 0x268   :  { %v1981_v46 = vshll.u32 %v1980_v32, 23  ;;  %v11245_v30 = vadd.s32 %v2104_v48, %v2100_v16  ;;  %vm2978_vm11 = vcmp.lt.s32.totalorder %v11181_v20, 4  ;;  %v2112_v6 = vmul.u32 %v11174_v28, %v11226_v60  ;;  %v367_v48 = vpop.permute.xlu1 %366 }
 0x269   :  { %v2110_v31 = vadd.s32 %v2109_v1, %v2099_v62  ;;  %v2180_v5 = vand.u32 8388607, %v2173_v15  ;;  %v2190_v52 = vshll.u32 %v17088_v33, %v10424_v2  ;;  %v1989_v37 = vsub.s32 4, %v11187_v41 }
 0x26a   :  { %v1982_v29 = vor.u32 4788187, %v1981_v46  ;;  %v2191_v3 = vshrl.u32 %v17086_v47, %v10467_v39  ;;  %v2193_v16 = vshll.u32 %v17086_v47, %v10424_v2  ;;  %v2194_v28 = vshrl.u32 %v17087_v61, %v10467_v39 }
 0x26b   :  { %v2111_v27 = vadd.s32 %v2110_v31, %v2101_v18  ;;  %v2181_v9 = vor.u32 8388608, %v2180_v5  ;;  %v2196_v60 = vshll.u32 %v17087_v61, %v10424_v2  ;;  %v1985_v7 = vcvt.s32.f32 %v1978_v57 }
 0x26c   :  { %v1983_v21 = vand.u32 2147483647, %v1982_v29  ;;  %vm2114_vm8 = vc.u32 %v11243_v13, %v11245_v30  ;;  %v2197_v24 = vshrl.u32 %v17073_v14, %v10467_v39  ;;  %v11267_v63 = vor.u32 %v2191_v3, %v2190_v52 }
 0x26d   :  { %v2115_v0 = vadd.s32 1, %v2111_v27  ;;  %v11269_v42 = vor.u32 %v2194_v28, %v2193_v16  ;;  %vm2207_vm0 = vcmp.lt.s32.totalorder %v10422_v25, 3  ;;  %v1990_v2 = vsel %vm1867_vm2, %v1989_v37, %v11187_v41 }
 0x26e   :  { %v1986_v44 = vmul.f32 %v1985_v7, %v1983_v21  ;;  %v2198_v26 = vor.u32 %v2197_v24, %v2196_v60  ;;  %vm2205_vm10 = vcmp.lt.s32.totalorder %v10422_v25, 1  ;;  %vm2206_vm6 = vcmp.lt.s32.totalorder %v10422_v25, 2 }
 0x26f   :  { %v2116_v62 = vsel %vm2114_vm8, %v2115_v0, %v2111_v27  ;;  %v2219_v23 = vsel %vm2207_vm0, %v10569_v35, %v10772_v54  ;;  %v11281_v19 = vshll.u32 %v2181_v9, 8  ;;  %v11284_v49 = vmul.f32 %v10781_v34, %v367_v48 }
 0x270   :  { %v17217_v32 = vand.u32 2147483647, %v17200_v22  ;;  %v1987_v17 = vxor.u32 2147483648, %v1986_v44  ;;  %v2117_v18 = vadd.s32 %v2116_v62, %v2112_v6  ;;  %v2213_v35 = vsel %vm2205_vm10, %v11267_v63, %v11269_v42 }
 0x271   :  { %v2215_v54 = vsel %vm2207_vm0, %v2198_v26, %v10765_v10  ;;  %v2217_v34 = vsel %vm2205_vm10, %v11269_v42, %v2198_v26  ;;  %v2222_v6 = vand.u32 65535, %v11281_v19  ;;  %v2223_v10 = vshrl.u32 %v11281_v19, 16 }
 0x272   :  { %vm11288_vm9 = vcmp.le.f32.partialorder %v17217_v32, 0.7853982  ;;  %v1988_v57 = vsel %vm1867_vm2, %v1987_v17, %v1986_v44  ;;  %v2118_v46 = vadd.s32 536870912, %v2117_v18  ;;  %v2220_v31 = vsel %vm2206_vm6, %v2217_v34, %v2219_v23 }
 0x273   :  { %v1992_v1 = vsel %vm11288_vm9, 0, %v1990_v2  ;;  %v11312_v5 = vsel %vm11288_vm9, %v17200_v22, %v1988_v57  ;;  %v2224_v52 = vand.u32 65535, %v2220_v31  ;;  %v2225_v29 = vshrl.u32 %v2220_v31, 16 }
 0x274   :  { %v11318_v37 = vsel %vm2978_vm11, %v11192_v12, 920167782  ;;  %v1993_v3 = vmul.f32 %v11312_v5, %v11312_v5  ;;  %v11322_v16 = vshrl.u32 %v2118_v46, 30  ;;  %v2216_v27 = vsel %vm2206_vm6, %v2213_v35, %v2215_v54 }
 0x275   :  { %v17220_v9 = vor.u32 %v11178_v45, %v11058_v50  ;;  %v3408_v60 = vand.u32 2139095040, %v11284_v49  ;;  %v11334_v21 = vmul.u32 %v2225_v29, %v2222_v6  ;;  %v11336_v7 = vmul.u32 %v2224_v52, %v2223_v10 }
 0x276   :  { %v1994_v24 = vmul.f32 -0.001358992, %v1993_v3  ;;  %v2001_v48 = vmul.f32 -0.00019511016, %v1993_v3  ;;  %v11338_v0 = vand.u32 3, %v1992_v1  ;;  %v2120_v44 = vshll.u32 %v11322_v16, 30 }
 0x277   :  { %v11331_v28 = vsel %vm2978_vm11, %v17220_v9, 1326507024  ;;  %v2189_v2 = vshrl.u32 %v17088_v33, %v10467_v39  ;;  %v2226_v50 = vmul.u32 %v2224_v52, %v2222_v6  ;;  %v2230_v45 = vshll.u32 %v11334_v21, 16 }
 0x278   :  { %v2247_v62 = vshrl.u32 %v2216_v27, 16  ;;  %v1995_v23 = vadd.f32 0.041655596, %v1994_v24  ;;  %v2002_v32 = vadd.f32 0.008332121, %v2001_v48  ;;  %v11344_v41 = vsub.s32 %v2117_v18, %v2120_v44 }
 0x279   :  { %v2210_v17 = vsel %vm2208_vm15, %v2198_v26, 2102212464  ;;  %v2229_v35 = vmul.u32 %v2225_v29, %v2223_v10  ;;  %v2232_v1 = vshll.u32 %v11336_v7, 16  ;;  %vm2234_vm5 = vc.u32 %v2226_v50, %v2230_v45 }
 0x27a   :  { %v2236_v54 = vadd.s32 %v2230_v45, %v2226_v50  ;;  %v1996_v34 = vmul.f32 %v1995_v23, %v1993_v3  ;;  %v2003_v57 = vmul.f32 %v2002_v32, %v1993_v3  ;;  %vm2122_vm7 = vcmp.lt.s32.totalorder %v11344_v41, 0 }
 0x27b   :  { %v2123_v39 = vsub.s32 0, %v11344_v41  ;;  %v2235_v46 = vsel %vm2234_vm5, 1, %v17071_v56  ;;  %v2246_v18 = vand.u32 65535, %v2216_v27  ;;  %v11356_v52 = vmul.u32 %v2247_v62, %v2222_v6 }
 0x27c   :  { %vm11352_vm13 = vc.u32 %v2236_v54, %v2232_v1  ;;  %v1997_v26 = vadd.f32 -0.4999988, %v1996_v34  ;;  %v2004_v29 = vadd.f32 -0.16666654, %v2003_v57  ;;  %v2237_v24 = vadd.s32 %v2235_v46, %v2229_v35 }
 0x27d   :  { %v2124_v9 = vsel %vm2122_vm7, %v2123_v39, %v11344_v41  ;;  %vm2011_vm15 = vcmp.eq.s32.totalorder %v11338_v0, 0  ;;  %vm2014_vm12 = vcmp.eq.s32.totalorder %v11338_v0, 2  ;;  %v2209_v44 = vsel %vm2205_vm10, %v2189_v2, %v11267_v63 }
 0x27e   :  { %v2125_v48 = vclz %v2124_v9  ;;  %v2211_v27 = vsel %vm2207_vm0, %v11269_v42, %v2210_v17  ;;  %v1998_v50 = vmul.f32 %v1997_v26, %v1993_v3  ;;  %v2005_v45 = vmul.f32 %v2004_v29, %v1993_v3 }
 0x27f   :  { %vm2010_vm2 = vcmp.lt.s32.totalorder %v11338_v0, 2  ;;  %v2113_v23 = vadd.s32 %v11245_v30, %v11243_v13  ;;  %v2239_v32 = vsel %vm11352_vm13, 1, %v17071_v56  ;;  %vm2008_vm8 = vweird.f32 %v17200_v22 }
 0x280   :  { %vm2021_vm9 = vcmp.lt.s32.totalorder %v17205_v11, 0  ;;  %v8430_v63 = vadd.s32 4294967294, %v2125_v48  ;;  %v2248_v2 = vmul.u32 %v2246_v18, %v2222_v6  ;;  %v2250_v35 = vmul.u32 %v2246_v18, %v2223_v10 }
 0x281   :  { %v2252_v42 = vshll.u32 %v11356_v52, 16  ;;  %v1999_v17 = vadd.f32 1.0, %v1998_v50  ;;  %v2006_v3 = vadd.f32 1.0, %v2005_v45  ;;  %v11378_v1 = vsel %vm2206_vm6, %v2209_v44, %v2211_v27 }
 0x282   :  { %v2241_v13 = vadd.s32 %v2239_v32, %v2237_v24  ;;  %vm8431_vm0 = vcmp.lt.s32.totalorder %v8430_v63, 0  ;;  %v2231_v30 = vshrl.u32 %v11334_v21, 16  ;;  %v2251_v54 = vmul.u32 %v2247_v62, %v2223_v10  ;;  %v17223_v62 = vld [vmem:[#allocation41_spill] sm:$0xff] }
 0x283   :  { %vm2256_vm10 = vc.u32 %v2248_v2, %v2252_v42  ;;  %v2007_v34 = vmul.f32 %v2006_v3, %v11312_v5  ;;  %v2015_v57 = vxor.u32 2147483648, %v1999_v17  ;;  %v2128_v39 = vsel %vm8431_vm0, 0, %v8430_v63 }
 0x284   :  { %v2257_v6 = vsel %vm2256_vm10, 1, %v17071_v56  ;;  %v2129_v46 = vsub.s32 32, %v2128_v39  ;;  %v2133_v31 = vsub.s32 4294967266, %v2128_v39  ;;  %v2143_v18 = vsub.s32 4, %v11322_v16 }
 0x285   :  { %v2254_v26 = vshll.u32 %v2250_v35, 16  ;;  %v2012_v25 = vxor.u32 2147483648, %v2007_v34  ;;  %v2242_v29 = vadd.s32 %v2241_v13, %v2231_v30  ;;  %v2258_v9 = vadd.s32 %v2252_v42, %v2248_v2 }
 0x286   :  { %v2259_v24 = vadd.s32 %v2257_v6, %v2251_v54  ;;  %v2130_v48 = vshll.u32 %v11344_v41, %v2128_v39  ;;  %v2131_v21 = vshrl.u32 %v2113_v23, %v2129_v46  ;;  %v2134_v10 = vadd.s32 127, %v2133_v31 }
 0x287   :  { %v2943_v44 = vand.u32 2147483647, %v17223_v62  ;;  %v2013_v5 = vsel %vm2011_vm15, %v1999_v17, %v2012_v25  ;;  %v2016_v27 = vsel %vm2014_vm12, %v2015_v57, %v2007_v34  ;;  %v2233_v50 = vshrl.u32 %v11336_v7, 16 }
 0x288   :  { %vm2260_vm6 = vc.u32 %v2258_v9, %v2254_v26  ;;  %v2017_v45 = vsel %vm2010_vm2, %v2013_v5, %v2016_v27  ;;  %v2132_v32 = vor.u32 %v2131_v21, %v2130_v48  ;;  %v2135_v63 = vshll.u32 %v2134_v10, 23 }
 0x289   :  { %v2261_v41 = vsel %vm2260_vm6, 1, %v17071_v56  ;;  %v2018_v23 = vsel %vm2008_vm8, nan, %v2017_v45  ;;  %v2144_v2 = vsel %vm2021_vm9, %v2143_v18, %v11322_v16  ;;  %v2253_v42 = vshrl.u32 %v11356_v52, 16 }
 0x28a   :  { %v2263_v17 = vadd.s32 %v2261_v41, %v2259_v24  ;;  %8504 = vmatmul.msk.f32.gmra.mxu0 %vm204_vm4, %v2018_v23  ;;  %v2136_v7 = vor.u32 4788187, %v2135_v63  ;;  %v11401_v3 = vadd.s32 %v2242_v29, %v2233_v50  ;;  %v2255_v0 = vshrl.u32 %v2250_v35, 16 }
 0x28b   :  { %v2950_v13 = vand.u32 8388607, %v2943_v44  ;;  %v11405_v30 = vadd.s32 %v2258_v9, %v2254_v26  ;;  %v2960_v54 = vshll.u32 %v17088_v33, %v11012_v38  ;;  %v2961_v16 = vshrl.u32 %v17086_v47, %v11048_v58 }
 0x28c   :  { %v2264_v22 = vadd.s32 %v2263_v17, %v2253_v42  ;;  %v2137_v52 = vand.u32 2147483647, %v2136_v7  ;;  %v2139_v34 = vcvt.s32.f32 %v2132_v32  ;;  %v2963_v57 = vshll.u32 %v17086_v47, %v11012_v38 }
 0x28d   :  { %v2964_v35 = vshrl.u32 %v17087_v61, %v11048_v58  ;;  %v2951_v6 = vor.u32 8388608, %v2950_v13  ;;  %v2966_v46 = vshll.u32 %v17087_v61, %v11012_v38  ;;  %v2967_v31 = vshrl.u32 %v17073_v14, %v11048_v58 }
 0x28e   :  { %v2265_v39 = vadd.s32 %v2264_v22, %v2255_v0  ;;  %v2140_v18 = vmul.f32 %v2139_v34, %v2137_v52  ;;  %vm2268_vm5 = vc.u32 %v11401_v3, %v11405_v30  ;;  %vm2975_vm7 = vcmp.lt.s32.totalorder %v11181_v20, 1 }
 0x28f   :  { %v2965_v26 = vor.u32 %v2964_v35, %v2963_v57  ;;  %v2962_v29 = vor.u32 %v2961_v16, %v2960_v54  ;;  %v2968_v9 = vor.u32 %v2967_v31, %v2966_v46  ;;  %vm2977_vm13 = vcmp.lt.s32.totalorder %v11181_v20, 3 }
 0x290   :  { %v2269_v25 = vadd.s32 1, %v2265_v39  ;;  %v2141_v24 = vxor.u32 2147483648, %v2140_v18  ;;  %v2266_v48 = vmul.u32 %v11281_v19, %v11378_v1  ;;  %vm2976_vm15 = vcmp.lt.s32.totalorder %v11181_v20, 2 }
 0x291   :  { %v2989_v38 = vsel %vm2977_vm13, %v11192_v12, %v11331_v28  ;;  %v17224_v21 = vand.u32 2147483647, %v17205_v11  ;;  %v2987_v27 = vsel %vm2975_vm7, %v2965_v26, %v2968_v9  ;;  %v11438_v50 = vshll.u32 %v2951_v6, 8 }
 0x292   :  { %v2270_v5 = vsel %vm2268_vm5, %v2269_v25, %v2265_v39  ;;  %v3409_v19 = vshrl.u32 %v3408_v60, 23  ;;  %v2142_v1 = vsel %vm2021_vm9, %v2141_v24, %v2140_v18  ;;  %v2983_v32 = vsel %vm2975_vm7, %v2962_v29, %v2965_v26 }
 0x293   :  { %vm11432_vm12 = vcmp.le.f32.partialorder %v17224_v21, 0.7853982  ;;  %v2271_v28 = vadd.s32 %v2270_v5, %v2266_v48  ;;  %v2985_v63 = vsel %vm2977_vm13, %v2968_v9, %v11318_v37  ;;  %v2990_v60 = vsel %vm2976_vm15, %v2987_v27, %v2989_v38 }
 0x294   :  { %v2146_v12 = vsel %vm11432_vm12, 0, %v2144_v2  ;;  %v11449_v45 = vsel %vm11432_vm12, %v17205_v11, %v2142_v1  ;;  %v2959_v2 = vshrl.u32 %v17088_v33, %v11048_v58  ;;  %v2994_v42 = vand.u32 65535, %v2990_v60 }
 0x295   :  { %v2147_v41 = vmul.f32 %v11449_v45, %v11449_v45  ;;  %v2272_v23 = vadd.s32 536870912, %v2271_v28  ;;  %v2980_v17 = vsel %vm2978_vm11, %v2968_v9, 2102212464  ;;  %v2992_v7 = vand.u32 65535, %v11438_v50 }
 0x296   :  { %v2993_v0 = vshrl.u32 %v11438_v50, 16  ;;  %v2995_v13 = vshrl.u32 %v2990_v60, 16  ;;  %v2986_v16 = vsel %vm2976_vm15, %v2983_v32, %v2985_v63  ;;  %v11470_v52 = vadd.s32 4294967169, %v3409_v19 }
 0x297   :  { %v2148_v37 = vmul.f32 -0.001358992, %v2147_v41  ;;  %v2155_v22 = vmul.f32 -0.00019511016, %v2147_v41  ;;  %v11466_v54 = vshrl.u32 %v2272_v23, 30  ;;  %v11472_v34 = vand.u32 3, %v2146_v12 }
 0x298   :  { %v2997_v58 = vmul.u32 %v2995_v13, %v2992_v7  ;;  %v2998_v57 = vmul.u32 %v2994_v42, %v2993_v0  ;;  %v2979_v46 = vsel %vm2975_vm7, %v2959_v2, %v2962_v29  ;;  %v2981_v31 = vsel %vm2977_vm13, %v2965_v26, %v2980_v17 }
 0x299   :  { %v2149_v35 = vadd.f32 0.041655596, %v2148_v37  ;;  %v2156_v39 = vadd.f32 0.008332121, %v2155_v22  ;;  %v2274_v6 = vshll.u32 %v11466_v54, 30  ;;  %v2996_v18 = vmul.u32 %v2994_v42, %v2992_v7 }
 0x29a   :  { %v3000_v25 = vshll.u32 %v2997_v58, 16  ;;  %v3017_v9 = vshrl.u32 %v2986_v16, 16  ;;  %v3016_v21 = vand.u32 65535, %v2986_v16  ;;  %v2999_v10 = vmul.u32 %v2995_v13, %v2993_v0 }
 0x29b   :  { %v2150_v24 = vmul.f32 %v2149_v35, %v2147_v41  ;;  %v2157_v48 = vmul.f32 %v2156_v39, %v2147_v41  ;;  %v11479_v38 = vsub.s32 %v2271_v28, %v2274_v6  ;;  %v3002_v5 = vshll.u32 %v2998_v57, 16 }
 0x29c   :  { %vm3004_vm11 = vc.u32 %v2996_v18, %v3000_v25  ;;  %v3006_v27 = vadd.s32 %v3000_v25, %v2996_v18  ;;  %vm2165_vm8 = vcmp.eq.s32.totalorder %v11472_v34, 0  ;;  %vm2168_vm9 = vcmp.eq.s32.totalorder %v11472_v34, 2 }
 0x29d   :  { %v2151_v19 = vadd.f32 -0.4999988, %v2150_v24  ;;  %v2158_v1 = vadd.f32 -0.16666654, %v2157_v48  ;;  %vm2276_vm2 = vcmp.lt.s32.totalorder %v11479_v38, 0  ;;  %v2277_v29 = vsub.s32 0, %v11479_v38 }
 0x29e   :  { %v3005_v26 = vsel %vm3004_vm11, 1, %v17071_v56  ;;  %vm3008_vm0 = vc.u32 %v3006_v27, %v3002_v5  ;;  %v3019_v12 = vmul.u32 %v3017_v9, %v2992_v7  ;;  %vm2164_vm10 = vcmp.lt.s32.totalorder %v11472_v34, 2 }
 0x29f   :  { %v2152_v28 = vmul.f32 %v2151_v19, %v2147_v41  ;;  %v2159_v32 = vmul.f32 %v2158_v1, %v2147_v41  ;;  %v2278_v63 = vsel %vm2276_vm2, %v2277_v29, %v11479_v38  ;;  %v3007_v60 = vadd.s32 %v3005_v26, %v2999_v10 }
 0x2a0   :  { %vm2162_vm6 = vweird.f32 %v17205_v11  ;;  %v2267_v23 = vadd.s32 %v11405_v30, %v11401_v3  ;;  %v2279_v2 = vclz %v2278_v63  ;;  %v11493_v42 = vsel %vm2976_vm15, %v2979_v46, %v2981_v31 }
 0x2a1   :  { %v3018_v17 = vmul.u32 %v3016_v21, %v2992_v7  ;;  %v2153_v13 = vadd.f32 1.0, %v2152_v28  ;;  %v2160_v37 = vadd.f32 1.0, %v2159_v32  ;;  %v3009_v41 = vsel %vm3008_vm0, 1, %v17071_v56 }
 0x2a2   :  { %v3020_v22 = vmul.u32 %v3016_v21, %v2993_v0  ;;  %v8433_v16 = vadd.s32 4294967294, %v2279_v2  ;;  %v3001_v35 = vshrl.u32 %v2997_v58, 16  ;;  %v3011_v39 = vadd.s32 %v3009_v41, %v3007_v60  ;;  %v17227_v60 = vld [vmem:[#allocation47_spill] sm:$0xff] }
 0x2a3   :  { %v3022_v6 = vshll.u32 %v3019_v12, 16  ;;  %v2161_v18 = vmul.f32 %v2160_v37, %v11449_v45  ;;  %v2169_v25 = vxor.u32 2147483648, %v2153_v13  ;;  %v3003_v24 = vshrl.u32 %v2998_v57, 16 }
 0x2a4   :  { %v3021_v3 = vmul.u32 %v3017_v9, %v2993_v0  ;;  %vm8434_vm5 = vcmp.lt.s32.totalorder %v8433_v16, 0  ;;  %v3012_v30 = vadd.s32 %v3011_v39, %v3001_v35  ;;  %v3024_v31 = vshll.u32 %v3020_v22, 16  ;;  %v17229_v35 = vld [vmem:[#allocation66_spill] sm:$0xff] }
 0x2a5   :  { %vm3026_vm7 = vc.u32 %v3018_v17, %v3022_v6  ;;  %v3028_v20 = vadd.s32 %v3022_v6, %v3018_v17  ;;  %v2166_v46 = vxor.u32 2147483648, %v2161_v18  ;;  %v2282_v7 = vsel %vm8434_vm5, 0, %v8433_v16 }
 0x2a6   :  { %v3027_v48 = vsel %vm3026_vm7, 1, %v17071_v56  ;;  %v2170_v21 = vsel %vm2168_vm9, %v2169_v25, %v2161_v18  ;;  %v2283_v58 = vsub.s32 32, %v2282_v7  ;;  %v2284_v10 = vshll.u32 %v11479_v38, %v2282_v7 }
 0x2a7   :  { %v2287_v5 = vsub.s32 4294967266, %v2282_v7  ;;  %v2167_v45 = vsel %vm2165_vm8, %v2153_v13, %v2166_v46  ;;  %v11503_v0 = vadd.s32 %v3012_v30, %v3003_v24  ;;  %v3029_v57 = vadd.s32 %v3027_v48, %v3021_v3  ;;  %v17228_v13 = vld [vmem:[#allocation63_spill] sm:$0xff] }
 0x2a8   :  { %vm3030_vm13 = vc.u32 %v3028_v20, %v3024_v31  ;;  %v2171_v9 = vsel %vm2164_vm10, %v2167_v45, %v2170_v21  ;;  %v2285_v27 = vshrl.u32 %v2267_v23, %v2283_v58  ;;  %vm2175_vm15 = vcmp.lt.s32.totalorder %v17216_v59, 0  ;;  %v17233_v58 = vld [vmem:[#allocation72_spill] sm:$0xff] }
 0x2a9   :  { %v2288_v19 = vadd.s32 127, %v2287_v5  ;;  %v3031_v1 = vsel %vm3030_vm13, 1, %v17071_v56  ;;  %v2172_v29 = vsel %vm2162_vm6, nan, %v2171_v9  ;;  %v3023_v38 = vshrl.u32 %v3019_v12, 16 }
 0x2aa   :  { %v3033_v26 = vadd.s32 %v3031_v1, %v3029_v57  ;;  %8505 = vmatmul.msk.f32.gmra.mxu0 %vm204_vm4, %v2172_v29  ;;  %v2286_v28 = vor.u32 %v2285_v27, %v2284_v10  ;;  %v11512_v63 = vadd.s32 %v3028_v20, %v3024_v31  ;;  %v2327_v34 = vand.u32 2147483647, %v17227_v60  ;;  %v17230_v31 = vld [vmem:[#allocation62_spill] sm:$0xff]  ;;  %v17234_v10 = vld [vmem:[#allocation69_spill] sm:$0xff] }
 0x2ab   :  { %v2289_v32 = vshll.u32 %v2288_v19, 23  ;;  %v3025_v2 = vshrl.u32 %v3020_v22, 16  ;;  %v3036_v17 = vmul.u32 %v11438_v50, %v11493_v42  ;;  %v2344_v11 = vshll.u32 %v17088_v33, %v17228_v13  ;;  %v17235_v19 = vld [vmem:[#allocation71_spill] sm:$0xff] }
 0x2ac   :  { %v3034_v23 = vadd.s32 %v3033_v26, %v3023_v38  ;;  %v2297_v12 = vsub.s32 4, %v11466_v54  ;;  %vm3038_vm12 = vc.u32 %v11503_v0, %v11512_v63  ;;  %v2334_v41 = vand.u32 8388607, %v2327_v34 }
 0x2ad   :  { %v2290_v37 = vor.u32 4788187, %v2289_v32  ;;  %v2345_v22 = vshrl.u32 %v17086_v47, %v17229_v35  ;;  %v2347_v39 = vshll.u32 %v17086_v47, %v17228_v13  ;;  %v2348_v50 = vshrl.u32 %v17087_v61, %v17229_v35 }
 0x2ae   :  { %v3035_v16 = vadd.s32 %v3034_v23, %v3025_v2  ;;  %v2293_v6 = vcvt.s32.f32 %v2286_v28  ;;  %v2350_v18 = vshll.u32 %v17087_v61, %v17228_v13  ;;  %v2351_v25 = vshrl.u32 %v17073_v14, %v17229_v35 }
 0x2af   :  { %v2291_v42 = vand.u32 2147483647, %v2290_v37  ;;  %v2335_v3 = vor.u32 8388608, %v2334_v41  ;;  %v2346_v30 = vor.u32 %v2345_v22, %v2344_v11  ;;  %v2349_v20 = vor.u32 %v2348_v50, %v2347_v39 }
 0x2b0   :  { %v3039_v24 = vadd.s32 1, %v3035_v16  ;;  %v2352_v7 = vor.u32 %v2351_v25, %v2350_v18  ;;  %vm2359_vm11 = vcmp.lt.s32.totalorder %v17230_v31, 1  ;;  %vm2361_vm2 = vcmp.lt.s32.totalorder %v17230_v31, 3 }
 0x2b1   :  { %v2294_v46 = vmul.f32 %v2293_v6, %v2291_v42  ;;  %vm11538_vm8 = vcmp.le.f32.partialorder %v2173_v15, 0.7853982  ;;  %vm2360_vm9 = vcmp.lt.s32.totalorder %v17230_v31, 2  ;;  %v2373_v5 = vsel %vm2361_vm2, %v17234_v10, %v17233_v58 }
 0x2b2   :  { %v3040_v21 = vsel %vm3038_vm12, %v3039_v24, %v3035_v16  ;;  %v2298_v57 = vsel %vm2175_vm15, %v2297_v12, %v11466_v54  ;;  %v2343_v9 = vshrl.u32 %v17088_v33, %v17229_v35  ;;  %v2367_v27 = vsel %vm2359_vm11, %v2346_v30, %v2349_v20 }
 0x2b3   :  { %v2295_v45 = vxor.u32 2147483648, %v2294_v46  ;;  %v3041_v15 = vadd.s32 %v3040_v21, %v3036_v17  ;;  %v2369_v1 = vsel %vm2361_vm2, %v2352_v7, %v17235_v19  ;;  %v2371_v29 = vsel %vm2359_vm11, %v2349_v20, %v2352_v7 }
 0x2b4   :  { %v11562_v38 = vshll.u32 %v2335_v3, 8  ;;  %v2364_v28 = vsel %vm2362_vm3, %v2352_v7, 2102212464  ;;  %v2374_v32 = vsel %vm2360_vm9, %v2371_v29, %v2373_v5  ;;  %v2370_v12 = vsel %vm2360_vm9, %v2367_v27, %v2369_v1 }
 0x2b5   :  { %v2296_v26 = vsel %vm2175_vm15, %v2295_v45, %v2294_v46  ;;  %v3042_v54 = vadd.s32 536870912, %v3041_v15  ;;  %v2378_v13 = vand.u32 65535, %v2374_v32  ;;  %v2379_v41 = vshrl.u32 %v2374_v32, 16 }
 0x2b6   :  { %v11573_v2 = vsel %vm11538_vm8, %v17216_v59, %v2296_v26  ;;  %v2376_v23 = vand.u32 65535, %v11562_v38  ;;  %v2377_v17 = vshrl.u32 %v11562_v38, 16  ;;  %v2666_v16 = vor.u32 %v11033_v4, %v11029_v55 }
 0x2b7   :  { %v2301_v11 = vmul.f32 %v11573_v2, %v11573_v2  ;;  %v11579_v37 = vshrl.u32 %v3042_v54, 30  ;;  %v2300_v35 = vsel %vm11538_vm8, 0, %v2298_v57  ;;  %v2363_v22 = vsel %vm2359_vm11, %v2343_v9, %v2346_v30 }
 0x2b8   :  { %v11589_v39 = vmul.u32 %v2378_v13, %v2377_v17  ;;  %v2365_v18 = vsel %vm2361_vm2, %v2349_v20, %v2364_v28  ;;  %v11595_v25 = vadd.s32 1, %v11470_v52  ;;  %v2380_v24 = vmul.u32 %v2378_v13, %v2376_v23 }
 0x2b9   :  { %v2302_v50 = vmul.f32 -0.001358992, %v2301_v11  ;;  %v2309_v42 = vmul.f32 -0.00019511016, %v2301_v11  ;;  %v3044_v6 = vshll.u32 %v11579_v37, 30  ;;  %v11597_v3 = vmul.u32 %v2379_v41, %v2376_v23 }
 0x2ba   :  { %v2401_v46 = vshrl.u32 %v2370_v12, 16  ;;  %v11599_v21 = vand.u32 3, %v2300_v35  ;;  %v11605_v58 = vsel %vm2360_vm9, %v2363_v22, %v2365_v18  ;;  %v2383_v10 = vmul.u32 %v2379_v41, %v2377_v17 }
 0x2bb   :  { %v2303_v7 = vadd.f32 0.041655596, %v2302_v50  ;;  %v2310_v48 = vadd.f32 0.008332121, %v2309_v42  ;;  %v11601_v30 = vsub.s32 %v3041_v15, %v3044_v6  ;;  %v2384_v20 = vshll.u32 %v11597_v3, 16 }
 0x2bc   :  { %v2386_v52 = vshll.u32 %v11589_v39, 16  ;;  %v2400_v27 = vand.u32 65535, %v2370_v12  ;;  %v11611_v15 = vmul.u32 %v2401_v46, %v2376_v23  ;;  %vm2319_vm10 = vcmp.eq.s32.totalorder %v11599_v21, 0 }
 0x2bd   :  { %v2304_v5 = vmul.f32 %v2303_v7, %v2301_v11  ;;  %v2311_v45 = vmul.f32 %v2310_v48, %v2301_v11  ;;  %vm3046_vm3 = vcmp.lt.s32.totalorder %v11601_v30, 0  ;;  %v3047_v57 = vsub.s32 0, %v11601_v30 }
 0x2be   :  { %vm2388_vm0 = vc.u32 %v2380_v24, %v2384_v20  ;;  %v2390_v9 = vadd.s32 %v2384_v20, %v2380_v24  ;;  %vm2322_vm6 = vcmp.eq.s32.totalorder %v11599_v21, 2  ;;  %v3037_v26 = vadd.s32 %v11512_v63, %v11503_v0 }
 0x2bf   :  { %v2305_v19 = vadd.f32 -0.4999988, %v2304_v5  ;;  %v2312_v31 = vadd.f32 -0.16666654, %v2311_v45  ;;  %v3048_v1 = vsel %vm3046_vm3, %v3047_v57, %v11601_v30  ;;  %v2389_v29 = vsel %vm2388_vm0, 1, %v17071_v56 }
 0x2c0   :  { %v3049_v54 = vclz %v3048_v1  ;;  %v2420_v28 = vmul.u32 %v11562_v38, %v11605_v58  ;;  %vm2318_vm5 = vcmp.lt.s32.totalorder %v11599_v21, 2  ;;  %v2391_v12 = vadd.s32 %v2389_v29, %v2383_v10  ;;  %v17236_v1 = vld [vmem:[#allocation20_spill] sm:$0xff] }
 0x2c1   :  { %v2306_v32 = vmul.f32 %v2305_v19, %v2301_v11  ;;  %v2313_v13 = vmul.f32 %v2312_v31, %v2301_v11  ;;  %vm2392_vm7 = vc.u32 %v2390_v9, %v2386_v52  ;;  %vm2316_vm13 = vweird.f32 %v17216_v59 }
 0x2c2   :  { %v8448_v41 = vadd.s32 4294967294, %v3049_v54  ;;  %v2393_v35 = vsel %vm2392_vm7, 1, %v17071_v56  ;;  %v2402_v22 = vmul.u32 %v2400_v27, %v2376_v23  ;;  %v2404_v50 = vmul.u32 %v2400_v27, %v2377_v17 }
 0x2c3   :  { %v2307_v42 = vadd.f32 1.0, %v2306_v32  ;;  %v2314_v6 = vadd.f32 1.0, %v2313_v13  ;;  %v3067_v0 = vsub.s32 4, %v11579_v37  ;;  %v2406_v63 = vshll.u32 %v11611_v15, 16 }
 0x2c4   :  { %vm8449_vm15 = vcmp.lt.s32.totalorder %v8448_v41, 0  ;;  %v2385_v11 = vshrl.u32 %v11597_v3, 16  ;;  %v2387_v18 = vshrl.u32 %v11589_v39, 16  ;;  %v2405_v24 = vmul.u32 %v2401_v46, %v2377_v17 }
 0x2c5   :  { %v2315_v7 = vmul.f32 %v2314_v6, %v11573_v2  ;;  %v2323_v48 = vxor.u32 2147483648, %v2307_v42  ;;  %v3052_v10 = vsel %vm8449_vm15, 0, %v8448_v41  ;;  %v2395_v20 = vadd.s32 %v2393_v35, %v2391_v12  ;;  %v17237_v12 = vld [vmem:[#allocation34_spill] sm:$0xff] }
 0x2c6   :  { %vm2945_vm12 = vcmp.lt.s32.totalorder %v17223_v62, 0  ;;  %v3053_v23 = vsub.s32 32, %v3052_v10  ;;  %v3057_v52 = vsub.s32 4294967266, %v3052_v10  ;;  %v2408_v5 = vshll.u32 %v2404_v50, 16 }
 0x2c7   :  { %vm2410_vm11 = vc.u32 %v2402_v22, %v2406_v63  ;;  %v2320_v45 = vxor.u32 2147483648, %v2315_v7  ;;  %v3054_v57 = vshll.u32 %v11601_v30, %v3052_v10  ;;  %v2407_v9 = vshrl.u32 %v11611_v15, 16 }
 0x2c8   :  { %v2411_v3 = vsel %vm2410_vm11, 1, %v17071_v56  ;;  %vm3416_vm2 = vcmp.gt.s32.totalorder %v11595_v25, 0  ;;  %v3055_v17 = vshrl.u32 %v3037_v26, %v3053_v23  ;;  %v3058_v2 = vadd.s32 127, %v3057_v52 }
 0x2c9   :  { %v2412_v39 = vadd.s32 %v2406_v63, %v2402_v22  ;;  %v2413_v46 = vadd.s32 %v2411_v3, %v2405_v24  ;;  %v2321_v27 = vsel %vm2319_vm10, %v2307_v42, %v2320_v45  ;;  %v2324_v19 = vsel %vm2322_vm6, %v2323_v48, %v2315_v7  ;;  %v17238_v42 = vld [vmem:[#allocation28_spill] sm:$0xff] }
 0x2ca   :  { %v2396_v31 = vadd.s32 %v2395_v20, %v2385_v11  ;;  %v3097_v29 = vand.u32 2147483647, %v17236_v1  ;;  %v2325_v30 = vsel %vm2318_vm5, %v2321_v27, %v2324_v19  ;;  %v3056_v15 = vor.u32 %v3055_v17, %v3054_v57 }
 0x2cb   :  { %v3059_v54 = vshll.u32 %v3058_v2, 23  ;;  %vm2414_vm8 = vc.u32 %v2412_v39, %v2408_v5  ;;  %v2326_v26 = vsel %vm2316_vm13, nan, %v2325_v30  ;;  %v3114_v41 = vshll.u32 %v17088_v33, %v17237_v12  ;;  %v17240_v2 = vld [vmem:[#allocation29_spill] sm:$0xff] }
 0x2cc   :  { %v2415_v32 = vsel %vm2414_vm8, 1, %v17071_v56  ;;  %v3104_v13 = vand.u32 8388607, %v3097_v29  ;;  %vm2670_vm9 = vcmp.lt.s32.totalorder %v10955_v8, 4  ;;  %8506 = vmatmul.msk.f32.gmra.mxu0 %vm204_vm4, %v2326_v26  ;;  %v2409_v35 = vshrl.u32 %v2404_v50, 16 }
 0x2cd   :  { %v3060_v21 = vor.u32 4788187, %v3059_v54  ;;  %v2417_v22 = vadd.s32 %v2415_v32, %v2413_v46  ;;  %v3115_v6 = vshrl.u32 %v17086_v47, %v17238_v42  ;;  %v11652_v59 = vadd.s32 %v2396_v31, %v2387_v18 }
 0x2ce   :  { %v11654_v63 = vadd.s32 %v2412_v39, %v2408_v5  ;;  %v3105_v11 = vor.u32 8388608, %v3104_v13  ;;  %v3117_v24 = vshll.u32 %v17086_v47, %v17237_v12  ;;  %v3063_v48 = vcvt.s32.f32 %v3056_v15  ;;  %v17241_v39 = vld [vmem:[#allocation57_spill] sm:$0xff] }
 0x2cf   :  { %v3061_v7 = vand.u32 2147483647, %v3060_v21  ;;  %v2418_v10 = vadd.s32 %v2417_v22, %v2407_v9  ;;  %v3118_v20 = vshrl.u32 %v17087_v61, %v17238_v42  ;;  %v3068_v50 = vsel %vm2945_vm12, %v3067_v0, %v11579_v37  ;;  %v17239_v9 = vld [vmem:[#allocation27_spill] sm:$0xff] }
 0x2d0   :  { %v11663_v23 = vor.u32 %v3115_v6, %v3114_v41  ;;  %v3120_v18 = vshll.u32 %v17087_v61, %v17237_v12  ;;  %v3121_v52 = vshrl.u32 %v17073_v14, %v17238_v42  ;;  %vm3129_vm3 = vcmp.lt.s32.totalorder %v17239_v9, 1 }
 0x2d1   :  { %v3064_v5 = vmul.f32 %v3063_v48, %v3061_v7  ;;  %v2419_v45 = vadd.s32 %v2418_v10, %v2409_v35  ;;  %v11669_v57 = vor.u32 %v3118_v20, %v3117_v24  ;;  %vm2422_vm0 = vc.u32 %v11652_v59, %v11654_v63 }
 0x2d2   :  { %v3122_v3 = vor.u32 %v3121_v52, %v3120_v18  ;;  %vm3131_vm10 = vcmp.lt.s32.totalorder %v17239_v9, 3  ;;  %v11675_v37 = vshll.u32 %v3105_v11, 8  ;;  %vm3130_vm6 = vcmp.lt.s32.totalorder %v17239_v9, 2 }
 0x2d3   :  { %v3065_v0 = vxor.u32 2147483648, %v3064_v5  ;;  %v2423_v17 = vadd.s32 1, %v2419_v45  ;;  %v3143_v46 = vsel %vm3131_vm10, %v17241_v39, %v17240_v2  ;;  %v3417_v27 = vsel %vm3416_vm2, %v11595_v25, 0  ;;  %v17244_v25 = vld [vmem:[#allocation19_spill] sm:$0xff]  ;;  %v11743_v39 = vld [vmem:[%s17040_s0] ss:$0 sm:$0xff] }
 0x2d4   :  { %vm11687_vm5 = vcmp.le.f32.partialorder %v2943_v44, 0.7853982  ;;  %v3137_v31 = vsel %vm3129_vm3, %v11663_v23, %v11669_v57  ;;  %v3141_v30 = vsel %vm3129_vm3, %v11669_v57, %v3122_v3  ;;  %v3139_v44 = vsel %vm3131_vm10, %v3122_v3, %v17244_v25 }
 0x2d5   :  { %v3066_v15 = vsel %vm2945_vm12, %v3065_v0, %v3064_v5  ;;  %v2424_v54 = vsel %vm2422_vm0, %v2423_v17, %v2419_v45  ;;  %v3146_v26 = vand.u32 65535, %v11675_v37  ;;  %v3070_v13 = vsel %vm11687_vm5, 0, %v3068_v50 }
 0x2d6   :  { %v11707_v32 = vsel %vm11687_vm5, %v17223_v62, %v3066_v15  ;;  %v2425_v12 = vadd.s32 %v2424_v54, %v2420_v28  ;;  %v3144_v41 = vsel %vm3130_vm6, %v3141_v30, %v3143_v46  ;;  %v11719_v35 = vshrl.u32 %v11675_v37, 16  ;;  %v374_v28 = vpop.permute.xlu2 %373 }
 0x2d7   :  { %v3071_v21 = vmul.f32 %v11707_v32, %v11707_v32  ;;  %v3148_v22 = vand.u32 65535, %v3144_v41  ;;  %v3149_v6 = vshrl.u32 %v3144_v41, 16  ;;  %v11724_v11 = vsel %vm2670_vm9, %v11039_v36, 920167782 }
 0x2d8   :  { %v11726_v24 = vshrl.u32 %v3417_v27, 5  ;;  %v2426_v38 = vadd.s32 536870912, %v2425_v12  ;;  %v3140_v58 = vsel %vm3130_vm6, %v3137_v31, %v3139_v44  ;;  %v11730_v50 = vand.u32 31, %v3417_v27 }
 0x2d9   :  { %v3072_v7 = vmul.f32 -0.001358992, %v3071_v21  ;;  %v3079_v48 = vmul.f32 -0.00019511016, %v3071_v21  ;;  %v3150_v10 = vmul.u32 %v3148_v22, %v3146_v26  ;;  %v3151_v20 = vmul.u32 %v3149_v6, %v3146_v26 }
 0x2da   :  { %v11732_v18 = vand.u32 3, %v3070_v13  ;;  %v11734_v52 = vshrl.u32 %v2426_v38, 30  ;;  %v11737_v5 = vmul.u32 %v3148_v22, %v11719_v35  ;;  %v3153_v17 = vmul.u32 %v3149_v6, %v11719_v35 }
 0x2db   :  { %v3073_v45 = vadd.f32 0.041655596, %v3072_v7  ;;  %v3080_v0 = vadd.f32 0.008332121, %v3079_v48  ;;  %v3154_v2 = vshll.u32 %v3151_v20, 16  ;;  %v11746_v46 = vmul.f32 %v11743_v39, %v374_v28 }
 0x2dc   :  { %v2428_v27 = vshll.u32 %v11734_v52, 30  ;;  %v3156_v19 = vshll.u32 %v11737_v5, 16  ;;  %v3171_v31 = vshrl.u32 %v3140_v58, 16  ;;  %v3113_v44 = vshrl.u32 %v17088_v33, %v17238_v42 }
 0x2dd   :  { %17245 = vst [vmem:[#allocation38_spill] sm:$0xff] %v11746_v46  ;;  %v3074_v30 = vmul.f32 %v3073_v45, %v3071_v21  ;;  %v3081_v15 = vmul.f32 %v3080_v0, %v3071_v21  ;;  %vm3158_vm7 = vc.u32 %v3150_v10, %v3154_v2  ;;  %v3160_v54 = vadd.s32 %v3154_v2, %v3150_v10 }
 0x2de   :  { %v11750_v25 = vsub.s32 %v2425_v12, %v2428_v27  ;;  %v3159_v13 = vsel %vm3158_vm7, 1, %v17071_v56  ;;  %v3170_v41 = vand.u32 65535, %v3140_v58  ;;  %vm3092_vm13 = vcmp.eq.s32.totalorder %v11732_v18, 2 }
 0x2df   :  { %v3075_v22 = vadd.f32 -0.4999988, %v3074_v30  ;;  %v3082_v6 = vadd.f32 -0.16666654, %v3081_v15  ;;  %v3134_v38 = vsel %vm3132_vm1, %v3122_v3, 2102212464  ;;  %v3161_v28 = vadd.s32 %v3159_v13, %v3153_v17 }
 0x2e0   :  { %vm3089_vm15 = vcmp.eq.s32.totalorder %v11732_v18, 0  ;;  %vm2430_vm12 = vcmp.lt.s32.totalorder %v11750_v25, 0  ;;  %v2431_v12 = vsub.s32 0, %v11750_v25  ;;  %v3155_v7 = vshrl.u32 %v3151_v20, 16 }
 0x2e1   :  { %vm3162_vm11 = vc.u32 %v3160_v54, %v3156_v19  ;;  %v3076_v42 = vmul.f32 %v3075_v22, %v3071_v21  ;;  %v3083_v48 = vmul.f32 %v3082_v6, %v3071_v21  ;;  %vm3088_vm2 = vcmp.lt.s32.totalorder %v11732_v18, 2  ;;  %v17246_v18 = vld [vmem:[#allocation54_spill] sm:$0xff] }
 0x2e2   :  { %v3163_v58 = vsel %vm3162_vm11, 1, %v17071_v56  ;;  %v3173_v10 = vmul.u32 %v3171_v31, %v3146_v26  ;;  %vm3086_vm8 = vweird.f32 %v17223_v62  ;;  %v2421_v3 = vadd.s32 %v11654_v63, %v11652_v59 }
 0x2e3   :  { %v2432_v45 = vsel %vm2430_vm12, %v2431_v12, %v11750_v25  ;;  %v3133_v0 = vsel %vm3129_vm3, %v3113_v44, %v11663_v23  ;;  %v3172_v20 = vmul.u32 %v3170_v41, %v3146_v26  ;;  %v3077_v17 = vadd.f32 1.0, %v3076_v42 }
 0x2e4   :  { %v3084_v2 = vadd.f32 1.0, %v3083_v48  ;;  %v2433_v21 = vclz %v2432_v45  ;;  %v3165_v27 = vadd.s32 %v3163_v58, %v3161_v28  ;;  %v3135_v19 = vsel %vm3131_vm10, %v11669_v57, %v3134_v38 }
 0x2e5   :  { %v3157_v30 = vshrl.u32 %v11737_v5, 16  ;;  %v3174_v15 = vmul.u32 %v3170_v41, %v11719_v35  ;;  %v3176_v59 = vshll.u32 %v3173_v10, 16  ;;  %v3093_v54 = vxor.u32 2147483648, %v3077_v17 }
 0x2e6   :  { %v3085_v63 = vmul.f32 %v3084_v2, %v11707_v32  ;;  %v8436_v13 = vadd.s32 4294967294, %v2433_v21  ;;  %v3166_v22 = vadd.s32 %v3165_v27, %v3155_v7  ;;  %v3175_v23 = vmul.u32 %v3171_v31, %v11719_v35 }
 0x2e7   :  { %v3178_v26 = vshll.u32 %v3174_v15, 16  ;;  %vm3180_vm1 = vc.u32 %v3172_v20, %v3176_v59  ;;  %v3182_v44 = vadd.s32 %v3176_v59, %v3172_v20  ;;  %v3136_v57 = vsel %vm3130_vm6, %v3133_v0, %v3135_v19  ;;  %v17247_v59 = vld [vmem:[#allocation68_spill] sm:$0xff] }
 0x2e8   :  { %v3090_v6 = vxor.u32 2147483648, %v3085_v63  ;;  %vm8437_vm3 = vcmp.lt.s32.totalorder %v8436_v13, 0  ;;  %v3177_v38 = vshrl.u32 %v3173_v10, 16  ;;  %v3094_v5 = vsel %vm3092_vm13, %v3093_v54, %v3085_v63 }
 0x2e9   :  { %v2436_v41 = vsel %vm8437_vm3, 0, %v8436_v13  ;;  %v3181_v32 = vsel %vm3180_vm1, 1, %v17071_v56  ;;  %vm3184_vm0 = vc.u32 %v3182_v44, %v3178_v26  ;;  %v11784_v12 = vadd.s32 %v3166_v22, %v3157_v30 }
 0x2ea   :  { %v3091_v28 = vsel %vm3089_vm15, %v3077_v17, %v3090_v6  ;;  %v2437_v35 = vsub.s32 32, %v2436_v41  ;;  %v2441_v31 = vsub.s32 4294967266, %v2436_v41  ;;  %v3183_v9 = vadd.s32 %v3181_v32, %v3175_v23 }
 0x2eb   :  { %v3095_v7 = vsel %vm3088_vm2, %v3091_v28, %v3094_v5  ;;  %v3185_v42 = vsel %vm3184_vm0, 1, %v17071_v56  ;;  %v11789_v48 = vadd.s32 %v3182_v44, %v3178_v26  ;;  %v2438_v10 = vshll.u32 %v11750_v25, %v2436_v41  ;;  %v17249_v41 = vld [vmem:[#allocation67_spill] sm:$0xff] }
 0x2ec   :  { %v3096_v58 = vsel %vm3086_vm8, nan, %v3095_v7  ;;  %v2439_v45 = vshrl.u32 %v2421_v3, %v2437_v35  ;;  %v2442_v0 = vadd.s32 127, %v2441_v31  ;;  %v2451_v20 = vsub.s32 4, %v11734_v52  ;;  %v17248_v3 = vld [vmem:[#allocation70_spill] sm:$0xff]  ;;  %v17250_v7 = vld [vmem:[#allocation17_spill] sm:$0xff] }
 0x2ed   :  { %8511 = vmatmul.msk.f32.vlgmr.msra.gmra.mxu2 %vm204_vm4, %v3096_v58  ;;  %v3179_v17 = vshrl.u32 %v3174_v15, 16  ;;  %v3187_v2 = vadd.s32 %v3185_v42, %v3183_v9  ;;  %v16994_v21 = vand.u32 2147483647, %v17246_v18  ;;  %v3190_v30 = vmul.u32 %v11675_v37, %v3136_v57  ;;  %v17251_v9 = vld [vmem:[#allocation48_spill] sm:$0xff] }
 0x2ee   :  { %v2440_v27 = vor.u32 %v2439_v45, %v2438_v10  ;;  %v2443_v19 = vshll.u32 %v2442_v0, 23  ;;  %v2498_v62 = vshll.u32 %v17088_v33, %v17247_v59  ;;  %v2499_v54 = vshrl.u32 %v17086_v47, %v17248_v3 }
 0x2ef   :  { %v3188_v63 = vadd.s32 %v3187_v2, %v3177_v38  ;;  %v2488_v25 = vand.u32 8388607, %v16994_v21  ;;  %v2501_v15 = vshll.u32 %v17086_v47, %v17247_v59  ;;  %vm3192_vm10 = vc.u32 %v11784_v12, %v11789_v48 }
 0x2f0   :  { %v2444_v13 = vor.u32 4788187, %v2443_v19  ;;  %v2502_v37 = vshrl.u32 %v17087_v61, %v17248_v3  ;;  %v2504_v22 = vshll.u32 %v17087_v61, %v17247_v59  ;;  %v2447_v23 = vcvt.s32.f32 %v2440_v27 }
 0x2f1   :  { %v3189_v26 = vadd.s32 %v3188_v63, %v3179_v17  ;;  %v2489_v44 = vor.u32 8388608, %v2488_v25  ;;  %v2505_v6 = vshrl.u32 %v17073_v14, %v17248_v3  ;;  %v2500_v38 = vor.u32 %v2499_v54, %v2498_v62 }
 0x2f2   :  { %v2445_v57 = vand.u32 2147483647, %v2444_v13  ;;  %v2503_v5 = vor.u32 %v2502_v37, %v2501_v15  ;;  %vm2513_vm6 = vcmp.lt.s32.totalorder %v17249_v41, 1  ;;  %v3562_v32 = vand.u32 2139095040, %v11746_v46 }
 0x2f3   :  { %v3193_v28 = vadd.s32 1, %v3189_v26  ;;  %v2506_v35 = vor.u32 %v2505_v6, %v2504_v22  ;;  %vm2515_vm5 = vcmp.lt.s32.totalorder %v17249_v41, 3  ;;  %vm2514_vm7 = vcmp.lt.s32.totalorder %v17249_v41, 2 }
 0x2f4   :  { %v2448_v31 = vmul.f32 %v2447_v23, %v2445_v57  ;;  %v2527_v42 = vsel %vm2515_vm5, %v17251_v9, %v17250_v7  ;;  %v11822_v58 = vshll.u32 %v2489_v44, 8  ;;  %vm11826_vm13 = vcmp.le.f32.partialorder %v2327_v34, 0.7853982  ;;  %v17254_v34 = vld [vmem:[#allocation45_spill] sm:$0xff] }
 0x2f5   :  { %vm2329_vm15 = vcmp.lt.s32.totalorder %v17227_v60, 0  ;;  %v3194_v45 = vsel %vm3192_vm10, %v3193_v28, %v3189_v26  ;;  %v2525_v0 = vsel %vm2513_vm6, %v2503_v5, %v2506_v35  ;;  %v2521_v19 = vsel %vm2513_vm6, %v2500_v38, %v2503_v5 }
 0x2f6   :  { %v2449_v17 = vxor.u32 2147483648, %v2448_v31  ;;  %v2452_v2 = vsel %vm2329_vm15, %v2451_v20, %v11734_v52  ;;  %v3195_v27 = vadd.s32 %v3194_v45, %v3190_v30  ;;  %v2523_v59 = vsel %vm2515_vm5, %v2506_v35, %v17254_v34 }
 0x2f7   :  { %v2528_v62 = vsel %vm2514_vm7, %v2525_v0, %v2527_v42  ;;  %v2530_v63 = vand.u32 65535, %v11822_v58  ;;  %v11846_v25 = vshrl.u32 %v11822_v58, 16  ;;  %v2454_v30 = vsel %vm11826_vm13, 0, %v2452_v2 }
 0x2f8   :  { %v2450_v54 = vsel %vm2329_vm15, %v2449_v17, %v2448_v31  ;;  %v3196_v15 = vadd.s32 536870912, %v3195_v27  ;;  %v2532_v13 = vand.u32 65535, %v2528_v62  ;;  %v2533_v52 = vshrl.u32 %v2528_v62, 16 }
 0x2f9   :  { %v11851_v20 = vsel %vm11826_vm13, %v17227_v60, %v2450_v54  ;;  %v2497_v37 = vshrl.u32 %v17088_v33, %v17248_v3  ;;  %vm17255_vm12 = vcmp.lt.s32.totalorder %v17249_v41, 4  ;;  %v2524_v44 = vsel %vm2514_vm7, %v2521_v19, %v2523_v59 }
 0x2fa   :  { %v2518_v22 = vsel %vm17255_vm12, %v2506_v35, 2102212464  ;;  %v2455_v23 = vmul.f32 %v11851_v20, %v11851_v20  ;;  %v11861_v26 = vshrl.u32 %v3196_v15, 30  ;;  %v2535_v6 = vmul.u32 %v2533_v52, %v2530_v63 }
 0x2fb   :  { %v11866_v57 = vsub.s32 32, %v11730_v50  ;;  %v3563_v28 = vshrl.u32 %v3562_v32, 23  ;;  %v2534_v31 = vmul.u32 %v2532_v13, %v2530_v63  ;;  %v11869_v7 = vmul.u32 %v2532_v13, %v11846_v25 }
 0x2fc   :  { %v2456_v3 = vmul.f32 -0.001358992, %v2455_v23  ;;  %v2463_v9 = vmul.f32 -0.00019511016, %v2455_v23  ;;  %v11871_v35 = vand.u32 3, %v2454_v30  ;;  %v3198_v42 = vshll.u32 %v11861_v26, 30 }
 0x2fd   :  { %v2517_v10 = vsel %vm2513_vm6, %v2497_v37, %v2500_v38  ;;  %v2519_v45 = vsel %vm2515_vm5, %v2503_v5, %v2518_v22  ;;  %v2538_v0 = vshll.u32 %v2535_v6, 16  ;;  %v2555_v17 = vshrl.u32 %v2524_v44, 16 }
 0x2fe   :  { %v2457_v2 = vadd.f32 0.041655596, %v2456_v3  ;;  %v2464_v32 = vadd.f32 0.008332121, %v2463_v9  ;;  %v11878_v19 = vsub.s32 %v3195_v27, %v3198_v42  ;;  %v2537_v34 = vmul.u32 %v2533_v52, %v11846_v25 }
 0x2ff   :  { %v2540_v59 = vshll.u32 %v11869_v7, 16  ;;  %vm2542_vm11 = vc.u32 %v2534_v31, %v2538_v0  ;;  %v2544_v62 = vadd.s32 %v2538_v0, %v2534_v31  ;;  %v2554_v54 = vand.u32 65535, %v2524_v44 }
 0x300   :  { %v2458_v15 = vmul.f32 %v2457_v2, %v2455_v23  ;;  %v2465_v13 = vmul.f32 %v2464_v32, %v2455_v23  ;;  %vm3200_vm2 = vcmp.lt.s32.totalorder %v11878_v19, 0  ;;  %v3201_v38 = vsub.s32 0, %v11878_v19 }
 0x301   :  { %v11884_v5 = vadd.s32 4294967169, %v3563_v28  ;;  %v3191_v30 = vadd.s32 %v11789_v48, %v11784_v12  ;;  %v2543_v27 = vsel %vm2542_vm11, 1, %v17071_v56  ;;  %v2557_v37 = vmul.u32 %v2555_v17, %v2530_v63 }
 0x302   :  { %v2459_v52 = vadd.f32 -0.4999988, %v2458_v15  ;;  %v2466_v22 = vadd.f32 -0.16666654, %v2465_v13  ;;  %vm2476_vm8 = vcmp.eq.s32.totalorder %v11871_v35, 2  ;;  %v3202_v44 = vsel %vm3200_vm2, %v3201_v38, %v11878_v19 }
 0x303   :  { %v2545_v31 = vadd.s32 %v2543_v27, %v2537_v34  ;;  %vm2473_vm1 = vcmp.eq.s32.totalorder %v11871_v35, 0  ;;  %v3203_v3 = vclz %v3202_v44  ;;  %v11894_v28 = vsel %vm2514_vm7, %v2517_v10, %v2519_v45 }
 0x304   :  { %v2556_v9 = vmul.u32 %v2554_v54, %v2530_v63  ;;  %v2558_v12 = vmul.u32 %v2554_v54, %v11846_v25  ;;  %v2460_v48 = vmul.f32 %v2459_v52, %v2455_v23  ;;  %v2467_v42 = vmul.f32 %v2466_v22, %v2455_v23 }
 0x305   :  { %vm2472_vm3 = vcmp.lt.s32.totalorder %v11871_v35, 2  ;;  %v2539_v0 = vshrl.u32 %v2535_v6, 16  ;;  %vm2546_vm0 = vc.u32 %v2544_v62, %v2540_v59  ;;  %vm2470_vm10 = vweird.f32 %v17227_v60 }
 0x306   :  { %v8451_v2 = vadd.s32 4294967294, %v3203_v3  ;;  %v2541_v32 = vshrl.u32 %v11869_v7, 16  ;;  %v2547_v34 = vsel %vm2546_vm0, 1, %v17071_v56  ;;  %v2560_v15 = vshll.u32 %v2557_v37, 16 }
 0x307   :  { %v2461_v41 = vadd.f32 1.0, %v2460_v48  ;;  %v2468_v10 = vadd.f32 1.0, %v2467_v42  ;;  %v2549_v45 = vadd.s32 %v2547_v34, %v2545_v31  ;;  %v2559_v63 = vmul.u32 %v2555_v17, %v11846_v25 }
 0x308   :  { %vm8452_vm6 = vcmp.lt.s32.totalorder %v8451_v2, 0  ;;  %v2562_v54 = vshll.u32 %v2558_v12, 16  ;;  %vm2564_vm5 = vc.u32 %v2556_v9, %v2560_v15  ;;  %v2566_v23 = vadd.s32 %v2560_v15, %v2556_v9  ;;  %v17256_v15 = vld [vmem:[#allocation73_spill] sm:$0xff] }
 0x309   :  { %v2469_v6 = vmul.f32 %v2468_v10, %v11851_v20  ;;  %v2477_v59 = vxor.u32 2147483648, %v2461_v41  ;;  %v3206_v62 = vsel %vm8452_vm6, 0, %v8451_v2  ;;  %v2550_v13 = vadd.s32 %v2549_v45, %v2539_v0 }
 0x30a   :  { %v3207_v38 = vsub.s32 32, %v3206_v62  ;;  %v3211_v27 = vsub.s32 4294967266, %v3206_v62  ;;  %v2561_v7 = vshrl.u32 %v2557_v37, 16  ;;  %v2565_v52 = vsel %vm2564_vm5, 1, %v17071_v56 }
 0x30b   :  { %v2474_v22 = vxor.u32 2147483648, %v2469_v6  ;;  %v3208_v44 = vshll.u32 %v11878_v19, %v3206_v62  ;;  %v2563_v31 = vshrl.u32 %v2558_v12, 16  ;;  %v2567_v3 = vadd.s32 %v2565_v52, %v2559_v63 }
 0x30c   :  { %v2478_v25 = vsel %vm2476_vm8, %v2477_v59, %v2469_v6  ;;  %v3209_v17 = vshrl.u32 %v3191_v30, %v3207_v38  ;;  %v3212_v9 = vadd.s32 127, %v3211_v27  ;;  %vm2568_vm7 = vc.u32 %v2566_v23, %v2562_v54 }
 0x30d   :  { %v2475_v20 = vsel %vm2473_vm1, %v2461_v41, %v2474_v22  ;;  %v11909_v48 = vadd.s32 %v2550_v13, %v2541_v32  ;;  %v2569_v37 = vsel %vm2568_vm7, 1, %v17071_v56  ;;  %v11912_v42 = vadd.s32 %v2566_v23, %v2562_v54  ;;  %v17257_v13 = vld [vmem:[#allocation32_spill] sm:$0xff] }
 0x30e   :  { %v2479_v19 = vsel %vm2472_vm3, %v2475_v20, %v2478_v25  ;;  %v3210_v12 = vor.u32 %v3209_v17, %v3208_v44  ;;  %v3213_v0 = vshll.u32 %v3212_v9, 23  ;;  %v2571_v2 = vadd.s32 %v2569_v37, %v2567_v3  ;;  %v380_v20 = vpop.permute.xlu1 %379 }
 0x30f   :  { %v3431_v30 = vshll.u32 %v17073_v14, %v11730_v50  ;;  %v3434_v34 = vshll.u32 %v17067_v40, %v11730_v50  ;;  %v2480_v32 = vsel %vm2470_vm10, nan, %v2479_v19  ;;  %v16993_v41 = vand.u32 2147483647, %v17256_v15 }
 0x310   :  { %v3432_v10 = vshrl.u32 %v17067_v40, %v11866_v57  ;;  %v3435_v35 = vshrl.u32 %v17070_v53, %v11866_v57  ;;  %8507 = vmatmul.msk.f32.gmra.mxu0 %vm204_vm4, %v2480_v32  ;;  %v3214_v45 = vor.u32 4788187, %v3213_v0  ;;  %v2572_v63 = vadd.s32 %v2571_v2, %v2561_v7  ;;  %v17258_v7 = vld [vmem:[#allocation59_spill] sm:$0xff] }
 0x311   :  { %v3569_v54 = vadd.s32 1, %v11884_v5  ;;  %v3221_v23 = vsub.s32 4, %v11861_v26  ;;  %v2574_v60 = vmul.u32 %v11822_v58, %v11894_v28  ;;  %vm2576_vm13 = vc.u32 %v11909_v48, %v11912_v42 }
 0x312   :  { %v3215_v6 = vand.u32 2147483647, %v3214_v45  ;;  %v3217_v59 = vcvt.s32.f32 %v3210_v12  ;;  %v2573_v62 = vadd.s32 %v2572_v63, %v2563_v31  ;;  %v3271_v38 = vshll.u32 %v17086_v47, %v17257_v13 }
 0x313   :  { %v3258_v27 = vand.u32 8388607, %v16993_v41  ;;  %v3272_v5 = vshrl.u32 %v17087_v61, %v17258_v7  ;;  %v3274_v52 = vshll.u32 %v17087_v61, %v17257_v13  ;;  %v3275_v58 = vshrl.u32 %v17073_v14, %v17258_v7 }
 0x314   :  { %v11944_v28 = vor.u32 %v3432_v10, %v3431_v30  ;;  %v3436_v22 = vor.u32 %v3435_v35, %v3434_v34  ;;  %v3218_v44 = vmul.f32 %v3217_v59, %v3215_v6  ;;  %v2577_v31 = vadd.s32 1, %v2573_v62  ;;  %v17261_v10 = vld [vmem:[#allocation36_spill] sm:$0xff] }
 0x315   :  { %vm3570_vm15 = vcmp.gt.s32.totalorder %v3569_v54, 0  ;;  %vm3099_vm12 = vcmp.lt.s32.totalorder %v17236_v1, 0  ;;  %v11947_v3 = vor.u32 %v3272_v5, %v3271_v38  ;;  %v11949_v25 = vor.u32 %v3275_v58, %v3274_v52 }
 0x316   :  { %v3219_v17 = vxor.u32 2147483648, %v3218_v44  ;;  %v2578_v9 = vsel %vm2576_vm13, %v2577_v31, %v2573_v62  ;;  %vm3283_vm11 = vcmp.lt.s32.totalorder %v10704_v43, 1  ;;  %vm3285_vm2 = vcmp.lt.s32.totalorder %v10704_v43, 3 }
 0x317   :  { %vm11958_vm8 = vcmp.le.f32.partialorder %v3097_v29, 0.7853982  ;;  %v3222_v19 = vsel %vm3099_vm12, %v3221_v23, %v11861_v26  ;;  %v2579_v12 = vadd.s32 %v2578_v9, %v2574_v60  ;;  %v3259_v0 = vor.u32 8388608, %v3258_v27 }
 0x318   :  { %v3220_v2 = vsel %vm3099_vm12, %v3219_v17, %v3218_v44  ;;  %v3268_v30 = vshll.u32 %v17088_v33, %v17257_v13  ;;  %v3269_v34 = vshrl.u32 %v17086_v47, %v17258_v7  ;;  %vm3284_vm1 = vcmp.lt.s32.totalorder %v10704_v43, 2 }
 0x319   :  { %v3223_v29 = vsel %vm11958_vm8, %v17236_v1, %v3220_v2  ;;  %v2580_v32 = vadd.s32 536870912, %v2579_v12  ;;  %v3295_v26 = vsel %vm3283_vm11, %v11947_v3, %v11949_v25  ;;  %v3297_v35 = vsel %vm3285_vm2, %v17261_v10, %v11005_v51  ;;  %v17264_v2 = vld [vmem:[#allocation37_spill] sm:$0xff] }
 0x31a   :  { %v11984_v45 = vsel %vm2670_vm9, %v2666_v16, 1326507024  ;;  %vm3440_vm3 = vcmp.lt.s32.totalorder %v11726_v24, 4  ;;  %v11988_v63 = vmul.f32 %v11743_v39, %v380_v20  ;;  %v3225_v23 = vmul.f32 %v3223_v29, %v3223_v29 }
 0x31b   :  { %v3571_v60 = vsel %vm3570_vm15, %v3569_v54, 0  ;;  %v3224_v6 = vsel %vm11958_vm8, 0, %v3222_v19  ;;  %v11993_v59 = vshrl.u32 %v2580_v32, 30  ;;  %v11995_v51 = vshll.u32 %v3259_v0, 8 }
 0x31c   :  { %17262 = vst [vmem:[#allocation35_spill] sm:$0xff] %v11988_v63  ;;  %v3226_v55 = vmul.f32 -0.001358992, %v3225_v23  ;;  %v3233_v4 = vmul.f32 -0.00019511016, %v3225_v23  ;;  %v11997_v62 = vor.u32 %v3269_v34, %v3268_v30  ;;  %v3298_v16 = vsel %vm3284_vm1, %v3295_v26, %v3297_v35 }
 0x31d   :  { %v12004_v13 = vsel %vm3440_vm3, %v11944_v28, 920167782  ;;  %v12008_v54 = vsel %vm3440_vm3, %v3436_v22, 1326507024  ;;  %v2582_v38 = vshll.u32 %v11993_v59, 30  ;;  %v12011_v27 = vand.u32 31, %v3571_v60 }
 0x31e   :  { %v3716_v5 = vand.u32 2139095040, %v11988_v63  ;;  %v3227_v52 = vadd.f32 0.041655596, %v3226_v55  ;;  %v3234_v58 = vadd.f32 0.008332121, %v3233_v4  ;;  %v3241_v44 = vand.u32 3, %v3224_v6 }
 0x31f   :  { %17263 = vst [vmem:[#allocation50_spill] sm:$0xff] %v12011_v27  ;;  %v12014_v31 = vsub.s32 %v2579_v12, %v2582_v38  ;;  %v12017_v17 = vand.u32 65535, %v11995_v51  ;;  %v3303_v9 = vshrl.u32 %v3298_v16, 16  ;;  %v12019_v20 = vshrl.u32 %v3571_v60, 5 }
 0x320   :  { %v3228_v37 = vmul.f32 %v3227_v52, %v3225_v23  ;;  %v3235_v22 = vmul.f32 %v3234_v58, %v3225_v23  ;;  %v3291_v19 = vsel %vm3283_vm11, %v11997_v62, %v11947_v3  ;;  %v3293_v12 = vsel %vm3285_vm2, %v11949_v25, %v17264_v2 }
 0x321   :  { %vm2584_vm0 = vcmp.lt.s32.totalorder %v12014_v31, 0  ;;  %v2585_v0 = vsub.s32 0, %v12014_v31  ;;  %v3302_v30 = vand.u32 65535, %v3298_v16  ;;  %v12032_v34 = vsub.s32 32, %v12011_v27 }
 0x322   :  { %v3229_v32 = vadd.f32 -0.4999988, %v3228_v37  ;;  %v3236_v26 = vadd.f32 -0.16666654, %v3235_v22  ;;  %v3301_v10 = vshrl.u32 %v11995_v51, 16  ;;  %v12035_v35 = vshrl.u32 %v3716_v5, 23 }
 0x323   :  { %vm3243_vm10 = vcmp.eq.s32.totalorder %v3241_v44, 0  ;;  %v2586_v60 = vsel %vm2584_vm0, %v2585_v0, %v12014_v31  ;;  %v3305_v6 = vmul.u32 %v3303_v9, %v12017_v17  ;;  %vm3242_vm6 = vcmp.lt.s32.totalorder %v3241_v44, 2 }
 0x324   :  { %v3230_v55 = vmul.f32 %v3229_v32, %v3225_v23  ;;  %v3237_v4 = vmul.f32 %v3236_v26, %v3225_v23  ;;  %vm3246_vm5 = vcmp.eq.s32.totalorder %v3241_v44, 2  ;;  %v3294_v16 = vsel %vm3284_vm1, %v3291_v19, %v3293_v12 }
 0x325   :  { %vm3240_vm7 = vweird.f32 %v17236_v1  ;;  %v2575_v38 = vadd.s32 %v11912_v42, %v11909_v48  ;;  %v2587_v52 = vclz %v2586_v60  ;;  %v3304_v5 = vmul.u32 %v3302_v30, %v12017_v17 }
 0x326   :  { %v3324_v58 = vand.u32 65535, %v3294_v16  ;;  %v3231_v37 = vadd.f32 1.0, %v3230_v55  ;;  %v3238_v22 = vadd.f32 1.0, %v3237_v4  ;;  %v3267_v0 = vshrl.u32 %v17088_v33, %v17258_v7 }
 0x327   :  { %v3306_v23 = vmul.u32 %v3302_v30, %v3301_v10  ;;  %v8439_v2 = vadd.s32 4294967294, %v2587_v52  ;;  %v3288_v19 = vsel %vm3286_vm14, %v11949_v25, 2102212464  ;;  %v3307_v12 = vmul.u32 %v3303_v9, %v3301_v10 }
 0x328   :  { %v3308_v32 = vshll.u32 %v3305_v6, 16  ;;  %v3239_v26 = vmul.f32 %v3238_v22, %v3223_v29  ;;  %v3247_v41 = vxor.u32 2147483648, %v3231_v37  ;;  %vm2483_vm13 = vcmp.lt.s32.totalorder %v17246_v18, 0 }
 0x329   :  { %v3309_v48 = vshrl.u32 %v3305_v6, 16  ;;  %v3310_v42 = vshll.u32 %v3306_v23, 16  ;;  %vm8440_vm15 = vcmp.lt.s32.totalorder %v8439_v2, 0  ;;  %v3311_v60 = vshrl.u32 %v3306_v23, 16 }
 0x32a   :  { %vm3312_vm12 = vc.u32 %v3304_v5, %v3308_v32  ;;  %v3314_v55 = vadd.s32 %v3308_v32, %v3304_v5  ;;  %v3244_v4 = vxor.u32 2147483648, %v3239_v26  ;;  %v3248_v7 = vsel %vm3246_vm5, %v3247_v41, %v3239_v26 }
 0x32b   :  { %v2590_v30 = vsel %vm8440_vm15, 0, %v8439_v2  ;;  %v3313_v52 = vsel %vm3312_vm12, 1, %v17071_v56  ;;  %v3325_v6 = vshrl.u32 %v3294_v16, 16  ;;  %v3326_v63 = vmul.u32 %v3324_v58, %v12017_v17 }
 0x32c   :  { %v2591_v21 = vsub.s32 32, %v2590_v30  ;;  %v2592_v25 = vshll.u32 %v12014_v31, %v2590_v30  ;;  %v2595_v9 = vsub.s32 4294967266, %v2590_v30  ;;  %v3315_v29 = vadd.s32 %v3313_v52, %v3307_v12 }
 0x32d   :  { %v3245_v22 = vsel %vm3243_vm10, %v3231_v37, %v3244_v4  ;;  %vm3316_vm14 = vc.u32 %v3314_v55, %v3310_v42  ;;  %v3327_v31 = vmul.u32 %v3325_v6, %v12017_v17  ;;  %v3328_v30 = vmul.u32 %v3324_v58, %v3301_v10  ;;  %v17265_v4 = vld [vmem:[#allocation30_spill] sm:$0xff] }
 0x32e   :  { %v3249_v23 = vsel %vm3242_vm6, %v3245_v22, %v3248_v7  ;;  %v2593_v5 = vshrl.u32 %v2575_v38, %v2591_v21  ;;  %v2596_v32 = vadd.s32 127, %v2595_v9  ;;  %v3317_v41 = vsel %vm3316_vm14, 1, %v17071_v56 }
 0x32f   :  { %v3250_v2 = vsel %vm3240_vm7, nan, %v3249_v23  ;;  %v3319_v26 = vadd.s32 %v3317_v41, %v3315_v29  ;;  %v2605_v16 = vsub.s32 4, %v11993_v59  ;;  %v3287_v21 = vsel %vm3283_vm11, %v3267_v0, %v11997_v62  ;;  %v17269_v23 = vld [vmem:[#allocation33_spill] sm:$0xff] }
 0x330   :  { %8512 = vmatmul.msk.f32.gmra.mxu2 %vm204_vm4, %v3250_v2  ;;  %v2594_v37 = vor.u32 %v2593_v5, %v2592_v25  ;;  %v2597_v12 = vshll.u32 %v2596_v32, 23  ;;  %v3289_v44 = vsel %vm3285_vm2, %v11947_v3, %v3288_v19  ;;  %v3329_v38 = vmul.u32 %v3325_v6, %v3301_v10  ;;  %v17270_v2 = vld [vmem:[#allocation40_spill] sm:$0xff] }
 0x331   :  { %v3320_v1 = vadd.s32 %v3319_v26, %v3309_v48  ;;  %v3330_v42 = vshll.u32 %v3327_v31, 16  ;;  %v3332_v58 = vshll.u32 %v3328_v30, 16  ;;  %v16997_v7 = vand.u32 2147483647, %v17265_v4 }
 0x332   :  { %v2598_v55 = vor.u32 4788187, %v2597_v12  ;;  %v2601_v17 = vcvt.s32.f32 %v2594_v37  ;;  %v17266_v52 = vand.u32 2147483647, %v17246_v18  ;;  %v2606_v3 = vsel %vm2483_vm13, %v2605_v16, %v11993_v59 }
 0x333   :  { %v12076_v9 = vadd.s32 %v3320_v1, %v3311_v60  ;;  %vm3334_vm11 = vc.u32 %v3326_v63, %v3330_v42  ;;  %v3336_v62 = vadd.s32 %v3330_v42, %v3326_v63  ;;  %v3290_v10 = vsel %vm3284_vm1, %v3287_v21, %v3289_v44 }
 0x334   :  { %vm12072_vm8 = vcmp.le.f32.partialorder %v17266_v52, 0.7853982  ;;  %v2599_v0 = vand.u32 2147483647, %v2598_v55  ;;  %v3335_v19 = vsel %vm3334_vm11, 1, %v17071_v56  ;;  %v3331_v48 = vshrl.u32 %v3327_v31, 16 }
 0x335   :  { %v3337_v29 = vadd.s32 %v3335_v19, %v3329_v38  ;;  %vm3338_vm2 = vc.u32 %v3336_v62, %v3332_v58  ;;  %v12084_v22 = vadd.s32 %v3336_v62, %v3332_v58  ;;  %v2642_v63 = vand.u32 8388607, %v16997_v7 }
 0x336   :  { %v2602_v6 = vmul.f32 %v2601_v17, %v2599_v0  ;;  %v3339_v60 = vsel %vm3338_vm2, 1, %v17071_v56  ;;  %v2652_v5 = vshll.u32 %v17088_v33, %v17269_v23  ;;  %v3333_v59 = vshrl.u32 %v3328_v30, 16 }
 0x337   :  { %v3341_v32 = vadd.s32 %v3339_v60, %v3337_v29  ;;  %v3344_v43 = vmul.u32 %v11995_v51, %v3290_v10  ;;  %vm3346_vm1 = vc.u32 %v12076_v9, %v12084_v22  ;;  %v2653_v26 = vshrl.u32 %v17086_v47, %v17270_v2 }
 0x338   :  { %v2603_v41 = vxor.u32 2147483648, %v2602_v6  ;;  %v2655_v31 = vshll.u32 %v17086_v47, %v17269_v23  ;;  %v2656_v37 = vshrl.u32 %v17087_v61, %v17270_v2  ;;  %v2658_v30 = vshll.u32 %v17087_v61, %v17269_v23 }
 0x339   :  { %v3342_v12 = vadd.s32 %v3341_v32, %v3331_v48  ;;  %v2659_v51 = vshrl.u32 %v17073_v14, %v17270_v2  ;;  %vm2667_vm0 = vcmp.lt.s32.totalorder %v10955_v8, 1  ;;  %v2643_v21 = vor.u32 8388608, %v2642_v63 }
 0x33a   :  { %v2604_v16 = vsel %vm2483_vm13, %v2603_v41, %v2602_v6  ;;  %v12107_v44 = vor.u32 %v2653_v26, %v2652_v5  ;;  %v12109_v1 = vor.u32 %v2656_v37, %v2655_v31  ;;  %vm2669_vm10 = vcmp.lt.s32.totalorder %v10955_v8, 3  ;;  %v386_v26 = vpop.permute.xlu2 %385 }
 0x33b   :  { %v2607_v38 = vsel %vm12072_vm8, %v17246_v18, %v2604_v16  ;;  %v3343_v42 = vadd.s32 %v3342_v12, %v3333_v59  ;;  %v12114_v55 = vor.u32 %v2659_v51, %v2658_v30  ;;  %vm2668_vm6 = vcmp.lt.s32.totalorder %v10955_v8, 2 }
 0x33c   :  { %v2609_v17 = vmul.f32 %v2607_v38, %v2607_v38  ;;  %v2675_v58 = vsel %vm2667_vm0, %v12107_v44, %v12109_v1  ;;  %v2681_v52 = vsel %vm2669_vm10, %v11039_v36, %v11984_v45  ;;  %v12128_v62 = vshll.u32 %v17073_v14, %v12011_v27 }
 0x33d   :  { %v3347_v0 = vadd.s32 1, %v3343_v42  ;;  %v2677_v10 = vsel %vm2669_vm10, %v12114_v55, %v11724_v11  ;;  %v2679_v19 = vsel %vm2667_vm0, %v12109_v1, %v12114_v55  ;;  %v8462_v48 = vadd.s32 4294967169, %v12035_v35 }
 0x33e   :  { %v2608_v36 = vsel %vm12072_vm8, 0, %v2606_v3  ;;  %v2610_v45 = vmul.f32 -0.001358992, %v2609_v17  ;;  %v2617_v29 = vmul.f32 -0.00019511016, %v2609_v17  ;;  %v2678_v60 = vsel %vm2668_vm6, %v2675_v58, %v2677_v10 }
 0x33f   :  { %v3348_v6 = vsel %vm3346_vm1, %v3347_v0, %v3343_v42  ;;  %v2682_v11 = vsel %vm2668_vm6, %v2679_v19, %v2681_v52  ;;  %v12148_v63 = vshll.u32 %v2643_v21, 8  ;;  %v12152_v25 = vshll.u32 %v17067_v40, %v12011_v27 }
 0x340   :  { %v2611_v23 = vadd.f32 0.041655596, %v2610_v45  ;;  %v2618_v5 = vadd.f32 0.008332121, %v2617_v29  ;;  %v3349_v35 = vadd.s32 %v3348_v6, %v3344_v43  ;;  %v2686_v59 = vand.u32 65535, %v2682_v11 }
 0x341   :  { %v2684_v3 = vand.u32 65535, %v12148_v63  ;;  %v2685_v32 = vshrl.u32 %v12148_v63, 16  ;;  %v2687_v41 = vshrl.u32 %v2682_v11, 16  ;;  %v2625_v12 = vand.u32 3, %v2608_v36 }
 0x342   :  { %v2612_v31 = vmul.f32 %v2611_v23, %v2609_v17  ;;  %v2619_v37 = vmul.f32 %v2618_v5, %v2609_v17  ;;  %v3350_v30 = vadd.s32 536870912, %v3349_v35  ;;  %v12158_v51 = vshrl.u32 %v17067_v40, %v12032_v34 }
 0x343   :  { %v2689_v43 = vmul.u32 %v2687_v41, %v2684_v3  ;;  %v12160_v16 = vmul.u32 %v2686_v59, %v2685_v32  ;;  %v2709_v21 = vshrl.u32 %v2678_v60, 16  ;;  %v12162_v42 = vadd.s32 1, %v8462_v48 }
 0x344   :  { %v2613_v58 = vadd.f32 -0.4999988, %v2612_v31  ;;  %v2620_v52 = vadd.f32 -0.16666654, %v2619_v37  ;;  %v12164_v0 = vshrl.u32 %v3350_v30, 30  ;;  %v12167_v10 = vmul.f32 %v11743_v39, %v386_v26 }
 0x345   :  { %v2688_v19 = vmul.u32 %v2686_v59, %v2684_v3  ;;  %v2692_v36 = vshll.u32 %v2689_v43, 16  ;;  %v2708_v45 = vand.u32 65535, %v2678_v60  ;;  %vm2626_vm5 = vcmp.lt.s32.totalorder %v2625_v12, 2 }
 0x346   :  { %v2614_v29 = vmul.f32 %v2613_v58, %v2609_v17  ;;  %v2621_v6 = vmul.f32 %v2620_v52, %v2609_v17  ;;  %v3352_v11 = vshll.u32 %v12164_v0, 30  ;;  %v2694_v23 = vshll.u32 %v12160_v16, 16 }
 0x347   :  { %vm2696_vm7 = vc.u32 %v2688_v19, %v2692_v36  ;;  %v2698_v48 = vadd.s32 %v2692_v36, %v2688_v19  ;;  %v12171_v5 = vmul.u32 %v2709_v21, %v2684_v3  ;;  %vm2627_vm13 = vcmp.eq.s32.totalorder %v2625_v12, 0 }
 0x348   :  { %v2615_v31 = vadd.f32 1.0, %v2614_v29  ;;  %v2622_v37 = vadd.f32 1.0, %v2621_v6  ;;  %v3353_v30 = vsub.s32 %v3349_v35, %v3352_v11  ;;  %v2691_v26 = vmul.u32 %v2687_v41, %v2685_v32 }
 0x349   :  { %v2697_v59 = vsel %vm2696_vm7, 1, %v17071_v56  ;;  %vm2700_vm15 = vc.u32 %v2698_v48, %v2694_v23  ;;  %v2712_v60 = vmul.u32 %v2708_v45, %v2685_v32  ;;  %v2710_v46 = vmul.u32 %v2708_v45, %v2684_v3 }
 0x34a   :  { %v2623_v58 = vmul.f32 %v2622_v37, %v2607_v38  ;;  %v2631_v17 = vxor.u32 2147483648, %v2615_v31  ;;  %vm3354_vm12 = vcmp.lt.s32.totalorder %v3353_v30, 0  ;;  %v3355_v52 = vsub.s32 0, %v3353_v30 }
 0x34b   :  { %v2699_v7 = vadd.s32 %v2697_v59, %v2691_v26  ;;  %v2701_v27 = vsel %vm2700_vm15, 1, %v17071_v56  ;;  %v2714_v19 = vshll.u32 %v12171_v5, 16  ;;  %vm2630_vm14 = vcmp.eq.s32.totalorder %v2625_v12, 2 }
 0x34c   :  { %v2628_v36 = vxor.u32 2147483648, %v2623_v58  ;;  %v3356_v29 = vsel %vm3354_vm12, %v3355_v52, %v3353_v30  ;;  %v2713_v6 = vmul.u32 %v2709_v21, %v2685_v32  ;;  %v2632_v35 = vsel %vm2630_vm14, %v2631_v17, %v2623_v58 }
 0x34d   :  { %v3357_v41 = vclz %v3356_v29  ;;  %v2703_v11 = vadd.s32 %v2701_v27, %v2699_v7  ;;  %vm2718_vm8 = vc.u32 %v2710_v46, %v2714_v19  ;;  %v2716_v38 = vshll.u32 %v2712_v60, 16 }
 0x34e   :  { %v2629_v23 = vsel %vm2627_vm13, %v2615_v31, %v2628_v36  ;;  %v2719_v48 = vsel %vm2718_vm8, 1, %v17071_v56  ;;  %v2720_v37 = vadd.s32 %v2714_v19, %v2710_v46  ;;  %vm2624_vm11 = vweird.f32 %v17246_v18 }
 0x34f   :  { %v2633_v3 = vsel %vm2626_vm5, %v2629_v23, %v2632_v35  ;;  %v8454_v45 = vadd.s32 4294967294, %v3357_v41  ;;  %v2693_v26 = vshrl.u32 %v2689_v43, 16  ;;  %v2651_v32 = vshrl.u32 %v17088_v33, %v17270_v2  ;;  %v392_v43 = vpop.permute.xlu0 %391 }
 0x350   :  { %v2634_v59 = vsel %vm2624_vm11, nan, %v2633_v3  ;;  %v2721_v21 = vadd.s32 %v2719_v48, %v2713_v6  ;;  %vm2722_vm2 = vc.u32 %v2720_v37, %v2716_v38  ;;  %v3345_v27 = vadd.s32 %v12084_v22, %v12076_v9 }
 0x351   :  { %8508 = vmatmul.msk.f32.gmra.mxu0 %vm204_vm4, %v2634_v59  ;;  %vm8455_vm1 = vcmp.lt.s32.totalorder %v8454_v45, 0  ;;  %v2672_v46 = vsel %vm2670_vm9, %v12114_v55, 2102212464  ;;  %v2704_v18 = vadd.s32 %v2703_v11, %v2693_v26  ;;  %vm3724_vm5 = vcmp.gt.s32.totalorder %v12162_v42, 0 }
 0x352   :  { %v3870_v7 = vand.u32 2139095040, %v12167_v10  ;;  %v3360_v12 = vsel %vm8455_vm1, 0, %v8454_v45  ;;  %v2723_v2 = vsel %vm2722_vm2, 1, %v17071_v56  ;;  %v2695_v52 = vshrl.u32 %v12160_v16, 16 }
 0x353   :  { %v3361_v31 = vsub.s32 32, %v3360_v12  ;;  %v3362_v58 = vshll.u32 %v3353_v30, %v3360_v12  ;;  %v3365_v17 = vsub.s32 4294967266, %v3360_v12  ;;  %v2671_v9 = vsel %vm2667_vm0, %v2651_v32, %v12107_v44 }
 0x354   :  { %v2673_v22 = vsel %vm2669_vm10, %v12109_v1, %v2672_v46  ;;  %v2715_v55 = vshrl.u32 %v12171_v5, 16  ;;  %v2725_v19 = vadd.s32 %v2723_v2, %v2721_v21  ;;  %v12199_v6 = vadd.s32 %v2704_v18, %v2695_v52 }
 0x355   :  { %v3363_v36 = vshrl.u32 %v3345_v27, %v3361_v31  ;;  %v3366_v29 = vadd.s32 127, %v3365_v17  ;;  %v17003_v30 = vand.u32 2147483647, %v11284_v49  ;;  %v3871_v35 = vshrl.u32 %v3870_v7, 23 }
 0x356   :  { %v12203_v16 = vmul.f32 %v11743_v39, %v392_v43  ;;  %v2717_v41 = vshrl.u32 %v2712_v60, 16  ;;  %v2726_v11 = vadd.s32 %v2725_v19, %v2715_v55  ;;  %v2674_v1 = vsel %vm2668_vm6, %v2671_v9, %v2673_v22 }
 0x357   :  { %v3364_v44 = vor.u32 %v3363_v36, %v3362_v58  ;;  %v3367_v23 = vshll.u32 %v3366_v29, 23  ;;  %v12207_v48 = vadd.s32 %v2720_v37, %v2716_v38  ;;  %v3412_v3 = vand.u32 8388607, %v17003_v30 }
 0x358   :  { %v2727_v5 = vadd.s32 %v2726_v11, %v2717_v41  ;;  %v3425_v45 = vshll.u32 %v17086_v47, %v11730_v50  ;;  %v3426_v39 = vshrl.u32 %v17087_v61, %v11866_v57  ;;  %v3725_v60 = vsel %vm3724_vm5, %v12162_v42, 0 }
 0x359   :  { %v3368_v26 = vor.u32 4788187, %v3367_v23  ;;  %v3371_v59 = vcvt.s32.f32 %v3364_v44  ;;  %vm2730_vm9 = vc.u32 %v12199_v6, %v12207_v48  ;;  %v8465_v8 = vadd.s32 4294967169, %v3871_v35 }
 0x35a   :  { %v4024_v38 = vand.u32 2139095040, %v12203_v16  ;;  %v2731_v37 = vadd.s32 1, %v2727_v5  ;;  %v3428_v32 = vshll.u32 %v17087_v61, %v11730_v50  ;;  %v3375_v27 = vsub.s32 4, %v12164_v0 }
 0x35b   :  { %v3369_v21 = vand.u32 2147483647, %v3368_v26  ;;  %v2728_v46 = vmul.u32 %v12148_v63, %v2674_v1  ;;  %v3429_v42 = vshrl.u32 %v17073_v14, %v11866_v57  ;;  %v3413_v7 = vor.u32 8388608, %v3412_v3 }
 0x35c   :  { %v2732_v18 = vsel %vm2730_vm9, %v2731_v37, %v2727_v5  ;;  %v12227_v12 = vor.u32 %v3426_v39, %v3425_v45  ;;  %vm3439_vm0 = vcmp.lt.s32.totalorder %v11726_v24, 3  ;;  %vm3437_vm10 = vcmp.lt.s32.totalorder %v11726_v24, 1 }
 0x35d   :  { %v3372_v2 = vmul.f32 %v3371_v59, %v3369_v21  ;;  %v2733_v43 = vadd.s32 %v2732_v18, %v2728_v46  ;;  %v12230_v31 = vor.u32 %v3429_v42, %v3428_v32  ;;  %v12235_v58 = vshrl.u32 %v17070_v53, %v12032_v34 }
 0x35e   :  { %vm3253_vm6 = vcmp.lt.s32.totalorder %v17256_v15, 0  ;;  %vm3438_vm7 = vcmp.lt.s32.totalorder %v11726_v24, 2  ;;  %v3451_v63 = vsel %vm3439_vm0, %v11944_v28, %v12008_v54  ;;  %v3877_v17 = vadd.s32 1, %v8465_v8 }
 0x35f   :  { %v17271_v52 = vand.u32 2147483647, %v17256_v15  ;;  %v3373_v22 = vxor.u32 2147483648, %v3372_v2  ;;  %v2734_v55 = vadd.s32 536870912, %v2733_v43  ;;  %v12249_v19 = vand.u32 31, %v3725_v60 }
 0x360   :  { %v4025_v36 = vshrl.u32 %v4024_v38, 23  ;;  %v3449_v29 = vsel %vm3437_vm10, %v12227_v12, %v12230_v31  ;;  %v12255_v35 = vshll.u32 %v3413_v7, 8  ;;  %v3376_v54 = vsel %vm3253_vm6, %v3375_v27, %v12164_v0 }
 0x361   :  { %vm12245_vm13 = vcmp.le.f32.partialorder %v17271_v52, 0.7853982  ;;  %v3374_v28 = vsel %vm3253_vm6, %v3373_v22, %v3372_v2  ;;  %v12258_v41 = vshrl.u32 %v2734_v55, 30  ;;  %v3452_v11 = vsel %vm3438_vm7, %v3449_v29, %v3451_v63 }
 0x362   :  { %v12264_v44 = vor.u32 %v12158_v51, %v12128_v62  ;;  %v12269_v23 = vsel %vm12245_vm13, %v17256_v15, %v3374_v28  ;;  %v3422_v1 = vshll.u32 %v17088_v33, %v11730_v50  ;;  %v3423_v0 = vshrl.u32 %v17086_v47, %v11866_v57 }
 0x363   :  { %vm3878_vm15 = vcmp.gt.s32.totalorder %v3877_v17, 0  ;;  %v3379_v3 = vmul.f32 %v12269_v23, %v12269_v23  ;;  %v2736_v62 = vshll.u32 %v12258_v41, 30  ;;  %v12280_v51 = vshrl.u32 %v3725_v60, 5  ;;  %v399_v60 = vpop.permute.xlu1 %398 }
 0x364   :  { %v3378_v45 = vsel %vm12245_vm13, 0, %v3376_v54  ;;  %v12285_v39 = vand.u32 65535, %v12255_v35  ;;  %v3457_v50 = vshrl.u32 %v3452_v11, 16  ;;  %v12288_v26 = vsub.s32 32, %v12249_v19  ;;  %v17275_v54 = vld [vmem:[#allocation65_spill] sm:$0xff] }
 0x365   :  { %v8468_v59 = vadd.s32 4294967169, %v4025_v36  ;;  %v3380_v8 = vmul.f32 -0.001358992, %v3379_v3  ;;  %v3387_v38 = vmul.f32 -0.00019511016, %v3379_v3  ;;  %v12292_v37 = vshll.u32 %v17073_v14, %v12249_v19 }
 0x366   :  { %v12294_v32 = vsel %vm3878_vm15, %v3877_v17, 0  ;;  %v12296_v21 = vsub.s32 %v2733_v43, %v2736_v62  ;;  %v12298_v27 = vor.u32 %v3423_v0, %v3422_v1  ;;  %v12300_v18 = vand.u32 3, %v3378_v45  ;;  %v8930_v43 = vld [vmem:[%s17040_s0] ss:$0 sm:$0xff] }
 0x367   :  { %v3381_v46 = vadd.f32 0.041655596, %v3380_v8  ;;  %v3388_v42 = vadd.f32 0.008332121, %v3387_v38  ;;  %v12303_v7 = vshrl.u32 %v12255_v35, 16  ;;  %v3456_v63 = vand.u32 65535, %v3452_v11 }
 0x368   :  { %vm2738_vm12 = vcmp.lt.s32.totalorder %v12296_v21, 0  ;;  %v2739_v2 = vsub.s32 0, %v12296_v21  ;;  %v12308_v17 = vmul.u32 %v3457_v50, %v12285_v39  ;;  %v12310_v52 = vadd.s32 1, %v8468_v59 }
 0x369   :  { %v12315_v9 = vmul.f32 %v8930_v43, %v399_v60  ;;  %v3382_v22 = vmul.f32 %v3381_v46, %v3379_v3  ;;  %v3389_v55 = vmul.f32 %v3388_v42, %v3379_v3  ;;  %v3445_v29 = vsel %vm3437_vm10, %v12298_v27, %v12227_v12 }
 0x36a   :  { %v2740_v36 = vsel %vm2738_vm12, %v2739_v2, %v12296_v21  ;;  %v3447_v28 = vsel %vm3439_vm0, %v12230_v31, %v12004_v13  ;;  %v17002_v11 = vand.u32 2147483647, %v17275_v54  ;;  %vm3396_vm14 = vcmp.lt.s32.totalorder %v12300_v18, 2 }
 0x36b   :  { %17274 = vst [vmem:[#allocation55_spill] sm:$0xff] %v12315_v9  ;;  %v3383_v1 = vadd.f32 -0.4999988, %v3382_v22  ;;  %v3390_v0 = vadd.f32 -0.16666654, %v3389_v55  ;;  %vm3397_vm8 = vcmp.eq.s32.totalorder %v12300_v18, 0  ;;  %v2729_v62 = vadd.s32 %v12207_v48, %v12199_v6 }
 0x36c   :  { %vm3394_vm11 = vweird.f32 %v17256_v15  ;;  %v2741_v45 = vclz %v2740_v36  ;;  %v3458_v59 = vmul.u32 %v3456_v63, %v12285_v39  ;;  %v12334_v8 = vmul.u32 %v3456_v63, %v12303_v7 }
 0x36d   :  { %v3462_v13 = vshll.u32 %v12308_v17, 16  ;;  %v3384_v38 = vmul.f32 %v3383_v1, %v3379_v3  ;;  %v3391_v60 = vmul.f32 %v3390_v0, %v3379_v3  ;;  %vm3400_vm2 = vcmp.eq.s32.totalorder %v12300_v18, 2 }
 0x36e   :  { %v3448_v46 = vsel %vm3438_vm7, %v3445_v29, %v3447_v28  ;;  %v8442_v42 = vadd.s32 4294967294, %v2741_v45  ;;  %v3461_v6 = vmul.u32 %v3457_v50, %v12303_v7  ;;  %v12343_v2 = vand.u32 8388607, %v17002_v11 }
 0x36f   :  { %v3478_v48 = vand.u32 65535, %v3448_v46  ;;  %v3385_v43 = vadd.f32 1.0, %v3384_v38  ;;  %v3392_v63 = vadd.f32 1.0, %v3391_v60  ;;  %v3421_v22 = vshrl.u32 %v17088_v33, %v11866_v57 }
 0x370   :  { %v3463_v3 = vshrl.u32 %v12308_v17, 16  ;;  %vm8443_vm1 = vcmp.lt.s32.totalorder %v8442_v42, 0  ;;  %v3442_v55 = vsel %vm3440_vm3, %v12230_v31, 2102212464  ;;  %v3464_v36 = vshll.u32 %v12334_v8, 16 }
 0x371   :  { %vm3466_vm5 = vc.u32 %v3458_v59, %v3462_v13  ;;  %v3393_v50 = vmul.f32 %v3392_v63, %v12269_v23  ;;  %v3401_v29 = vxor.u32 2147483648, %v3385_v43  ;;  %v2744_v28 = vsel %vm8443_vm1, 0, %v8442_v42 }
 0x372   :  { %v3467_v1 = vsel %vm3466_vm5, 1, %v17071_v56  ;;  %v2745_v0 = vsub.s32 32, %v2744_v28  ;;  %v2746_v45 = vshll.u32 %v12296_v21, %v2744_v28  ;;  %v2749_v57 = vsub.s32 4294967266, %v2744_v28 }
 0x373   :  { %v3468_v38 = vadd.s32 %v3462_v13, %v3458_v59  ;;  %v3398_v17 = vxor.u32 2147483648, %v3393_v50  ;;  %v3402_v60 = vsel %vm3400_vm2, %v3401_v29, %v3393_v50  ;;  %v3469_v11 = vadd.s32 %v3467_v1, %v3461_v6  ;;  %v17276_v29 = vld [vmem:[#allocation31_spill] sm:$0xff] }
 0x374   :  { %v3479_v31 = vshrl.u32 %v3448_v46, 16  ;;  %v2747_v30 = vshrl.u32 %v2729_v62, %v2745_v0  ;;  %v2750_v5 = vadd.s32 127, %v2749_v57  ;;  %v3480_v23 = vmul.u32 %v3478_v48, %v12285_v39 }
 0x375   :  { %vm3470_vm3 = vc.u32 %v3468_v38, %v3464_v36  ;;  %v3399_v42 = vsel %vm3397_vm8, %v3385_v43, %v3398_v17  ;;  %v3482_v59 = vmul.u32 %v3478_v48, %v12303_v7  ;;  %vm2637_vm9 = vcmp.lt.s32.totalorder %v17265_v4, 0 }
 0x376   :  { %v3471_v63 = vsel %vm3470_vm3, 1, %v17071_v56  ;;  %v3481_v21 = vmul.u32 %v3479_v31, %v12285_v39  ;;  %v3403_v13 = vsel %vm3396_vm14, %v3399_v42, %v3402_v60  ;;  %v2748_v50 = vor.u32 %v2747_v30, %v2746_v45  ;;  %v17280_v60 = vld [vmem:[#allocation23_spill] sm:$0xff] }
 0x377   :  { %v2751_v6 = vshll.u32 %v2750_v5, 23  ;;  %v3473_v46 = vadd.s32 %v3471_v63, %v3469_v11  ;;  %v3404_v62 = vsel %vm3394_vm11, nan, %v3403_v13  ;;  %v2759_v36 = vsub.s32 4, %v12258_v41 }
 0x378   :  { %v2797_v43 = vor.u32 8388608, %v12343_v2  ;;  %v2806_v39 = vshll.u32 %v17088_v33, %v17276_v29  ;;  %8513 = vmatmul.msk.f32.gmra.mxu2 %vm204_vm4, %v3404_v62  ;;  %v17277_v18 = vand.u32 2147483647, %v17265_v4  ;;  %v3441_v15 = vsel %vm3437_vm10, %v3421_v22, %v12298_v27  ;;  %v17281_v62 = vld [vmem:[#allocation22_spill] sm:$0xff] }
 0x379   :  { %v2752_v5 = vor.u32 4788187, %v2751_v6  ;;  %v3483_v11 = vmul.u32 %v3479_v31, %v12303_v7  ;;  %v3484_v48 = vshll.u32 %v3481_v21, 16  ;;  %v3443_v2 = vsel %vm3439_vm0, %v12227_v12, %v3442_v55 }
 0x37a   :  { %vm12375_vm6 = vcmp.le.f32.partialorder %v17277_v18, 0.7853982  ;;  %v3465_v28 = vshrl.u32 %v12334_v8, 16  ;;  %v3474_v1 = vadd.s32 %v3473_v46, %v3463_v3  ;;  %v3486_v0 = vshll.u32 %v3482_v59, 16 }
 0x37b   :  { %v2753_v45 = vand.u32 2147483647, %v2752_v5  ;;  %v2755_v57 = vcvt.s32.f32 %v2748_v50  ;;  %vm3488_vm13 = vc.u32 %v3480_v23, %v3484_v48  ;;  %v3490_v38 = vadd.s32 %v3484_v48, %v3480_v23 }
 0x37c   :  { %v3489_v17 = vsel %vm3488_vm13, 1, %v17071_v56  ;;  %v2807_v27 = vshrl.u32 %v17086_v47, %v17280_v60  ;;  %v2809_v7 = vshll.u32 %v17086_v47, %v17276_v29  ;;  %v2810_v22 = vshrl.u32 %v17087_v61, %v17280_v60 }
 0x37d   :  { %v2756_v12 = vmul.f32 %v2755_v57, %v2753_v45  ;;  %v3485_v55 = vshrl.u32 %v3481_v21, 16  ;;  %v3491_v8 = vadd.s32 %v3489_v17, %v3483_v11  ;;  %vm3492_vm0 = vc.u32 %v3490_v38, %v3486_v0 }
 0x37e   :  { %v12394_v3 = vadd.s32 %v3474_v1, %v3465_v28  ;;  %v3487_v31 = vshrl.u32 %v3482_v59, 16  ;;  %v3493_v23 = vsel %vm3492_vm0, 1, %v17071_v56  ;;  %v2812_v42 = vshll.u32 %v17087_v61, %v17276_v29 }
 0x37f   :  { %v2757_v63 = vxor.u32 2147483648, %v2756_v12  ;;  %v3495_v13 = vadd.s32 %v3493_v23, %v3491_v8  ;;  %v2808_v50 = vor.u32 %v2807_v27, %v2806_v39  ;;  %v12399_v6 = vor.u32 %v2810_v22, %v2809_v7 }
 0x380   :  { %v12401_v46 = vadd.s32 %v3490_v38, %v3486_v0  ;;  %v2813_v21 = vshrl.u32 %v17073_v14, %v17280_v60  ;;  %vm2821_vm10 = vcmp.lt.s32.totalorder %v17281_v62, 1  ;;  %vm2823_vm15 = vcmp.lt.s32.totalorder %v17281_v62, 3 }
 0x381   :  { %v2758_v59 = vsel %vm2637_vm9, %v2757_v63, %v2756_v12  ;;  %v2760_v29 = vsel %vm2637_vm9, %v2759_v36, %v12258_v41  ;;  %v3444_v39 = vsel %vm3438_vm7, %v3441_v15, %v3443_v2  ;;  %v3496_v18 = vadd.s32 %v3495_v13, %v3485_v55  ;;  %v17282_v41 = vld [vmem:[#allocation26_spill] sm:$0xff] }
 0x382   :  { %v12417_v5 = vsel %vm12375_vm6, %v17265_v4, %v2758_v59  ;;  %v12419_v11 = vor.u32 %v2813_v21, %v2812_v42  ;;  %vm2822_vm12 = vcmp.lt.s32.totalorder %v17281_v62, 2  ;;  %v12422_v48 = vshll.u32 %v2797_v43, 8  ;;  %v17283_v36 = vld [vmem:[#allocation18_spill] sm:$0xff]  ;;  %v17284_v43 = vld [vmem:[#allocation24_spill] sm:$0xff] }
 0x383   :  { %v2763_v28 = vmul.f32 %v12417_v5, %v12417_v5  ;;  %v3497_v1 = vadd.s32 %v3496_v18, %v3487_v31  ;;  %v2829_v24 = vsel %vm2821_vm10, %v2808_v50, %v12399_v6  ;;  %v2835_v15 = vsel %vm2823_vm15, %v17283_v36, %v17282_v41 }
 0x384   :  { %v3498_v2 = vmul.u32 %v12255_v35, %v3444_v39  ;;  %vm3500_vm7 = vc.u32 %v12394_v3, %v12401_v46  ;;  %v2831_v0 = vsel %vm2823_vm15, %v12419_v11, %v17284_v43  ;;  %v2833_v45 = vsel %vm2821_vm10, %v12399_v6, %v12419_v11 }
 0x385   :  { %v2762_v57 = vsel %vm12375_vm6, 0, %v2760_v29  ;;  %v2764_v38 = vmul.f32 -0.001358992, %v2763_v28  ;;  %v2771_v17 = vmul.f32 -0.00019511016, %v2763_v28  ;;  %v3501_v27 = vadd.s32 1, %v3497_v1 }
 0x386   :  { %v2832_v35 = vsel %vm2822_vm12, %v2829_v24, %v2831_v0  ;;  %v2836_v7 = vsel %vm2822_vm12, %v2833_v45, %v2835_v15  ;;  %v2838_v22 = vand.u32 65535, %v12422_v48  ;;  %v2839_v12 = vshrl.u32 %v12422_v48, 16 }
 0x387   :  { %v2765_v55 = vadd.f32 0.041655596, %v2764_v38  ;;  %v2772_v8 = vadd.f32 0.008332121, %v2771_v17  ;;  %v3502_v31 = vsel %vm3500_vm7, %v3501_v27, %v3497_v1  ;;  %v2840_v23 = vand.u32 65535, %v2836_v7 }
 0x388   :  { %v2779_v42 = vand.u32 3, %v2762_v57  ;;  %v3503_v30 = vadd.s32 %v3502_v31, %v3498_v2  ;;  %v2841_v63 = vshrl.u32 %v2836_v7, 16  ;;  %v2863_v13 = vshrl.u32 %v2832_v35, 16 }
 0x389   :  { %v2766_v21 = vmul.f32 %v2765_v55, %v2763_v28  ;;  %v2773_v59 = vmul.f32 %v2772_v8, %v2763_v28  ;;  %v2805_v29 = vshrl.u32 %v17088_v33, %v17280_v60  ;;  %v12454_v39 = vmul.u32 %v2840_v23, %v2839_v12 }
 0x38a   :  { %v3504_v18 = vadd.s32 536870912, %v3503_v30  ;;  %v2842_v24 = vmul.u32 %v2840_v23, %v2838_v22  ;;  %v2843_v41 = vmul.u32 %v2841_v63, %v2838_v22  ;;  %v2862_v36 = vand.u32 65535, %v2832_v35 }
 0x38b   :  { %v4178_v15 = vand.u32 2139095040, %v12315_v9  ;;  %v2767_v43 = vadd.f32 -0.4999988, %v2766_v21  ;;  %v2774_v1 = vadd.f32 -0.16666654, %v2773_v59  ;;  %v2845_v0 = vmul.u32 %v2841_v63, %v2839_v12 }
 0x38c   :  { %vm2781_vm14 = vcmp.eq.s32.totalorder %v2779_v42, 0  ;;  %v12457_v2 = vshrl.u32 %v3504_v18, 30  ;;  %v2846_v45 = vshll.u32 %v2843_v41, 16  ;;  %v2848_v57 = vshll.u32 %v12454_v39, 16 }
 0x38d   :  { %v2865_v38 = vmul.u32 %v2863_v13, %v2838_v22  ;;  %v2768_v17 = vmul.f32 %v2767_v43, %v2763_v28  ;;  %v2775_v60 = vmul.f32 %v2774_v1, %v2763_v28  ;;  %vm2780_vm8 = vcmp.lt.s32.totalorder %v2779_v42, 2 }
 0x38e   :  { %vm2784_vm11 = vcmp.eq.s32.totalorder %v2779_v42, 2  ;;  %v2825_v27 = vsel %vm2821_vm10, %v2805_v29, %v2808_v50  ;;  %vm2778_vm2 = vweird.f32 %v17265_v4  ;;  %v3506_v35 = vshll.u32 %v12457_v2, 30 }
 0x38f   :  { %vm2850_vm1 = vc.u32 %v2842_v24, %v2846_v45  ;;  %v2852_v7 = vadd.s32 %v2846_v45, %v2842_v24  ;;  %v2864_v55 = vmul.u32 %v2862_v36, %v2838_v22  ;;  %v2769_v8 = vadd.f32 1.0, %v2768_v17 }
 0x390   :  { %v2776_v31 = vadd.f32 1.0, %v2775_v60  ;;  %v2851_v23 = vsel %vm2850_vm1, 1, %v17071_v56  ;;  %v2866_v63 = vmul.u32 %v2862_v36, %v2839_v12  ;;  %v12465_v21 = vsub.s32 %v3503_v30, %v3506_v35 }
 0x391   :  { %v2853_v28 = vadd.s32 %v2851_v23, %v2845_v0  ;;  %vm2854_vm5 = vc.u32 %v2852_v7, %v2848_v57  ;;  %v2868_v59 = vshll.u32 %v2865_v38, 16  ;;  %v2785_v50 = vxor.u32 2147483648, %v2769_v8 }
 0x392   :  { %v2777_v18 = vmul.f32 %v2776_v31, %v12417_v5  ;;  %v2847_v29 = vshrl.u32 %v2843_v41, 16  ;;  %v2855_v43 = vsel %vm2854_vm5, 1, %v17071_v56  ;;  %vm3508_vm3 = vcmp.lt.s32.totalorder %v12465_v21, 0 }
 0x393   :  { %v3509_v22 = vsub.s32 0, %v12465_v21  ;;  %v2857_v24 = vadd.s32 %v2855_v43, %v2853_v28  ;;  %v2867_v1 = vmul.u32 %v2863_v13, %v2839_v12  ;;  %vm17285_vm9 = vcmp.lt.s32.totalorder %v17281_v62, 4 }
 0x394   :  { %v2782_v45 = vxor.u32 2147483648, %v2777_v18  ;;  %v2826_v30 = vsel %vm17285_vm9, %v12419_v11, 2102212464  ;;  %v2849_v36 = vshrl.u32 %v12454_v39, 16  ;;  %v2870_v0 = vshll.u32 %v2866_v63, 16 }
 0x395   :  { %v2786_v5 = vsel %vm2784_vm11, %v2785_v50, %v2777_v18  ;;  %v3510_v41 = vsel %vm3508_vm3, %v3509_v22, %v12465_v21  ;;  %vm2872_vm6 = vc.u32 %v2864_v55, %v2868_v59  ;;  %v2874_v57 = vadd.s32 %v2868_v59, %v2864_v55 }
 0x396   :  { %v2783_v17 = vsel %vm2781_vm14, %v2769_v8, %v2782_v45  ;;  %v3511_v60 = vclz %v3510_v41  ;;  %v2858_v35 = vadd.s32 %v2857_v24, %v2847_v29  ;;  %v2873_v12 = vsel %vm2872_vm6, 1, %v17071_v56 }
 0x397   :  { %vm3594_vm13 = vcmp.lt.s32.totalorder %v12019_v20, 4  ;;  %v2787_v13 = vsel %vm2780_vm8, %v2783_v17, %v2786_v5  ;;  %v2869_v11 = vshrl.u32 %v2865_v38, 16  ;;  %v2875_v7 = vadd.s32 %v2873_v12, %v2867_v1 }
 0x398   :  { %vm2876_vm0 = vc.u32 %v2874_v57, %v2870_v0  ;;  %v2788_v39 = vsel %vm2778_vm2, nan, %v2787_v13  ;;  %v8457_v31 = vadd.s32 4294967294, %v3511_v60  ;;  %v2827_v55 = vsel %vm2823_vm15, %v12399_v6, %v2826_v30 }
 0x399   :  { %v2877_v8 = vsel %vm2876_vm0, 1, %v17071_v56  ;;  %v12488_v23 = vand.u32 31, %v12294_v32  ;;  %vm4032_vm10 = vcmp.gt.s32.totalorder %v12310_v52, 0  ;;  %8509 = vmatmul.msk.f32.gmra.mxu0 %vm204_vm4, %v2788_v39  ;;  %v2871_v42 = vshrl.u32 %v2866_v63, 16 }
 0x39a   :  { %v2879_v38 = vadd.s32 %v2877_v8, %v2875_v7  ;;  %v3499_v4 = vadd.s32 %v12401_v46, %v12394_v3  ;;  %vm8458_vm7 = vcmp.lt.s32.totalorder %v8457_v31, 0  ;;  %v12494_v28 = vadd.s32 %v2858_v35, %v2849_v36 }
 0x39b   :  { %v12496_v59 = vadd.s32 %v2874_v57, %v2870_v0  ;;  %v4179_v6 = vshrl.u32 %v4178_v15, 23  ;;  %v3514_v18 = vsel %vm8458_vm7, 0, %v8457_v31  ;;  %v2828_v50 = vsel %vm2822_vm12, %v2825_v27, %v2827_v55 }
 0x39c   :  { %v2880_v29 = vadd.s32 %v2879_v38, %v2869_v11  ;;  %v4033_v43 = vsel %vm4032_vm10, %v12310_v52, 0  ;;  %v3515_v63 = vsub.s32 32, %v3514_v18  ;;  %v3516_v22 = vshll.u32 %v12465_v21, %v3514_v18 }
 0x39d   :  { %v3519_v24 = vsub.s32 4294967266, %v3514_v18  ;;  %v3740_v3 = vshrl.u32 %v17067_v40, %v12288_v26  ;;  %v3742_v46 = vshll.u32 %v17067_v40, %v12249_v19  ;;  %v12509_v1 = vsub.s32 32, %v12488_v23 }
 0x39e   :  { %v2881_v15 = vadd.s32 %v2880_v29, %v2871_v42  ;;  %v3517_v45 = vshrl.u32 %v3499_v4, %v3515_v63  ;;  %v2882_v27 = vmul.u32 %v12422_v48, %v2828_v50  ;;  %vm2884_vm15 = vc.u32 %v12494_v28, %v12496_v59 }
 0x39f   :  { %v3520_v62 = vadd.s32 127, %v3519_v24  ;;  %v3743_v52 = vshrl.u32 %v17070_v53, %v12288_v26  ;;  %v12516_v21 = vand.u32 31, %v4033_v43  ;;  %v8471_v30 = vadd.s32 4294967169, %v4179_v6 }
 0x3a0   :  { %v2885_v36 = vadd.s32 1, %v2881_v15  ;;  %v12519_v0 = vshrl.u32 %v12294_v32, 5  ;;  %v3893_v5 = vshll.u32 %v17073_v14, %v12488_v23  ;;  %v3518_v41 = vor.u32 %v3517_v45, %v3516_v22 }
 0x3a1   :  { %v3521_v57 = vshll.u32 %v3520_v62, 23  ;;  %v3894_v48 = vshrl.u32 %v17067_v40, %v12509_v1  ;;  %v3896_v17 = vshll.u32 %v17067_v40, %v12488_v23  ;;  %v3897_v60 = vshrl.u32 %v17070_v53, %v12509_v1 }
 0x3a2   :  { %v2886_v35 = vsel %vm2884_vm15, %v2885_v36, %v2881_v15  ;;  %v12532_v32 = vsel %vm3594_vm13, %v12264_v44, 920167782  ;;  %v3525_v13 = vcvt.s32.f32 %v3518_v41  ;;  %v17286_v7 = vor.u32 %v12235_v58, %v12152_v25 }
 0x3a3   :  { %v3522_v12 = vor.u32 4788187, %v3521_v57  ;;  %v2887_v11 = vadd.s32 %v2886_v35, %v2882_v27  ;;  %vm3748_vm12 = vcmp.lt.s32.totalorder %v12280_v51, 4  ;;  %v12543_v31 = vsub.s32 32, %v12516_v21 }
 0x3a4   :  { %v12539_v39 = vsel %vm3594_vm13, %v17286_v7, 1326507024  ;;  %v4185_v55 = vadd.s32 1, %v8471_v30  ;;  %v12546_v8 = vor.u32 %v3740_v3, %v12292_v37  ;;  %v3744_v42 = vor.u32 %v3743_v52, %v3742_v46  ;;  %v17293_v30 = vld [vmem:[#allocation38_spill] sm:$0xff]  ;;  %v12621_v7 = vld [vmem:[%s16838_s10] ss:$0 sm:$0xff] }
 0x3a5   :  { %17287 = vst [vmem:[#allocation53_spill] sm:$0xff] %v12543_v31  ;;  %v3523_v38 = vand.u32 2147483647, %v3522_v12  ;;  %v2888_v4 = vadd.s32 536870912, %v2887_v11  ;;  %v12548_v6 = vor.u32 %v3894_v48, %v3893_v5  ;;  %v3898_v18 = vor.u32 %v3897_v60, %v3896_v17 }
 0x3a6   :  { %vm3902_vm14 = vcmp.lt.s32.totalorder %v12519_v0, 4  ;;  %v3529_v25 = vsub.s32 4, %v12457_v2  ;;  %v4047_v58 = vshll.u32 %v17073_v14, %v12516_v21  ;;  %v12556_v50 = vshll.u32 %v17067_v40, %v12516_v21 }
 0x3a7   :  { %v3526_v29 = vmul.f32 %v3525_v13, %v3523_v38  ;;  %v12558_v37 = vshrl.u32 %v2888_v4, 30  ;;  %v4048_v63 = vshrl.u32 %v17067_v40, %v12543_v31  ;;  %v12564_v22 = vshrl.u32 %v17070_v53, %v12543_v31 }
 0x3a8   :  { %17288 = vst [vmem:[#allocation61_spill] sm:$0xff] %v12556_v50  ;;  %vm4186_vm8 = vcmp.gt.s32.totalorder %v4185_v55, 0  ;;  %vm3407_vm11 = vcmp.lt.s32.totalorder %v11284_v49, 0  ;;  %v12570_v24 = vsel %vm3748_vm12, %v12546_v8, 920167782  ;;  %v12598_v17 = vshrl.u32 %v4033_v43, 5 }
 0x3a9   :  { %17289 = vst [vmem:[#allocation58_spill] sm:$0xff] %v12564_v22  ;;  %v17290_v3 = vand.u32 2147483647, %v11284_v49  ;;  %v3527_v15 = vxor.u32 2147483648, %v3526_v29  ;;  %v2890_v45 = vshll.u32 %v12558_v37, 30  ;;  %v3530_v52 = vsel %vm3407_vm11, %v3529_v25, %v12457_v2  ;;  %v5532_v25 = vpop.f32.mrf.mxu0 }
 0x3aa   :  { %v12581_v62 = vsel %vm3748_vm12, %v3744_v42, 1326507024  ;;  %v12586_v27 = vsel %vm3902_vm14, %v12548_v6, 920167782  ;;  %v17004_v36 = vand.u32 2147483647, %v17293_v30  ;;  %v12600_v60 = vor.u32 %v4048_v63, %v4047_v58 }
 0x3ab   :  { %vm12574_vm2 = vcmp.le.f32.partialorder %v17290_v3, 0.7853982  ;;  %v12592_v5 = vsel %vm3902_vm14, %v3898_v18, 1326507024  ;;  %v12594_v41 = vsel %vm4186_vm8, %v4185_v55, 0  ;;  %v3528_v57 = vsel %vm3407_vm11, %v3527_v15, %v3526_v29  ;;  %v17295_v42 = vld [vmem:[#allocation50_spill] sm:$0xff] }
 0x3ac   :  { %v12596_v48 = vsub.s32 %v2887_v11, %v2890_v45  ;;  %17294 = vst [vmem:[#allocation60_spill] sm:$0xff] %v12600_v60  ;;  %v12607_v2 = vsel %vm12574_vm2, %v11284_v49, %v3528_v57  ;;  %v3532_v12 = vsel %vm12574_vm2, 0, %v3530_v52  ;;  %v12616_v11 = vand.u32 31, %v12594_v41 }
 0x3ad   :  { %v3533_v13 = vmul.f32 %v12607_v2, %v12607_v2  ;;  %vm2791_vm5 = vcmp.lt.s32.totalorder %v17275_v54, 0  ;;  %v3566_v55 = vand.u32 8388607, %v17004_v36  ;;  %v3579_v38 = vshll.u32 %v17086_v47, %v17295_v42 }
 0x3ae   :  { %vm2892_vm1 = vcmp.lt.s32.totalorder %v12596_v48, 0  ;;  %v2893_v43 = vsub.s32 0, %v12596_v48  ;;  %v3580_v29 = vshrl.u32 %v17087_v61, %v12032_v34  ;;  %v12631_v63 = vand.u32 3, %v3532_v12 }
 0x3af   :  { %v3534_v4 = vmul.f32 -0.001358992, %v3533_v13  ;;  %v3541_v18 = vmul.f32 -0.00019511016, %v3533_v13  ;;  %v3576_v46 = vshll.u32 %v17088_v33, %v17295_v42  ;;  %v3577_v15 = vshrl.u32 %v17086_v47, %v12032_v34 }
 0x3b0   :  { %v2894_v58 = vsel %vm2892_vm1, %v2893_v43, %v12596_v48  ;;  %v17296_v57 = vand.u32 2147483647, %v17275_v54  ;;  %v2883_v43 = vadd.s32 %v12496_v59, %v12494_v28  ;;  %v3582_v12 = vshll.u32 %v17087_v61, %v17295_v42 }
 0x3b1   :  { %v2895_v3 = vclz %v2894_v58  ;;  %v3535_v45 = vadd.f32 0.041655596, %v3534_v4  ;;  %v3542_v52 = vadd.f32 0.008332121, %v3541_v18  ;;  %v12648_v58 = vadd.f32 %v12621_v7, %v5532_v25 }
 0x3b2   :  { %vm12639_vm3 = vcmp.le.f32.partialorder %v17296_v57, 0.7853982  ;;  %v2913_v9 = vsub.s32 4, %v12558_v37  ;;  %v3583_v4 = vshrl.u32 %v17073_v14, %v12032_v34  ;;  %v3567_v50 = vor.u32 8388608, %v3566_v55 }
 0x3b3   :  { %17299 = vst [vmem:[#allocation56_spill] sm:$0xff] %v12648_v58  ;;  %v8445_v36 = vadd.s32 4294967294, %v2895_v3  ;;  %v3536_v18 = vmul.f32 %v3535_v45, %v3533_v13  ;;  %v3543_v57 = vmul.f32 %v3542_v52, %v3533_v13  ;;  %v3581_v22 = vor.u32 %v3580_v29, %v3579_v38 }
 0x3b4   :  { %v3578_v60 = vor.u32 %v3577_v15, %v3576_v46  ;;  %v3584_v31 = vor.u32 %v3583_v4, %v3582_v12  ;;  %vm3591_vm6 = vcmp.lt.s32.totalorder %v12019_v20, 1  ;;  %vm3593_vm0 = vcmp.lt.s32.totalorder %v12019_v20, 3 }
 0x3b5   :  { %vm8446_vm9 = vcmp.lt.s32.totalorder %v8445_v36, 0  ;;  %v3537_v28 = vadd.f32 -0.4999988, %v3536_v18  ;;  %v3544_v59 = vadd.f32 -0.16666654, %v3543_v57  ;;  %vm3551_vm10 = vcmp.eq.s32.totalorder %v12631_v63, 0 }
 0x3b6   :  { %v2898_v42 = vsel %vm8446_vm9, 0, %v8445_v36  ;;  %vm3554_vm7 = vcmp.eq.s32.totalorder %v12631_v63, 2  ;;  %v2914_v55 = vsel %vm2791_vm5, %v2913_v9, %v12558_v37  ;;  %vm3592_vm15 = vcmp.lt.s32.totalorder %v12019_v20, 2 }
 0x3b7   :  { %v2899_v25 = vsub.s32 32, %v2898_v42  ;;  %v2903_v3 = vsub.s32 4294967266, %v2898_v42  ;;  %v3538_v38 = vmul.f32 %v3537_v28, %v3533_v13  ;;  %v3545_v29 = vmul.f32 %v3544_v59, %v3533_v13 }
 0x3b8   :  { %vm3550_vm8 = vcmp.lt.s32.totalorder %v12631_v63, 2  ;;  %v2900_v36 = vshll.u32 %v12596_v48, %v2898_v42  ;;  %v3603_v46 = vsel %vm3591_vm6, %v3581_v22, %v3584_v31  ;;  %vm3548_vm11 = vweird.f32 %v11284_v49 }
 0x3b9   :  { %v2901_v15 = vshrl.u32 %v2883_v43, %v2899_v25  ;;  %v2904_v45 = vadd.s32 127, %v2903_v3  ;;  %v3605_v9 = vsel %vm3593_vm0, %v12264_v44, %v12539_v39  ;;  %v12670_v37 = vshll.u32 %v3567_v50, 8 }
 0x3ba   :  { %v3539_v52 = vadd.f32 1.0, %v3538_v38  ;;  %v3546_v13 = vadd.f32 1.0, %v3545_v29  ;;  %v3599_v12 = vsel %vm3591_vm6, %v3578_v60, %v3581_v22  ;;  %v3601_v48 = vsel %vm3593_vm0, %v3584_v31, %v12532_v32 }
 0x3bb   :  { %v2902_v4 = vor.u32 %v2901_v15, %v2900_v36  ;;  %v2905_v18 = vshll.u32 %v2904_v45, 23  ;;  %v2916_v43 = vsel %vm12639_vm3, 0, %v2914_v55  ;;  %v3606_v57 = vsel %vm3592_vm15, %v3603_v46, %v3605_v9 }
 0x3bc   :  { %v3547_v44 = vmul.f32 %v3546_v13, %v12607_v2  ;;  %v3555_v39 = vxor.u32 2147483648, %v3539_v52  ;;  %v5630_v50 = vsel %vm204_vm4, %v12648_v58, 0.0  ;;  %v3609_v28 = vshrl.u32 %v12670_v37, 16 }
 0x3bd   :  { %v2906_v59 = vor.u32 4788187, %v2905_v18  ;;  %5631 = vadd.xlane.f32.xlu2 %v5630_v50  ;;  %v3575_v32 = vshrl.u32 %v17088_v33, %v12032_v34  ;;  %v3602_v42 = vsel %vm3592_vm15, %v3599_v12, %v3601_v48  ;;  %v3608_v25 = vand.u32 65535, %v12670_v37 }
 0x3be   :  { %v3552_v3 = vxor.u32 2147483648, %v3547_v44  ;;  %v2909_v55 = vcvt.s32.f32 %v2902_v4  ;;  %v3596_v2 = vsel %vm3594_vm13, %v3584_v31, 2102212464  ;;  %v3610_v38 = vand.u32 65535, %v3606_v57 }
 0x3bf   :  { %v2907_v29 = vand.u32 2147483647, %v2906_v59  ;;  %v3595_v36 = vsel %vm3591_vm6, %v3575_v32, %v3578_v60  ;;  %v3597_v46 = vsel %vm3593_vm0, %v3581_v22, %v3596_v2  ;;  %v3611_v15 = vshrl.u32 %v3606_v57, 16 }
 0x3c0   :  { %v3553_v34 = vsel %vm3551_vm10, %v3539_v52, %v3552_v3  ;;  %v3556_v45 = vsel %vm3554_vm7, %v3555_v39, %v3547_v44  ;;  %v3614_v9 = vmul.u32 %v3610_v38, %v3609_v28  ;;  %v3632_v13 = vand.u32 65535, %v3602_v42 }
 0x3c1   :  { %v3557_v31 = vsel %vm3550_vm8, %v3553_v34, %v3556_v45  ;;  %v2910_v12 = vmul.f32 %v2909_v55, %v2907_v29  ;;  %v3612_v48 = vmul.u32 %v3610_v38, %v3608_v25  ;;  %v3613_v4 = vmul.u32 %v3611_v15, %v3608_v25  ;;  %v17300_v38 = vld [vmem:[#allocation35_spill] sm:$0xff] }
 0x3c2   :  { %v3558_v60 = vsel %vm3548_vm11, nan, %v3557_v31  ;;  %v12704_v18 = vand.u32 3, %v2916_v43  ;;  %v12708_v22 = vsel %vm3592_vm15, %v3595_v36, %v3597_v46  ;;  %v3633_v52 = vshrl.u32 %v3602_v42, 16 }
 0x3c3   :  { %8514 = vmatmul.msk.f32.gmra.mxu2 %vm204_vm4, %v3558_v60  ;;  %v2911_v57 = vxor.u32 2147483648, %v2910_v12  ;;  %v3615_v44 = vmul.u32 %v3611_v15, %v3609_v28  ;;  %v3616_v39 = vshll.u32 %v3613_v4, 16  ;;  %v3618_v63 = vshll.u32 %v3614_v9, 16 }
 0x3c4   :  { %v3617_v50 = vshrl.u32 %v3613_v4, 16  ;;  %v3634_v59 = vmul.u32 %v3632_v13, %v3608_v25  ;;  %v3635_v32 = vmul.u32 %v3633_v52, %v3608_v25  ;;  %v3636_v3 = vmul.u32 %v3632_v13, %v3609_v28 }
 0x3c5   :  { %v2912_v49 = vsel %vm2791_vm5, %v2911_v57, %v2910_v12  ;;  %vm3620_vm13 = vc.u32 %v3612_v48, %v3616_v39  ;;  %v3622_v43 = vadd.s32 %v3616_v39, %v3612_v48  ;;  %v3637_v55 = vmul.u32 %v3633_v52, %v3609_v28 }
 0x3c6   :  { %v2915_v20 = vsel %vm12639_vm3, %v17275_v54, %v2912_v49  ;;  %v3621_v42 = vsel %vm3620_vm13, 1, %v17071_v56  ;;  %v3638_v2 = vshll.u32 %v3635_v32, 16  ;;  %v17013_v29 = vand.u32 2147483647, %v17300_v38 }
 0x3c7   :  { %v2917_v36 = vmul.f32 %v2915_v20, %v2915_v20  ;;  %v3623_v46 = vadd.s32 %v3621_v42, %v3615_v44  ;;  %vm3624_vm2 = vc.u32 %v3622_v43, %v3618_v63  ;;  %v3640_v25 = vshll.u32 %v3636_v3, 16 }
 0x3c8   :  { %v3619_v15 = vshrl.u32 %v3614_v9, 16  ;;  %v3625_v34 = vsel %vm3624_vm2, 1, %v17071_v56  ;;  %vm3642_vm1 = vc.u32 %v3634_v59, %v3638_v2  ;;  %v3644_v45 = vadd.s32 %v3638_v2, %v3634_v59 }
 0x3c9   :  { %v2918_v13 = vmul.f32 -0.001358992, %v2917_v36  ;;  %v2925_v28 = vmul.f32 -0.00019511016, %v2917_v36  ;;  %v3627_v31 = vadd.s32 %v3625_v34, %v3623_v46  ;;  %v3643_v35 = vsel %vm3642_vm1, 1, %v17071_v56 }
 0x3ca   :  { %v3639_v12 = vshrl.u32 %v3635_v32, 16  ;;  %v3645_v48 = vadd.s32 %v3643_v35, %v3637_v55  ;;  %vm3646_vm5 = vc.u32 %v3644_v45, %v3640_v25  ;;  %v3720_v4 = vand.u32 8388607, %v17013_v29 }
 0x3cb   :  { %v2919_v60 = vadd.f32 0.041655596, %v2918_v13  ;;  %v2926_v52 = vadd.f32 0.008332121, %v2925_v28  ;;  %v3628_v57 = vadd.s32 %v3627_v31, %v3617_v50  ;;  %v3647_v9 = vsel %vm3646_vm5, 1, %v17071_v56 }
 0x3cc   :  { %v3641_v44 = vshrl.u32 %v3636_v3, 16  ;;  %v12723_v39 = vadd.s32 %v3644_v45, %v3640_v25  ;;  %v3649_v63 = vadd.s32 %v3647_v9, %v3645_v48  ;;  %v3730_v59 = vshll.u32 %v17088_v33, %v12249_v19 }
 0x3cd   :  { %v2920_v49 = vmul.f32 %v2919_v60, %v2917_v36  ;;  %v2927_v43 = vmul.f32 %v2926_v52, %v2917_v36  ;;  %v12727_v32 = vadd.s32 %v3628_v57, %v3619_v15  ;;  %v3731_v55 = vshrl.u32 %v17086_v47, %v12288_v26 }
 0x3ce   :  { %v3650_v42 = vadd.s32 %v3649_v63, %v3639_v12  ;;  %v3733_v50 = vshll.u32 %v17086_v47, %v12249_v19  ;;  %v3734_v3 = vshrl.u32 %v17087_v61, %v12288_v26  ;;  %v3736_v2 = vshll.u32 %v17087_v61, %v12249_v19 }
 0x3cf   :  { %v2921_v46 = vadd.f32 -0.4999988, %v2920_v49  ;;  %v2928_v25 = vadd.f32 -0.16666654, %v2927_v43  ;;  %v3652_v34 = vmul.u32 %v12670_v37, %v12708_v22  ;;  %v3721_v15 = vor.u32 8388608, %v3720_v4 }
 0x3d0   :  { %v3651_v45 = vadd.s32 %v3650_v42, %v3641_v44  ;;  %v12739_v13 = vor.u32 %v3731_v55, %v3730_v59  ;;  %v12741_v28 = vor.u32 %v3734_v3, %v3733_v50  ;;  %v3737_v31 = vshrl.u32 %v17073_v14, %v12288_v26 }
 0x3d1   :  { %v2922_v35 = vmul.f32 %v2921_v46, %v2917_v36  ;;  %v2929_v12 = vmul.f32 %v2928_v25, %v2917_v36  ;;  %vm3654_vm3 = vc.u32 %v12727_v32, %v12723_v39  ;;  %vm3745_vm9 = vcmp.lt.s32.totalorder %v12280_v51, 1 }
 0x3d2   :  { %v3655_v19 = vadd.s32 1, %v3651_v45  ;;  %v3738_v48 = vor.u32 %v3737_v31, %v3736_v2  ;;  %vm3746_vm6 = vcmp.lt.s32.totalorder %v12280_v51, 2  ;;  %vm3747_vm0 = vcmp.lt.s32.totalorder %v12280_v51, 3  ;;  %v12834_v51 = vld [vmem:[%s17040_s0] ss:$0 sm:$0xff] }
 0x3d3   :  { %v2923_v37 = vadd.f32 1.0, %v2922_v35  ;;  %v2930_v22 = vadd.f32 1.0, %v2929_v12  ;;  %v3753_v4 = vsel %vm3745_vm9, %v12739_v13, %v12741_v28  ;;  %v3759_v36 = vsel %vm3747_vm0, %v12546_v8, %v12581_v62 }
 0x3d4   :  { %vm2932_vm10 = vweird.f32 %v17275_v54  ;;  %v3656_v60 = vsel %vm3654_vm3, %v3655_v19, %v3651_v45  ;;  %v3755_v52 = vsel %vm3747_vm0, %v3738_v48, %v12570_v24  ;;  %v3757_v57 = vsel %vm3745_vm9, %v12741_v28, %v3738_v48 }
 0x3d5   :  { %v2931_v9 = vmul.f32 %v2930_v22, %v2915_v20  ;;  %vm2934_vm7 = vcmp.lt.s32.totalorder %v12704_v18, 2  ;;  %v2939_v44 = vxor.u32 2147483648, %v2923_v37  ;;  %v3657_v63 = vadd.s32 %v3656_v60, %v3652_v34 }
 0x3d6   :  { %vm2935_vm15 = vcmp.eq.s32.totalorder %v12704_v18, 0  ;;  %v3756_v8 = vsel %vm3746_vm6, %v3753_v4, %v3755_v52  ;;  %v3760_v62 = vsel %vm3746_vm6, %v3757_v57, %v3759_v36  ;;  %v12771_v59 = vshll.u32 %v3721_v15, 8 }
 0x3d7   :  { %v2936_v24 = vxor.u32 2147483648, %v2931_v9  ;;  %vm2938_vm8 = vcmp.eq.s32.totalorder %v12704_v18, 2  ;;  %v3658_v49 = vadd.s32 536870912, %v3657_v63  ;;  %v3764_v43 = vand.u32 65535, %v3760_v62 }
 0x3d8   :  { %v2940_v20 = vsel %vm2938_vm8, %v2939_v44, %v2931_v9  ;;  %v3762_v55 = vand.u32 65535, %v12771_v59  ;;  %v3763_v42 = vshrl.u32 %v12771_v59, 16  ;;  %v3765_v50 = vshrl.u32 %v3760_v62, 16 }
 0x3d9   :  { %v2937_v3 = vsel %vm2935_vm15, %v2923_v37, %v2936_v24  ;;  %v12776_v2 = vshrl.u32 %v3658_v49, 30  ;;  %v3786_v46 = vand.u32 65535, %v3756_v8  ;;  %v3787_v25 = vshrl.u32 %v3756_v8, 16 }
 0x3da   :  { %v2941_v34 = vsel %vm2934_vm7, %v2937_v3, %v2940_v20  ;;  %v3766_v15 = vmul.u32 %v3764_v43, %v3762_v55  ;;  %v3767_v45 = vmul.u32 %v3765_v50, %v3762_v55  ;;  %v3768_v31 = vmul.u32 %v3764_v43, %v3763_v42 }
 0x3db   :  { %v12781_v35 = vshrl.u32 %v12594_v41, 5  ;;  %v12784_v12 = vsub.s32 32, %v12616_v11  ;;  %v2942_v19 = vsel %vm2932_vm10, nan, %v2941_v34  ;;  %v3660_v37 = vshll.u32 %v12776_v2, 30 }
 0x3dc   :  { %v12791_v22 = vshll.u32 %v17073_v14, %v12616_v11  ;;  %8510 = vmatmul.msk.f32.gmra.mxu0 %vm204_vm4, %v2942_v19  ;;  %v3769_v18 = vmul.u32 %v3765_v50, %v3763_v42  ;;  %v3770_v4 = vshll.u32 %v3767_v45, 16  ;;  %v3772_v36 = vshll.u32 %v3768_v31, 16 }
 0x3dd   :  { %v12794_v60 = vsub.s32 %v3657_v63, %v3660_v37  ;;  %v3729_v41 = vshrl.u32 %v17088_v33, %v12288_v26  ;;  %v3750_v54 = vsel %vm3748_vm12, %v3738_v48, 2102212464  ;;  %v3789_v52 = vmul.u32 %v3787_v25, %v3762_v55 }
 0x3de   :  { %vm3774_vm11 = vc.u32 %v3766_v15, %v3770_v4  ;;  %v3776_v57 = vadd.s32 %v3770_v4, %v3766_v15  ;;  %v3788_v9 = vmul.u32 %v3786_v46, %v3762_v55  ;;  %v3790_v44 = vmul.u32 %v3786_v46, %v3763_v42 }
 0x3df   :  { %vm3662_vm13 = vcmp.lt.s32.totalorder %v12794_v60, 0  ;;  %v3663_v8 = vsub.s32 0, %v12794_v60  ;;  %v3771_v62 = vshrl.u32 %v3767_v45, 16  ;;  %v3775_v24 = vsel %vm3774_vm11, 1, %v17071_v56 }
 0x3e0   :  { %v3777_v63 = vadd.s32 %v3775_v24, %v3769_v18  ;;  %vm3778_vm2 = vc.u32 %v3776_v57, %v3772_v36  ;;  %v3791_v49 = vmul.u32 %v3787_v25, %v3763_v42  ;;  %v3792_v43 = vshll.u32 %v3789_v52, 16 }
 0x3e1   :  { %v12805_v26 = vshll.u32 %v17067_v40, %v12616_v11  ;;  %v3664_v48 = vsel %vm3662_vm13, %v3663_v8, %v12794_v60  ;;  %v3779_v20 = vsel %vm3778_vm2, 1, %v17071_v56  ;;  %v3794_v55 = vshll.u32 %v3790_v44, 16 }
 0x3e2   :  { %v3665_v50 = vclz %v3664_v48  ;;  %v3781_v3 = vadd.s32 %v3779_v20, %v3777_v63  ;;  %vm3796_vm12 = vc.u32 %v3788_v9, %v3792_v43  ;;  %v3798_v46 = vadd.s32 %v3792_v43, %v3788_v9 }
 0x3e3   :  { %v3749_v34 = vsel %vm3745_vm9, %v3729_v41, %v12739_v13  ;;  %v3751_v42 = vsel %vm3747_vm0, %v12741_v28, %v3750_v54  ;;  %v3773_v25 = vshrl.u32 %v3768_v31, 16  ;;  %v3797_v15 = vsel %vm3796_vm12, 1, %v17071_v56  ;;  %v405_v13 = vpop.permute.xlu2 %404 }
 0x3e4   :  { %v8460_v45 = vadd.s32 4294967294, %v3665_v50  ;;  %v3782_v19 = vadd.s32 %v3781_v3, %v3771_v62  ;;  %v3799_v37 = vadd.s32 %v3797_v15, %v3791_v49  ;;  %vm3800_vm1 = vc.u32 %v3798_v46, %v3794_v55 }
 0x3e5   :  { %v3653_v18 = vadd.s32 %v12723_v39, %v12727_v32  ;;  %v3793_v4 = vshrl.u32 %v3789_v52, 16  ;;  %v3801_v36 = vsel %vm3800_vm1, 1, %v17071_v56  ;;  %v17012_v57 = vand.u32 2147483647, %v12167_v10 }
 0x3e6   :  { %vm8461_vm5 = vcmp.lt.s32.totalorder %v8460_v45, 0  ;;  %v3752_v28 = vsel %vm3746_vm6, %v3749_v34, %v3751_v42  ;;  %v3884_v31 = vshll.u32 %v17088_v33, %v12488_v23  ;;  %v3885_v41 = vshrl.u32 %v17086_v47, %v12509_v1 }
 0x3e7   :  { %v3668_v54 = vsel %vm8461_vm5, 0, %v8460_v45  ;;  %v3795_v9 = vshrl.u32 %v3790_v44, 16  ;;  %v12826_v8 = vadd.s32 %v3798_v46, %v3794_v55  ;;  %v3803_v39 = vadd.s32 %v3801_v36, %v3799_v37 }
 0x3e8   :  { %v3669_v32 = vsub.s32 32, %v3668_v54  ;;  %v3670_v52 = vshll.u32 %v12794_v60, %v3668_v54  ;;  %v3673_v62 = vsub.s32 4294967266, %v3668_v54  ;;  %v12829_v24 = vadd.s32 %v3782_v19, %v3773_v25 }
 0x3e9   :  { %v12837_v63 = vmul.f32 %v12834_v51, %v405_v13  ;;  %v3804_v49 = vadd.s32 %v3803_v39, %v3793_v4  ;;  %v3806_v44 = vmul.u32 %v12771_v59, %v3752_v28  ;;  %v3874_v43 = vand.u32 8388607, %v17012_v57 }
 0x3ea   :  { %v3671_v48 = vshrl.u32 %v3653_v18, %v3669_v32  ;;  %v3674_v20 = vadd.s32 127, %v3673_v62  ;;  %v12842_v60 = vor.u32 %v3885_v41, %v3884_v31  ;;  %v3887_v55 = vshll.u32 %v17086_v47, %v12488_v23 }
 0x3eb   :  { %v3805_v50 = vadd.s32 %v3804_v49, %v3795_v9  ;;  %v3888_v3 = vshrl.u32 %v17087_v61, %v12509_v1  ;;  %v3890_v46 = vshll.u32 %v17087_v61, %v12488_v23  ;;  %v3891_v59 = vshrl.u32 %v17073_v14, %v12509_v1 }
 0x3ec   :  { %v3672_v34 = vor.u32 %v3671_v48, %v3670_v52  ;;  %v3675_v42 = vshll.u32 %v3674_v20, 23  ;;  %vm3808_vm3 = vc.u32 %v12829_v24, %v12826_v8  ;;  %vm3899_vm9 = vcmp.lt.s32.totalorder %v12519_v0, 1 }
 0x3ed   :  { %v4332_v25 = vand.u32 2139095040, %v12837_v63  ;;  %v3809_v15 = vadd.s32 1, %v3805_v50  ;;  %v3875_v45 = vor.u32 8388608, %v3874_v43  ;;  %v12856_v19 = vor.u32 %v3888_v3, %v3887_v55 }
 0x3ee   :  { %v3676_v37 = vor.u32 4788187, %v3675_v42  ;;  %v3679_v18 = vcvt.s32.f32 %v3672_v34  ;;  %v12858_v4 = vor.u32 %v3891_v59, %v3890_v46  ;;  %vm3901_vm6 = vcmp.lt.s32.totalorder %v12519_v0, 3 }
 0x3ef   :  { %v3810_v23 = vsel %vm3808_vm3, %v3809_v15, %v3805_v50  ;;  %vm3900_vm0 = vcmp.lt.s32.totalorder %v12519_v0, 2  ;;  %v3907_v36 = vsel %vm3899_vm9, %v12842_v60, %v12856_v19  ;;  %v3913_v13 = vsel %vm3901_vm6, %v12548_v6, %v12592_v5 }
 0x3f0   :  { %v3677_v28 = vand.u32 2147483647, %v3676_v37  ;;  %v3683_v31 = vsub.s32 4, %v12776_v2  ;;  %v3811_v41 = vadd.s32 %v3810_v23, %v3806_v44  ;;  %v3909_v54 = vsel %vm3901_vm6, %v12858_v4, %v12586_v27 }
 0x3f1   :  { %v4333_v9 = vshrl.u32 %v4332_v25, 23  ;;  %vm3561_vm10 = vcmp.lt.s32.totalorder %v17293_v30, 0  ;;  %v3911_v39 = vsel %vm3899_vm9, %v12856_v19, %v12858_v4  ;;  %v12880_v32 = vshll.u32 %v3875_v45, 8 }
 0x3f2   :  { %v3680_v6 = vmul.f32 %v3679_v18, %v3677_v28  ;;  %v3812_v5 = vadd.s32 536870912, %v3811_v41  ;;  %v12884_v52 = vsel %vm3900_vm0, %v3907_v36, %v3909_v54  ;;  %v3914_v62 = vsel %vm3900_vm0, %v3911_v39, %v3913_v13 }
 0x3f3   :  { %v3916_v27 = vand.u32 65535, %v12880_v32  ;;  %v3917_v49 = vshrl.u32 %v12880_v32, 16  ;;  %v3918_v44 = vand.u32 65535, %v3914_v62  ;;  %v3919_v43 = vshrl.u32 %v3914_v62, 16 }
 0x3f4   :  { %v17301_v48 = vand.u32 2147483647, %v17293_v30  ;;  %v3681_v55 = vxor.u32 2147483648, %v3680_v6  ;;  %v3684_v50 = vsel %vm3561_vm10, %v3683_v31, %v12776_v2  ;;  %v12899_v3 = vshrl.u32 %v3812_v5, 30 }
 0x3f5   :  { %v3920_v46 = vmul.u32 %v3918_v44, %v3916_v27  ;;  %v12901_v59 = vmul.u32 %v3919_v43, %v3916_v27  ;;  %v12903_v34 = vmul.u32 %v3918_v44, %v3917_v49  ;;  %v3941_v42 = vshrl.u32 %v12884_v52, 16 }
 0x3f6   :  { %vm12892_vm7 = vcmp.le.f32.partialorder %v17301_v48, 0.7853982  ;;  %v4202_v25 = vshrl.u32 %v17067_v40, %v12784_v12  ;;  %v12910_v15 = vshrl.u32 %v17070_v53, %v12784_v12  ;;  %v3682_v45 = vsel %vm3561_vm10, %v3681_v55, %v3680_v6 }
 0x3f7   :  { %v3814_v2 = vshll.u32 %v12899_v3, 30  ;;  %v8474_v37 = vadd.s32 4294967169, %v4333_v9  ;;  %v12918_v18 = vsel %vm12892_vm7, %v17293_v30, %v3682_v45  ;;  %v3924_v23 = vshll.u32 %v12901_v59, 16 }
 0x3f8   :  { %v3926_v36 = vshll.u32 %v12903_v34, 16  ;;  %v3686_v13 = vsel %vm12892_vm7, 0, %v3684_v50  ;;  %v3687_v28 = vmul.f32 %v12918_v18, %v12918_v18  ;;  %v3940_v54 = vand.u32 65535, %v12884_v52 }
 0x3f9   :  { %v12926_v31 = vsub.s32 %v3811_v41, %v3814_v2  ;;  %v3923_v9 = vmul.u32 %v3919_v43, %v3917_v49  ;;  %vm3928_vm15 = vc.u32 %v3920_v46, %v3924_v23  ;;  %v3930_v39 = vadd.s32 %v3924_v23, %v3920_v46 }
 0x3fa   :  { %v12929_v6 = vmul.u32 %v3941_v42, %v3916_v27  ;;  %v3688_v5 = vmul.f32 -0.001358992, %v3687_v28  ;;  %v3695_v62 = vmul.f32 -0.00019511016, %v3687_v28  ;;  %v12934_v48 = vor.u32 %v4202_v25, %v12791_v22 }
 0x3fb   :  { %vm3816_vm8 = vcmp.lt.s32.totalorder %v12926_v31, 0  ;;  %v3817_v44 = vsub.s32 0, %v12926_v31  ;;  %v12936_v20 = vand.u32 3, %v3686_v13  ;;  %v3929_v41 = vsel %vm3928_vm15, 1, %v17071_v56 }
 0x3fc   :  { %vm3932_vm11 = vc.u32 %v3930_v39, %v3926_v36  ;;  %v3689_v52 = vadd.f32 0.041655596, %v3688_v5  ;;  %v3696_v43 = vadd.f32 0.008332121, %v3695_v62  ;;  %v3942_v50 = vmul.u32 %v3940_v54, %v3916_v27 }
 0x3fd   :  { %v3818_v55 = vsel %vm3816_vm8, %v3817_v44, %v12926_v31  ;;  %v12940_v46 = vadd.s32 1, %v8474_v37  ;;  %v3931_v2 = vadd.s32 %v3929_v41, %v3923_v9  ;;  %v3946_v23 = vshll.u32 %v12929_v6, 16 }
 0x3fe   :  { %v3819_v45 = vclz %v3818_v55  ;;  %v3690_v57 = vmul.f32 %v3689_v52, %v3687_v28  ;;  %v3697_v29 = vmul.f32 %v3696_v43, %v3687_v28  ;;  %v3933_v22 = vsel %vm3932_vm11, 1, %v17071_v56 }
 0x3ff   :  { %v12944_v25 = vmul.u32 %v3940_v54, %v3917_v49  ;;  %vm3705_vm13 = vcmp.eq.s32.totalorder %v12936_v20, 0  ;;  %v3807_v36 = vadd.s32 %v12826_v8, %v12829_v24  ;;  %v3883_v27 = vshrl.u32 %v17088_v33, %v12509_v1 }
 0x400   :  { %v8463_v13 = vadd.s32 4294967294, %v3819_v45  ;;  %v3691_v37 = vadd.f32 -0.4999988, %v3690_v57  ;;  %v3698_v39 = vadd.f32 -0.16666654, %v3697_v29  ;;  %vm3704_vm2 = vcmp.lt.s32.totalorder %v12936_v20, 2 }
 0x401   :  { %vm3708_vm12 = vcmp.eq.s32.totalorder %v12936_v20, 2  ;;  %vm3950_vm1 = vc.u32 %v3942_v50, %v3946_v23  ;;  %vm4340_vm5 = vcmp.gt.s32.totalorder %v12940_v46, 0  ;;  %vm3702_vm3 = vweird.f32 %v17293_v30 }
 0x402   :  { %vm8464_vm10 = vcmp.lt.s32.totalorder %v8463_v13, 0  ;;  %v3925_v54 = vshrl.u32 %v12901_v59, 16  ;;  %v3935_v9 = vadd.s32 %v3933_v22, %v3931_v2  ;;  %v3945_v8 = vmul.u32 %v3941_v42, %v3917_v49 }
 0x403   :  { %v3692_v24 = vmul.f32 %v3691_v37, %v3687_v28  ;;  %v3699_v5 = vmul.f32 %v3698_v39, %v3687_v28  ;;  %v3822_v62 = vsel %vm8464_vm10, 0, %v8463_v13  ;;  %v3948_v1 = vshll.u32 %v12944_v25, 16 }
 0x404   :  { %v3823_v29 = vsub.s32 32, %v3822_v62  ;;  %v3824_v57 = vshll.u32 %v12926_v31, %v3822_v62  ;;  %v3827_v44 = vsub.s32 4294967266, %v3822_v62  ;;  %v3951_v41 = vsel %vm3950_vm1, 1, %v17071_v56 }
 0x405   :  { %v3693_v52 = vadd.f32 1.0, %v3692_v24  ;;  %v3700_v43 = vadd.f32 1.0, %v3699_v5  ;;  %v3903_v55 = vsel %vm3899_vm9, %v3883_v27, %v12842_v60  ;;  %v3904_v49 = vsel %vm3902_vm14, %v12858_v4, 2102212464 }
 0x406   :  { %v3825_v59 = vshrl.u32 %v3807_v36, %v3823_v29  ;;  %v3828_v42 = vadd.s32 127, %v3827_v44  ;;  %v3927_v28 = vshrl.u32 %v12903_v34, 16  ;;  %v3952_v45 = vadd.s32 %v3946_v23, %v3942_v50  ;;  %v5535_v50 = vpop.f32.mrf.mxu0 }
 0x407   :  { %vm4056_vm7 = vcmp.lt.s32.totalorder %v12598_v17, 4  ;;  %v3701_v31 = vmul.f32 %v3700_v43, %v12918_v18  ;;  %v3709_v2 = vxor.u32 2147483648, %v3693_v52  ;;  %v3936_v22 = vadd.s32 %v3935_v9, %v3925_v54 }
 0x408   :  { %v3953_v13 = vadd.s32 %v3951_v41, %v3945_v8  ;;  %vm4210_vm15 = vcmp.lt.s32.totalorder %v12781_v35, 4  ;;  %v3826_v37 = vor.u32 %v3825_v59, %v3824_v57  ;;  %v3829_v60 = vshll.u32 %v3828_v42, 23 }
 0x409   :  { %v3905_v4 = vsel %vm3901_vm6, %v12856_v19, %v3904_v49  ;;  %vm3954_vm14 = vc.u32 %v3952_v45, %v3948_v1  ;;  %v3706_v36 = vxor.u32 2147483648, %v3701_v31  ;;  %v3710_v34 = vsel %vm3708_vm12, %v3709_v2, %v3701_v31  ;;  %v17308_v49 = vld [vmem:[#allocation53_spill] sm:$0xff]  ;;  %v17309_v2 = vld [vmem:[#allocation60_spill] sm:$0xff] }
 0x40a   :  { %v3947_v23 = vshrl.u32 %v12929_v6, 16  ;;  %v3955_v18 = vsel %vm3954_vm14, 1, %v17071_v56  ;;  %v3830_v27 = vor.u32 4788187, %v3829_v60  ;;  %v3833_v39 = vcvt.s32.f32 %v3826_v37  ;;  %v17311_v37 = vld [vmem:[#allocation61_spill] sm:$0xff] }
 0x40b   :  { %v12977_v54 = vadd.f32 %v12621_v7, %v5535_v50  ;;  %v3949_v9 = vshrl.u32 %v12944_v25, 16  ;;  %v3707_v19 = vsel %vm3705_vm13, %v3693_v52, %v3706_v36  ;;  %v12982_v8 = vadd.s32 %v3936_v22, %v3927_v28 }
 0x40c   :  { %v12984_v24 = vadd.s32 %v3952_v45, %v3948_v1  ;;  %v3957_v5 = vadd.s32 %v3955_v18, %v3953_v13  ;;  %v3711_v6 = vsel %vm3704_vm2, %v3707_v19, %v3710_v34  ;;  %v3831_v62 = vand.u32 2147483647, %v3830_v27  ;;  %v17310_v13 = vld [vmem:[#allocation58_spill] sm:$0xff] }
 0x40d   :  { %17304 = vst [vmem:[#allocation74_spill] sm:$0xff] %v12977_v54  ;;  %v5633_v29 = vsel %vm204_vm4, %v12977_v54, 0.0  ;;  %v3906_v7 = vsel %vm3900_vm0, %v3903_v55, %v3905_v4  ;;  %v4341_v25 = vsel %vm4340_vm5, %v12940_v46, 0  ;;  %v3712_v57 = vsel %vm3702_vm3, nan, %v3711_v6 }
 0x40e   :  { %v17305_v1 = vand.u32 2147483647, %v17300_v38  ;;  %5634 = vadd.xlane.f32.xlu1 %v5633_v29  ;;  %v3958_v20 = vadd.s32 %v3957_v5, %v3947_v23  ;;  %8515 = vmatmul.msk.f32.gmra.mxu2 %vm204_vm4, %v3712_v57  ;;  %vm3715_vm6 = vcmp.lt.s32.totalorder %v17300_v38, 0  ;;  %v3834_v0 = vmul.f32 %v3833_v39, %v3831_v62 }
 0x40f   :  { %v3837_v41 = vsub.s32 4, %v12899_v3  ;;  %v4021_v46 = vand.u32 2147483647, %v12203_v16  ;;  %v3960_v30 = vmul.u32 %v12880_v32, %v3906_v7  ;;  %vm3962_vm0 = vc.u32 %v12982_v8, %v12984_v24 }
 0x410   :  { %vm12999_vm9 = vcmp.le.f32.partialorder %v17305_v1, 0.7853982  ;;  %v3959_v52 = vadd.s32 %v3958_v20, %v3949_v9  ;;  %v4041_v43 = vshll.u32 %v17086_v47, %v12516_v21  ;;  %v3835_v55 = vxor.u32 2147483648, %v3834_v0 }
 0x411   :  { %v4042_v59 = vshrl.u32 %v17087_v61, %v17308_v49  ;;  %v4044_v42 = vshll.u32 %v17087_v61, %v12516_v21  ;;  %v4045_v28 = vshrl.u32 %v17073_v14, %v17308_v49  ;;  %v4206_v45 = vor.u32 %v12910_v15, %v12805_v26 }
 0x412   :  { %v13020_v32 = vand.u32 31, %v4341_v25  ;;  %v3963_v31 = vadd.s32 1, %v3959_v52  ;;  %v4062_v22 = vsel %vm4056_vm7, %v17309_v2, 920167782  ;;  %v17312_v60 = vor.u32 %v17310_v13, %v17311_v37 }
 0x413   :  { %v3836_v36 = vsel %vm3715_vm6, %v3835_v55, %v3834_v0  ;;  %v4028_v34 = vand.u32 8388607, %v4021_v46  ;;  %v13037_v26 = vsel %vm4210_vm15, %v12934_v48, 920167782  ;;  %v3838_v15 = vsel %vm3715_vm6, %v3837_v41, %v12899_v3 }
 0x414   :  { %v4066_v4 = vsel %vm4056_vm7, %v17312_v60, 1326507024  ;;  %v3839_v50 = vsel %vm12999_vm9, %v17300_v38, %v3836_v36  ;;  %v3964_v23 = vsel %vm3962_vm0, %v3963_v31, %v3959_v52  ;;  %v13048_v39 = vor.u32 %v4042_v59, %v4041_v43 }
 0x415   :  { %v3841_v18 = vmul.f32 %v3839_v50, %v3839_v50  ;;  %v3965_v27 = vadd.s32 %v3964_v23, %v3960_v30  ;;  %v13050_v9 = vor.u32 %v4045_v28, %v4044_v42  ;;  %v13054_v19 = vsel %vm4210_vm15, %v4206_v45, 1326507024 }
 0x416   :  { %v13057_v3 = vsub.s32 32, %v13020_v32  ;;  %vm4053_vm8 = vcmp.lt.s32.totalorder %v12598_v17, 1  ;;  %vm4055_vm11 = vcmp.lt.s32.totalorder %v12598_v17, 3  ;;  %v3840_v5 = vsel %vm12999_vm9, 0, %v3838_v15 }
 0x417   :  { %v3842_v6 = vmul.f32 -0.001358992, %v3841_v18  ;;  %v3849_v62 = vmul.f32 -0.00019511016, %v3841_v18  ;;  %v4029_v29 = vor.u32 8388608, %v4028_v34  ;;  %v3966_v7 = vadd.s32 536870912, %v3965_v27 }
 0x418   :  { %v4038_v57 = vshll.u32 %v17088_v33, %v12516_v21  ;;  %v4039_v1 = vshrl.u32 %v17086_v47, %v17308_v49  ;;  %vm4054_vm13 = vcmp.lt.s32.totalorder %v12598_v17, 2  ;;  %v4065_v44 = vsel %vm4053_vm8, %v13048_v39, %v13050_v9 }
 0x419   :  { %v3843_v20 = vadd.f32 0.041655596, %v3842_v6  ;;  %v3850_v0 = vadd.f32 0.008332121, %v3849_v62  ;;  %v4067_v41 = vsel %vm4055_vm11, %v17309_v2, %v4066_v4  ;;  %v13075_v52 = vshrl.u32 %v4341_v25, 5 }
 0x41a   :  { %v4355_v21 = vshll.u32 %v17073_v14, %v13020_v32  ;;  %v4356_v30 = vshrl.u32 %v17067_v40, %v13057_v3  ;;  %v13081_v43 = vshrl.u32 %v3966_v7, 30  ;;  %v13085_v55 = vshll.u32 %v17067_v40, %v13020_v32 }
 0x41b   :  { %v3844_v59 = vmul.f32 %v3843_v20, %v3841_v18  ;;  %v3851_v42 = vmul.f32 %v3850_v0, %v3841_v18  ;;  %v3857_v28 = vand.u32 3, %v3840_v5  ;;  %v4040_v31 = vor.u32 %v4039_v1, %v4038_v57 }
 0x41c   :  { %v3968_v45 = vshll.u32 %v13081_v43, 30  ;;  %v4068_v25 = vsel %vm4054_vm13, %v4065_v44, %v4067_v41  ;;  %v13090_v2 = vshll.u32 %v4029_v29, 8  ;;  %v13094_v13 = vshrl.u32 %v17070_v53, %v13057_v3 }
 0x41d   :  { %v3845_v37 = vadd.f32 -0.4999988, %v3844_v59  ;;  %v3852_v60 = vadd.f32 -0.16666654, %v3851_v42  ;;  %v4072_v4 = vand.u32 65535, %v4068_v25  ;;  %v13096_v36 = vor.u32 %v4356_v30, %v4355_v21 }
 0x41e   :  { %v13098_v34 = vsub.s32 %v3965_v27, %v3968_v45  ;;  %v4070_v15 = vand.u32 65535, %v13090_v2  ;;  %v13102_v23 = vshrl.u32 %v13090_v2, 16  ;;  %vm3858_vm2 = vcmp.lt.s32.totalorder %v3857_v28, 2 }
 0x41f   :  { %v3846_v5 = vmul.f32 %v3845_v37, %v3841_v18  ;;  %v3853_v6 = vmul.f32 %v3852_v60, %v3841_v18  ;;  %vm3859_vm12 = vcmp.eq.s32.totalorder %v3857_v28, 0  ;;  %vm3856_vm1 = vweird.f32 %v17300_v38 }
 0x420   :  { %vm3970_vm5 = vcmp.lt.s32.totalorder %v13098_v34, 0  ;;  %v3971_v62 = vsub.s32 0, %v13098_v34  ;;  %v4061_v27 = vsel %vm4053_vm8, %v4040_v31, %v13048_v39  ;;  %v4073_v29 = vshrl.u32 %v4068_v25, 16 }
 0x421   :  { %v3847_v7 = vadd.f32 1.0, %v3846_v5  ;;  %v3854_v57 = vadd.f32 1.0, %v3853_v6  ;;  %v4063_v1 = vsel %vm4055_vm11, %v13050_v9, %v4062_v22  ;;  %v13114_v18 = vmul.u32 %v4072_v4, %v13102_v23 }
 0x422   :  { %vm3862_vm3 = vcmp.eq.s32.totalorder %v3857_v28, 2  ;;  %v3972_v20 = vsel %vm3970_vm5, %v3971_v62, %v13098_v34  ;;  %v4074_v0 = vmul.u32 %v4072_v4, %v4070_v15  ;;  %v4075_v44 = vmul.u32 %v4073_v29, %v4070_v15 }
 0x423   :  { %v3855_v41 = vmul.f32 %v3854_v57, %v3839_v50  ;;  %v3863_v21 = vxor.u32 2147483648, %v3847_v7  ;;  %vm3869_vm10 = vcmp.lt.s32.totalorder %v12167_v10, 0  ;;  %v3961_v30 = vadd.s32 %v12984_v24, %v12982_v8 }
 0x424   :  { %v3973_v59 = vclz %v3972_v20  ;;  %v4037_v42 = vshrl.u32 %v17088_v33, %v17308_v49  ;;  %v4064_v22 = vsel %vm4054_vm13, %v4061_v27, %v4063_v1  ;;  %v4078_v45 = vshll.u32 %v4075_v44, 16 }
 0x425   :  { %v4080_v25 = vshll.u32 %v13114_v18, 16  ;;  %v3860_v37 = vxor.u32 2147483648, %v3855_v41  ;;  %v3864_v60 = vsel %vm3862_vm3, %v3863_v21, %v3855_v41  ;;  %v4058_v50 = vsel %vm4056_vm7, %v13050_v9, 2102212464 }
 0x426   :  { %v8466_v4 = vadd.s32 4294967294, %v3973_v59  ;;  %v4077_v5 = vmul.u32 %v4073_v29, %v13102_v23  ;;  %vm4082_vm14 = vc.u32 %v4074_v0, %v4078_v45  ;;  %v4084_v8 = vadd.s32 %v4078_v45, %v4074_v0 }
 0x427   :  { %v4094_v24 = vand.u32 65535, %v4064_v22  ;;  %v3861_v49 = vsel %vm3859_vm12, %v3847_v7, %v3860_v37  ;;  %v17313_v6 = vand.u32 2147483647, %v12167_v10  ;;  %v3991_v27 = vsub.s32 4, %v13081_v43 }
 0x428   :  { %vm8467_vm6 = vcmp.lt.s32.totalorder %v8466_v4, 0  ;;  %v4095_v57 = vshrl.u32 %v4064_v22, 16  ;;  %v3865_v1 = vsel %vm3858_vm2, %v3861_v49, %v3864_v60  ;;  %v4083_v29 = vsel %vm4082_vm14, 1, %v17071_v56 }
 0x429   :  { %vm13132_vm9 = vcmp.le.f32.partialorder %v17313_v6, 0.7853982  ;;  %v3976_v9 = vsel %vm8467_vm6, 0, %v8466_v4  ;;  %vm4086_vm7 = vc.u32 %v4084_v8, %v4080_v25  ;;  %v3866_v20 = vsel %vm3856_vm1, nan, %v3865_v1  ;;  %v17316_v6 = vld [vmem:[#allocation55_spill] sm:$0xff] }
 0x42a   :  { %v3977_v7 = vsub.s32 32, %v3976_v9  ;;  %v3978_v0 = vshll.u32 %v13098_v34, %v3976_v9  ;;  %v3981_v41 = vsub.s32 4294967266, %v3976_v9  ;;  %8516 = vmatmul.msk.f32.gmra.mxu2 %vm204_vm4, %v3866_v20  ;;  %v4057_v21 = vsel %vm4053_vm8, %v4037_v42, %v4040_v31 }
 0x42b   :  { %v4079_v59 = vshrl.u32 %v4075_v44, 16  ;;  %v4085_v22 = vadd.s32 %v4083_v29, %v4077_v5  ;;  %v4096_v28 = vmul.u32 %v4094_v24, %v4070_v15  ;;  %v4087_v60 = vsel %vm4086_vm7, 1, %v17071_v56 }
 0x42c   :  { %v3979_v45 = vshrl.u32 %v3961_v30, %v3977_v7  ;;  %v3982_v37 = vadd.s32 127, %v3981_v41  ;;  %v4097_v25 = vmul.u32 %v4095_v57, %v4070_v15  ;;  %v3992_v38 = vsel %vm3869_vm10, %v3991_v27, %v13081_v43 }
 0x42d   :  { %v4059_v34 = vsel %vm4055_vm11, %v13048_v39, %v4058_v50  ;;  %v4089_v4 = vadd.s32 %v4087_v60, %v4085_v22  ;;  %v4098_v8 = vmul.u32 %v4094_v24, %v13102_v23  ;;  %v4099_v42 = vmul.u32 %v4095_v57, %v13102_v23 }
 0x42e   :  { %v3980_v31 = vor.u32 %v3979_v45, %v3978_v0  ;;  %v3983_v44 = vshll.u32 %v3982_v37, 23  ;;  %v4100_v30 = vshll.u32 %v4097_v25, 16  ;;  %v4081_v5 = vshrl.u32 %v13114_v18, 16 }
 0x42f   :  { %v4090_v49 = vadd.s32 %v4089_v4, %v4079_v59  ;;  %v4102_v15 = vshll.u32 %v4098_v8, 16  ;;  %v17014_v1 = vand.u32 2147483647, %v17316_v6  ;;  %v4060_v27 = vsel %vm4054_vm13, %v4057_v21, %v4059_v34 }
 0x430   :  { %v3984_v9 = vor.u32 4788187, %v3983_v44  ;;  %v3987_v43 = vcvt.s32.f32 %v3980_v31  ;;  %vm4104_vm0 = vc.u32 %v4096_v28, %v4100_v30  ;;  %v3994_v39 = vsel %vm13132_vm9, 0, %v3992_v38 }
 0x431   :  { %v4105_v50 = vsel %vm4104_vm0, 1, %v17071_v56  ;;  %v4106_v24 = vadd.s32 %v4100_v30, %v4096_v28  ;;  %v4182_v23 = vand.u32 8388607, %v17014_v1  ;;  %v4101_v57 = vshrl.u32 %v4097_v25, 16 }
 0x432   :  { %v3985_v18 = vand.u32 2147483647, %v3984_v9  ;;  %v4107_v29 = vadd.s32 %v4105_v50, %v4099_v42  ;;  %v4192_v20 = vshll.u32 %v17088_v33, %v12616_v11  ;;  %vm4364_vm8 = vcmp.lt.s32.totalorder %v13075_v52, 4 }
 0x433   :  { %v13166_v17 = vadd.s32 %v4090_v49, %v4081_v5  ;;  %v4103_v7 = vshrl.u32 %v4098_v8, 16  ;;  %vm4108_vm11 = vc.u32 %v4106_v24, %v4102_v15  ;;  %v4193_v0 = vshrl.u32 %v17086_v47, %v12784_v12 }
 0x434   :  { %v3988_v41 = vmul.f32 %v3987_v43, %v3985_v18  ;;  %v4109_v21 = vsel %vm4108_vm11, 1, %v17071_v56  ;;  %v4195_v59 = vshll.u32 %v17086_v47, %v12616_v11  ;;  %v4196_v22 = vshrl.u32 %v17087_v61, %v12784_v12 }
 0x435   :  { %v13175_v28 = vadd.s32 %v4106_v24, %v4102_v15  ;;  %v4111_v45 = vadd.s32 %v4109_v21, %v4107_v29  ;;  %v4183_v37 = vor.u32 8388608, %v4182_v23  ;;  %v13177_v60 = vor.u32 %v4193_v0, %v4192_v20 }
 0x436   :  { %v3989_v25 = vxor.u32 2147483648, %v3988_v41  ;;  %v13179_v38 = vor.u32 %v4196_v22, %v4195_v59  ;;  %v4198_v34 = vshll.u32 %v17087_v61, %v12616_v11  ;;  %v4199_v4 = vshrl.u32 %v17073_v14, %v12784_v12 }
 0x437   :  { %v4112_v8 = vadd.s32 %v4111_v45, %v4101_v57  ;;  %v4114_v31 = vmul.u32 %v13090_v2, %v4060_v27  ;;  %vm4207_vm13 = vcmp.lt.s32.totalorder %v12781_v35, 1  ;;  %vm4209_vm2 = vcmp.lt.s32.totalorder %v12781_v35, 3 }
 0x438   :  { %v3990_v44 = vsel %vm3869_vm10, %v3989_v25, %v3988_v41  ;;  %v4200_v42 = vor.u32 %v4199_v4, %v4198_v34  ;;  %vm4208_vm12 = vcmp.lt.s32.totalorder %v12781_v35, 2  ;;  %v4215_v11 = vsel %vm4207_vm13, %v13177_v60, %v13179_v38 }
 0x439   :  { %v13198_v30 = vsel %vm13132_vm9, %v12167_v10, %v3990_v44  ;;  %v4113_v2 = vadd.s32 %v4112_v8, %v4103_v7  ;;  %v4221_v5 = vsel %vm4209_vm2, %v12934_v48, %v13054_v19  ;;  %v13204_v49 = vshll.u32 %v4183_v37, 8  ;;  %v417_v37 = vpop.permute.xlu2 %416 }
 0x43a   :  { %v3995_v15 = vmul.f32 %v13198_v30, %v13198_v30  ;;  %vm4116_vm1 = vc.u32 %v13166_v17, %v13175_v28  ;;  %v4217_v62 = vsel %vm4209_vm2, %v4200_v42, %v13037_v26  ;;  %v4219_v9 = vsel %vm4207_vm13, %v13179_v38, %v4200_v42 }
 0x43b   :  { %v4360_v43 = vor.u32 %v13094_v13, %v13085_v55  ;;  %v13218_v48 = vand.u32 3, %v3994_v39  ;;  %v4117_v19 = vadd.s32 1, %v4113_v2  ;;  %v4222_v27 = vsel %vm4208_vm12, %v4219_v9, %v4221_v5 }
 0x43c   :  { %v3996_v50 = vmul.f32 -0.001358992, %v3995_v15  ;;  %v4003_v24 = vmul.f32 -0.00019511016, %v3995_v15  ;;  %v4218_v23 = vsel %vm4208_vm12, %v4215_v11, %v4217_v62  ;;  %v4224_v26 = vand.u32 65535, %v13204_v49 }
 0x43d   :  { %v4118_v18 = vsel %vm4116_vm1, %v4117_v19, %v4113_v2  ;;  %v4225_v57 = vshrl.u32 %v13204_v49, 16  ;;  %v4226_v29 = vand.u32 65535, %v4222_v27  ;;  %v4227_v20 = vshrl.u32 %v4222_v27, 16 }
 0x43e   :  { %v13229_v39 = vsel %vm4364_vm8, %v13096_v36, 920167782  ;;  %v3997_v7 = vadd.f32 0.041655596, %v3996_v50  ;;  %v4004_v0 = vadd.f32 0.008332121, %v4003_v24  ;;  %v4119_v41 = vadd.s32 %v4118_v18, %v4114_v31 }
 0x43f   :  { %v4228_v21 = vmul.u32 %v4226_v29, %v4224_v26  ;;  %v4229_v59 = vmul.u32 %v4227_v20, %v4224_v26  ;;  %v13231_v22 = vmul.u32 %v4226_v29, %v4225_v57  ;;  %v4248_v45 = vand.u32 65535, %v4218_v23 }
 0x440   :  { %v3998_v25 = vmul.f32 %v3997_v7, %v3995_v15  ;;  %v4005_v34 = vmul.f32 %v4004_v0, %v3995_v15  ;;  %v4120_v4 = vadd.s32 536870912, %v4119_v41  ;;  %v4249_v8 = vshrl.u32 %v4218_v23, 16 }
 0x441   :  { %v13234_v44 = vmul.f32 %v12834_v51, %v417_v37  ;;  %vm4016_vm5 = vcmp.eq.s32.totalorder %v13218_v48, 2  ;;  %v4232_v11 = vshll.u32 %v4229_v59, 16  ;;  %v4234_v2 = vshll.u32 %v13231_v22, 16 }
 0x442   :  { %v3999_v5 = vadd.f32 -0.4999988, %v3998_v25  ;;  %v4006_v31 = vadd.f32 -0.16666654, %v4005_v34  ;;  %vm4012_vm3 = vcmp.lt.s32.totalorder %v13218_v48, 2  ;;  %v13239_v62 = vshrl.u32 %v4120_v4, 30 }
 0x443   :  { %v4191_v9 = vshrl.u32 %v17088_v33, %v12784_v12  ;;  %vm4010_vm10 = vweird.f32 %v12167_v10  ;;  %v4231_v19 = vmul.u32 %v4227_v20, %v4225_v57  ;;  %vm4236_vm14 = vc.u32 %v4228_v21, %v4232_v11 }
 0x444   :  { %v4238_v27 = vadd.s32 %v4232_v11, %v4228_v21  ;;  %v4251_v50 = vmul.u32 %v4249_v8, %v4224_v26  ;;  %v4000_v24 = vmul.f32 %v3999_v5, %v3995_v15  ;;  %v4007_v23 = vmul.f32 %v4006_v31, %v3995_v15 }
 0x445   :  { %v4122_v18 = vshll.u32 %v13239_v62, 30  ;;  %v4250_v29 = vmul.u32 %v4248_v45, %v4224_v26  ;;  %v4237_v7 = vsel %vm4236_vm14, 1, %v17071_v56  ;;  %v4252_v0 = vmul.u32 %v4248_v45, %v4225_v57 }
 0x446   :  { %vm4240_vm9 = vc.u32 %v4238_v27, %v4234_v2  ;;  %v4254_v37 = vshll.u32 %v4251_v50, 16  ;;  %v4001_v25 = vadd.f32 1.0, %v4000_v24  ;;  %v4008_v34 = vadd.f32 1.0, %v4007_v23 }
 0x447   :  { %v4123_v4 = vsub.s32 %v4119_v41, %v4122_v18  ;;  %v4212_v12 = vsel %vm4210_vm15, %v4200_v42, 2102212464  ;;  %v4233_v20 = vshrl.u32 %v4229_v59, 16  ;;  %v4239_v1 = vadd.s32 %v4237_v7, %v4231_v19 }
 0x448   :  { %v4241_v21 = vsel %vm4240_vm9, 1, %v17071_v56  ;;  %v4253_v11 = vmul.u32 %v4249_v8, %v4225_v57  ;;  %v4009_v15 = vmul.f32 %v4008_v34, %v13198_v30  ;;  %v4017_v5 = vxor.u32 2147483648, %v4001_v25 }
 0x449   :  { %vm4124_vm6 = vcmp.lt.s32.totalorder %v4123_v4, 0  ;;  %v4125_v26 = vsub.s32 0, %v4123_v4  ;;  %vm4013_vm7 = vcmp.eq.s32.totalorder %v13218_v48, 0  ;;  %v4243_v45 = vadd.s32 %v4241_v21, %v4239_v1 }
 0x44a   :  { %v4256_v2 = vshll.u32 %v4252_v0, 16  ;;  %vm4258_vm0 = vc.u32 %v4250_v29, %v4254_v37  ;;  %v4014_v31 = vxor.u32 2147483648, %v4009_v15  ;;  %v4018_v41 = vsel %vm4016_vm5, %v4017_v5, %v4009_v15 }
 0x44b   :  { %v4126_v42 = vsel %vm4124_vm6, %v4125_v26, %v4123_v4  ;;  %v4259_v59 = vsel %vm4258_vm0, 1, %v17071_v56  ;;  %v4211_v30 = vsel %vm4207_vm13, %v4191_v9, %v13177_v60  ;;  %v4213_v57 = vsel %vm4209_vm2, %v13179_v38, %v4212_v12 }
 0x44c   :  { %v4127_v19 = vclz %v4126_v42  ;;  %v4260_v8 = vadd.s32 %v4254_v37, %v4250_v29  ;;  %v4015_v1 = vsel %vm4013_vm7, %v4001_v25, %v4014_v31  ;;  %v4235_v27 = vshrl.u32 %v13231_v22, 16  ;;  %v411_v25 = vpop.permute.xlu1 %410 }
 0x44d   :  { %v4244_v24 = vadd.s32 %v4243_v45, %v4233_v20  ;;  %v4261_v23 = vadd.s32 %v4259_v59, %v4253_v11  ;;  %v4374_v18 = vsel %vm4364_vm8, %v4360_v43, 1326507024  ;;  %v4019_v7 = vsel %vm4012_vm3, %v4015_v1, %v4018_v41 }
 0x44e   :  { %v8469_v60 = vadd.s32 4294967294, %v4127_v19  ;;  %vm4262_vm15 = vc.u32 %v4260_v8, %v4256_v2  ;;  %v4020_v38 = vsel %vm4010_vm10, nan, %v4019_v7  ;;  %v4255_v9 = vshrl.u32 %v4251_v50, 16 }
 0x44f   :  { %v4263_v29 = vsel %vm4262_vm15, 1, %v17071_v56  ;;  %v4329_v22 = vand.u32 2147483647, %v12837_v63  ;;  %v4640_v37 = vand.u32 2139095040, %v13234_v44  ;;  %8517 = vmatmul.msk.f32.gmra.mxu2 %vm204_vm4, %v4020_v38  ;;  %v4115_v55 = vadd.s32 %v13175_v28, %v13166_v17 }
 0x450   :  { %vm8470_vm11 = vcmp.lt.s32.totalorder %v8469_v60, 0  ;;  %v4214_v13 = vsel %vm4208_vm12, %v4211_v30, %v4213_v57  ;;  %v13278_v10 = vadd.s32 %v4244_v24, %v4235_v27  ;;  %v4257_v48 = vshrl.u32 %v4252_v0, 16 }
 0x451   :  { %v4130_v43 = vsel %vm8470_vm11, 0, %v8469_v60  ;;  %v4265_v50 = vadd.s32 %v4263_v29, %v4261_v23  ;;  %v13280_v21 = vadd.s32 %v4260_v8, %v4256_v2  ;;  %v13283_v11 = vmul.f32 %v12834_v51, %v411_v25 }
 0x452   :  { %v4131_v34 = vsub.s32 32, %v4130_v43  ;;  %v4132_v12 = vshll.u32 %v4123_v4, %v4130_v43  ;;  %v4135_v20 = vsub.s32 4294967266, %v4130_v43  ;;  %v4145_v15 = vsub.s32 4, %v13239_v62 }
 0x453   :  { %v4266_v17 = vadd.s32 %v4265_v50, %v4255_v9  ;;  %v4336_v35 = vand.u32 8388607, %v4329_v22  ;;  %v4346_v0 = vshll.u32 %v17088_v33, %v13020_v32  ;;  %v4347_v4 = vshrl.u32 %v17086_v47, %v13057_v3 }
 0x454   :  { %v4133_v28 = vshrl.u32 %v4115_v55, %v4131_v34  ;;  %v4136_v5 = vadd.s32 127, %v4135_v20  ;;  %v4268_v45 = vmul.u32 %v13204_v49, %v4214_v13  ;;  %v4349_v2 = vshll.u32 %v17086_v47, %v13020_v32 }
 0x455   :  { %v4267_v26 = vadd.s32 %v4266_v17, %v4257_v48  ;;  %v4350_v31 = vshrl.u32 %v17087_v61, %v13057_v3  ;;  %vm4270_vm13 = vc.u32 %v13278_v10, %v13280_v21  ;;  %v4352_v59 = vshll.u32 %v17087_v61, %v13020_v32 }
 0x456   :  { %v4134_v41 = vor.u32 %v4133_v28, %v4132_v12  ;;  %v4137_v42 = vshll.u32 %v4136_v5, 23  ;;  %v4337_v30 = vor.u32 8388608, %v4336_v35  ;;  %v4353_v49 = vshrl.u32 %v17073_v14, %v13057_v3 }
 0x457   :  { %v4271_v19 = vadd.s32 1, %v4267_v26  ;;  %v13301_v57 = vor.u32 %v4350_v31, %v4349_v2  ;;  %v13305_v27 = vor.u32 %v4347_v4, %v4346_v0  ;;  %vm4361_vm2 = vcmp.lt.s32.totalorder %v13075_v52, 1 }
 0x458   :  { %v4138_v8 = vor.u32 4788187, %v4137_v42  ;;  %v4141_v1 = vcvt.s32.f32 %v4134_v41  ;;  %v4486_v24 = vand.u32 2139095040, %v13283_v11  ;;  %v13309_v7 = vor.u32 %v4353_v49, %v4352_v59 }
 0x459   :  { %v4272_v23 = vsel %vm4270_vm13, %v4271_v19, %v4267_v26  ;;  %vm4363_vm12 = vcmp.lt.s32.totalorder %v13075_v52, 3  ;;  %vm4362_vm1 = vcmp.lt.s32.totalorder %v13075_v52, 2  ;;  %vm13318_vm5 = vcmp.le.f32.partialorder %v4021_v46, 0.7853982 }
 0x45a   :  { %v4139_v32 = vand.u32 2147483647, %v4138_v8  ;;  %v4273_v60 = vadd.s32 %v4272_v23, %v4268_v45  ;;  %v4375_v38 = vsel %vm4363_vm12, %v13096_v36, %v4374_v18  ;;  %vm4023_vm3 = vcmp.lt.s32.totalorder %v12203_v16, 0 }
 0x45b   :  { %v4373_v29 = vsel %vm4361_vm2, %v13301_v57, %v13309_v7  ;;  %v13327_v25 = vshll.u32 %v4337_v30, 8  ;;  %v4146_v13 = vsel %vm4023_vm3, %v4145_v15, %v13239_v62  ;;  %v4369_v46 = vsel %vm4361_vm2, %v13305_v27, %v13301_v57 }
 0x45c   :  { %v4142_v55 = vmul.f32 %v4141_v1, %v4139_v32  ;;  %v4274_v43 = vadd.s32 536870912, %v4273_v60  ;;  %v4371_v36 = vsel %vm4363_vm12, %v13309_v7, %v13229_v39  ;;  %v4376_v18 = vsel %vm4362_vm1, %v4373_v29, %v4375_v38  ;;  %v436_v32 = vpop.permute.xlu2 %435 }
 0x45d   :  { %v4378_v48 = vand.u32 65535, %v13327_v25  ;;  %v13342_v50 = vshrl.u32 %v13327_v25, 16  ;;  %v4380_v12 = vand.u32 65535, %v4376_v18  ;;  %v4381_v20 = vshrl.u32 %v4376_v18, 16 }
 0x45e   :  { %v4143_v62 = vxor.u32 2147483648, %v4142_v55  ;;  %v13344_v34 = vshrl.u32 %v4274_v43, 30  ;;  %v4148_v17 = vsel %vm13318_vm5, 0, %v4146_v13  ;;  %v4372_v39 = vsel %vm4362_vm1, %v4369_v46, %v4371_v36 }
 0x45f   :  { %v4382_v5 = vmul.u32 %v4380_v12, %v4378_v48  ;;  %v13354_v0 = vmul.u32 %v4381_v20, %v4378_v48  ;;  %v13357_v4 = vmul.u32 %v4380_v12, %v13342_v50  ;;  %v13361_v26 = vshrl.u32 %v4640_v37, 23 }
 0x460   :  { %v4144_v15 = vsel %vm4023_vm3, %v4143_v62, %v4142_v55  ;;  %v4276_v35 = vshll.u32 %v13344_v34, 30  ;;  %v4487_v45 = vshrl.u32 %v4486_v24, 23  ;;  %v13363_v41 = vand.u32 3, %v4148_v17 }
 0x461   :  { %v4147_v28 = vsel %vm13318_vm5, %v12203_v16, %v4144_v15  ;;  %v4386_v42 = vshll.u32 %v13354_v0, 16  ;;  %v4388_v59 = vshll.u32 %v13357_v4, 16  ;;  %v4403_v19 = vshrl.u32 %v4372_v39, 16 }
 0x462   :  { %v4149_v2 = vmul.f32 %v4147_v28, %v4147_v28  ;;  %v4277_v31 = vsub.s32 %v4273_v60, %v4276_v35  ;;  %v4385_v1 = vmul.u32 %v4381_v20, %v13342_v50  ;;  %v4402_v37 = vand.u32 65535, %v4372_v39 }
 0x463   :  { %vm4390_vm14 = vc.u32 %v4382_v5, %v4386_v42  ;;  %v4392_v23 = vadd.s32 %v4386_v42, %v4382_v5  ;;  %v13370_v29 = vmul.f32 %v12834_v51, %v436_v32  ;;  %v13372_v55 = vadd.s32 4294967169, %v4487_v45 }
 0x464   :  { %v4150_v30 = vmul.f32 -0.001358992, %v4149_v2  ;;  %v4157_v49 = vmul.f32 -0.00019511016, %v4149_v2  ;;  %vm4278_vm10 = vcmp.lt.s32.totalorder %v4277_v31, 0  ;;  %v4279_v8 = vsub.s32 0, %v4277_v31 }
 0x465   :  { %v4391_v9 = vsel %vm4390_vm14, 1, %v17071_v56  ;;  %vm4394_vm9 = vc.u32 %v4392_v23, %v4388_v59  ;;  %v4345_v36 = vshrl.u32 %v17088_v33, %v13057_v3  ;;  %v4405_v18 = vmul.u32 %v4403_v19, %v4378_v48 }
 0x466   :  { %v4151_v24 = vadd.f32 0.041655596, %v4150_v30  ;;  %v4158_v38 = vadd.f32 0.008332121, %v4157_v49  ;;  %v4280_v60 = vsel %vm4278_vm10, %v4279_v8, %v4277_v31  ;;  %vm4167_vm6 = vcmp.eq.s32.totalorder %v13363_v41, 0 }
 0x467   :  { %v4281_v13 = vclz %v4280_v60  ;;  %v4269_v62 = vadd.s32 %v13280_v21, %v13278_v10  ;;  %v4393_v20 = vadd.s32 %v4391_v9, %v4385_v1  ;;  %vm4166_vm7 = vcmp.lt.s32.totalorder %v13363_v41, 2 }
 0x468   :  { %v4152_v43 = vmul.f32 %v4151_v24, %v4149_v2  ;;  %v4159_v46 = vmul.f32 %v4158_v38, %v4149_v2  ;;  %v4395_v17 = vsel %vm4394_vm9, 1, %v17071_v56  ;;  %v4406_v35 = vmul.u32 %v4402_v37, %v13342_v50 }
 0x469   :  { %v8472_v12 = vadd.s32 4294967294, %v4281_v13  ;;  %vm4170_vm0 = vcmp.eq.s32.totalorder %v13363_v41, 2  ;;  %v4387_v3 = vshrl.u32 %v13354_v0, 16  ;;  %v4404_v39 = vmul.u32 %v4402_v37, %v4378_v48 }
 0x46a   :  { %v4153_v15 = vadd.f32 -0.4999988, %v4152_v43  ;;  %v4160_v51 = vadd.f32 -0.16666654, %v4159_v46  ;;  %v4408_v10 = vshll.u32 %v4405_v18, 16  ;;  %v4397_v49 = vadd.s32 %v4395_v17, %v4393_v20 }
 0x46b   :  { %vm8473_vm15 = vcmp.lt.s32.totalorder %v8472_v12, 0  ;;  %v4407_v23 = vmul.u32 %v4403_v19, %v13342_v50  ;;  %v4410_v32 = vshll.u32 %v4406_v35, 16  ;;  %v4366_v0 = vsel %vm4364_vm8, %v13309_v7, 2102212464 }
 0x46c   :  { %v4154_v5 = vmul.f32 %v4153_v15, %v4149_v2  ;;  %v4161_v45 = vmul.f32 %v4160_v51, %v4149_v2  ;;  %v4284_v42 = vsel %vm8473_vm15, 0, %v8472_v12  ;;  %v4389_v48 = vshrl.u32 %v13357_v4, 16 }
 0x46d   :  { %v4285_v21 = vsub.s32 32, %v4284_v42  ;;  %v4286_v59 = vshll.u32 %v4277_v31, %v4284_v42  ;;  %v4289_v30 = vsub.s32 4294967266, %v4284_v42  ;;  %vm4412_vm11 = vc.u32 %v4404_v39, %v4408_v10  ;;  %v13413_v42 = vpop.f32.mrf.mxu0 }
 0x46e   :  { %v4155_v8 = vadd.f32 1.0, %v4154_v5  ;;  %v4162_v1 = vadd.f32 1.0, %v4161_v45  ;;  %v4414_v60 = vadd.s32 %v4408_v10, %v4404_v39  ;;  %v4398_v13 = vadd.s32 %v4397_v49, %v4387_v3 }
 0x46f   :  { %v4287_v24 = vshrl.u32 %v4269_v62, %v4285_v21  ;;  %v4290_v38 = vadd.s32 127, %v4289_v30  ;;  %v4413_v43 = vsel %vm4412_vm11, 1, %v17071_v56  ;;  %vm4164_vm5 = vweird.f32 %v12203_v16 }
 0x470   :  { %v4163_v2 = vmul.f32 %v4162_v1, %v4147_v28  ;;  %v4171_v37 = vxor.u32 2147483648, %v4155_v8  ;;  %v4415_v19 = vadd.s32 %v4413_v43, %v4407_v23  ;;  %vm4416_vm13 = vc.u32 %v4414_v60, %v4410_v32 }
 0x471   :  { %v4288_v31 = vor.u32 %v4287_v24, %v4286_v59  ;;  %v4291_v9 = vshll.u32 %v4290_v38, 23  ;;  %v4409_v4 = vshrl.u32 %v4405_v18, 16  ;;  %v4365_v12 = vsel %vm4361_vm2, %v4345_v36, %v13305_v27 }
 0x472   :  { %v4168_v46 = vxor.u32 2147483648, %v4163_v2  ;;  %v4172_v50 = vsel %vm4170_vm0, %v4171_v37, %v4163_v2  ;;  %v4367_v20 = vsel %vm4363_vm12, %v13301_v57, %v4366_v0  ;;  %v4417_v15 = vsel %vm4416_vm13, 1, %v17071_v56 }
 0x473   :  { %v4292_v7 = vor.u32 4788187, %v4291_v9  ;;  %v4295_v62 = vcvt.s32.f32 %v4288_v31  ;;  %v4411_v17 = vshrl.u32 %v4406_v35, 16  ;;  %v4419_v3 = vadd.s32 %v4417_v15, %v4415_v19 }
 0x474   :  { %v4169_v28 = vsel %vm4167_vm6, %v4155_v8, %v4168_v46  ;;  %v8480_v18 = vadd.s32 4294967169, %v13361_v26  ;;  %v13405_v5 = vadd.s32 %v4398_v13, %v4389_v48  ;;  %v13407_v45 = vadd.s32 %v4414_v60, %v4410_v32 }
 0x475   :  { %v4173_v51 = vsel %vm4166_vm7, %v4169_v28, %v4172_v50  ;;  %v4293_v16 = vand.u32 2147483647, %v4292_v7  ;;  %v4368_v57 = vsel %vm4362_vm1, %v4365_v12, %v4367_v20  ;;  %v4420_v36 = vadd.s32 %v4419_v3, %v4409_v4  ;;  %v13437_v46 = vpop.f32.mrf.mxu0  ;;  %v424_v4 = vpop.permute.xlu0 %423 }
 0x476   :  { %v4174_v39 = vsel %vm4164_vm5, nan, %v4173_v51  ;;  %v4493_v41 = vadd.s32 1, %v13372_v55  ;;  %vm4177_vm8 = vcmp.lt.s32.totalorder %v17316_v6, 0  ;;  %v5102_v26 = vand.u32 2139095040, %v13370_v29 }
 0x477   :  { %8518 = vmatmul.msk.f32.gmra.mxu2 %vm204_vm4, %v4174_v39  ;;  %v4296_v27 = vmul.f32 %v4295_v62, %v4293_v16  ;;  %v17319_v35 = vand.u32 2147483647, %v17316_v6  ;;  %v4421_v59 = vadd.s32 %v4420_v36, %v4411_v17  ;;  %v4647_v30 = vadd.s32 1, %v8480_v18  ;;  %v13452_v17 = vld [vmem:[%s17040_s0] ss:$0 sm:$0xff] }
 0x478   :  { %v4422_v52 = vmul.u32 %v13327_v25, %v4368_v57  ;;  %vm4424_vm12 = vc.u32 %v13405_v5, %v13407_v45  ;;  %vm4494_vm1 = vcmp.gt.s32.totalorder %v4493_v41, 0  ;;  %v4299_v8 = vsub.s32 4, %v13344_v34 }
 0x479   :  { %vm13419_vm2 = vcmp.le.f32.partialorder %v17319_v35, 0.7853982  ;;  %v4297_v21 = vxor.u32 2147483648, %v4296_v27  ;;  %v4425_v49 = vadd.s32 1, %v4421_v59  ;;  %v5103_v23 = vshrl.u32 %v5102_v26, 23 }
 0x47a   :  { %vm4648_vm3 = vcmp.gt.s32.totalorder %v4647_v30, 0  ;;  %v4495_v25 = vsel %vm4494_vm1, %v4493_v41, 0  ;;  %v4300_v2 = vsel %vm4177_vm8, %v4299_v8, %v13344_v34  ;;  %v13455_v3 = vmul.f32 %v13452_v17, %v424_v4 }
 0x47b   :  { %v4298_v55 = vsel %vm4177_vm8, %v4297_v21, %v4296_v27  ;;  %v4426_v24 = vsel %vm4424_vm12, %v4425_v49, %v4421_v59  ;;  %v4649_v60 = vsel %vm4648_vm3, %v4647_v30, 0  ;;  %v8489_v31 = vadd.s32 4294967169, %v5103_v23 }
 0x47c   :  { %v4301_v1 = vsel %vm13419_vm2, %v17316_v6, %v4298_v55  ;;  %v4427_v38 = vadd.s32 %v4426_v24, %v4422_v52  ;;  %v13435_v43 = vand.u32 31, %v4495_v25  ;;  %v4302_v19 = vsel %vm13419_vm2, 0, %v4300_v2 }
 0x47d   :  { %v4303_v32 = vmul.f32 %v4301_v1, %v4301_v1  ;;  %v13443_v28 = vand.u32 31, %v4649_v60  ;;  %v5109_v12 = vadd.s32 1, %v8489_v31  ;;  %v4319_v16 = vand.u32 3, %v4302_v19 }
 0x47e   :  { %v4428_v37 = vadd.s32 536870912, %v4427_v38  ;;  %v13447_v51 = vsub.s32 32, %v13435_v43  ;;  %v13457_v39 = vshrl.u32 %v4649_v60, 5  ;;  %v4512_v35 = vshll.u32 %v17067_v40, %v13435_v43 }
 0x47f   :  { %v4304_v0 = vmul.f32 -0.001358992, %v4303_v32  ;;  %v4311_v48 = vmul.f32 -0.00019511016, %v4303_v32  ;;  %v13460_v36 = vsub.s32 32, %v13443_v28  ;;  %v13464_v41 = vshll.u32 %v17073_v14, %v13443_v28 }
 0x480   :  { %v13439_v50 = vshrl.u32 %v4428_v37, 30  ;;  %vm5110_vm14 = vcmp.gt.s32.totalorder %v5109_v12, 0  ;;  %v4513_v59 = vshrl.u32 %v17070_v53, %v13447_v51  ;;  %vm4324_vm9 = vcmp.eq.s32.totalorder %v4319_v16, 2 }
 0x481   :  { %v4305_v9 = vadd.f32 0.041655596, %v4304_v0  ;;  %v4312_v13 = vadd.f32 0.008332121, %v4311_v48  ;;  %v4794_v30 = vand.u32 2139095040, %v13455_v3  ;;  %v13471_v55 = vshrl.u32 %v4495_v25, 5  ;;  %v13479_v0 = vpop.f32.mrf.mxu0 }
 0x482   :  { %v4430_v34 = vshll.u32 %v13439_v50, 30  ;;  %v4509_v24 = vshll.u32 %v17073_v14, %v13435_v43  ;;  %vm4321_vm6 = vcmp.eq.s32.totalorder %v4319_v16, 0  ;;  %vm4320_vm7 = vcmp.lt.s32.totalorder %v4319_v16, 2 }
 0x483   :  { %v4306_v7 = vmul.f32 %v4305_v9, %v4303_v32  ;;  %v4313_v62 = vmul.f32 %v4312_v13, %v4303_v32  ;;  %v4514_v25 = vor.u32 %v4513_v59, %v4512_v35  ;;  %vm4318_vm0 = vweird.f32 %v17316_v6 }
 0x484   :  { %v4431_v18 = vsub.s32 %v4427_v38, %v4430_v34  ;;  %v4510_v38 = vshrl.u32 %v17067_v40, %v13447_v51  ;;  %v17015_v60 = vand.u32 2147483647, %v13283_v11  ;;  %vm4518_vm15 = vcmp.lt.s32.totalorder %v13471_v55, 4 }
 0x485   :  { %v4307_v20 = vadd.f32 -0.4999988, %v4306_v7  ;;  %v4314_v15 = vadd.f32 -0.16666654, %v4313_v62  ;;  %v4423_v9 = vadd.s32 %v13407_v45, %v13405_v5  ;;  %v4504_v35 = vshrl.u32 %v17087_v61, %v13447_v51 }
 0x486   :  { %vm4432_vm10 = vcmp.lt.s32.totalorder %v4431_v18, 0  ;;  %v4433_v26 = vsub.s32 0, %v4431_v18  ;;  %v4490_v62 = vand.u32 8388607, %v17015_v60  ;;  %vm4515_vm13 = vcmp.lt.s32.totalorder %v13471_v55, 1 }
 0x487   :  { %v4308_v27 = vmul.f32 %v4307_v20, %v4303_v32  ;;  %v4315_v57 = vmul.f32 %v4314_v15, %v4303_v32  ;;  %v13473_v32 = vsel %vm5110_vm14, %v5109_v12, 0  ;;  %v4511_v20 = vor.u32 %v4510_v38, %v4509_v24 }
 0x488   :  { %v4434_v52 = vsel %vm4432_vm10, %v4433_v26, %v4431_v18  ;;  %v13487_v13 = vand.u32 31, %v13473_v32  ;;  %v4528_v15 = vsel %vm4518_vm15, %v4514_v25, 1326507024  ;;  %v4491_v45 = vor.u32 8388608, %v4490_v62 }
 0x489   :  { %v4309_v10 = vadd.f32 1.0, %v4308_v27  ;;  %v4316_v21 = vadd.f32 1.0, %v4315_v57  ;;  %v4435_v23 = vclz %v4434_v52  ;;  %v4500_v57 = vshll.u32 %v17088_v33, %v13435_v43  ;;  %v13508_v52 = vpop.f32.mrf.mxu0 }
 0x48a   :  { %v4503_v26 = vshll.u32 %v17086_v47, %v13435_v43  ;;  %vm4516_vm5 = vcmp.lt.s32.totalorder %v13471_v55, 2  ;;  %17322 = vst [vmem:[#allocation49_spill] sm:$0xff] %v13508_v52  ;;  %vm4517_vm8 = vcmp.lt.s32.totalorder %v13471_v55, 3  ;;  %v4666_v24 = vshll.u32 %v17067_v40, %v13443_v28 }
 0x48b   :  { %v4317_v49 = vmul.f32 %v4316_v21, %v4301_v1  ;;  %v4325_v8 = vxor.u32 2147483648, %v4309_v10  ;;  %v8475_v37 = vadd.s32 4294967294, %v4435_v23  ;;  %v4795_v1 = vshrl.u32 %v4794_v30, 23 }
 0x48c   :  { %v4507_v21 = vshrl.u32 %v17073_v14, %v13447_v51  ;;  %v13515_v23 = vshll.u32 %v4491_v45, 8  ;;  %vm4672_vm2 = vcmp.lt.s32.totalorder %v13457_v39, 4  ;;  %vm4331_vm12 = vcmp.lt.s32.totalorder %v12837_v63, 0 }
 0x48d   :  { %v4322_v48 = vxor.u32 2147483648, %v4317_v49  ;;  %v4326_v2 = vsel %vm4324_vm9, %v4325_v8, %v4317_v49  ;;  %vm8476_vm11 = vcmp.lt.s32.totalorder %v8475_v37, 0  ;;  %v8483_v5 = vadd.s32 4294967169, %v4795_v1 }
 0x48e   :  { %v4438_v7 = vsel %vm8476_vm11, 0, %v8475_v37  ;;  %v13510_v49 = vor.u32 %v4504_v35, %v4503_v26  ;;  %v4529_v1 = vsel %vm4517_vm8, %v4511_v20, %v4528_v15  ;;  %v13537_v62 = vand.u32 65535, %v13515_v23 }
 0x48f   :  { %v4323_v31 = vsel %vm4321_vm6, %v4309_v10, %v4322_v48  ;;  %v4439_v6 = vsub.s32 32, %v4438_v7  ;;  %v4440_v34 = vshll.u32 %v4431_v18, %v4438_v7  ;;  %v4443_v12 = vsub.s32 4294967266, %v4438_v7 }
 0x490   :  { %v4327_v19 = vsel %vm4320_vm7, %v4323_v31, %v4326_v2  ;;  %v4501_v18 = vshrl.u32 %v17086_v47, %v13447_v51  ;;  %v4506_v10 = vshll.u32 %v17087_v61, %v13435_v43  ;;  %v4664_v43 = vshrl.u32 %v17067_v40, %v13460_v36 }
 0x491   :  { %v4328_v4 = vsel %vm4318_vm0, nan, %v4327_v19  ;;  %v4441_v16 = vshrl.u32 %v4423_v9, %v4439_v6  ;;  %v4444_v27 = vadd.s32 127, %v4443_v12  ;;  %v13522_v2 = vsub.s32 32, %v13487_v13 }
 0x492   :  { %8519 = vmatmul.msk.f32.gmra.mxu2 %vm204_vm4, %v4328_v4  ;;  %v13512_v8 = vor.u32 %v4507_v21, %v4506_v10  ;;  %v13524_v37 = vor.u32 %v4501_v18, %v4500_v57  ;;  %v4524_v31 = vsel %vm4518_vm15, %v4511_v20, 920167782  ;;  %v4801_v9 = vadd.s32 1, %v8483_v5  ;;  %v430_v18 = vpop.permute.xlu1 %429  ;;  %v13573_v21 = vpop.f32.mrf.mxu0 }
 0x493   :  { %v4442_v59 = vor.u32 %v4441_v16, %v4440_v34  ;;  %v4445_v30 = vshll.u32 %v4444_v27, 23  ;;  %v13540_v4 = vshrl.u32 %v13515_v23, 16  ;;  %v13543_v12 = vor.u32 %v4664_v43, %v13464_v41 }
 0x494   :  { %v4527_v25 = vsel %vm4515_vm13, %v13510_v49, %v13512_v8  ;;  %v4667_v15 = vshrl.u32 %v17070_v53, %v13460_v36  ;;  %v4523_v5 = vsel %vm4515_vm13, %v13524_v37, %v13510_v49  ;;  %v4525_v45 = vsel %vm4517_vm8, %v13512_v8, %v4524_v31 }
 0x495   :  { %v4446_v38 = vor.u32 4788187, %v4445_v30  ;;  %v4449_v48 = vcvt.s32.f32 %v4442_v59  ;;  %v4530_v7 = vsel %vm4516_vm5, %v4527_v25, %v4529_v1  ;;  %v13560_v16 = vshrl.u32 %v13473_v32, 5 }
 0x496   :  { %v4534_v6 = vand.u32 65535, %v4530_v7  ;;  %v4535_v34 = vshrl.u32 %v4530_v7, 16  ;;  %v5125_v27 = vshll.u32 %v17073_v14, %v13487_v13  ;;  %vm13566_vm1 = vcmp.le.f32.partialorder %v4329_v22, 0.7853982 }
 0x497   :  { %v4447_v19 = vand.u32 2147483647, %v4446_v38  ;;  %v5126_v35 = vshrl.u32 %v17067_v40, %v13522_v2  ;;  %vm4802_vm3 = vcmp.gt.s32.totalorder %v4801_v9, 0  ;;  %v4453_v10 = vsub.s32 4, %v13439_v50 }
 0x498   :  { %v13557_v41 = vmul.u32 %v4535_v34, %v13537_v62  ;;  %v13576_v32 = vmul.u32 %v4534_v6, %v13540_v4  ;;  %v13582_v22 = vsel %vm4516_vm5, %v4523_v5, %v4525_v45  ;;  %v4536_v30 = vmul.u32 %v4534_v6, %v13537_v62 }
 0x499   :  { %v4450_v20 = vmul.f32 %v4449_v48, %v4447_v19  ;;  %v5128_v38 = vshll.u32 %v17067_v40, %v13487_v13  ;;  %v5129_v48 = vshrl.u32 %v17070_v53, %v13522_v2  ;;  %v13594_v1 = vmul.f32 %v13452_v17, %v430_v18 }
 0x49a   :  { %v4540_v43 = vshll.u32 %v13557_v41, 16  ;;  %v4668_v31 = vor.u32 %v4667_v15, %v4666_v24  ;;  %v13599_v19 = vsel %vm4672_vm2, %v13543_v12, 920167782  ;;  %v4803_v7 = vsel %vm4802_vm3, %v4801_v9, 0  ;;  %v13619_v54 = vpop.f32.mrf.mxu0 }
 0x49b   :  { %v4451_v26 = vxor.u32 2147483648, %v4450_v20  ;;  %v4454_v5 = vsel %vm4331_vm12, %v4453_v10, %v13439_v50  ;;  %v4542_v45 = vshll.u32 %v13576_v32, 16  ;;  %v5130_v15 = vor.u32 %v5129_v48, %v5128_v38  ;;  %17326 = vst [vmem:[#allocation25_spill] sm:$0xff] %v13619_v54 }
 0x49c   :  { %vm4544_vm10 = vc.u32 %v4536_v30, %v4540_v43  ;;  %v4546_v24 = vadd.s32 %v4540_v43, %v4536_v30  ;;  %vm5134_vm14 = vcmp.lt.s32.totalorder %v13560_v16, 4  ;;  %v4948_v9 = vand.u32 2139095040, %v13594_v1 }
 0x49d   :  { %v4452_v59 = vsel %vm4331_vm12, %v4451_v26, %v4450_v20  ;;  %v13601_v20 = vor.u32 %v5126_v35, %v5125_v27  ;;  %v4557_v26 = vshrl.u32 %v13582_v22, 16  ;;  %v4456_v27 = vsel %vm13566_vm1, 0, %v4454_v5 }
 0x49e   :  { %v4455_v25 = vsel %vm13566_vm1, %v12837_v63, %v4452_v59  ;;  %v13609_v59 = vand.u32 31, %v4803_v7  ;;  %v4539_v10 = vmul.u32 %v4535_v34, %v13540_v4  ;;  %v13617_v60 = vsel %vm4672_vm2, %v4668_v31, 1326507024 }
 0x49f   :  { %v4457_v6 = vmul.f32 %v4455_v25, %v4455_v25  ;;  %17325 = vst [vmem:[#allocation21_spill] sm:$0xff] %v13601_v20  ;;  %v4545_v30 = vsel %vm4544_vm10, 1, %v17071_v56  ;;  %v4556_v43 = vand.u32 65535, %v13582_v22  ;;  %v13624_v38 = vmul.u32 %v4557_v26, %v13537_v62 }
 0x4a0   :  { %v13629_v57 = vsel %vm5134_vm14, %v13601_v20, 920167782  ;;  %vm4548_vm9 = vc.u32 %v4546_v24, %v4542_v45  ;;  %v13633_v31 = vsel %vm5134_vm14, %v5130_v15, 1326507024  ;;  %v13635_v5 = vshrl.u32 %v4803_v7, 5 }
 0x4a1   :  { %v4458_v17 = vmul.f32 -0.001358992, %v4457_v6  ;;  %v4465_v18 = vmul.f32 -0.00019511016, %v4457_v6  ;;  %17327 = vst [vmem:[#allocation39_spill] sm:$0xff] %v13629_v57  ;;  %v13638_v22 = vsub.s32 32, %v13609_v59  ;;  %v4547_v52 = vadd.s32 %v4545_v30, %v4539_v10  ;;  %v5580_v57 = vpop.f32.mrf.mxu2 }
 0x4a2   :  { %17328 = vst [vmem:[#allocation43_spill] sm:$0xff] %v13633_v31  ;;  %v4549_v20 = vsel %vm4548_vm9, 1, %v17071_v56  ;;  %v13643_v45 = vmul.u32 %v4556_v43, %v13540_v4  ;;  %v4562_v24 = vshll.u32 %v13624_v38, 16  ;;  %v13648_v7 = vshll.u32 %v17073_v14, %v13609_v59 }
 0x4a3   :  { %v4459_v35 = vadd.f32 0.041655596, %v4458_v17  ;;  %v4466_v50 = vadd.f32 0.008332121, %v4465_v18  ;;  %v4473_v17 = vand.u32 3, %v4456_v27  ;;  %v4949_v18 = vshrl.u32 %v4948_v9, 23 }
 0x4a4   :  { %vm4472_vm6 = vweird.f32 %v12837_v63  ;;  %v4541_v30 = vshrl.u32 %v13557_v41, 16  ;;  %v4655_v63 = vshrl.u32 %v17086_v47, %v13460_v36  ;;  %vm4671_vm1 = vcmp.lt.s32.totalorder %v13457_v39, 3 }
 0x4a5   :  { %v4460_v48 = vmul.f32 %v4459_v35, %v4457_v6  ;;  %v4467_v34 = vmul.f32 %v4466_v50, %v4457_v6  ;;  %v4558_v35 = vmul.u32 %v4556_v43, %v13537_v62  ;;  %vm4474_vm7 = vcmp.lt.s32.totalorder %v4473_v17, 2 }
 0x4a6   :  { %vm4475_vm0 = vcmp.eq.s32.totalorder %v4473_v17, 0  ;;  %v8486_v27 = vadd.s32 4294967169, %v4949_v18  ;;  %v4499_v50 = vshrl.u32 %v17088_v33, %v13447_v51  ;;  %v4551_v43 = vadd.s32 %v4549_v20, %v4547_v52  ;;  %v13664_v52 = vld [vmem:[%s16838_s10] ss:$0 sm:$0xff] }
 0x4a7   :  { %v4461_v54 = vadd.f32 -0.4999988, %v4460_v48  ;;  %v4468_v58 = vadd.f32 -0.16666654, %v4467_v34  ;;  %vm4478_vm11 = vcmp.eq.s32.totalorder %v4473_v17, 2  ;;  %v13654_v48 = vpop.f32.mrf.mxu0  ;;  %v4561_v51 = vmul.u32 %v4557_v26, %v13540_v4 }
 0x4a8   :  { %17329 = vst [vmem:[#allocation44_spill] sm:$0xff] %v13654_v48  ;;  %vm4566_vm12 = vc.u32 %v4558_v35, %v4562_v24  ;;  %v13667_v41 = vadd.f32 %v13664_v52, %v5580_v57  ;;  %v4552_v26 = vadd.s32 %v4551_v43, %v4541_v30  ;;  %vm4670_vm3 = vcmp.lt.s32.totalorder %v13457_v39, 2 }
 0x4a9   :  { %v4462_v15 = vmul.f32 %v4461_v54, %v4457_v6  ;;  %v4469_v9 = vmul.f32 %v4468_v58, %v4457_v6  ;;  %v4520_v58 = vsel %vm4518_vm15, %v13512_v8, 2102212464  ;;  %v4564_v54 = vshll.u32 %v13643_v45, 16 }
 0x4aa   :  { %v4568_v6 = vadd.s32 %v4562_v24, %v4558_v35  ;;  %17330 = vst [vmem:[#allocation52_spill] sm:$0xff] %v13667_v41  ;;  %v4519_v8 = vsel %vm4515_vm13, %v4499_v50, %v13524_v37  ;;  %v4521_v4 = vsel %vm4517_vm8, %v13510_v49, %v4520_v58  ;;  %v5678_v35 = vsel %vm204_vm4, %v13667_v41, 0.0 }
 0x4ab   :  { %v4463_v62 = vadd.f32 1.0, %v4462_v15  ;;  %v4470_v10 = vadd.f32 1.0, %v4469_v9  ;;  %v4955_v15 = vadd.s32 1, %v8486_v27  ;;  %v4567_v57 = vsel %vm4566_vm12, 1, %v17071_v56  ;;  %5679 = vadd.xlane.f32.xlu0 %v5678_v35 }
 0x4ac   :  { %vm4570_vm15 = vc.u32 %v4568_v6, %v4564_v54  ;;  %v17019_v24 = vand.u32 2147483647, %v13234_v44  ;;  %v13683_v37 = vshll.u32 %v17067_v40, %v13609_v59  ;;  %v4563_v27 = vshrl.u32 %v13624_v38, 16 }
 0x4ad   :  { %v4471_v34 = vmul.f32 %v4470_v10, %v4455_v25  ;;  %v4479_v18 = vxor.u32 2147483648, %v4463_v62  ;;  %v4543_v25 = vshrl.u32 %v13576_v32, 16  ;;  %v4569_v50 = vadd.s32 %v4567_v57, %v4561_v51 }
 0x4ae   :  { %vm4956_vm13 = vcmp.gt.s32.totalorder %v4955_v15, 0  ;;  %v4522_v10 = vsel %vm4516_vm5, %v4519_v8, %v4521_v4  ;;  %v4571_v30 = vsel %vm4570_vm15, 1, %v17071_v56  ;;  %v13699_v17 = vadd.s32 %v4568_v6, %v4564_v54 }
 0x4af   :  { %v4476_v20 = vxor.u32 2147483648, %v4471_v34  ;;  %v4480_v9 = vsel %vm4478_vm11, %v4479_v18, %v4471_v34  ;;  %v13693_v58 = vadd.s32 %v4552_v26, %v4543_v25  ;;  %v4565_v34 = vshrl.u32 %v13643_v45, 16  ;;  %v13697_v38 = vpop.f32.mrf.mxu0  ;;  %v5583_v25 = vpop.f32.mrf.mxu2 }
 0x4b0   :  { %17331 = vst [vmem:[#allocation46_spill] sm:$0xff] %v13697_v38  ;;  %v4644_v55 = vand.u32 8388607, %v17019_v24  ;;  %v4654_v18 = vshll.u32 %v17088_v33, %v13443_v28  ;;  %v4818_v51 = vshrl.u32 %v17067_v40, %v13638_v22  ;;  %v4821_v45 = vshrl.u32 %v17070_v53, %v13638_v22 }
 0x4b1   :  { %v4477_v32 = vsel %vm4475_vm0, %v4463_v62, %v4476_v20  ;;  %v4573_v62 = vadd.s32 %v4571_v30, %v4569_v50  ;;  %v4957_v8 = vsel %vm4956_vm13, %v4955_v15, 0  ;;  %v13712_v54 = vadd.f32 %v13664_v52, %v5583_v25 }
 0x4b2   :  { %v4481_v49 = vsel %vm4474_vm7, %v4477_v32, %v4480_v9  ;;  %v4576_v6 = vmul.u32 %v13515_v23, %v4522_v10  ;;  %v4645_v9 = vor.u32 8388608, %v4644_v55  ;;  %v13715_v4 = vor.u32 %v4655_v63, %v4654_v18 }
 0x4b3   :  { %v4482_v43 = vsel %vm4472_vm6, nan, %v4481_v49  ;;  %v4574_v20 = vadd.s32 %v4573_v62, %v4563_v27  ;;  %17332 = vst [vmem:[#allocation51_spill] sm:$0xff] %v13712_v54  ;;  %v4657_v35 = vshll.u32 %v17086_v47, %v13443_v28  ;;  %v4658_v57 = vshrl.u32 %v17087_v61, %v13460_v36 }
 0x4b4   :  { %8520 = vmatmul.msk.f32.gmra.mxu2 %vm204_vm4, %v4482_v43  ;;  %v4660_v15 = vshll.u32 %v17087_v61, %v13443_v28  ;;  %v5681_v32 = vsel %vm204_vm4, %v13712_v54, 0.0  ;;  %vm4578_vm5 = vc.u32 %v13693_v58, %v13699_v17  ;;  %v4661_v23 = vshrl.u32 %v17073_v14, %v13460_v36 }
 0x4b5   :  { %v4575_v26 = vadd.s32 %v4574_v20, %v4565_v34  ;;  %vm4669_vm8 = vcmp.lt.s32.totalorder %v13457_v39, 1  ;;  %v13731_v27 = vor.u32 %v4818_v51, %v13648_v7  ;;  %5682 = vadd.xlane.f32.xlu1 %v5681_v32  ;;  %v13733_v49 = vor.u32 %v4658_v57, %v4657_v35 }
 0x4b6   :  { %v4662_v28 = vor.u32 %v4661_v23, %v4660_v15  ;;  %v4683_v10 = vsel %vm4671_vm1, %v13543_v12, %v13617_v60  ;;  %v13741_v30 = vshll.u32 %v4645_v9, 8  ;;  %vm4826_vm10 = vcmp.lt.s32.totalorder %v13635_v5, 4 }
 0x4b7   :  { %v4579_v50 = vadd.s32 1, %v4575_v26  ;;  %v13744_v7 = vand.u32 31, %v4957_v8  ;;  %v4677_v34 = vsel %vm4669_vm8, %v13715_v4, %v13733_v49  ;;  %v4822_v62 = vor.u32 %v4821_v45, %v13683_v37  ;;  %v13761_v63 = vpop.f32.mrf.mxu0 }
 0x4b8   :  { %v4679_v18 = vsel %vm4671_vm1, %v4662_v28, %v13599_v19  ;;  %v4681_v60 = vsel %vm4669_vm8, %v13733_v49, %v4662_v28  ;;  %v13759_v12 = vadd.f32 %v13664_v52, %v13413_v42  ;;  %17333 = vst [vmem:[#allocation42_spill] sm:$0xff] %v13761_v63  ;;  %v13770_v19 = vsel %vm4826_vm10, %v13731_v27, 920167782 }
 0x4b9   :  { %v4580_v43 = vsel %vm4578_vm5, %v4579_v50, %v4575_v26  ;;  %v4680_v51 = vsel %vm4670_vm3, %v4677_v34, %v4679_v18  ;;  %v4684_v37 = vsel %vm4670_vm3, %v4681_v60, %v4683_v10  ;;  %v4686_v25 = vand.u32 65535, %v13741_v30 }
 0x4ba   :  { %v4581_v55 = vadd.s32 %v4580_v43, %v4576_v6  ;;  %v4687_v20 = vshrl.u32 %v13741_v30, 16  ;;  %v13775_v42 = vsub.s32 32, %v13744_v7  ;;  %v4688_v6 = vand.u32 65535, %v4684_v37 }
 0x4bb   :  { %v4689_v9 = vshrl.u32 %v4684_v37, 16  ;;  %v4711_v26 = vshrl.u32 %v4680_v51, 16  ;;  %v13779_v35 = vsel %vm4826_vm10, %v4822_v62, 1326507024  ;;  %v13783_v57 = vadd.f32 %v13664_v52, %v13573_v21 }
 0x4bc   :  { %v4582_v45 = vadd.s32 536870912, %v4581_v55  ;;  %v4710_v32 = vand.u32 65535, %v4680_v51  ;;  %v13787_v23 = vshrl.u32 %v4957_v8, 5  ;;  %v4690_v50 = vmul.u32 %v4688_v6, %v4686_v25 }
 0x4bd   :  { %v4691_v10 = vmul.u32 %v4689_v9, %v4686_v25  ;;  %v4692_v43 = vmul.u32 %v4688_v6, %v4687_v20  ;;  %v4971_v34 = vshll.u32 %v17073_v14, %v13744_v7  ;;  %v13793_v18 = vshll.u32 %v17067_v40, %v13744_v7 }
 0x4be   :  { %v13785_v15 = vshrl.u32 %v4582_v45, 30  ;;  %v4713_v60 = vmul.u32 %v4711_v26, %v4686_v25  ;;  %v4972_v21 = vshrl.u32 %v17067_v40, %v13775_v42  ;;  %v4693_v37 = vmul.u32 %v4689_v9, %v4687_v20 }
 0x4bf   :  { %v4694_v51 = vshll.u32 %v4691_v10, 16  ;;  %v4696_v8 = vshll.u32 %v4692_v43, 16  ;;  %v4653_v6 = vshrl.u32 %v17088_v33, %v13460_v36  ;;  %v4712_v24 = vmul.u32 %v4710_v32, %v4686_v25 }
 0x4c0   :  { %v4584_v62 = vshll.u32 %v13785_v15, 30  ;;  %v4714_v63 = vmul.u32 %v4710_v32, %v4687_v20  ;;  %v4674_v48 = vsel %vm4672_vm2, %v4662_v28, 2102212464  ;;  %v4715_v54 = vmul.u32 %v4711_v26, %v4687_v20 }
 0x4c1   :  { %vm4698_vm9 = vc.u32 %v4690_v50, %v4694_v51  ;;  %v4700_v38 = vadd.s32 %v4694_v51, %v4690_v50  ;;  %v4716_v40 = vshll.u32 %v4713_v60, 16  ;;  %v13811_v25 = vshrl.u32 %v17070_v53, %v13775_v42 }
 0x4c2   :  { %v13798_v45 = vsub.s32 %v4581_v55, %v4584_v62  ;;  %v4699_v9 = vsel %vm4698_vm9, 1, %v17071_v56  ;;  %v13807_v55 = vpop.f32.mrf.mxu0  ;;  %v4695_v62 = vshrl.u32 %v4691_v10, 16  ;;  %v4718_v36 = vshll.u32 %v4714_v63, 16 }
 0x4c3   :  { %17334 = vst [vmem:[#allocation41_spill] sm:$0xff] %v13807_v55  ;;  %v4701_v31 = vadd.s32 %v4699_v9, %v4693_v37  ;;  %vm4702_vm7 = vc.u32 %v4700_v38, %v4696_v8  ;;  %vm4720_vm2 = vc.u32 %v4712_v24, %v4716_v40  ;;  %v4722_v51 = vadd.s32 %v4716_v40, %v4712_v24 }
 0x4c4   :  { %vm4586_vm6 = vcmp.lt.s32.totalorder %v13798_v45, 0  ;;  %v4587_v41 = vsub.s32 0, %v13798_v45  ;;  %v4703_v20 = vsel %vm4702_vm7, 1, %v17071_v56  ;;  %v4721_v50 = vsel %vm4720_vm2, 1, %v17071_v56 }
 0x4c5   :  { %v4705_v32 = vadd.s32 %v4703_v20, %v4701_v31  ;;  %vm4980_vm0 = vcmp.lt.s32.totalorder %v13787_v23, 4  ;;  %v4673_v38 = vsel %vm4669_vm8, %v4653_v6, %v13715_v4  ;;  %v4675_v10 = vsel %vm4671_vm1, %v13733_v49, %v4674_v48 }
 0x4c6   :  { %v4588_v28 = vsel %vm4586_vm6, %v4587_v41, %v13798_v45  ;;  %v4723_v37 = vadd.s32 %v4721_v50, %v4715_v54  ;;  %v4697_v8 = vshrl.u32 %v4692_v43, 16  ;;  %vm4724_vm11 = vc.u32 %v4722_v51, %v4718_v36 }
 0x4c7   :  { %v4589_v26 = vclz %v4588_v28  ;;  %v4706_v9 = vadd.s32 %v4705_v32, %v4695_v62  ;;  %v13823_v28 = vor.u32 %v4972_v21, %v4971_v34  ;;  %v4976_v40 = vor.u32 %v13811_v25, %v13793_v18 }
 0x4c8   :  { %v4717_v31 = vshrl.u32 %v4713_v60, 16  ;;  %v4725_v24 = vsel %vm4724_vm11, 1, %v17071_v56  ;;  %v4577_v4 = vadd.s32 %v13699_v17, %v13693_v58  ;;  %v4676_v48 = vsel %vm4670_vm3, %v4673_v38, %v4675_v10 }
 0x4c9   :  { %v8478_v41 = vadd.s32 4294967294, %v4589_v26  ;;  %v17023_v54 = vand.u32 2147483647, %v13455_v3  ;;  %v4719_v43 = vshrl.u32 %v4714_v63, 16  ;;  %v13833_v6 = vadd.s32 %v4722_v51, %v4718_v36 }
 0x4ca   :  { %v4727_v34 = vadd.s32 %v4725_v24, %v4723_v37  ;;  %v13836_v62 = vadd.s32 %v4706_v9, %v4697_v8  ;;  %v4811_v58 = vshll.u32 %v17086_v47, %v13609_v59  ;;  %v4812_v39 = vshrl.u32 %v17087_v61, %v13638_v22  ;;  %v13849_v36 = vpop.f32.mrf.mxu0 }
 0x4cb   :  { %vm8479_vm12 = vcmp.lt.s32.totalorder %v8478_v41, 0  ;;  %v4814_v17 = vshll.u32 %v17087_v61, %v13609_v59  ;;  %v13847_v63 = vsel %vm4980_vm0, %v13823_v28, 920167782  ;;  %v4798_v26 = vand.u32 8388607, %v17023_v54 }
 0x4cc   :  { %v4592_v49 = vsel %vm8479_vm12, 0, %v8478_v41  ;;  %v4728_v25 = vadd.s32 %v4727_v34, %v4717_v31  ;;  %v4808_v50 = vshll.u32 %v17088_v33, %v13609_v59  ;;  %v4809_v51 = vshrl.u32 %v17086_v47, %v13638_v22 }
 0x4cd   :  { %v4593_v21 = vsub.s32 32, %v4592_v49  ;;  %v4594_v18 = vshll.u32 %v13798_v45, %v4592_v49  ;;  %v4597_v60 = vsub.s32 4294967266, %v4592_v49  ;;  %v4815_v38 = vshrl.u32 %v17073_v14, %v13638_v22  ;;  %v5586_v49 = vpop.f32.mrf.mxu2 }
 0x4ce   :  { %v4729_v32 = vadd.s32 %v4728_v25, %v4719_v43  ;;  %v4730_v41 = vmul.u32 %v13741_v30, %v4676_v48  ;;  %vm4732_vm15 = vc.u32 %v13836_v62, %v13833_v6  ;;  %v4607_v8 = vsub.s32 4, %v13785_v15 }
 0x4cf   :  { %v4595_v45 = vshrl.u32 %v4577_v4, %v4593_v21  ;;  %v4598_v20 = vadd.s32 127, %v4597_v60  ;;  %v4813_v31 = vor.u32 %v4812_v39, %v4811_v58  ;;  %v4816_v24 = vor.u32 %v4815_v38, %v4814_v17 }
 0x4d0   :  { %v4733_v9 = vadd.s32 1, %v4729_v32  ;;  %v4799_v43 = vor.u32 8388608, %v4798_v26  ;;  %vm4823_vm13 = vcmp.lt.s32.totalorder %v13635_v5, 1  ;;  %v13865_v34 = vadd.f32 %v13664_v52, %v5586_v49 }
 0x4d1   :  { %v4596_v10 = vor.u32 %v4595_v45, %v4594_v18  ;;  %v4599_v37 = vshll.u32 %v4598_v20, 23  ;;  %v4810_v18 = vor.u32 %v4809_v51, %v4808_v50  ;;  %vm4825_vm5 = vcmp.lt.s32.totalorder %v13635_v5, 3 }
 0x4d2   :  { %v4734_v21 = vsel %vm4732_vm15, %v4733_v9, %v4729_v32  ;;  %v13870_v30 = vsel %vm4980_vm0, %v4976_v40, 1326507024  ;;  %vm4824_vm8 = vcmp.lt.s32.totalorder %v13635_v5, 2  ;;  %v17335_v25 = vand.u32 2147483647, %v13283_v11 }
 0x4d3   :  { %v4600_v4 = vor.u32 4788187, %v4599_v37  ;;  %v4603_v59 = vcvt.s32.f32 %v4596_v10  ;;  %v4735_v60 = vadd.s32 %v4734_v21, %v4730_v41  ;;  %vm4485_vm3 = vcmp.lt.s32.totalorder %v13283_v11, 0 }
 0x4d4   :  { %vm13875_vm1 = vcmp.le.f32.partialorder %v17335_v25, 0.7853982  ;;  %v5684_v39 = vsel %vm204_vm4, %v13865_v34, 0.0  ;;  %v4835_v17 = vsel %vm4823_vm13, %v4813_v31, %v4816_v24  ;;  %v4608_v45 = vsel %vm4485_vm3, %v4607_v8, %v13785_v15  ;;  %v13900_v15 = vpop.f32.mrf.mxu0 }
 0x4d5   :  { %v4601_v48 = vand.u32 2147483647, %v4600_v4  ;;  %5685 = vadd.xlane.f32.xlu0 %v5684_v39  ;;  %v4736_v20 = vadd.s32 536870912, %v4735_v60  ;;  %v4837_v26 = vsel %vm4825_vm5, %v13731_v27, %v13779_v35  ;;  %v4831_v32 = vsel %vm4823_vm13, %v4810_v18, %v4813_v31  ;;  %17338 = vst [vmem:[#allocation47_spill] sm:$0xff] %v13900_v15 }
 0x4d6   :  { %v4833_v50 = vsel %vm4825_vm5, %v4816_v24, %v13770_v19  ;;  %v4838_v51 = vsel %vm4824_vm8, %v4835_v17, %v4837_v26  ;;  %v13898_v38 = vshll.u32 %v4799_v43, 8  ;;  %v4610_v27 = vsel %vm13875_vm1, 0, %v4608_v45 }
 0x4d7   :  { %v4604_v40 = vmul.f32 %v4603_v59, %v4601_v48  ;;  %v13902_v37 = vshrl.u32 %v4736_v20, 30  ;;  %v4842_v41 = vand.u32 65535, %v4838_v51  ;;  %v4843_v8 = vshrl.u32 %v4838_v51, 16 }
 0x4d8   :  { %v4807_v35 = vshrl.u32 %v17088_v33, %v13638_v22  ;;  %v4840_v19 = vand.u32 65535, %v13898_v38  ;;  %v13910_v9 = vshrl.u32 %v13898_v38, 16  ;;  %v5636_v49 = vsel %vm204_vm4, %v13759_v12, 0.0 }
 0x4d9   :  { %v4605_v10 = vxor.u32 2147483648, %v4604_v40  ;;  %v4738_v59 = vshll.u32 %v13902_v37, 30  ;;  %v13919_v43 = vsel %vm4824_vm8, %v4831_v32, %v4833_v50  ;;  %v13933_v17 = vand.u32 3, %v4610_v27 }
 0x4da   :  { %v4844_v21 = vmul.u32 %v4842_v41, %v4840_v19  ;;  %v13926_v48 = vmul.u32 %v4843_v8, %v4840_v19  ;;  %v13929_v25 = vmul.u32 %v4842_v41, %v13910_v9  ;;  %v4828_v45 = vsel %vm4826_vm10, %v4816_v24, 2102212464 }
 0x4db   :  { %v4606_v4 = vsel %vm4485_vm3, %v4605_v10, %v4604_v40  ;;  %v13935_v40 = vsub.s32 %v4735_v60, %v4738_v59  ;;  %v4827_v58 = vsel %vm4823_vm13, %v4807_v35, %v4810_v18  ;;  %v4865_v32 = vshrl.u32 %v13919_v43, 16 }
 0x4dc   :  { %v13924_v22 = vsel %vm13875_vm1, %v13283_v11, %v4606_v4  ;;  %v4848_v20 = vshll.u32 %v13926_v48, 16  ;;  %v4850_v26 = vshll.u32 %v13929_v25, 16  ;;  %v4829_v60 = vsel %vm4825_vm5, %v4813_v31, %v4828_v45  ;;  %v13956_v45 = vpop.f32.mrf.mxu0 }
 0x4dd   :  { %v4611_v39 = vmul.f32 %v13924_v22, %v13924_v22  ;;  %vm4740_vm9 = vcmp.lt.s32.totalorder %v13935_v40, 0  ;;  %v4741_v10 = vsub.s32 0, %v13935_v40  ;;  %5637 = vadd.xlane.f32.xlu0 %v5636_v49  ;;  %v4864_v18 = vand.u32 65535, %v13919_v43 }
 0x4de   :  { %vm4852_vm10 = vc.u32 %v4844_v21, %v4848_v20  ;;  %v4854_v24 = vadd.s32 %v4848_v20, %v4844_v21  ;;  %v4847_v4 = vmul.u32 %v4843_v8, %v13910_v9  ;;  %v5648_v54 = vsel %vm204_vm4, %v13783_v57, 0.0 }
 0x4df   :  { %v4612_v50 = vmul.f32 -0.001358992, %v4611_v39  ;;  %v4619_v51 = vmul.f32 -0.00019511016, %v4611_v39  ;;  %v4742_v35 = vsel %vm4740_vm9, %v4741_v10, %v13935_v40  ;;  %v4853_v15 = vsel %vm4852_vm10, 1, %v17071_v56 }
 0x4e0   :  { %v4743_v59 = vclz %v4742_v35  ;;  %v13954_v49 = vmul.u32 %v4865_v32, %v4840_v19  ;;  %vm4639_vm6 = vcmp.lt.s32.totalorder %v13234_v44, 0  ;;  %vm4856_vm7 = vc.u32 %v4854_v24, %v4850_v26 }
 0x4e1   :  { %v4613_v41 = vadd.f32 0.041655596, %v4612_v50  ;;  %v4620_v27 = vadd.f32 0.008332121, %v4619_v51  ;;  %vm4629_vm2 = vcmp.eq.s32.totalorder %v13933_v17, 0  ;;  %vm4632_vm11 = vcmp.eq.s32.totalorder %v13933_v17, 2 }
 0x4e2   :  { %v4731_v8 = vadd.s32 %v13833_v6, %v13836_v62  ;;  %v8481_v43 = vadd.s32 4294967294, %v4743_v59  ;;  %v13965_v21 = vsel %vm4824_vm8, %v4827_v58, %v4829_v60  ;;  %vm4628_vm12 = vcmp.lt.s32.totalorder %v13933_v17, 2 }
 0x4e3   :  { %v4614_v55 = vmul.f32 %v4613_v41, %v4611_v39  ;;  %v4621_v31 = vmul.f32 %v4620_v27, %v4611_v39  ;;  %v4855_v51 = vadd.s32 %v4853_v15, %v4847_v4  ;;  %v4866_v10 = vmul.u32 %v4864_v18, %v4840_v19 }
 0x4e4   :  { %vm4626_vm15 = vweird.f32 %v13283_v11  ;;  %vm8482_vm13 = vcmp.lt.s32.totalorder %v8481_v43, 0  ;;  %v4857_v26 = vsel %vm4856_vm7, 1, %v17071_v56  ;;  %v13971_v24 = vmul.u32 %v4864_v18, %v13910_v9 }
 0x4e5   :  { %v4615_v20 = vadd.f32 -0.4999988, %v4614_v55  ;;  %v4622_v50 = vadd.f32 -0.16666654, %v4621_v31  ;;  %v4870_v6 = vshll.u32 %v13954_v49, 16  ;;  %v4746_v58 = vsel %vm8482_vm13, 0, %v8481_v43  ;;  %5649 = vadd.xlane.f32.xlu0 %v5648_v54 }
 0x4e6   :  { %v4761_v55 = vsub.s32 4, %v13902_v37  ;;  %v4747_v60 = vsub.s32 32, %v4746_v58  ;;  %v4748_v15 = vshll.u32 %v13935_v40, %v4746_v58  ;;  %v4751_v19 = vsub.s32 4294967266, %v4746_v58 }
 0x4e7   :  { %v4616_v62 = vmul.f32 %v4615_v20, %v4611_v39  ;;  %v4623_v5 = vmul.f32 %v4622_v50, %v4611_v39  ;;  %v4849_v41 = vshrl.u32 %v13926_v48, 16  ;;  %v17339_v4 = vand.u32 2147483647, %v13234_v44 }
 0x4e8   :  { %v4859_v59 = vadd.s32 %v4857_v26, %v4855_v51  ;;  %v4869_v39 = vmul.u32 %v4865_v32, %v13910_v9  ;;  %v4749_v31 = vshrl.u32 %v4731_v8, %v4747_v60  ;;  %v4752_v43 = vadd.s32 127, %v4751_v19  ;;  %v5577_v51 = vpop.f32.mrf.mxu0 }
 0x4e9   :  { %v4617_v27 = vadd.f32 1.0, %v4616_v62  ;;  %v4624_v35 = vadd.f32 1.0, %v4623_v5  ;;  %vm13979_vm5 = vcmp.le.f32.partialorder %v17339_v4, 0.7853982  ;;  %v4872_v54 = vshll.u32 %v13971_v24, 16 }
 0x4ea   :  { %vm4874_vm8 = vc.u32 %v4866_v10, %v4870_v6  ;;  %v4876_v50 = vadd.s32 %v4870_v6, %v4866_v10  ;;  %v4750_v62 = vor.u32 %v4749_v31, %v4748_v15  ;;  %v4753_v5 = vshll.u32 %v4752_v43, 23 }
 0x4eb   :  { %v4625_v40 = vmul.f32 %v4624_v35, %v13924_v22  ;;  %v4633_v20 = vxor.u32 2147483648, %v4617_v27  ;;  %v4875_v48 = vsel %vm4874_vm8, 1, %v17071_v56  ;;  %v13990_v58 = vsel %vm4639_vm6, %v4761_v55, %v13902_v37  ;;  %v5589_v22 = vpop.f32.mrf.mxu2 }
 0x4ec   :  { %v4884_v9 = vmul.u32 %v13898_v38, %v13965_v21  ;;  %v4851_v26 = vshrl.u32 %v13929_v25, 16  ;;  %v4860_v60 = vadd.s32 %v4859_v59, %v4849_v41  ;;  %v4754_v10 = vor.u32 4788187, %v4753_v5 }
 0x4ed   :  { %v4630_v32 = vxor.u32 2147483648, %v4625_v40  ;;  %v4634_v8 = vsel %vm4632_vm11, %v4633_v20, %v4625_v40  ;;  %v4757_v6 = vcvt.s32.f32 %v4750_v62  ;;  %v13998_v15 = vadd.f32 %v13664_v52, %v5577_v51 }
 0x4ee   :  { %v4877_v19 = vadd.s32 %v4875_v48, %v4869_v39  ;;  %v4871_v55 = vshrl.u32 %v13954_v49, 16  ;;  %vm4878_vm1 = vc.u32 %v4876_v50, %v4872_v54  ;;  %v4945_v35 = vand.u32 2147483647, %v13594_v1 }
 0x4ef   :  { %v4631_v37 = vsel %vm4629_vm2, %v4617_v27, %v4630_v32  ;;  %v4755_v31 = vand.u32 2147483647, %v4754_v10  ;;  %v14007_v25 = vadd.f32 %v13664_v52, %v5589_v22  ;;  %v5675_v41 = vsel %vm204_vm4, %v13998_v15, 0.0 }
 0x4f0   :  { %v4635_v4 = vsel %vm4628_vm12, %v4631_v37, %v4634_v8  ;;  %5676 = vadd.xlane.f32.xlu2 %v5675_v41  ;;  %v14013_v27 = vadd.s32 %v4860_v60, %v4851_v26  ;;  %v4879_v49 = vsel %vm4878_vm1, 1, %v17071_v56  ;;  %v14016_v39 = vadd.s32 %v4876_v50, %v4872_v54 }
 0x4f1   :  { %v4636_v59 = vsel %vm4626_vm15, nan, %v4635_v4  ;;  %v4758_v17 = vmul.f32 %v4757_v6, %v4755_v31  ;;  %v4764_v43 = vsel %vm13979_vm5, 0, %v13990_v58  ;;  %v4873_v40 = vshrl.u32 %v13971_v24, 16 }
 0x4f2   :  { %8521 = vmatmul.msk.f32.gmra.mxu2 %vm204_vm4, %v4636_v59  ;;  %v4881_v20 = vadd.s32 %v4879_v49, %v4877_v19  ;;  %v4952_v11 = vand.u32 8388607, %v4945_v35  ;;  %v4962_v48 = vshll.u32 %v17088_v33, %v13744_v7  ;;  %v4963_v54 = vshrl.u32 %v17086_v47, %v13775_v42 }
 0x4f3   :  { %v4965_v50 = vshll.u32 %v17086_v47, %v13744_v7  ;;  %v4759_v62 = vxor.u32 2147483648, %v4758_v17  ;;  %v5687_v5 = vsel %vm204_vm4, %v14007_v25, 0.0  ;;  %v4966_v24 = vshrl.u32 %v17087_v61, %v13775_v42  ;;  %v5592_v32 = vpop.f32.mrf.mxu2 }
 0x4f4   :  { %v4882_v58 = vadd.s32 %v4881_v20, %v4871_v55  ;;  %vm4886_vm3 = vc.u32 %v14013_v27, %v14016_v39  ;;  %v4968_v8 = vshll.u32 %v17087_v61, %v13744_v7  ;;  %v4969_v51 = vshrl.u32 %v17073_v14, %v13775_v42 }
 0x4f5   :  { %vm4977_vm9 = vcmp.lt.s32.totalorder %v13787_v23, 1  ;;  %v4760_v22 = vsel %vm4639_vm6, %v4759_v62, %v4758_v17  ;;  %v14045_v26 = vadd.f32 %v13664_v52, %v5592_v32  ;;  %v14047_v10 = vor.u32 %v4966_v24, %v4965_v50 }
 0x4f6   :  { %v4883_v60 = vadd.s32 %v4882_v58, %v4873_v40  ;;  %v14052_v6 = vsel %vm13979_vm5, %v13234_v44, %v4760_v22  ;;  %v4953_v7 = vor.u32 8388608, %v4952_v11  ;;  %v14054_v19 = vor.u32 %v4963_v54, %v4962_v48 }
 0x4f7   :  { %v14056_v37 = vor.u32 %v4969_v51, %v4968_v8  ;;  %v4765_v55 = vmul.f32 %v14052_v6, %v14052_v6  ;;  %v5690_v4 = vsel %vm204_vm4, %v14045_v26, 0.0  ;;  %vm4979_vm10 = vcmp.lt.s32.totalorder %v13787_v23, 3 }
 0x4f8   :  { %v4887_v31 = vadd.s32 1, %v4883_v60  ;;  %v14065_v41 = vadd.f32 %v13664_v52, %v13437_v46  ;;  %v14069_v18 = vadd.f32 %v13664_v52, %v13479_v0  ;;  %5691 = vadd.xlane.f32.xlu1 %v5690_v4  ;;  %5688 = vadd.xlane.f32.xlu2 %v5687_v5  ;;  %vm4978_vm6 = vcmp.lt.s32.totalorder %v13787_v23, 2 }
 0x4f9   :  { %v4989_v59 = vsel %vm4977_vm9, %v14047_v10, %v14056_v37  ;;  %v4766_v49 = vmul.f32 -0.001358992, %v4765_v55  ;;  %v4773_v17 = vmul.f32 -0.00019511016, %v4765_v55  ;;  %v14076_v40 = vand.u32 3, %v4764_v43 }
 0x4fa   :  { %v4888_v46 = vsel %vm4886_vm3, %v4887_v31, %v4883_v60  ;;  %v4985_v20 = vsel %vm4977_vm9, %v14054_v19, %v14047_v10  ;;  %v4987_v11 = vsel %vm4979_vm10, %v14056_v37, %v13847_v63  ;;  %v4991_v43 = vsel %vm4979_vm10, %v13823_v28, %v13870_v30 }
 0x4fb   :  { %v4889_v0 = vadd.s32 %v4888_v46, %v4884_v9  ;;  %v4767_v48 = vadd.f32 0.041655596, %v4766_v49  ;;  %v4774_v54 = vadd.f32 0.008332121, %v4773_v17  ;;  %v4992_v38 = vsel %vm4978_vm6, %v4989_v59, %v4991_v43 }
 0x4fc   :  { %v14098_v21 = vshll.u32 %v4953_v7, 8  ;;  %v5639_v50 = vsel %vm204_vm4, %v14065_v41, 0.0  ;;  %v4996_v62 = vand.u32 65535, %v4992_v38  ;;  %v4997_v5 = vshrl.u32 %v4992_v38, 16 }
 0x4fd   :  { %v4890_v9 = vadd.s32 536870912, %v4889_v0  ;;  %v4768_v58 = vmul.f32 %v4767_v48, %v4765_v55  ;;  %v4775_v63 = vmul.f32 %v4774_v54, %v4765_v55  ;;  %vm4783_vm7 = vcmp.eq.s32.totalorder %v14076_v40, 0 }
 0x4fe   :  { %v4994_v24 = vand.u32 65535, %v14098_v21  ;;  %v4995_v32 = vshrl.u32 %v14098_v21, 16  ;;  %vm4786_vm2 = vcmp.eq.s32.totalorder %v14076_v40, 2  ;;  %v4988_v30 = vsel %vm4978_vm6, %v4985_v20, %v4987_v11 }
 0x4ff   :  { %v14106_v28 = vshrl.u32 %v4890_v9, 30  ;;  %v4769_v8 = vadd.f32 -0.4999988, %v4768_v58  ;;  %v4776_v51 = vadd.f32 -0.16666654, %v4775_v63  ;;  %vm4782_vm11 = vcmp.lt.s32.totalorder %v14076_v40, 2 }
 0x500   :  { %v4998_v22 = vmul.u32 %v4996_v62, %v4994_v24  ;;  %v4999_v60 = vmul.u32 %v4997_v5, %v4994_v24  ;;  %vm4780_vm12 = vweird.f32 %v13234_v44  ;;  %v14114_v7 = vadd.s32 %v14016_v39, %v14013_v27  ;;  %5640 = vadd.xlane.f32.xlu2 %v5639_v50 }
 0x501   :  { %v4892_v4 = vshll.u32 %v14106_v28, 30  ;;  %v14117_v31 = vmul.u32 %v4996_v62, %v4995_v32  ;;  %v5018_v59 = vand.u32 65535, %v4988_v30  ;;  %v4770_v49 = vmul.f32 %v4769_v8, %v4765_v55 }
 0x502   :  { %v4777_v17 = vmul.f32 %v4776_v51, %v4765_v55  ;;  %v5001_v46 = vmul.u32 %v4997_v5, %v4995_v32  ;;  %v5002_v20 = vshll.u32 %v4999_v60, 16  ;;  %v4961_v43 = vshrl.u32 %v17088_v33, %v13775_v42 }
 0x503   :  { %v14119_v11 = vsub.s32 %v4889_v0, %v4892_v4  ;;  %v5004_v48 = vshll.u32 %v14117_v31, 16  ;;  %v5019_v54 = vshrl.u32 %v4988_v30, 16  ;;  %v4771_v27 = vadd.f32 1.0, %v4770_v49 }
 0x504   :  { %v4778_v39 = vadd.f32 1.0, %v4777_v17  ;;  %vm5006_vm15 = vc.u32 %v4998_v22, %v5002_v20  ;;  %v5642_v38 = vsel %vm204_vm4, %v14069_v18, 0.0  ;;  %v5008_v0 = vadd.s32 %v5002_v20, %v4998_v22 }
 0x505   :  { %vm4894_vm13 = vcmp.lt.s32.totalorder %v14119_v11, 0  ;;  %v4895_v55 = vsub.s32 0, %v14119_v11  ;;  %v5007_v9 = vsel %vm5006_vm15, 1, %v17071_v56  ;;  %v4787_v62 = vxor.u32 2147483648, %v4771_v27 }
 0x506   :  { %v4779_v50 = vmul.f32 %v4778_v39, %v14052_v6  ;;  %v5009_v42 = vadd.s32 %v5007_v9, %v5001_v46  ;;  %v5020_v5 = vmul.u32 %v5018_v59, %v4994_v24  ;;  %vm5010_vm5 = vc.u32 %v5008_v0, %v5004_v48 }
 0x507   :  { %v4896_v58 = vsel %vm4894_vm13, %v4895_v55, %v14119_v11  ;;  %v5021_v63 = vmul.u32 %v5019_v54, %v4994_v24  ;;  %v5022_v30 = vmul.u32 %v5018_v59, %v4995_v32  ;;  %v5011_v49 = vsel %vm5010_vm5, 1, %v17071_v56 }
 0x508   :  { %v4784_v8 = vxor.u32 2147483648, %v4779_v50  ;;  %v4788_v51 = vsel %vm4786_vm2, %v4787_v62, %v4779_v50  ;;  %v4897_v4 = vclz %v4896_v58  ;;  %v4982_v22 = vsel %vm4980_vm0, %v14056_v37, 2102212464  ;;  %5643 = vadd.xlane.f32.xlu2 %v5642_v38 }
 0x509   :  { %v5003_v6 = vshrl.u32 %v4999_v60, 16  ;;  %v5013_v17 = vadd.s32 %v5011_v49, %v5009_v42  ;;  %v5024_v46 = vshll.u32 %v5021_v63, 16  ;;  %v4981_v59 = vsel %vm4977_vm9, %v4961_v43, %v14054_v19 }
 0x50a   :  { %v4785_v20 = vsel %vm4783_vm7, %v4771_v27, %v4784_v8  ;;  %v8484_v24 = vadd.s32 4294967294, %v4897_v4  ;;  %v5026_v48 = vshll.u32 %v5022_v30, 16  ;;  %v5023_v55 = vmul.u32 %v5019_v54, %v4995_v32 }
 0x50b   :  { %v4789_v39 = vsel %vm4782_vm11, %v4785_v20, %v4788_v51  ;;  %vm5028_vm8 = vc.u32 %v5020_v5, %v5024_v46  ;;  %v5030_v9 = vadd.s32 %v5024_v46, %v5020_v5  ;;  %v4983_v60 = vsel %vm4979_vm10, %v14047_v10, %v4982_v22 }
 0x50c   :  { %v4790_v37 = vsel %vm4780_vm12, nan, %v4789_v39  ;;  %vm8485_vm0 = vcmp.lt.s32.totalorder %v8484_v24, 0  ;;  %v5005_v27 = vshrl.u32 %v14117_v31, 16  ;;  %v5014_v43 = vadd.s32 %v5013_v17, %v5003_v6 }
 0x50d   :  { %8522 = vmatmul.msk.f32.gmra.mxu2 %vm204_vm4, %v4790_v37  ;;  %v4900_v19 = vsel %vm8485_vm0, 0, %v8484_v24  ;;  %v5029_v40 = vsel %vm5028_vm8, 1, %v17071_v56  ;;  %vm5032_vm1 = vc.u32 %v5030_v9, %v5026_v48  ;;  %v9111_v32 = vmov 64.0  }
 0x50e   :  { %8667 = vrcp.f32 %v9111_v32  ;;  %v4901_v54 = vsub.s32 32, %v4900_v19  ;;  %v4902_v44 = vshll.u32 %v14119_v11, %v4900_v19  ;;  %v4905_v38 = vsub.s32 4294967266, %v4900_v19 }
 0x50f   :  { %vm4793_vm3 = vcmp.lt.s32.totalorder %v13455_v3, 0  ;;  %v5025_v0 = vshrl.u32 %v5021_v63, 16  ;;  %v5031_v50 = vadd.s32 %v5029_v40, %v5023_v55  ;;  %v5033_v10 = vsel %vm5032_vm1, 1, %v17071_v56 }
 0x510   :  { %v4903_v31 = vshrl.u32 %v14114_v7, %v4901_v54  ;;  %v4906_v62 = vadd.s32 127, %v4905_v38  ;;  %v4984_v42 = vsel %vm4978_vm6, %v4981_v59, %v4983_v60  ;;  %v5099_v5 = vand.u32 2147483647, %v13370_v29  ;;  %v5595_v7 = vpop.f32.mrf.mxu2 }
 0x511   :  { %v14159_v58 = vadd.s32 %v5014_v43, %v5005_v27  ;;  %v5027_v8 = vshrl.u32 %v5022_v30, 16  ;;  %v14161_v51 = vadd.s32 %v5030_v9, %v5026_v48  ;;  %v5035_v11 = vadd.s32 %v5033_v10, %v5031_v50  ;;  %v442_v43 = vpop.permute.xlu1 %441 }
 0x512   :  { %v4904_v4 = vor.u32 %v4903_v31, %v4902_v44  ;;  %v4907_v49 = vshll.u32 %v4906_v62, 23  ;;  %v4915_v63 = vsub.s32 4, %v14106_v28  ;;  %v5116_v22 = vshll.u32 %v17088_v33, %v13487_v13  ;;  %v8934_v31 = vld [vmem:[%s17040_s0] ss:$0 sm:$0xff] }
 0x513   :  { %v5036_v6 = vadd.s32 %v5035_v11, %v5025_v0  ;;  %v5106_v23 = vand.u32 8388607, %v5099_v5  ;;  %v5117_v17 = vshrl.u32 %v17086_v47, %v13522_v2  ;;  %v5119_v30 = vshll.u32 %v17086_v47, %v13487_v13  ;;  %v17342_v0 = vld [vmem:[#allocation43_spill] sm:$0xff] }
 0x514   :  { %v14172_v46 = vpop.eup %8667  ;;  %v4908_v20 = vor.u32 4788187, %v4907_v49  ;;  %v4911_v24 = vcvt.s32.f32 %v4904_v4  ;;  %v14175_v59 = vadd.f32 %v13664_v52, %v5595_v7  ;;  %v5038_v48 = vmul.u32 %v14098_v21, %v4984_v42 }
 0x515   :  { %v5037_v39 = vadd.s32 %v5036_v6, %v5027_v8  ;;  %vm5040_vm9 = vc.u32 %v14159_v58, %v14161_v51  ;;  %v5107_v55 = vor.u32 8388608, %v5106_v23  ;;  %v5120_v9 = vshrl.u32 %v17087_v61, %v13522_v2 }
 0x516   :  { %v4909_v37 = vand.u32 2147483647, %v4908_v20  ;;  %v5693_v60 = vsel %vm204_vm4, %v14175_v59, 0.0  ;;  %v5122_v27 = vshll.u32 %v17087_v61, %v13487_v13  ;;  %v5123_v19 = vshrl.u32 %v17073_v14, %v13522_v2 }
 0x517   :  { %v4916_v21 = vsel %vm4793_vm3, %v4915_v63, %v14106_v28  ;;  %5694 = vadd.xlane.f32.xlu1 %v5693_v60  ;;  %v5041_v40 = vadd.s32 1, %v5037_v39  ;;  %v14191_v32 = vor.u32 %v5117_v17, %v5116_v22  ;;  %v14193_v54 = vor.u32 %v5120_v9, %v5119_v30  ;;  %v17343_v28 = vld [vmem:[#allocation21_spill] sm:$0xff]  ;;  %v17347_v63 = vld [vmem:[#allocation39_spill] sm:$0xff] }
 0x518   :  { %v4912_v44 = vmul.f32 %v4911_v24, %v4909_v37  ;;  %v5124_v38 = vor.u32 %v5123_v19, %v5122_v27  ;;  %vm5131_vm10 = vcmp.lt.s32.totalorder %v13560_v16, 1  ;;  %vm5133_vm6 = vcmp.lt.s32.totalorder %v13560_v16, 3  ;;  %v17348_v9 = vld [vmem:[#allocation49_spill] sm:$0xff] }
 0x519   :  { %v5042_v13 = vsel %vm5040_vm9, %v5041_v40, %v5037_v39  ;;  %vm5132_vm7 = vcmp.lt.s32.totalorder %v13560_v16, 2  ;;  %v5145_v50 = vsel %vm5133_vm6, %v17343_v28, %v17342_v0  ;;  %v14205_v10 = vshll.u32 %v5107_v55, 8 }
 0x51a   :  { %v14210_v62 = vmul.f32 %v8934_v31, %v442_v43  ;;  %v17344_v42 = vand.u32 2147483647, %v13455_v3  ;;  %v4913_v11 = vxor.u32 2147483648, %v4912_v44  ;;  %v5043_v4 = vadd.s32 %v5042_v13, %v5038_v48 }
 0x51b   :  { %v5139_v49 = vsel %vm5131_vm10, %v14191_v32, %v14193_v54  ;;  %v5141_v22 = vsel %vm5133_vm6, %v5124_v38, %v17347_v63  ;;  %v5143_v7 = vsel %vm5131_vm10, %v14193_v54, %v5124_v38  ;;  %v5148_v6 = vand.u32 65535, %v14205_v10 }
 0x51c   :  { %vm14214_vm2 = vcmp.le.f32.partialorder %v17344_v42, 0.7853982  ;;  %v4914_v23 = vsel %vm4793_vm3, %v4913_v11, %v4912_v44  ;;  %v5044_v30 = vadd.s32 536870912, %v5043_v4  ;;  %v5146_v20 = vsel %vm5132_vm7, %v5143_v7, %v5145_v50 }
 0x51d   :  { %v4918_v17 = vsel %vm14214_vm2, 0, %v4916_v21  ;;  %v14238_v24 = vsel %vm14214_vm2, %v13455_v3, %v4914_v23  ;;  %v5149_v48 = vshrl.u32 %v14205_v10, 16  ;;  %v5150_v39 = vand.u32 65535, %v5146_v20 }
 0x51e   :  { %v5151_v55 = vshrl.u32 %v5146_v20, 16  ;;  %v14243_v37 = vadd.f32 %v13664_v52, %v17348_v9  ;;  %v4919_v60 = vmul.f32 %v14238_v24, %v14238_v24  ;;  %v14247_v27 = vshrl.u32 %v5044_v30, 30 }
 0x51f   :  { %v5142_v19 = vsel %vm5132_vm7, %v5139_v49, %v5141_v22  ;;  %v5256_v43 = vand.u32 2139095040, %v14210_v62  ;;  %v5152_v21 = vmul.u32 %v5150_v39, %v5148_v6  ;;  %v14254_v44 = vmul.u32 %v5150_v39, %v5149_v48 }
 0x520   :  { %v14252_v40 = vmul.u32 %v5151_v55, %v5148_v6  ;;  %v4920_v13 = vmul.f32 -0.001358992, %v4919_v60  ;;  %v4927_v0 = vmul.f32 -0.00019511016, %v4919_v60  ;;  %v14256_v28 = vand.u32 3, %v4918_v17 }
 0x521   :  { %v5046_v52 = vshll.u32 %v14247_v27, 30  ;;  %v5158_v31 = vshll.u32 %v14254_v44, 16  ;;  %v5172_v42 = vand.u32 65535, %v5142_v19  ;;  %v5173_v8 = vshrl.u32 %v5142_v19, 16 }
 0x522   :  { %v5156_v50 = vshll.u32 %v14252_v40, 16  ;;  %v4921_v11 = vadd.f32 0.041655596, %v4920_v13  ;;  %v4928_v49 = vadd.f32 0.008332121, %v4927_v0  ;;  %v5155_v22 = vmul.u32 %v5151_v55, %v5149_v48 }
 0x523   :  { %v14261_v63 = vsub.s32 %v5043_v4, %v5046_v52  ;;  %v5115_v7 = vshrl.u32 %v17088_v33, %v13522_v2  ;;  %v5136_v23 = vsel %vm5134_vm14, %v5124_v38, 2102212464  ;;  %vm4937_vm15 = vcmp.eq.s32.totalorder %v14256_v28, 0 }
 0x524   :  { %vm5160_vm11 = vc.u32 %v5152_v21, %v5156_v50  ;;  %v5162_v17 = vadd.s32 %v5156_v50, %v5152_v21  ;;  %v4922_v30 = vmul.f32 %v4921_v11, %v4919_v60  ;;  %v4929_v20 = vmul.f32 %v4928_v49, %v4919_v60 }
 0x525   :  { %vm5048_vm12 = vcmp.lt.s32.totalorder %v14261_v63, 0  ;;  %v5049_v39 = vsub.s32 0, %v14261_v63  ;;  %v5161_v4 = vsel %vm5160_vm11, 1, %v17071_v56  ;;  %v5174_v55 = vmul.u32 %v5172_v42, %v5148_v6 }
 0x526   :  { %vm5164_vm13 = vc.u32 %v5162_v17, %v5158_v31  ;;  %v5175_v9 = vmul.u32 %v5173_v8, %v5148_v6  ;;  %v4923_v19 = vadd.f32 -0.4999988, %v4922_v30  ;;  %v4930_v2 = vadd.f32 -0.16666654, %v4929_v20 }
 0x527   :  { %vm4936_vm5 = vcmp.lt.s32.totalorder %v14256_v28, 2  ;;  %v5050_v38 = vsel %vm5048_vm12, %v5049_v39, %v14261_v63  ;;  %v5163_v21 = vadd.s32 %v5161_v4, %v5155_v22  ;;  %vm4934_vm14 = vweird.f32 %v13455_v3 }
 0x528   :  { %v5051_v13 = vclz %v5050_v38  ;;  %v5165_v0 = vsel %vm5164_vm13, 1, %v17071_v56  ;;  %v5176_v52 = vmul.u32 %v5172_v42, %v5149_v48  ;;  %v5178_v50 = vshll.u32 %v5175_v9, 16 }
 0x529   :  { %v4924_v11 = vmul.f32 %v4923_v19, %v4919_v60  ;;  %v4931_v49 = vmul.f32 %v4930_v2, %v4919_v60  ;;  %vm4940_vm8 = vcmp.eq.s32.totalorder %v14256_v28, 2  ;;  %v5039_v6 = vadd.s32 %v14161_v51, %v14159_v58  ;;  %v14310_v28 = vld [vmem:[%s16838_s10] ss:$0 sm:$0xff] }
 0x52a   :  { %v8487_v31 = vadd.s32 4294967294, %v5051_v13  ;;  %v5135_v17 = vsel %vm5131_vm10, %v5115_v7, %v14191_v32  ;;  %v5137_v22 = vsel %vm5133_vm6, %v14193_v54, %v5136_v23  ;;  %vm5182_vm0 = vc.u32 %v5174_v55, %v5178_v50 }
 0x52b   :  { %v4925_v30 = vadd.f32 1.0, %v4924_v11  ;;  %v4932_v42 = vadd.f32 1.0, %v4931_v49  ;;  %v5157_v20 = vshrl.u32 %v14252_v40, 16  ;;  %v5167_v60 = vadd.s32 %v5165_v0, %v5163_v21 }
 0x52c   :  { %vm8488_vm1 = vcmp.lt.s32.totalorder %v8487_v31, 0  ;;  %v5177_v39 = vmul.u32 %v5173_v8, %v5149_v48  ;;  %v5180_v4 = vshll.u32 %v5176_v52, 16  ;;  %v5184_v19 = vadd.s32 %v5178_v50, %v5174_v55 }
 0x52d   :  { %v4933_v58 = vmul.f32 %v4932_v42, %v14238_v24  ;;  %v4941_v51 = vxor.u32 2147483648, %v4925_v30  ;;  %v5054_v2 = vsel %vm8488_vm1, 0, %v8487_v31  ;;  %v5183_v32 = vsel %vm5182_vm0, 1, %v17071_v56 }
 0x52e   :  { %v5055_v7 = vsub.s32 32, %v5054_v2  ;;  %v5056_v38 = vshll.u32 %v14261_v63, %v5054_v2  ;;  %v5059_v54 = vsub.s32 4294967266, %v5054_v2  ;;  %v5159_v23 = vshrl.u32 %v14254_v44, 16 }
 0x52f   :  { %v4938_v13 = vxor.u32 2147483648, %v4933_v58  ;;  %v4942_v40 = vsel %vm4940_vm8, %v4941_v51, %v4933_v58  ;;  %v5168_v21 = vadd.s32 %v5167_v60, %v5157_v20  ;;  %v5179_v48 = vshrl.u32 %v5175_v9, 16 }
 0x530   :  { %v5057_v8 = vshrl.u32 %v5039_v6, %v5055_v7  ;;  %v5060_v55 = vadd.s32 127, %v5059_v54  ;;  %v5185_v0 = vadd.s32 %v5183_v32, %v5177_v39  ;;  %vm5186_vm3 = vc.u32 %v5184_v19, %v5180_v4  ;;  %v5598_v6 = vpop.f32.mrf.mxu2 }
 0x531   :  { %v5257_v24 = vshrl.u32 %v5256_v43, 23  ;;  %v4939_v50 = vsel %vm4937_vm15, %v4925_v30, %v4938_v13  ;;  %v5181_v63 = vshrl.u32 %v5176_v52, 16  ;;  %v5187_v11 = vsel %vm5186_vm3, 1, %v17071_v56 }
 0x532   :  { %v4943_v44 = vsel %vm4936_vm5, %v4939_v50, %v4942_v40  ;;  %v5058_v49 = vor.u32 %v5057_v8, %v5056_v38  ;;  %v5061_v31 = vshll.u32 %v5060_v55, 23  ;;  %v5189_v42 = vadd.s32 %v5187_v11, %v5185_v0  ;;  %v207_v0 = vpop.xlane.xlu2 %206 }
 0x533   :  { %v4944_v9 = vsel %vm4934_vm14, nan, %v4943_v44  ;;  %v5138_v20 = vsel %vm5132_vm7, %v5135_v17, %v5137_v22  ;;  %v14302_v43 = vadd.s32 %v5168_v21, %v5159_v23  ;;  %v14304_v60 = vadd.s32 %v5184_v19, %v5180_v4 }
 0x534   :  { %8523 = vmatmul.msk.f32.gmra.mxu2 %vm204_vm4, %v4944_v9  ;;  %v5062_v52 = vor.u32 4788187, %v5061_v31  ;;  %v5065_v30 = vcvt.s32.f32 %v5058_v49  ;;  %v14313_v3 = vadd.f32 %v14310_v28, %v5598_v6  ;;  %v5190_v39 = vadd.s32 %v5189_v42, %v5179_v48 }
 0x535   :  { %v8492_v58 = vadd.s32 4294967169, %v5257_v24  ;;  %v5645_v16 = vsel %vm204_vm4, %v14243_v37, 0.0  ;;  %v5192_v19 = vmul.u32 %v14205_v10, %v5138_v20  ;;  %vm5194_vm9 = vc.u32 %v14302_v43, %v14304_v60 }
 0x536   :  { %v5063_v17 = vand.u32 2147483647, %v5062_v52  ;;  %v5696_v22 = vsel %vm204_vm4, %v14313_v3, 0.0  ;;  %v5191_v4 = vadd.s32 %v5190_v39, %v5181_v63  ;;  %5646 = vadd.xlane.f32.xlu2 %v5645_v16  ;;  %v209_v51 = vmul.f32 64.0, %v14172_v46 }
 0x537   :  { %5697 = vadd.xlane.f32.xlu1 %v5696_v22  ;;  %v5263_v7 = vadd.s32 1, %v8492_v58  ;;  %vm4947_vm10 = vcmp.lt.s32.totalorder %v13594_v1, 0  ;;  %vm14326_vm6 = vcmp.le.f32.partialorder %v4945_v35, 0.7853982  ;;  %v5069_v21 = vsub.s32 4, %v14247_v27 }
 0x538   :  { %v5066_v2 = vmul.f32 %v5065_v30, %v5063_v17  ;;  %v5195_v32 = vadd.s32 1, %v5191_v4  ;;  %v210_v10 = vsub.f32 1.0, %v209_v51  ;;  %vm213_vm11 = vweird.f32 %v14172_v46 }
 0x539   :  { %vm5264_vm7 = vcmp.gt.s32.totalorder %v5263_v7, 0  ;;  %v5070_v44 = vsel %vm4947_vm10, %v5069_v21, %v14247_v27  ;;  %vm5088_vm8 = vweird.f32 %v13594_v1  ;;  %vm14389_vm0 = vcmp.le.f32.partialorder %v5099_v5, 0.7853982 }
 0x53a   :  { %v5067_v54 = vxor.u32 2147483648, %v5066_v2  ;;  %v5196_v23 = vsel %vm5194_vm9, %v5195_v32, %v5191_v4  ;;  %v5265_v24 = vsel %vm5264_vm7, %v5263_v7, 0  ;;  %v211_v11 = vmul.f32 %v14172_v46, %v210_v10 }
 0x53b   :  { %v5197_v13 = vadd.s32 %v5196_v23, %v5192_v19  ;;  %v14343_v9 = vand.u32 31, %v5265_v24  ;;  %v5072_v20 = vsel %vm14326_vm6, 0, %v5070_v44  ;;  %v5632_v19 = vpop.xlane.xlu2 %5631  ;;  %v14355_v38 = vshrl.u32 %v5265_v24, 5 }
 0x53c   :  { %v5068_v40 = vsel %vm4947_vm10, %v5067_v54, %v5066_v2  ;;  %v212_v39 = vadd.f32 %v14172_v46, %v211_v11  ;;  %v5089_v22 = vand.u32 3, %v5072_v20  ;;  %v17351_v23 = vmov 920167782  }
 0x53d   :  { %v5071_v48 = vsel %vm14326_vm6, %v13594_v1, %v5068_v40  ;;  %v5198_v8 = vadd.s32 536870912, %v5197_v13  ;;  %v14350_v17 = vsub.s32 32, %v14343_v9  ;;  %v5279_v54 = vshll.u32 %v17073_v14, %v14343_v9 }
 0x53e   :  { %v5073_v55 = vmul.f32 %v5071_v48, %v5071_v48  ;;  %v14353_v7 = vsel %vm213_vm11, %v14172_v46, %v212_v39  ;;  %vm5094_vm12 = vcmp.eq.s32.totalorder %v5089_v22, 2  ;;  %vm5090_vm13 = vcmp.lt.s32.totalorder %v5089_v22, 2 }
 0x53f   :  { %v14336_v35 = vshrl.u32 %v5198_v8, 30  ;;  %v5280_v8 = vshrl.u32 %v17351_v23, %v14350_v17  ;;  %v5726_v46 = vmul.f32 %v5632_v19, %v14353_v7  ;;  %v215_v11 = vmul.f32 %v14353_v7, %v207_v0  ;;  %v5635_v0 = vpop.xlane.xlu1 %5634  ;;  %v17353_v19 = vld [vmem:[#allocation64_spill] sm:$0xff] }
 0x540   :  { %v5074_v50 = vmul.f32 -0.001358992, %v5073_v55  ;;  %v5081_v63 = vmul.f32 -0.00019511016, %v5073_v55  ;;  %vm5091_vm5 = vcmp.eq.s32.totalorder %v5089_v22, 0  ;;  %vm5288_vm14 = vcmp.lt.s32.totalorder %v14355_v38, 4 }
 0x541   :  { %v5200_v49 = vshll.u32 %v14336_v35, 30  ;;  %vm5101_vm1 = vcmp.lt.s32.totalorder %v13370_v29, 0  ;;  %vm5285_vm3 = vcmp.lt.s32.totalorder %v14355_v38, 1  ;;  %vm5287_vm9 = vcmp.lt.s32.totalorder %v14355_v38, 3 }
 0x542   :  { %v5075_v31 = vadd.f32 0.041655596, %v5074_v50  ;;  %v5082_v42 = vadd.f32 0.008332121, %v5081_v63  ;;  %v5193_v63 = vadd.s32 %v14304_v60, %v14302_v43  ;;  %vm5286_vm10 = vcmp.lt.s32.totalorder %v14355_v38, 2 }
 0x543   :  { %v5201_v6 = vsub.s32 %v5197_v13, %v5200_v49  ;;  %v5282_v13 = vshll.u32 %v17351_v23, %v14343_v9  ;;  %v5253_v23 = vand.u32 2147483647, %v14210_v62 }
 0x544   :  { %v5076_v52 = vmul.f32 %v5075_v31, %v5073_v55  ;;  %v5083_v30 = vmul.f32 %v5082_v42, %v5073_v55 }
 0x545   :  { %vm5202_vm2 = vcmp.lt.s32.totalorder %v5201_v6, 0  ;;  %v5203_v58 = vsub.s32 0, %v5201_v6 }
 0x546   :  { %v5077_v16 = vadd.f32 -0.4999988, %v5076_v52  ;;  %v5084_v27 = vadd.f32 -0.16666654, %v5083_v30  ;;  %v5281_v52 = vor.u32 %v5280_v8, %v5279_v54  ;;  %v17352_v30 = vld [vmem:[#allocation56_spill] sm:$0xff]  ;;  %v5601_v54 = vpop.f32.mrf.mxu2  ;;  %v5223_v8 = vsub.s32 4, %v14336_v35 }
 0x547   :  { %v5204_v4 = vsel %vm5202_vm2, %v5203_v58, %v5201_v6  ;;  %v14372_v39 = vsub.f32 %v17352_v30, %v5726_v46  ;;  %v5260_v46 = vand.u32 8388607, %v5253_v23 }
 0x548   :  { %v5078_v51 = vmul.f32 %v5077_v16, %v5073_v55  ;;  %v5085_v2 = vmul.f32 %v5084_v27, %v5073_v55  ;;  %v5205_v32 = vclz %v5204_v4  ;;  %v5283_v55 = vshrl.u32 %v17070_v53, %v14350_v17 }
 0x549   :  { %v5790_v22 = vmul.f32 %v14372_v39, %v14372_v39 }
 0x54a   :  { %v5079_v10 = vadd.f32 1.0, %v5078_v51  ;;  %v5086_v40 = vadd.f32 1.0, %v5085_v2  ;;  %v8490_v21 = vadd.s32 4294967294, %v5205_v32  ;;  %v5294_v51 = vsel %vm5288_vm14, %v5281_v52, 920167782 }
 0x54b   :  { %v5727_v32 = vmul.f32 %v5635_v0, %v14353_v7 }
 0x54c   :  { %v5087_v24 = vmul.f32 %v5086_v40, %v5071_v48  ;;  %v5095_v50 = vxor.u32 2147483648, %v5079_v10  ;;  %vm8491_vm15 = vcmp.lt.s32.totalorder %v8490_v21, 0  ;;  %v5284_v48 = vor.u32 %v5283_v55, %v5282_v13 }
 0x54d   :  { %v5208_v44 = vsel %vm8491_vm15, 0, %v8490_v21  ;;  %v14394_v21 = vadd.f32 %v14310_v28, %v5601_v54  ;;  %v5822_v55 = vsel %vm204_vm4, %v5790_v22, 0.0 }
 0x54e   :  { %v5092_v49 = vxor.u32 2147483648, %v5087_v24  ;;  %v5096_v31 = vsel %vm5094_vm12, %v5095_v50, %v5087_v24  ;;  %v5209_v42 = vsub.s32 32, %v5208_v44  ;;  %v5210_v20 = vshll.u32 %v5201_v6, %v5208_v44  ;;  %5823 = vadd.xlane.f32.xlu2 %v5822_v55 }
 0x54f   :  { %v5213_v53 = vsub.s32 4294967266, %v5208_v44  ;;  %v14376_v6 = vsub.f32 %v17353_v19, %v215_v11  ;;  %v5298_v2 = vsel %vm5288_vm14, %v5284_v48, 1326507024  ;;  %v5699_v5 = vsel %vm204_vm4, %v14394_v21, 0.0 }
 0x550   :  { %v5093_v43 = vsel %vm5091_vm5, %v5079_v10, %v5092_v49  ;;  %v5211_v60 = vshrl.u32 %v5193_v63, %v5209_v42  ;;  %v5270_v50 = vshll.u32 %v17088_v33, %v14343_v9  ;;  %v5271_v63 = vshrl.u32 %v17086_v47, %v14350_v17  ;;  %5700 = vadd.xlane.f32.xlu1 %v5699_v5 }
 0x551   :  { %v5097_v58 = vsel %vm5090_vm13, %v5093_v43, %v5096_v31  ;;  %v5214_v16 = vadd.s32 127, %v5213_v53  ;;  %v5261_v11 = vor.u32 8388608, %v5260_v46  ;;  %v5273_v44 = vshll.u32 %v17086_v47, %v14343_v9 }
 0x552   :  { %v5098_v27 = vsel %vm5088_vm8, nan, %v5097_v58  ;;  %v5212_v4 = vor.u32 %v5211_v60, %v5210_v20  ;;  %v5274_v49 = vshrl.u32 %v17087_v61, %v14350_v17  ;;  %v5276_v31 = vshll.u32 %v17087_v61, %v14343_v9 }
 0x553   :  { %8524 = vmatmul.msk.f32.gmra.mxu2 %vm204_vm4, %v5098_v27  ;;  %v5215_v1 = vshll.u32 %v5214_v16, 23  ;;  %v14413_v20 = vor.u32 %v5271_v63, %v5270_v50  ;;  %v5277_v53 = vshrl.u32 %v17073_v14, %v14350_v17  ;;  %v5224_v48 = vsel %vm5101_vm1, %v5223_v8, %v14336_v35  ;;  %v17356_v14 = vld [vmem:[#allocation74_spill] sm:$0xff]  ;;  %v14442_v27 = vpop.f32.mrf.mxu2 }
 0x554   :  { %v5219_v40 = vcvt.s32.f32 %v5212_v4  ;;  %v14421_v30 = vor.u32 %v5274_v49, %v5273_v44  ;;  %v14424_v47 = vshll.u32 %v5261_v11, 8  ;;  %v217_v61 = vmul.f32 %v14376_v6, %v14376_v6 }
 0x555   :  { %v5216_v10 = vor.u32 4788187, %v5215_v1  ;;  %v5278_v9 = vor.u32 %v5277_v53, %v5276_v31  ;;  %v14430_v60 = vsub.f32 %v17356_v14, %v5727_v32  ;;  %v5299_v0 = vsel %vm5287_vm9, %v5281_v52, %v5298_v2 }
 0x556   :  { %v5293_v35 = vsel %vm5285_vm3, %v14413_v20, %v14421_v30  ;;  %v5226_v16 = vsel %vm14389_vm0, 0, %v5224_v48  ;;  %v5302_v19 = vand.u32 65535, %v14424_v47  ;;  %v5303_v32 = vshrl.u32 %v14424_v47, 16 }
 0x557   :  { %v5217_v24 = vand.u32 2147483647, %v5216_v10  ;;  %v5295_v4 = vsel %vm5287_vm9, %v5278_v9, %v5294_v51  ;;  %v5297_v2 = vsel %vm5285_vm3, %v14421_v30, %v5278_v9  ;;  %v218_v51 = vsel %vm204_vm4, %v217_v61, 0.0 }
 0x558   :  { %v5296_v52 = vsel %vm5286_vm10, %v5293_v35, %v5295_v4  ;;  %v5300_v22 = vsel %vm5286_vm10, %v5297_v2, %v5299_v0  ;;  %219 = vadd.xlane.f32.xlu1 %v218_v51  ;;  %v5791_v5 = vmul.f32 %v14430_v60, %v14430_v60  ;;  %v5269_v50 = vshrl.u32 %v17088_v33, %v14350_v17 }
 0x559   :  { %v5220_v42 = vmul.f32 %v5219_v40, %v5217_v24  ;;  %v5326_v13 = vand.u32 65535, %v5296_v52  ;;  %v5304_v10 = vand.u32 65535, %v5300_v22  ;;  %v5305_v40 = vshrl.u32 %v5300_v22, 16 }
 0x55a   :  { %v5327_v8 = vshrl.u32 %v5296_v52, 16  ;;  %v14463_v24 = vand.u32 3, %v5226_v16  ;;  %v5290_v4 = vsel %vm5288_vm14, %v5278_v9, 2102212464  ;;  %vm5242_vm5 = vweird.f32 %v13370_v29 }
 0x55b   :  { %v5221_v43 = vxor.u32 2147483648, %v5220_v42  ;;  %v5306_v63 = vmul.u32 %v5304_v10, %v5302_v19  ;;  %v5307_v11 = vmul.u32 %v5305_v40, %v5302_v19  ;;  %v5308_v44 = vmul.u32 %v5304_v10, %v5303_v32 }
 0x55c   :  { %v5329_v53 = vmul.u32 %v5327_v8, %v5302_v19  ;;  %v5309_v48 = vmul.u32 %v5305_v40, %v5303_v32  ;;  %v5330_v14 = vmul.u32 %v5326_v13, %v5303_v32  ;;  %v5331_v17 = vmul.u32 %v5327_v8, %v5303_v32 }
 0x55d   :  { %v5222_v58 = vsel %vm5101_vm1, %v5221_v43, %v5220_v42  ;;  %v5328_v42 = vmul.u32 %v5326_v13, %v5302_v19  ;;  %v5310_v43 = vshll.u32 %v5307_v11, 16  ;;  %v5312_v61 = vshll.u32 %v5308_v44, 16  ;;  %v5607_v19 = vpop.f32.mrf.mxu2 }
 0x55e   :  { %v14450_v1 = vsel %vm14389_vm0, %v13370_v29, %v5222_v58  ;;  %v5825_v58 = vsel %vm204_vm4, %v5791_v5, 0.0  ;;  %v5332_v16 = vshll.u32 %v5329_v53, 16  ;;  %vm5244_vm7 = vcmp.lt.s32.totalorder %v14463_v24, 2 }
 0x55f   :  { %v5227_v54 = vmul.f32 %v14450_v1, %v14450_v1  ;;  %vm5314_vm6 = vc.u32 %v5306_v63, %v5310_v43  ;;  %v5316_v33 = vadd.s32 %v5310_v43, %v5306_v63  ;;  %v5311_v51 = vshrl.u32 %v5307_v11, 16 }
 0x560   :  { %v5315_v22 = vsel %vm5314_vm6, 1, %v17071_v56  ;;  %5826 = vadd.xlane.f32.xlu1 %v5825_v58  ;;  %v5334_v10 = vshll.u32 %v5330_v14, 16  ;;  %vm5336_vm11 = vc.u32 %v5328_v42, %v5332_v16  ;;  %v14477_v32 = vadd.f32 %v14310_v28, %v5607_v19 }
 0x561   :  { %v5228_v55 = vmul.f32 -0.001358992, %v5227_v54  ;;  %v5235_v46 = vmul.f32 -0.00019511016, %v5227_v54  ;;  %v5317_v13 = vadd.s32 %v5315_v22, %v5309_v48  ;;  %vm5318_vm2 = vc.u32 %v5316_v33, %v5312_v61 }
 0x562   :  { %v5319_v9 = vsel %vm5318_vm2, 1, %v17071_v56  ;;  %v5338_v5 = vadd.s32 %v5332_v16, %v5328_v42  ;;  %vm5248_vm12 = vcmp.eq.s32.totalorder %v14463_v24, 2  ;;  %v5289_v48 = vsel %vm5285_vm3, %v5269_v50, %v14413_v20 }
 0x563   :  { %v5229_v49 = vadd.f32 0.041655596, %v5228_v55  ;;  %v5236_v31 = vadd.f32 0.008332121, %v5235_v46  ;;  %v5337_v46 = vsel %vm5336_vm11, 1, %v17071_v56  ;;  %v5321_v8 = vadd.s32 %v5319_v9, %v5317_v13 }
 0x564   :  { %v5339_v63 = vadd.s32 %v5337_v46, %v5331_v17  ;;  %v5333_v43 = vshrl.u32 %v5329_v53, 16  ;;  %vm5340_vm15 = vc.u32 %v5338_v5, %v5334_v10  ;;  %v5291_v42 = vsel %vm5287_vm9, %v14421_v30, %v5290_v4 }
 0x565   :  { %v5230_v35 = vmul.f32 %v5229_v49, %v5227_v54  ;;  %v5237_v0 = vmul.f32 %v5236_v31, %v5227_v54  ;;  %v5313_v31 = vshrl.u32 %v5308_v44, 16  ;;  %vm5245_vm13 = vcmp.eq.s32.totalorder %v14463_v24, 0 }
 0x566   :  { %v5705_v44 = vsel %vm204_vm4, %v14477_v32, 0.0  ;;  %v5335_v58 = vshrl.u32 %v5330_v14, 16  ;;  %v5342_v33 = vadd.s32 %v5338_v5, %v5334_v10  ;;  %vm5255_vm1 = vcmp.lt.s32.totalorder %v14210_v62, 0 }
 0x567   :  { %v5231_v52 = vadd.f32 -0.4999988, %v5230_v35  ;;  %v5238_v2 = vadd.f32 -0.16666654, %v5237_v0  ;;  %v5341_v0 = vsel %vm5340_vm15, 1, %v17071_v56 }
 0x568   :  { %v5343_v16 = vadd.s32 %v5341_v0, %v5339_v63  ;;  %5706 = vadd.xlane.f32.xlu1 %v5705_v44  ;;  %v5677_v0 = vpop.xlane.xlu2 %5676  ;;  %vm14511_vm3 = vcmp.le.f32.partialorder %v5253_v23, 0.7853982 }
 0x569   :  { %v5232_v40 = vmul.f32 %v5231_v52, %v5227_v54  ;;  %v5239_v55 = vmul.f32 %v5238_v2, %v5227_v54  ;;  %v5322_v54 = vadd.s32 %v5321_v8, %v5311_v51 }
 0x56a   :  { %v5344_v30 = vadd.s32 %v5343_v16, %v5333_v43 }
 0x56b   :  { %v5233_v11 = vadd.f32 1.0, %v5232_v40  ;;  %v5240_v49 = vadd.f32 1.0, %v5239_v55  ;;  %v5323_v53 = vadd.s32 %v5322_v54, %v5313_v31  ;;  %v5683_v54 = vpop.xlane.xlu1 %5682 }
 0x56c   :  { %v5345_v17 = vadd.s32 %v5344_v30, %v5335_v58  ;;  %v17357_v58 = vld [vmem:[#allocation52_spill] sm:$0xff] }
 0x56d   :  { %v5241_v61 = vmul.f32 %v5240_v49, %v14450_v1  ;;  %v5249_v35 = vxor.u32 2147483648, %v5233_v11  ;;  %v5292_v1 = vsel %vm5286_vm10, %v5289_v48, %v5291_v42  ;;  %vm5348_vm14 = vc.u32 %v5323_v53, %v5342_v33  ;;  %v5680_v48 = vpop.xlane.xlu0 %5679 }
 0x56e   :  { %v5346_v14 = vmul.u32 %v14424_v47, %v5292_v1  ;;  %v5349_v2 = vadd.s32 1, %v5345_v17  ;;  %v5347_v9 = vadd.s32 %v5342_v33, %v5323_v53  ;;  %v5743_v42 = vmul.f32 %v5683_v54, %v14353_v7 }
 0x56f   :  { %v5246_v20 = vxor.u32 2147483648, %v5241_v61  ;;  %v5250_v50 = vsel %vm5248_vm12, %v5249_v35, %v5241_v61  ;;  %v5742_v35 = vmul.f32 %v5680_v48, %v14353_v7 }
 0x570   :  { %v5350_v19 = vsel %vm5348_vm14, %v5349_v2, %v5345_v17 }
 0x571   :  { %v5247_v4 = vsel %vm5245_vm13, %v5233_v11, %v5246_v20  ;;  %v5351_v51 = vadd.s32 %v5350_v19, %v5346_v14  ;;  %v14501_v16 = vsub.f32 %v17357_v58, %v5742_v35  ;;  %v17358_v20 = vld [vmem:[#allocation51_spill] sm:$0xff] }
 0x572   :  { %v5251_v56 = vsel %vm5244_vm7, %v5247_v4, %v5250_v50  ;;  %v14504_v50 = vsub.f32 %v17358_v20, %v5743_v42  ;;  %vm5396_vm7 = vweird.f32 %v14210_v62 }
 0x573   :  { %v5252_v52 = vsel %vm5242_vm5, nan, %v5251_v56  ;;  %v5352_v29 = vadd.s32 536870912, %v5351_v51  ;;  %v5806_v33 = vmul.f32 %v14501_v16, %v14501_v16  ;;  %v5692_v14 = vpop.xlane.xlu1 %5691 }
 0x574   :  { %8525 = vmatmul.msk.f32.gmra.mxu2 %vm204_vm4, %v5252_v52  ;;  %v5807_v17 = vmul.f32 %v14504_v50, %v14504_v50  ;;  %v5741_v52 = vmul.f32 %v5677_v0, %v14353_v7  ;;  %v5746_v23 = vmul.f32 %v5692_v14, %v14353_v7 }
 0x575   :  { %v5353_v22 = vshrl.u32 %v5352_v29, 30  ;;  %v5870_v4 = vsel %vm204_vm4, %v5806_v33, 0.0  ;;  %v5686_v56 = vpop.xlane.xlu0 %5685 }
 0x576   :  { %5871 = vadd.xlane.f32.xlu0 %v5870_v4  ;;  %v5744_v19 = vmul.f32 %v5686_v56, %v14353_v7 }
 0x577   :  { %v5354_v13 = vshll.u32 %v5353_v22, 30  ;;  %v5377_v29 = vsub.s32 4, %v5353_v22 }
 0x579   :  { %v5355_v38 = vsub.s32 %v5351_v51, %v5354_v13  ;;  %v5689_v51 = vpop.xlane.xlu2 %5688 }
 0x57b   :  { %vm5356_vm8 = vcmp.lt.s32.totalorder %v5355_v38, 0  ;;  %v5357_v10 = vsub.s32 0, %v5355_v38 }
 0x57d   :  { %v5358_v40 = vsel %vm5356_vm8, %v5357_v10, %v5355_v38  ;;  %v14527_v10 = vsub.f32 %v13865_v34, %v5744_v19  ;;  %v5378_v34 = vsel %vm5255_vm1, %v5377_v29, %v5353_v22  ;;  %v17361_v22 = vld [vmem:[#allocation25_spill] sm:$0xff] }
 0x57e   :  { %v5359_v55 = vclz %v5358_v40  ;;  %v14530_v40 = vsub.f32 %v14045_v26, %v5746_v23 }
 0x580   :  { %v8493_v24 = vadd.s32 4294967294, %v5359_v55  ;;  %v5873_v55 = vsel %vm204_vm4, %v5807_v17, 0.0 }
 0x581   :  { %5874 = vadd.xlane.f32.xlu0 %v5873_v55  ;;  %v14572_v55 = vadd.f32 %v14310_v28, %v14442_v27 }
 0x582   :  { %vm8494_vm0 = vcmp.lt.s32.totalorder %v8493_v24, 0 }
 0x583   :  { %v5362_v46 = vsel %vm8494_vm0, 0, %v8493_v24  ;;  %v14534_v24 = vsub.f32 %v13998_v15, %v5741_v52  ;;  %v5638_v15 = vpop.xlane.xlu0 %5637 }
 0x584   :  { %v5363_v8 = vsub.s32 32, %v5362_v46  ;;  %v5364_v47 = vshll.u32 %v5355_v38, %v5362_v46  ;;  %v5367_v5 = vsub.s32 4294967266, %v5362_v46  ;;  %v5728_v0 = vmul.f32 %v5638_v15, %v14353_v7 }
 0x585   :  { %v5805_v54 = vmul.f32 %v14534_v24, %v14534_v24 }
 0x586   :  { %v5365_v63 = vshrl.u32 %v5347_v9, %v5363_v8  ;;  %v5368_v11 = vadd.s32 127, %v5367_v5  ;;  %v5808_v8 = vmul.f32 %v14527_v10, %v14527_v10  ;;  %v14561_v56 = vsub.f32 %v13759_v12, %v5728_v0 }
 0x587   :  { %v5867_v1 = vsel %vm204_vm4, %v5805_v54, 0.0  ;;  %v17363_v54 = vld [vmem:[#allocation44_spill] sm:$0xff] }
 0x588   :  { %v5366_v49 = vor.u32 %v5365_v63, %v5364_v47  ;;  %v5369_v31 = vshll.u32 %v5368_v11, 23  ;;  %v5810_v47 = vmul.f32 %v14530_v40, %v14530_v40  ;;  %v5876_v26 = vsel %vm204_vm4, %v5808_v8, 0.0 }
 0x589   :  { %5877 = vadd.xlane.f32.xlu2 %v5876_v26  ;;  %5868 = vadd.xlane.f32.xlu0 %v5867_v1 }
 0x58a   :  { %v5370_v43 = vor.u32 4788187, %v5369_v31  ;;  %v5373_v61 = vcvt.s32.f32 %v5366_v49  ;;  %v5882_v11 = vsel %vm204_vm4, %v5810_v47, 0.0  ;;  %v5380_v49 = vsel %vm14511_vm3, 0, %v5378_v34 }
 0x58b   :  { %5883 = vadd.xlane.f32.xlu1 %v5882_v11  ;;  %v5397_v20 = vand.u32 3, %v5380_v49 }
 0x58c   :  { %v5371_v44 = vand.u32 2147483647, %v5370_v43  ;;  %v14548_v43 = vpop.xlane.xlu2 %5640 }
 0x58d   :  { %vm5402_vm9 = vcmp.eq.s32.totalorder %v5397_v20, 2  ;;  %vm5399_vm10 = vcmp.eq.s32.totalorder %v5397_v20, 0  ;;  %vm5398_vm6 = vcmp.lt.s32.totalorder %v5397_v20, 2  ;;  %v5729_v1 = vmul.f32 %v14548_v43, %v14353_v7 }
 0x58e   :  { %v5374_v53 = vmul.f32 %v5373_v61, %v5371_v44  ;;  %v14552_v61 = vadd.f32 %v14310_v28, %v17361_v22  ;;  %v17362_v44 = vld [vmem:[#allocation46_spill] sm:$0xff]  ;;  %v14605_v22 = vadd.f32 %v14310_v28, %v17363_v54 }
 0x58f   :  { %v14557_v58 = vadd.f32 %v14310_v28, %v17362_v44  ;;  %v17364_v44 = vld [vmem:[#allocation42_spill] sm:$0xff] }
 0x590   :  { %v5375_v30 = vxor.u32 2147483648, %v5374_v53  ;;  %v5651_v17 = vsel %vm204_vm4, %v14552_v61, 0.0  ;;  %v14612_v20 = vadd.f32 %v14310_v28, %v17364_v44 }
 0x591   :  { %5652 = vadd.xlane.f32.xlu2 %v5651_v17  ;;  %v5657_v52 = vsel %vm204_vm4, %v14557_v58, 0.0  ;;  %v14619_v17 = vsub.f32 %v14065_v41, %v5729_v1 }
 0x592   :  { %v5376_v2 = vsel %vm5255_vm1, %v5375_v30, %v5374_v53 }
 0x593   :  { %v5379_v13 = vsel %vm14511_vm3, %v14210_v62, %v5376_v2  ;;  %5658 = vadd.xlane.f32.xlu1 %v5657_v52  ;;  %v5695_v62 = vpop.xlane.xlu1 %5694 }
 0x594   :  { %v5381_v38 = vmul.f32 %v5379_v13, %v5379_v13  ;;  %v5644_v19 = vpop.xlane.xlu2 %5643  ;;  %v5747_v11 = vmul.f32 %v5695_v62, %v14353_v7 }
 0x595   :  { %v5730_v23 = vmul.f32 %v5644_v19, %v14353_v7 }
 0x596   :  { %v5382_v9 = vmul.f32 -0.001358992, %v5381_v38  ;;  %v5389_v46 = vmul.f32 -0.00019511016, %v5381_v38 }
 0x598   :  { %v5383_v5 = vadd.f32 0.041655596, %v5382_v9  ;;  %v5390_v63 = vadd.f32 0.008332121, %v5389_v46  ;;  %v14577_v9 = vsub.f32 %v14069_v18, %v5730_v23  ;;  %v5702_v18 = vsel %vm204_vm4, %v14572_v55, 0.0 }
 0x599   :  { %5703 = vadd.xlane.f32.xlu0 %v5702_v18 }
 0x59a   :  { %v5384_v31 = vmul.f32 %v5383_v5, %v5381_v38  ;;  %v5391_v48 = vmul.f32 %v5390_v63, %v5381_v38  ;;  %v5794_v5 = vmul.f32 %v14577_v9, %v14577_v9  ;;  %v5610_v63 = vpop.f32.mrf.mxu2 }
 0x59b   :  { %v14590_v26 = vadd.f32 %v14310_v28, %v5610_v63 }
 0x59c   :  { %v5385_v35 = vadd.f32 -0.4999988, %v5384_v31  ;;  %v5392_v42 = vadd.f32 -0.16666654, %v5391_v48 }
 0x59d   :  { %v5708_v49 = vsel %vm204_vm4, %v14590_v26, 0.0 }
 0x59e   :  { %v5386_v53 = vmul.f32 %v5385_v35, %v5381_v38  ;;  %v5393_v33 = vmul.f32 %v5392_v42, %v5381_v38  ;;  %v5792_v38 = vmul.f32 %v14561_v56, %v14561_v56 }
 0x5a0   :  { %v5387_v30 = vadd.f32 1.0, %v5386_v53  ;;  %v5394_v4 = vadd.f32 1.0, %v5393_v33  ;;  %v5828_v34 = vsel %vm204_vm4, %v5792_v38, 0.0  ;;  %v5660_v33 = vsel %vm204_vm4, %v14612_v20, 0.0 }
 0x5a1   :  { %5829 = vadd.xlane.f32.xlu2 %v5828_v34 }
 0x5a2   :  { %v5395_v14 = vmul.f32 %v5394_v4, %v5379_v13  ;;  %v5403_v2 = vxor.u32 2147483648, %v5387_v30  ;;  %v5745_v13 = vmul.f32 %v5689_v51, %v14353_v7  ;;  %v5834_v51 = vsel %vm204_vm4, %v5794_v5, 0.0  ;;  %v5613_v42 = vpop.f32.mrf.mxu2 }
 0x5a3   :  { %5835 = vadd.xlane.f32.xlu1 %v5834_v51  ;;  %v14634_v5 = vadd.f32 %v14310_v28, %v5613_v42  ;;  %v14658_v42 = vadd.f32 %v14310_v28, %v13849_v36 }
 0x5a4   :  { %v5400_v29 = vxor.u32 2147483648, %v5395_v14  ;;  %v5404_v12 = vsel %vm5402_vm9, %v5403_v2, %v5395_v14  ;;  %v14584_v27 = vsub.f32 %v14007_v25, %v5745_v13  ;;  %v14596_v25 = vsub.f32 %v14175_v59, %v5747_v11 }
 0x5a5   :  { %v5654_v59 = vsel %vm204_vm4, %v14605_v22, 0.0  ;;  %v5793_v14 = vmul.f32 %v14619_v17, %v14619_v17 }
 0x5a6   :  { %v5401_v46 = vsel %vm5399_vm10, %v5387_v30, %v5400_v29  ;;  %v5809_v15 = vmul.f32 %v14584_v27, %v14584_v27  ;;  %v5811_v48 = vmul.f32 %v14596_v25, %v14596_v25 }
 0x5a7   :  { %v5405_v8 = vsel %vm5398_vm6, %v5401_v46, %v5404_v12  ;;  %v5831_v43 = vsel %vm204_vm4, %v5793_v14, 0.0 }
 0x5a8   :  { %v5406_v47 = vsel %vm5396_vm7, nan, %v5405_v8  ;;  %v5879_v31 = vsel %vm204_vm4, %v5809_v15, 0.0  ;;  %v5885_v35 = vsel %vm204_vm4, %v5811_v48, 0.0  ;;  %v5711_v15 = vsel %vm204_vm4, %v14634_v5, 0.0 }
 0x5a9   :  { %8526 = vmatmul.msk.f32.gmra.mxu2 %vm204_vm4, %v5406_v47  ;;  %5709 = vadd.xlane.f32.xlu2 %v5708_v49  ;;  %v5647_v53 = vpop.xlane.xlu2 %5646 }
 0x5aa   :  { %5880 = vadd.xlane.f32.xlu0 %v5879_v31  ;;  %v5698_v0 = vpop.xlane.xlu1 %5697  ;;  %v5731_v13 = vmul.f32 %v5647_v53, %v14353_v7 }
 0x5ab   :  { %v5748_v63 = vmul.f32 %v5698_v0, %v14353_v7 }
 0x5ac   :  { %v14641_v18 = vsub.f32 %v14243_v37, %v5731_v13 }
 0x5ad   :  { %v14644_v11 = vsub.f32 %v14313_v3, %v5748_v63 }
 0x5ae   :  { %v5795_v31 = vmul.f32 %v14641_v18, %v14641_v18 }
 0x5b0   :  { %v5837_v37 = vsel %vm204_vm4, %v5795_v31, 0.0 }
 0x5b1   :  { %5886 = vadd.xlane.f32.xlu2 %v5885_v35 }
 0x5b2   :  { %5655 = vadd.xlane.f32.xlu0 %v5654_v59  ;;  %v5812_v59 = vmul.f32 %v14644_v11, %v14644_v11 }
 0x5b4   :  { %v5888_v1 = vsel %vm204_vm4, %v5812_v59, 0.0 }
 0x5b7   :  { %v5616_v30 = vpop.f32.mrf.mxu2 }
 0x5b8   :  { %v14622_v52 = vadd.f32 %v14310_v28, %v5616_v30  ;;  %v5650_v30 = vpop.xlane.xlu0 %5649 }
 0x5b9   :  { %5661 = vadd.xlane.f32.xlu2 %v5660_v33 }
 0x5ba   :  { %v5714_v2 = vsel %vm204_vm4, %v14622_v52, 0.0  ;;  %5832 = vadd.xlane.f32.xlu0 %v5831_v43  ;;  %v5732_v43 = vmul.f32 %v5650_v30, %v14353_v7 }
 0x5bb   :  { %5715 = vadd.xlane.f32.xlu1 %v5714_v2 }
 0x5c1   :  { %v5824_v19 = vpop.xlane.xlu2 %5823  ;;  %5838 = vadd.xlane.f32.xlu2 %v5837_v37 }
 0x5c2   :  { %v5918_v23 = vmul.f32 %v5824_v19, %v14353_v7  ;;  %5712 = vadd.xlane.f32.xlu0 %v5711_v15  ;;  %v17365_v19 = vld [vmem:[#allocation41_spill] sm:$0xff] }
 0x5c3   :  { %v5701_v4 = vpop.xlane.xlu1 %5700 }
 0x5c4   :  { %v5950_v12 = vadd.f32 1e-05, %v5918_v23  ;;  %v5749_v38 = vmul.f32 %v5701_v4, %v14353_v7  ;;  %v5666_v4 = vsel %vm204_vm4, %v14658_v42, 0.0  ;;  %v14671_v23 = vadd.f32 %v14310_v28, %v17365_v19  ;;  %v8659_v19 = vld [vmem:[%s16835_s7] ss:$0 sm:$0xff] }
 0x5c6   :  { %8669 = vrsqrt.f32 %v5950_v12  ;;  %v14638_v62 = vsub.f32 %v14394_v21, %v5749_v38  ;;  %vm5988_vm11 = vweird.f32 %v5950_v12 }
 0x5c8   :  { %v5813_v49 = vmul.f32 %v14638_v62, %v14638_v62 }
 0x5ca   :  { %v5891_v21 = vsel %vm204_vm4, %v5813_v49, 0.0  ;;  %5889 = vadd.xlane.f32.xlu0 %v5888_v1 }
 0x5cb   :  { %v220_v29 = vpop.xlane.xlu1 %219  ;;  %5892 = vadd.xlane.f32.xlu1 %v5891_v21 }
 0x5cc   :  { %v8670_v41 = vpop.eup %8669  ;;  %v221_v33 = vmul.f32 %v220_v29, %v14353_v7 }
 0x5cd   :  { %v5983_v47 = vmul.f32 %v8670_v41, %v5950_v12  ;;  %vm5989_vm2 = vweird.f32 %v8670_v41 }
 0x5ce   :  { %v222_v29 = vadd.f32 1e-05, %v221_v33  ;;  %vm5990_vm12 = vmor %vm5988_vm11, %vm5989_vm2 }
 0x5cf   :  { %v5984_v51 = vmul.f32 %v8670_v41, %v5983_v47  ;;  %v14682_v47 = vld [vmem:[%s16839_s11] ss:$0 sm:$0xff] }
 0x5d0   :  { %vm229_vm8 = vweird.f32 %v222_v29 }
 0x5d1   :  { %v5985_v35 = vmul.f32 0.5, %v5984_v51 }
 0x5d3   :  { %v5827_v46 = vpop.xlane.xlu1 %5826  ;;  %v5986_v44 = vsub.f32 1.5, %v5985_v35  ;;  %5667 = vadd.xlane.f32.xlu1 %v5666_v4 }
 0x5d4   :  { %v5919_v8 = vmul.f32 %v5827_v46, %v14353_v7  ;;  %v14675_v46 = vsub.f32 %v13783_v57, %v5732_v43 }
 0x5d5   :  { %v5987_v2 = vmul.f32 %v8670_v41, %v5986_v44 }
 0x5d6   :  { %v5951_v34 = vadd.f32 1e-05, %v5919_v8  ;;  %v5619_v54 = vpop.f32.mrf.mxu2  ;;  %v5663_v8 = vsel %vm204_vm4, %v14671_v23, 0.0  ;;  %v5796_v12 = vmul.f32 %v14675_v46, %v14675_v46 }
 0x5d7   :  { %v14661_v0 = vadd.f32 %v14310_v28, %v5619_v54  ;;  %v5991_v38 = vsel %vm5990_vm12, %v8670_v41, %v5987_v2  ;;  %5664 = vadd.xlane.f32.xlu0 %v5663_v8  ;;  %v14690_v41 = vld [vmem:[%s16840_s12] ss:$0 sm:$0xff]  ;;  %v7074_v8 = vld [vmem:[#allocation11 + $0x30] sm:$0xff] }
 0x5d8   :  { %8671 = vrsqrt.f32 %v5951_v34  ;;  %v6302_v63 = vmul.f32 %v5991_v38, %v14372_v39  ;;  %vm5998_vm13 = vweird.f32 %v5951_v34  ;;  %v5840_v31 = vsel %vm204_vm4, %v5796_v12, 0.0  ;;  %v8660_v12 = vld [vmem:[%s16836_s8] ss:$0 sm:$0xff] }
 0x5d9   :  { %v5717_v14 = vsel %vm204_vm4, %v14661_v0, 0.0  ;;  %8673 = vrsqrt.f32 %v222_v29 }
 0x5da   :  { %5718 = vadd.xlane.f32.xlu2 %v5717_v14  ;;  %v6337_v15 = vmul.f32 %v14682_v47, %v6302_v63  ;;  %v7073_v63 = vld [vmem:[#allocation11 + $0x28] sm:$0xff] }
 0x5db   :  { %v5707_v30 = vpop.xlane.xlu1 %5706 }
 0x5dc   :  { %v6372_v39 = vadd.f32 %v14690_v41, %v6337_v15  ;;  %v5751_v14 = vmul.f32 %v5707_v30, %v14353_v7 }
 0x5de   :  { %v8672_v48 = vpop.eup %8671  ;;  %v14707_v38 = vsub.f32 %v14477_v32, %v5751_v14  ;;  %v7072_v32 = vld [vmem:[#allocation11 + $0x20] sm:$0xff] }
 0x5df   :  { %v5993_v3 = vmul.f32 %v8672_v48, %v5951_v34  ;;  %vm5999_vm15 = vweird.f32 %v8672_v48  ;;  %v8674_v57 = vpop.eup %8673  ;;  %5841 = vadd.xlane.f32.xlu0 %v5840_v31  ;;  %v8527_v34 = vmul.f32 -1.442695, %v6372_v39  ;;  %v7070_v39 = vld [vmem:[#allocation11 + $0x10] sm:$0xff] }
 0x5e0   :  { %vm6000_vm5 = vmor %vm5998_vm13, %vm5999_vm15  ;;  %v224_v21 = vmul.f32 %v8674_v57, %v222_v29  ;;  %vm230_vm14 = vweird.f32 %v8674_v57  ;;  %17366 = vst [vmem:[#allocation63_spill] sm:$0xff] %v14707_v38 }
 0x5e1   :  { %v5994_v53 = vmul.f32 %v8672_v48, %v5993_v3  ;;  %8675 = vpow2.f32 %v8527_v34  ;;  %vm231_vm0 = vmor %vm229_vm8, %vm230_vm14 }
 0x5e2   :  { %v225_v54 = vmul.f32 %v8674_v57, %v224_v21 }
 0x5e3   :  { %v5995_v36 = vmul.f32 0.5, %v5994_v53 }
 0x5e4   :  { %v226_v3 = vmul.f32 0.5, %v225_v54  ;;  %v7069_v54 = vld [vmem:[#allocation11 + $0x8] sm:$0xff] }
 0x5e5   :  { %v5996_v13 = vsub.f32 1.5, %v5995_v36 }
 0x5e6   :  { %v227_v44 = vsub.f32 1.5, %v226_v3 }
 0x5e7   :  { %v5997_v51 = vmul.f32 %v8672_v48, %v5996_v13  ;;  %v8676_v33 = vpop.eup %8675  ;;  %v7075_v13 = vld [vmem:[#allocation11 + $0x38] sm:$0xff] }
 0x5e8   :  { %v6500_v4 = vadd.f32 1.0, %v8676_v33  ;;  %7184 = vmatpush.msrb.mxu1 %v7075_v13  ;;  %8599 = vmatpush.msra.mxu3 %v7075_v13 }
 0x5e9   :  { %v6001_v49 = vsel %vm6000_vm5, %v8672_v48, %v5997_v51  ;;  %v228_v48 = vmul.f32 %v8674_v57, %v227_v44  ;;  %v7068_v44 = vld [vmem:[#allocation11] sm:$0xff] }
 0x5ea   :  { %v6303_v37 = vmul.f32 %v6001_v49, %v14430_v60  ;;  %7185 = vmatpush.msrb.mxu1 %v7074_v8  ;;  %8600 = vmatpush.msra.mxu3 %v7074_v8  ;;  %v7071_v49 = vld [vmem:[#allocation11 + $0x18] sm:$0xff]  ;;  %v6543_v3 = vand.u32 2147483648, %v6500_v4  ;;  %v6541_v33 = vand.u32 2147483647, %v6500_v4  ;;  %vm6537_vm3 = vweird.f32 %v6500_v4 }
 0x5eb   :  { %v232_v2 = vsel %vm231_vm0, %v8674_v57, %v228_v48 }
 0x5ec   :  { %v6338_v35 = vmul.f32 %v14682_v47, %v6303_v37  ;;  %v233_v43 = vmul.f32 %v232_v2, %v14376_v6  ;;  %v5815_v6 = vmul.f32 %v14707_v38, %v14707_v38  ;;  %7186 = vmatpush.msrb.mxu1 %v7073_v63  ;;  %8601 = vmatpush.msra.mxu3 %v7073_v63  ;;  %vm6542_vm10 = vcmp.eq.f32.partialorder %v6541_v33, 8.507059e+37 }
 0x5ee   :  { %v6373_v59 = vadd.f32 %v14690_v41, %v6338_v35  ;;  %v237_v57 = vmul.f32 %v8659_v19, %v233_v43  ;;  %7187 = vmatpush.msrb.mxu1 %v7072_v32  ;;  %v5897_v21 = vsel %vm204_vm4, %v5815_v6, 0.0  ;;  %8602 = vmatpush.msra.mxu3 %v7072_v32  ;;  %v14719_v35 = vadd.f32 %v14310_v28, %v13956_v45 }
 0x5ef   :  { %v6544_v45 = vor.u32 1.1754944e-38, %v6543_v3 }
 0x5f0   :  { %v8528_v53 = vmul.f32 -1.442695, %v6373_v59  ;;  %v241_v31 = vadd.f32 %v8660_v12, %v237_v57  ;;  %7188 = vmatpush.msrb.mxu1 %v7071_v49  ;;  %8603 = vmatpush.msra.mxu3 %v7071_v49  ;;  %17367 = vst [vmem:[#allocation66_spill] sm:$0xff] %v14719_v35  ;;  %v5672_v30 = vsel %vm204_vm4, %v14719_v35, 0.0 }
 0x5f2   :  { %8677 = vpow2.f32 %v8528_v53  ;;  %7189 = vmatpush.msrb.mxu1 %v7070_v39  ;;  %v14721_v59 = vmax.f32 %v241_v31, 0.0  ;;  %8604 = vmatpush.msra.mxu3 %v7070_v39 }
 0x5f3   :  { %8679 = vrcp.f32 %v6500_v4 }
 0x5f4   :  { %7190 = vmatpush.msrb.mxu1 %v7069_v54  ;;  %8605 = vmatpush.msra.mxu3 %v7069_v54  ;;  %v14726_v14 = vperm.slane %v14721_v59, 0 }
 0x5f6   :  { %7191 = vmatpush.msrb.mxu1 %v7068_v44  ;;  %8606 = vmatpush.msra.mxu3 %v7068_v44 }
 0x5f7   :  { %v5622_v1 = vpop.f32.mrf.mxu2 }
 0x5f8   :  { %v14699_v60 = vadd.f32 %v14310_v28, %v5622_v1  ;;  %v8678_v36 = vpop.eup %8677 }
 0x5f9   :  { %v6501_v51 = vadd.f32 1.0, %v8678_v36  ;;  %v8680_v15 = vpop.eup %8679 }
 0x5fa   :  { %v5720_v29 = vsel %vm204_vm4, %v14699_v60, 0.0  ;;  %v6533_v37 = vmul.f32 %v8680_v15, %v6500_v4  ;;  %vm6538_vm1 = vweird.f32 %v8680_v15  ;;  %v5872_v4 = vpop.xlane.xlu0 %5871 }
 0x5fb   :  { %5721 = vadd.xlane.f32.xlu0 %v5720_v29  ;;  %8681 = vrcp.f32 %v6501_v51  ;;  %vm6539_vm9 = vmor %vm6537_vm3, %vm6538_vm1  ;;  %v6558_v29 = vand.u32 2147483648, %v6501_v51  ;;  %v6556_v8 = vand.u32 2147483647, %v6501_v51  ;;  %vm6552_vm7 = vweird.f32 %v6501_v51 }
 0x5fc   :  { %v6534_v34 = vsub.f32 1.0, %v6533_v37  ;;  %v5934_v37 = vmul.f32 %v5872_v4, %v14353_v7 }
 0x5fd   :  { %v6559_v12 = vor.u32 1.1754944e-38, %v6558_v29  ;;  %vm6557_vm11 = vcmp.eq.f32.partialorder %v6556_v8, 8.507059e+37 }
 0x5fe   :  { %v6535_v53 = vmul.f32 %v8680_v15, %v6534_v34  ;;  %v5884_v3 = vpop.xlane.xlu1 %5883 }
 0x600   :  { %v6536_v1 = vadd.f32 %v8680_v15, %v6535_v53 }
 0x601   :  { %v8682_v48 = vpop.eup %8681 }
 0x602   :  { %v6540_v28 = vsel %vm6539_vm9, %v8680_v15, %v6536_v1  ;;  %v6548_v2 = vmul.f32 %v8682_v48, %v6501_v51  ;;  %vm6553_vm6 = vweird.f32 %v8682_v48  ;;  %v5878_v15 = vpop.xlane.xlu2 %5877  ;;  %v5875_v49 = vpop.xlane.xlu0 %5874  ;;  %v14737_v51 = vadd.f32 1e-05, %v5934_v37 }
 0x603   :  { %5898 = vadd.xlane.f32.xlu0 %v5897_v21  ;;  %v6545_v36 = vsel %vm6542_vm10, %v6544_v45, %v6540_v28  ;;  %vm6554_vm2 = vmor %vm6552_vm7, %vm6553_vm6  ;;  %v5935_v33 = vmul.f32 %v5875_v49, %v14353_v7  ;;  %v5936_v1 = vmul.f32 %v5878_v15, %v14353_v7  ;;  %v5938_v45 = vmul.f32 %v5884_v3, %v14353_v7 }
 0x604   :  { %v7036_v19 = vmul.f32 %v14726_v14, %v6545_v36  ;;  %v6549_v43 = vsub.f32 1.0, %v6548_v2  ;;  %8683 = vrsqrt.f32 %v14737_v51  ;;  %vm6148_vm15 = vweird.f32 %v14737_v51 }
 0x605   :  { %v14753_v36 = vadd.f32 1e-05, %v5936_v1 }
 0x606   :  { %8559 = vmatmul.msk.f32.vlgmr.msrb.gmra.mxu1 %vm204_vm4, %v7036_v19  ;;  %v6550_v13 = vmul.f32 %v8682_v48, %v6549_v43  ;;  %v14755_v19 = vpop.xlane.xlu1 %5658 }
 0x607   :  { %vm6168_vm0 = vweird.f32 %v14753_v36 }
 0x608   :  { %v6551_v63 = vadd.f32 %v8682_v48, %v6550_v13 }
 0x60a   :  { %v6555_v57 = vsel %vm6554_vm2, %v8682_v48, %v6551_v63  ;;  %v5653_v31 = vpop.xlane.xlu2 %5652  ;;  %v5869_v21 = vpop.xlane.xlu0 %5868  ;;  %v14744_v48 = vadd.f32 1e-05, %v5935_v33  ;;  %v14762_v63 = vadd.f32 1e-05, %v5938_v45 }
 0x60b   :  { %5673 = vadd.xlane.f32.xlu0 %v5672_v30  ;;  %v6560_v6 = vsel %vm6557_vm11, %v6559_v12, %v6555_v57  ;;  %v5733_v39 = vmul.f32 %v5653_v31, %v14353_v7  ;;  %v5933_v30 = vmul.f32 %v5869_v21, %v14353_v7  ;;  %v14749_v28 = vpop.eup %8683 }
 0x60c   :  { %v7037_v32 = vmul.f32 %v14726_v14, %v6560_v6  ;;  %8685 = vrsqrt.f32 %v14744_v48  ;;  %v6143_v8 = vmul.f32 %v14749_v28, %v14737_v51  ;;  %v8936_v6 = vld [vmem:[%s16838_s10] ss:$0 sm:$0xff]  ;;  %vm6149_vm12 = vweird.f32 %v14749_v28  ;;  %s17437_s10 = sld [smem:[#allocation80_spill]] }
 0x60d   :  { %v14735_v54 = vsub.f32 %v14552_v61, %v5733_v39  ;;  %v14757_v4 = vadd.f32 1e-05, %v5933_v30  ;;  %8687 = vrsqrt.f32 %v14753_v36  ;;  %vm6150_vm13 = vmor %vm6148_vm15, %vm6149_vm12  ;;  %vm6158_vm14 = vweird.f32 %v14744_v48 }
 0x60e   :  { %8560 = vmatmul.msk.f32.gmra.mxu1 %vm204_vm4, %v7037_v32  ;;  %v6144_v31 = vmul.f32 %v14749_v28, %v6143_v8  ;;  %vm6188_vm11 = vweird.f32 %v14762_v63 }
 0x60f   :  { %17368 = vst [vmem:[#allocation62_spill] sm:$0xff] %v14735_v54  ;;  %v5797_v34 = vmul.f32 %v14735_v54, %v14735_v54  ;;  %8689 = vrsqrt.f32 %v14757_v4  ;;  %vm6138_vm9 = vweird.f32 %v14757_v4 }
 0x610   :  { %8691 = vrsqrt.f32 %v14762_v63 }
 0x611   :  { %v5843_v53 = vsel %vm204_vm4, %v5797_v34, 0.0 }
 0x612   :  { %v5704_v44 = vpop.xlane.xlu0 %5703  ;;  %5844 = vadd.xlane.f32.xlu1 %v5843_v53  ;;  %v14777_v49 = vpop.eup %8685  ;;  %s8383_s23 = sshll.u32 %s17437_s10, 4  ;;  %s8384_s23 = int_to_ptr.hbm [resolvable:$true] %s8383_s23 }
 0x613   :  { %v5750_v29 = vmul.f32 %v5704_v44, %v14353_v7  ;;  %v6153_v39 = vmul.f32 %v14777_v49, %v14744_v48  ;;  %v14790_v3 = vpop.eup %8687  ;;  %v6145_v44 = vmul.f32 0.5, %v6144_v31  ;;  %v17371_v31 = vld [vmem:[#allocation47_spill] sm:$0xff]  ;;  %vm6159_vm5 = vweird.f32 %v14777_v49 }
 0x614   :  { %v5830_v61 = vpop.xlane.xlu2 %5829  ;;  %vm14851_vm8 = vmor %vm6158_vm14, %vm6159_vm5  ;;  %vm6169_vm1 = vweird.f32 %v14790_v3 }
 0x615   :  { %v5920_v2 = vmul.f32 %v5830_v61, %v14353_v7  ;;  %v14775_v15 = vsub.f32 %v14572_v55, %v5750_v29  ;;  %v14792_v33 = vpop.eup %8689  ;;  %v6163_v29 = vmul.f32 %v14790_v3, %v14753_v36  ;;  %v6146_v8 = vsub.f32 1.5, %v6145_v44  ;;  %vm14873_vm6 = vmor %vm6168_vm0, %vm6169_vm1 }
 0x616   :  { %v5836_v53 = vpop.xlane.xlu1 %5835  ;;  %v14798_v45 = vpop.eup %8691  ;;  %vm6139_vm3 = vweird.f32 %v14792_v33 }
 0x617   :  { %v14764_v12 = vadd.f32 1e-05, %v5920_v2  ;;  %17370 = vst [vmem:[#allocation69_spill] sm:$0xff] %v14775_v15  ;;  %v5814_v37 = vmul.f32 %v14775_v15, %v14775_v15  ;;  %v5922_v30 = vmul.f32 %v5836_v53, %v14353_v7  ;;  %vm6189_vm10 = vweird.f32 %v14798_v45  ;;  %vm14887_vm2 = vmor %vm6138_vm9, %vm6139_vm3 }
 0x618   :  { %vm14897_vm12 = vmor %vm6188_vm11, %vm6189_vm10 }
 0x619   :  { %8693 = vrsqrt.f32 %v14764_v12  ;;  %v5894_v1 = vsel %vm204_vm4, %v5814_v37, 0.0  ;;  %v14810_v37 = vadd.f32 %v8936_v6, %v17371_v31  ;;  %vm6008_vm15 = vweird.f32 %v14764_v12 }
 0x61a   :  { %5895 = vadd.xlane.f32.xlu2 %v5894_v1  ;;  %v6164_v1 = vmul.f32 %v14790_v3, %v6163_v29 }
 0x61b   :  { %17372 = vst [vmem:[#allocation71_spill] sm:$0xff] %v14810_v37 }
 0x61c   :  { %v5710_v34 = vpop.xlane.xlu2 %5709 }
 0x61d   :  { %v5881_v43 = vpop.xlane.xlu0 %5880  ;;  %v5752_v61 = vmul.f32 %v5710_v34, %v14353_v7 }
 0x61e   :  { %v5937_v57 = vmul.f32 %v5881_v43, %v14353_v7  ;;  %v6154_v43 = vmul.f32 %v14777_v49, %v6153_v39 }
 0x61f   :  { %v14800_v2 = vpop.eup %8693  ;;  %v14815_v34 = vsub.f32 %v14590_v26, %v5752_v61  ;;  %v5669_v61 = vsel %vm204_vm4, %v14810_v37, 0.0 }
 0x620   :  { %v14782_v21 = vadd.f32 1e-05, %v5937_v57  ;;  %v6133_v57 = vmul.f32 %v14792_v33, %v14757_v4  ;;  %v6003_v39 = vmul.f32 %v14800_v2, %v14764_v12  ;;  %v6155_v44 = vmul.f32 0.5, %v6154_v43 }
 0x621   :  { %17373 = vst [vmem:[#allocation20_spill] sm:$0xff] %v14815_v34  ;;  %v5816_v15 = vmul.f32 %v14815_v34, %v14815_v34  ;;  %vm6009_vm7 = vweird.f32 %v14800_v2 }
 0x622   :  { %8695 = vrsqrt.f32 %v14782_v21  ;;  %v6004_v43 = vmul.f32 %v14800_v2, %v6003_v39  ;;  %5670 = vadd.xlane.f32.xlu2 %v5669_v61  ;;  %vm6178_vm14 = vweird.f32 %v14782_v21 }
 0x623   :  { %v5900_v37 = vsel %vm204_vm4, %v5816_v15, 0.0 }
 0x624   :  { %v5887_v54 = vpop.xlane.xlu2 %5886 }
 0x625   :  { %v5656_v26 = vpop.xlane.xlu0 %5655 }
 0x628   :  { %v14820_v53 = vpop.eup %8695 }
 0x629   :  { %v6173_v29 = vmul.f32 %v14820_v53, %v14782_v21  ;;  %vm6179_vm5 = vweird.f32 %v14820_v53 }
 0x62a   :  { %vm14924_vm0 = vmor %vm6178_vm14, %vm6179_vm5 }
 0x62b   :  { %v6174_v61 = vmul.f32 %v14820_v53, %v6173_v29 }
 0x62c   :  { %v5625_v13 = vpop.f32.mrf.mxu2 }
 0x62d   :  { %v14771_v32 = vadd.f32 %v8936_v6, %v5625_v13  ;;  %v14805_v13 = vadd.f32 1e-05, %v5922_v30  ;;  %v6147_v30 = vmul.f32 %v14749_v28, %v6146_v8  ;;  %v6134_v6 = vmul.f32 %v14792_v33, %v6133_v57  ;;  %v5833_v48 = vpop.xlane.xlu0 %5832 }
 0x62e   :  { %v5939_v8 = vmul.f32 %v5887_v54, %v14353_v7  ;;  %v6005_v54 = vmul.f32 0.5, %v6004_v43  ;;  %v6175_v43 = vmul.f32 0.5, %v6174_v61 }
 0x62f   :  { %17369 = vst [vmem:[#allocation72_spill] sm:$0xff] %v14771_v32  ;;  %v5723_v55 = vsel %vm204_vm4, %v14771_v32, 0.0  ;;  %8697 = vrsqrt.f32 %v14805_v13  ;;  %v6165_v32 = vmul.f32 0.5, %v6164_v1  ;;  %v6151_v34 = vsel %vm6150_vm13, %v14749_v28, %v6147_v30  ;;  %vm6010_vm13 = vmor %vm6008_vm15, %vm6009_vm7 }
 0x630   :  { %5724 = vadd.xlane.f32.xlu1 %v5723_v55  ;;  %v6183_v55 = vmul.f32 %v14798_v45, %v14762_v63  ;;  %v6135_v38 = vmul.f32 0.5, %v6134_v6  ;;  %v14842_v35 = vadd.f32 1e-05, %v5939_v8  ;;  %v5921_v8 = vmul.f32 %v5833_v48, %v14353_v7  ;;  %v14928_v48 = vpop.xlane.xlu1 %5715 }
 0x631   :  { %v6166_v15 = vsub.f32 1.5, %v6165_v32  ;;  %v6176_v61 = vsub.f32 1.5, %v6175_v43  ;;  %vm6028_vm1 = vweird.f32 %v14805_v13 }
 0x632   :  { %v6184_v31 = vmul.f32 %v14798_v45, %v6183_v55  ;;  %v6156_v55 = vsub.f32 1.5, %v6155_v44  ;;  %v6318_v44 = vmul.f32 %v6151_v34, %v14501_v16  ;;  %8699 = vrsqrt.f32 %v14842_v35 }
 0x633   :  { %v6136_v28 = vsub.f32 1.5, %v6135_v38  ;;  %v6167_v38 = vmul.f32 %v14790_v3, %v6166_v15  ;;  %v6177_v12 = vmul.f32 %v14820_v53, %v6176_v61  ;;  %vm6198_vm10 = vweird.f32 %v14842_v35 }
 0x634   :  { %v6185_v39 = vmul.f32 0.5, %v6184_v31  ;;  %v6157_v1 = vmul.f32 %v14777_v49, %v6156_v55  ;;  %v6006_v31 = vsub.f32 1.5, %v6005_v54  ;;  %v6353_v16 = vmul.f32 %v14682_v47, %v6318_v44 }
 0x635   :  { %v14836_v57 = vpop.eup %8697  ;;  %v6137_v34 = vmul.f32 %v14792_v33, %v6136_v28  ;;  %v6181_v21 = vsel %vm14924_vm0, %v14820_v53, %v6177_v12 }
 0x636   :  { %v6023_v51 = vmul.f32 %v14836_v57, %v14805_v13  ;;  %v6161_v32 = vsel %vm14851_vm8, %v14777_v49, %v6157_v1  ;;  %v5734_v49 = vmul.f32 %v5656_v26, %v14353_v7  ;;  %v6007_v54 = vmul.f32 %v14800_v2, %v6006_v31 }
 0x637   :  { %v6319_v44 = vmul.f32 %v6161_v32, %v14504_v50  ;;  %v6171_v26 = vsel %vm14873_vm6, %v14790_v3, %v6167_v38  ;;  %v14892_v1 = vadd.f32 1e-05, %v5921_v8  ;;  %v6141_v15 = vsel %vm14887_vm2, %v14792_v33, %v6137_v34 }
 0x638   :  { %5901 = vadd.xlane.f32.xlu1 %v5900_v37  ;;  %v6024_v30 = vmul.f32 %v14836_v57, %v6023_v51  ;;  %v6186_v37 = vsub.f32 1.5, %v6185_v39  ;;  %v14865_v55 = vpop.eup %8699  ;;  %v14910_v33 = vsub.f32 %v14605_v22, %v5734_v49  ;;  %v6320_v43 = vmul.f32 %v6171_v26, %v14527_v10  ;;  %v5662_v26 = vpop.xlane.xlu2 %5661 }
 0x639   :  { %v6193_v4 = vmul.f32 %v14865_v55, %v14842_v35  ;;  %8701 = vrsqrt.f32 %v14892_v1  ;;  %v6354_v31 = vmul.f32 %v14682_v47, %v6319_v44  ;;  %vm6029_vm8 = vweird.f32 %v14836_v57 }
 0x63a   :  { %v6025_v29 = vmul.f32 0.5, %v6024_v30  ;;  %v6187_v51 = vmul.f32 %v14798_v45, %v6186_v37  ;;  %v6388_v30 = vadd.f32 %v14690_v41, %v6353_v16  ;;  %v6011_v37 = vsel %vm6010_vm13, %v14800_v2, %v6007_v54  ;;  %vm6030_vm3 = vmor %vm6028_vm1, %vm6029_vm8 }
 0x63b   :  { %v6194_v28 = vmul.f32 %v14865_v55, %v6193_v4  ;;  %v6304_v32 = vmul.f32 %v6011_v37, %v14561_v56  ;;  %v5798_v10 = vmul.f32 %v14910_v33, %v14910_v33  ;;  %v6355_v56 = vmul.f32 %v14682_v47, %v6320_v43 }
 0x63c   :  { %v6026_v3 = vsub.f32 1.5, %v6025_v29  ;;  %v6191_v63 = vsel %vm14897_vm12, %v14798_v45, %v6187_v51  ;;  %v6317_v45 = vmul.f32 %v6141_v15, %v14534_v24  ;;  %v8543_v24 = vmul.f32 -1.442695, %v6388_v30 }
 0x63d   :  { %v6195_v6 = vmul.f32 0.5, %v6194_v28  ;;  %v6322_v2 = vmul.f32 %v6191_v63, %v14530_v40  ;;  %v6389_v40 = vadd.f32 %v14690_v41, %v6354_v31  ;;  %v5846_v8 = vsel %vm204_vm4, %v5798_v10, 0.0 }
 0x63e   :  { %v6027_v22 = vmul.f32 %v14836_v57, %v6026_v3  ;;  %v6352_v29 = vmul.f32 %v14682_v47, %v6317_v45  ;;  %vm6199_vm9 = vweird.f32 %v14865_v55  ;;  %5847 = vadd.xlane.f32.xlu2 %v5846_v8  ;;  %v6339_v39 = vmul.f32 %v14682_v47, %v6304_v32  ;;  %v5893_v30 = vpop.xlane.xlu1 %5892 }
 0x63f   :  { %v6196_v16 = vsub.f32 1.5, %v6195_v6  ;;  %v8702_v34 = vpop.eup %8701  ;;  %v6357_v13 = vmul.f32 %v14682_v47, %v6322_v2  ;;  %v6321_v54 = vmul.f32 %v6181_v21, %v14584_v27  ;;  %8703 = vpow2.f32 %v8543_v24  ;;  %vm14949_vm6 = vmor %vm6198_vm10, %vm6199_vm9 }
 0x640   :  { %v6031_v51 = vsel %vm6030_vm3, %v14836_v57, %v6027_v22  ;;  %v6013_v53 = vmul.f32 %v8702_v34, %v14892_v1  ;;  %v8544_v4 = vmul.f32 -1.442695, %v6389_v40  ;;  %v6390_v36 = vadd.f32 %v14690_v41, %v6355_v56  ;;  %v5713_v56 = vpop.xlane.xlu0 %5712  ;;  %v5839_v8 = vpop.xlane.xlu2 %5838 }
 0x641   :  { %v6197_v49 = vmul.f32 %v14865_v55, %v6196_v16  ;;  %v6306_v57 = vmul.f32 %v6031_v51, %v14577_v9  ;;  %v6387_v15 = vadd.f32 %v14690_v41, %v6352_v29  ;;  %v6392_v35 = vadd.f32 %v14690_v41, %v6357_v13 }
 0x642   :  { %v6014_v61 = vmul.f32 %v8702_v34, %v6013_v53  ;;  %v6374_v3 = vadd.f32 %v14690_v41, %v6339_v39  ;;  %v5735_v9 = vmul.f32 %v14755_v19, %v14353_v7  ;;  %v6356_v28 = vmul.f32 %v14682_v47, %v6321_v54 }
 0x643   :  { %v6201_v27 = vsel %vm14949_vm6, %v14865_v55, %v6197_v49  ;;  %vm6019_vm7 = vweird.f32 %v8702_v34  ;;  %v5736_v37 = vmul.f32 %v5662_v26, %v14353_v7  ;;  %v5941_v12 = vmul.f32 %v5893_v30, %v14353_v7 }
 0x644   :  { %v6015_v50 = vmul.f32 0.5, %v6014_v61  ;;  %v6341_v6 = vmul.f32 %v14682_v47, %v6306_v57  ;;  %v6323_v55 = vmul.f32 %v6201_v27, %v14596_v25  ;;  %v8542_v31 = vmul.f32 -1.442695, %v6387_v15 }
 0x645   :  { %vm6018_vm2 = vweird.f32 %v14892_v1  ;;  %v14968_v45 = vadd.f32 1e-05, %v5941_v12  ;;  %v8704_v19 = vpop.eup %8703  ;;  %8705 = vpow2.f32 %v8544_v4  ;;  %v8545_v22 = vmul.f32 -1.442695, %v6390_v36 }
 0x646   :  { %v6016_v63 = vsub.f32 1.5, %v6015_v50  ;;  %v8547_v16 = vmul.f32 -1.442695, %v6392_v35  ;;  %v14971_v2 = vsub.f32 %v14557_v58, %v5735_v9  ;;  %vm6020_vm11 = vmor %vm6018_vm2, %vm6019_vm7  ;;  %v8529_v32 = vmul.f32 -1.442695, %v6374_v3 }
 0x647   :  { %v6391_v38 = vadd.f32 %v14690_v41, %v6356_v28  ;;  %v14975_v25 = vsub.f32 %v14612_v20, %v5736_v37  ;;  %v6376_v24 = vadd.f32 %v14690_v41, %v6341_v6  ;;  %v6358_v1 = vmul.f32 %v14682_v47, %v6323_v55 }
 0x648   :  { %v6017_v43 = vmul.f32 %v8702_v34, %v6016_v63  ;;  %8707 = vrsqrt.f32 %v14968_v45  ;;  %v14981_v40 = vadd.f32 1.0, %v8704_v19  ;;  %v5799_v20 = vmul.f32 %v14971_v2, %v14971_v2 }
 0x649   :  { %8709 = vpow2.f32 %v8542_v31  ;;  %v5800_v29 = vmul.f32 %v14975_v25, %v14975_v25  ;;  %v6393_v49 = vadd.f32 %v14690_v41, %v6358_v1  ;;  %v5923_v53 = vmul.f32 %v5839_v8, %v14353_v7  ;;  %v5890_v31 = vpop.xlane.xlu0 %5889 }
 0x64a   :  { %v6021_v10 = vsel %vm6020_vm11, %v8702_v34, %v6017_v43  ;;  %8711 = vpow2.f32 %v8545_v22  ;;  %v8546_v34 = vmul.f32 -1.442695, %v6391_v38  ;;  %v5753_v39 = vmul.f32 %v5713_v56, %v14353_v7 }
 0x64b   :  { %v6305_v21 = vmul.f32 %v6021_v10, %v14619_v17  ;;  %8713 = vpow2.f32 %v8547_v16  ;;  %v8706_v51 = vpop.eup %8705  ;;  %v8531_v17 = vmul.f32 -1.442695, %v6376_v24  ;;  %v5849_v54 = vsel %vm204_vm4, %v5799_v20, 0.0 }
 0x64c   :  { %8715 = vpow2.f32 %v8529_v32  ;;  %v5852_v61 = vsel %vm204_vm4, %v5800_v29, 0.0  ;;  %5850 = vadd.xlane.f32.xlu2 %v5849_v54  ;;  %v14994_v57 = vadd.f32 1e-05, %v5923_v53  ;;  %v14996_v26 = vadd.f32 1.0, %v8706_v51 }
 0x64d   :  { %v6340_v58 = vmul.f32 %v14682_v47, %v6305_v21  ;;  %5853 = vadd.xlane.f32.xlu1 %v5852_v61  ;;  %8717 = vpow2.f32 %v8546_v34  ;;  %v8548_v27 = vmul.f32 -1.442695, %v6393_v49  ;;  %v15001_v3 = vsub.f32 %v14634_v5, %v5753_v39 }
 0x64e   :  { %v8708_v4 = vpop.eup %8707  ;;  %8719 = vpow2.f32 %v8531_v17  ;;  %v5940_v22 = vmul.f32 %v5890_v31, %v14353_v7  ;;  %v7015_v16 = vrot.slane %v14721_v59, 3  ;;  %v5754_v38 = vmul.f32 %v14928_v48, %v14353_v7 }
 0x64f   :  { %v6375_v13 = vadd.f32 %v14690_v41, %v6340_v58  ;;  %v8710_v44 = vpop.eup %8709  ;;  %v6213_v36 = vmul.f32 %v8708_v4, %v14968_v45  ;;  %8721 = vrcp.f32 %v14981_v40  ;;  %vm6219_vm12 = vweird.f32 %v8708_v4 }
 0x650   :  { %v8712_v15 = vpop.eup %8711  ;;  %v15003_v30 = vadd.f32 1.0, %v8710_v44  ;;  %8723 = vrsqrt.f32 %v14994_v57  ;;  %v5817_v5 = vmul.f32 %v15001_v3, %v15001_v3  ;;  %vm6218_vm15 = vweird.f32 %v14968_v45 }
 0x651   :  { %v8714_v50 = vpop.eup %8713  ;;  %v8530_v35 = vmul.f32 -1.442695, %v6375_v13  ;;  %v6214_v9 = vmul.f32 %v8708_v4, %v6213_v36  ;;  %8725 = vrcp.f32 %v14996_v26  ;;  %v15007_v37 = vadd.f32 1.0, %v8712_v15  ;;  %vm6220_vm13 = vmor %vm6218_vm15, %vm6219_vm12 }
 0x652   :  { %v8716_v28 = vpop.eup %8715  ;;  %v15009_v12 = vadd.f32 1.0, %v8714_v50  ;;  %8727 = vpow2.f32 %v8548_v27  ;;  %v5903_v24 = vsel %vm204_vm4, %v5817_v5, 0.0  ;;  %v15028_v58 = vadd.f32 1e-05, %v5940_v22  ;;  %v5668_v27 = vpop.xlane.xlu1 %5667 }
 0x653   :  { %v6215_v63 = vmul.f32 0.5, %v6214_v9  ;;  %v8718_v6 = vpop.eup %8717  ;;  %8729 = vpow2.f32 %v8530_v35  ;;  %v15014_v19 = vadd.f32 1.0, %v8716_v28  ;;  %5904 = vadd.xlane.f32.xlu0 %v5903_v24  ;;  %v7016_v56 = vrot.slane %v14721_v59, 4  ;;  %v5719_v35 = vpop.xlane.xlu2 %5718 }
 0x654   :  { %v8720_v43 = vpop.eup %8719  ;;  %8731 = vrcp.f32 %v15003_v30  ;;  %v15025_v21 = vadd.f32 1.0, %v8718_v6  ;;  %v15039_v51 = vsub.f32 %v14622_v52, %v5754_v38  ;;  %v15046_v13 = vperm.slane %v7015_v16, 0 }
 0x655   :  { %v6216_v55 = vsub.f32 1.5, %v6215_v63  ;;  %v15018_v32 = vpop.eup %8721  ;;  %8733 = vrcp.f32 %v15007_v37  ;;  %v15034_v48 = vadd.f32 1.0, %v8720_v43  ;;  %v15051_v61 = vperm.slane %v7016_v56, 0 }
 0x656   :  { %v8724_v1 = vpop.eup %8723  ;;  %8735 = vrcp.f32 %v15009_v12  ;;  %vm6038_vm5 = vweird.f32 %v14994_v57  ;;  %v5818_v50 = vmul.f32 %v15039_v51, %v15039_v51  ;;  %v5738_v63 = vmul.f32 %v5668_v27, %v14353_v7 }
 0x657   :  { %v6217_v10 = vmul.f32 %v8708_v4, %v6216_v55  ;;  %v15031_v34 = vpop.eup %8725  ;;  %v6033_v20 = vmul.f32 %v8724_v1, %v14994_v57  ;;  %8737 = vrcp.f32 %v15014_v19  ;;  %vm6039_vm14 = vweird.f32 %v8724_v1  ;;  %v5665_v55 = vpop.xlane.xlu0 %5664 }
 0x658   :  { %v8728_v29 = vpop.eup %8727  ;;  %8739 = vrsqrt.f32 %v15028_v58  ;;  %v5755_v6 = vmul.f32 %v5719_v35, %v14353_v7  ;;  %vm6762_vm8 = vweird.f32 %v15003_v30  ;;  %v6773_v5 = vmul.f32 %v15018_v32, %v14981_v40  ;;  %vm6040_vm0 = vmor %vm6038_vm5, %vm6039_vm14 }
 0x659   :  { %v6221_v45 = vsel %vm6220_vm13, %v8708_v4, %v6217_v10  ;;  %v8730_v8 = vpop.eup %8729  ;;  %v6034_v49 = vmul.f32 %v8724_v1, %v6033_v20  ;;  %8741 = vrcp.f32 %v15025_v21  ;;  %v15049_v39 = vadd.f32 1.0, %v8728_v29 }
 0x65a   :  { %v6325_v17 = vmul.f32 %v6221_v45, %v14638_v62  ;;  %v15043_v53 = vpop.eup %8731  ;;  %8743 = vrcp.f32 %v15034_v48  ;;  %v15055_v4 = vadd.f32 1.0, %v8730_v8  ;;  %v6781_v62 = vand.u32 2147483647, %v14981_v40 }
 0x65b   :  { %v6035_v54 = vmul.f32 0.5, %v6034_v49  ;;  %v15053_v52 = vpop.eup %8733  ;;  %v6758_v9 = vmul.f32 %v15043_v53, %v15003_v30  ;;  %v5906_v22 = vsel %vm204_vm4, %v5818_v50, 0.0  ;;  %v5737_v16 = vmul.f32 %v5665_v55, %v14353_v7 }
 0x65c   :  { %v15059_v44 = vpop.eup %8735  ;;  %v15062_v36 = vmul.f32 %v14682_v47, %v6325_v17  ;;  %v15084_v56 = vsub.f32 %v14658_v42, %v5738_v63  ;;  %5907 = vadd.xlane.f32.xlu2 %v5906_v22  ;;  %vm6763_vm3 = vweird.f32 %v15043_v53  ;;  %v15090_v29 = vsub.f32 %v14661_v0, %v5755_v6 }
 0x65d   :  { %v6036_v15 = vsub.f32 1.5, %v6035_v54  ;;  %v15068_v28 = vpop.eup %8737  ;;  %v6759_v38 = vsub.f32 1.0, %v6758_v9  ;;  %v15093_v8 = vsub.f32 %v14671_v23, %v5737_v16  ;;  %v6766_v54 = vand.u32 2147483647, %v15003_v30  ;;  %vm6764_vm9 = vmor %vm6762_vm8, %vm6763_vm3 }
 0x65e   :  { %v8740_v31 = vpop.eup %8739  ;;  %v5802_v42 = vmul.f32 %v15084_v56, %v15084_v56  ;;  %v6768_v0 = vand.u32 2147483648, %v15003_v30  ;;  %v6774_v16 = vsub.f32 1.0, %v6773_v5  ;;  %vm6208_vm6 = vweird.f32 %v15028_v58 }
 0x65f   :  { %v6037_v43 = vmul.f32 %v8724_v1, %v6036_v15  ;;  %v15077_v10 = vpop.eup %8741  ;;  %v6203_v24 = vmul.f32 %v8740_v31, %v15028_v58  ;;  %vm6209_vm1 = vweird.f32 %v8740_v31  ;;  %v6760_v57 = vmul.f32 %v15043_v53, %v6759_v38  ;;  %v5842_v22 = vpop.xlane.xlu0 %5841 }
 0x660   :  { %v15087_v45 = vpop.eup %8743  ;;  %v5819_v15 = vmul.f32 %v15090_v29, %v15090_v29  ;;  %v5801_v23 = vmul.f32 %v15093_v8, %v15093_v8  ;;  %vm6767_vm10 = vcmp.eq.f32.partialorder %v6766_v54, 8.507059e+37  ;;  %v6769_v63 = vor.u32 1.1754944e-38, %v6768_v0  ;;  %vm6210_vm2 = vmor %vm6208_vm6, %vm6209_vm1 }
 0x661   :  { %v6041_v20 = vsel %vm6040_vm0, %v8724_v1, %v6037_v43  ;;  %v6204_v49 = vmul.f32 %v8740_v31, %v6203_v24  ;;  %v6761_v1 = vadd.f32 %v15043_v53, %v6760_v57  ;;  %v6788_v38 = vmul.f32 %v15031_v34, %v14996_v26 }
 0x662   :  { %v6307_v17 = vmul.f32 %v6041_v20, %v14641_v18  ;;  %v5858_v18 = vsel %vm204_vm4, %v5802_v42, 0.0  ;;  %v5909_v35 = vsel %vm204_vm4, %v5819_v15, 0.0  ;;  %v5855_v6 = vsel %vm204_vm4, %v5801_v23, 0.0 }
 0x663   :  { %v6205_v50 = vmul.f32 0.5, %v6204_v49  ;;  %v6765_v9 = vsel %vm6764_vm9, %v15043_v53, %v6761_v1  ;;  %5910 = vadd.xlane.f32.xlu1 %v5909_v35  ;;  %5856 = vadd.xlane.f32.xlu0 %v5855_v6  ;;  %v5924_v24 = vmul.f32 %v5842_v22, %v14353_v7  ;;  %v6783_v53 = vand.u32 2147483648, %v14981_v40 }
 0x664   :  { %v6342_v27 = vmul.f32 %v14682_v47, %v6307_v17  ;;  %v6770_v30 = vsel %vm6767_vm10, %v6769_v63, %v6765_v9  ;;  %5859 = vadd.xlane.f32.xlu2 %v5858_v18  ;;  %v6775_v17 = vmul.f32 %v15018_v32, %v6774_v16  ;;  %vm6778_vm7 = vweird.f32 %v15018_v32 }
 0x665   :  { %v6206_v43 = vsub.f32 1.5, %v6205_v50  ;;  %v7051_v57 = vmul.f32 %v15046_v13, %v6770_v30  ;;  %v15125_v5 = vadd.f32 1e-05, %v5924_v24  ;;  %vm6777_vm11 = vweird.f32 %v14981_v40 }
 0x666   :  { %v6377_v55 = vadd.f32 %v14690_v41, %v6342_v27  ;;  %vm15130_vm12 = vcmp.eq.f32.partialorder %v6781_v62, 8.507059e+37  ;;  %v6789_v49 = vsub.f32 1.0, %v6788_v38  ;;  %v6395_v42 = vadd.f32 %v14690_v41, %v15062_v36  ;;  %vm6779_vm15 = vmor %vm6777_vm11, %vm6778_vm7 }
 0x667   :  { %v6207_v20 = vmul.f32 %v8740_v31, %v6206_v43  ;;  %8574 = vmatmul.msk.f32.vlgmr.msra.gmra.mxu3 %vm204_vm4, %v7051_v57  ;;  %v6776_v1 = vadd.f32 %v15018_v32, %v6775_v17  ;;  %8745 = vrsqrt.f32 %v15125_v5  ;;  %v6784_v40 = vor.u32 1.1754944e-38, %v6783_v53 }
 0x668   :  { %v8532_v54 = vmul.f32 -1.442695, %v6377_v55  ;;  %v6790_v62 = vmul.f32 %v15031_v34, %v6789_v49  ;;  %8747 = vrcp.f32 %v15055_v4  ;;  %vm6793_vm13 = vweird.f32 %v15031_v34 }
 0x669   :  { %v6211_v15 = vsel %vm6210_vm2, %v8740_v31, %v6207_v20  ;;  %v6780_v23 = vsel %vm6779_vm15, %v15018_v32, %v6776_v1  ;;  %v6796_v36 = vand.u32 2147483647, %v14996_v26  ;;  %v6798_v50 = vand.u32 2147483648, %v14996_v26 }
 0x66a   :  { %v6324_v0 = vmul.f32 %v6211_v15, %v14644_v11  ;;  %v6785_v27 = vsel %vm15130_vm12, %v6784_v40, %v6780_v23  ;;  %v6791_v11 = vadd.f32 %v15031_v34, %v6790_v62  ;;  %v15150_v18 = vmul.f32 -1.442695, %v6395_v42 }
 0x66b   :  { %8749 = vpow2.f32 %v8532_v54  ;;  %v6563_v35 = vmul.f32 %v15068_v28, %v15014_v19  ;;  %vm6792_vm5 = vweird.f32 %v14996_v26  ;;  %v6803_v55 = vmul.f32 %v15053_v52, %v15007_v37 }
 0x66c   :  { %v6359_v31 = vmul.f32 %v14682_v47, %v6324_v0  ;;  %v6573_v47 = vand.u32 2147483648, %v15014_v19  ;;  %vm15158_vm14 = vmor %vm6792_vm5, %vm6793_vm13  ;;  %v7052_v22 = vmul.f32 %v15051_v61, %v6785_v27  ;;  %vm6797_vm8 = vcmp.eq.f32.partialorder %v6796_v36, 8.507059e+37 }
 0x66d   :  { %v6564_v43 = vsub.f32 1.0, %v6563_v35  ;;  %v6795_v26 = vsel %vm15158_vm14, %v15031_v34, %v6791_v11  ;;  %vm6567_vm0 = vweird.f32 %v15014_v19  ;;  %v6799_v30 = vor.u32 1.1754944e-38, %v6798_v50 }
 0x66e   :  { %v5722_v32 = vpop.xlane.xlu0 %5721  ;;  %v6394_v9 = vadd.f32 %v14690_v41, %v6359_v31  ;;  %v8746_v41 = vpop.eup %8745  ;;  %vm6568_vm1 = vweird.f32 %v15068_v28  ;;  %v6571_v57 = vand.u32 2147483647, %v15014_v19  ;;  %v6574_v34 = vor.u32 1.1754944e-38, %v6573_v47 }
 0x66f   :  { %v5756_v63 = vmul.f32 %v5722_v32, %v14353_v7  ;;  %v15172_v24 = vpop.eup %8747  ;;  %v6043_v53 = vmul.f32 %v8746_v41, %v15125_v5  ;;  %v6565_v20 = vmul.f32 %v15068_v28, %v6564_v43  ;;  %8575 = vmatmul.msk.f32.gmra.mxu3 %vm204_vm4, %v7052_v22  ;;  %v6800_v17 = vsel %vm6797_vm8, %v6799_v30, %v6795_v26  ;;  %vm6569_vm9 = vmor %vm6567_vm0, %vm6568_vm1 }
 0x670   :  { %v8549_v16 = vmul.f32 -1.442695, %v6394_v9  ;;  %vm6808_vm3 = vweird.f32 %v15053_v52  ;;  %v6811_v0 = vand.u32 2147483647, %v15007_v37  ;;  %v6813_v40 = vand.u32 2147483648, %v15007_v37 }
 0x671   :  { %v15170_v38 = vsub.f32 %v14699_v60, %v5756_v63  ;;  %v6804_v60 = vsub.f32 1.0, %v6803_v55  ;;  %v8750_v49 = vpop.eup %8749  ;;  %v6044_v42 = vmul.f32 %v8746_v41, %v6043_v53  ;;  %v6566_v54 = vadd.f32 %v15068_v28, %v6565_v20 }
 0x672   :  { %8751 = vpow2.f32 %v8549_v16  ;;  %vm6572_vm10 = vcmp.eq.f32.partialorder %v6571_v57, 8.507059e+37  ;;  %vm6807_vm6 = vweird.f32 %v15007_v37  ;;  %vm6049_vm7 = vweird.f32 %v8746_v41 }
 0x673   :  { %v5820_v58 = vmul.f32 %v15170_v38, %v15170_v38  ;;  %v6805_v1 = vmul.f32 %v15053_v52, %v6804_v60  ;;  %v6045_v62 = vmul.f32 0.5, %v6044_v42  ;;  %v6570_v23 = vsel %vm6569_vm9, %v15068_v28, %v6566_v54  ;;  %vm6809_vm2 = vmor %vm6807_vm6, %vm6808_vm3  ;;  %v15245_v54 = vld [vmem:[%s16840_s12] ss:$0 sm:$0xff] }
 0x674   :  { %v6575_v31 = vsel %vm6572_vm10, %v6574_v34, %v6570_v23  ;;  %v7053_v35 = vmul.f32 %v15051_v61, %v6800_v17  ;;  %v6814_v28 = vor.u32 1.1754944e-38, %v6813_v40  ;;  %v15197_v32 = vadd.f32 1.0, %v8750_v49 }
 0x675   :  { %v5912_v15 = vsel %vm204_vm4, %v5820_v58, 0.0  ;;  %v6806_v27 = vadd.f32 %v15053_v52, %v6805_v1  ;;  %v6046_v11 = vsub.f32 1.5, %v6045_v62  ;;  %v7038_v50 = vmul.f32 %v14726_v14, %v6575_v31  ;;  %v17390_v1 = vld [vmem:[#allocation66_spill] sm:$0xff] }
 0x676   :  { %5913 = vadd.xlane.f32.xlu0 %v5912_v15  ;;  %v5899_v36 = vpop.xlane.xlu0 %5898  ;;  %vm6812_vm11 = vcmp.eq.f32.partialorder %v6811_v0, 8.507059e+37  ;;  %8753 = vrcp.f32 %v15049_v39  ;;  %vm6048_vm12 = vweird.f32 %v15125_v5  ;;  %v7013_v22 = vrot.slane %v14721_v59, 1 }
 0x677   :  { %v5943_v19 = vmul.f32 %v5899_v36, %v14353_v7  ;;  %v6810_v37 = vsel %vm6809_vm2, %v15053_v52, %v6806_v27  ;;  %v6047_v63 = vmul.f32 %v8746_v41, %v6046_v11  ;;  %8561 = vmatmul.msk.f32.gmra.mxu1 %vm204_vm4, %v7038_v50  ;;  %8576 = vmatmul.msk.f32.gmra.mxu3 %vm204_vm4, %v7053_v35  ;;  %vm6050_vm15 = vmor %vm6048_vm12, %vm6049_vm7  ;;  %v6841_v26 = vand.u32 2147483647, %v15009_v12 }
 0x678   :  { %v8752_v47 = vpop.eup %8751  ;;  %v6815_v6 = vsel %vm6812_vm11, %v6814_v28, %v6810_v37  ;;  %v7017_v16 = vrot.slane %v14721_v59, 5  ;;  %v6578_v53 = vmul.f32 %v15172_v24, %v15055_v4  ;;  %v6818_v34 = vmul.f32 %v15077_v10, %v15025_v21 }
 0x679   :  { %v15199_v9 = vadd.f32 1e-05, %v5943_v19  ;;  %v15206_v55 = vadd.f32 1.0, %v8752_v47  ;;  %v7054_v52 = vmul.f32 %v15051_v61, %v6815_v6  ;;  %v6051_v43 = vsel %vm6050_vm15, %v8746_v41, %v6047_v63 }
 0x67a   :  { %v6308_v5 = vmul.f32 %v6051_v43, %v14675_v46  ;;  %v6843_v41 = vand.u32 2147483648, %v15009_v12  ;;  %v15228_v46 = vld [vmem:[%s16839_s11] ss:$0 sm:$0xff]  ;;  %vm6822_vm13 = vweird.f32 %v15025_v21  ;;  %v6579_v58 = vsub.f32 1.0, %v6578_v53 }
 0x67b   :  { %8755 = vrsqrt.f32 %v15199_v9  ;;  %vm6582_vm5 = vweird.f32 %v15055_v4  ;;  %v6586_v60 = vand.u32 2147483647, %v15055_v4  ;;  %v6826_v49 = vand.u32 2147483647, %v15025_v21 }
 0x67c   :  { %8757 = vpow2.f32 %v15150_v18  ;;  %v15222_v18 = vmul.f32 %v15059_v44, %v15009_v12  ;;  %v6343_v20 = vmul.f32 %v15228_v46, %v6308_v5  ;;  %v15235_v17 = vpop.eup %8753  ;;  %v6588_v40 = vand.u32 2147483648, %v15055_v4 }
 0x67d   :  { %8759 = vrcp.f32 %v15197_v32  ;;  %v6819_v62 = vsub.f32 1.0, %v6818_v34  ;;  %v6580_v36 = vmul.f32 %v15172_v24, %v6579_v58  ;;  %vm6583_vm14 = vweird.f32 %v15172_v24 }
 0x67e   :  { %8761 = vrcp.f32 %v15206_v55  ;;  %v5674_v30 = vpop.xlane.xlu0 %5673  ;;  %v6378_v15 = vadd.f32 %v15245_v54, %v6343_v20  ;;  %vm6823_vm8 = vweird.f32 %v15077_v10  ;;  %v6828_v31 = vand.u32 2147483648, %v15025_v21  ;;  %vm6584_vm3 = vmor %vm6582_vm5, %vm6583_vm14 }
 0x67f   :  { %v5740_v57 = vmul.f32 %v5674_v30, %v14353_v7  ;;  %8577 = vmatmul.msk.f32.gmra.mxu3 %vm204_vm4, %v7054_v52  ;;  %v6820_v11 = vmul.f32 %v15077_v10, %v6819_v62  ;;  %v6593_v35 = vmul.f32 %v15087_v45, %v15034_v48  ;;  %v6581_v47 = vadd.f32 %v15172_v24, %v6580_v36  ;;  %vm6824_vm9 = vmor %vm6822_vm13, %vm6823_vm8 }
 0x680   :  { %v8533_v27 = vmul.f32 -1.442695, %v6378_v15  ;;  %vm6587_vm0 = vcmp.eq.f32.partialorder %v6586_v60, 8.507059e+37  ;;  %vm15269_vm1 = vcmp.eq.f32.partialorder %v6826_v49, 8.507059e+37  ;;  %v6589_v6 = vor.u32 1.1754944e-38, %v6588_v40 }
 0x681   :  { %v15240_v42 = vpop.eup %8755  ;;  %v15249_v0 = vsub.f32 %v17390_v1, %v5740_v57  ;;  %v6821_v52 = vadd.f32 %v15077_v10, %v6820_v11  ;;  %v6594_v5 = vsub.f32 1.0, %v6593_v35  ;;  %v6585_v30 = vsel %vm6584_vm3, %v15172_v24, %v6581_v47 }
 0x682   :  { %v8758_v23 = vpop.eup %8757  ;;  %v6233_v37 = vmul.f32 %v15240_v42, %v15199_v9  ;;  %8763 = vpow2.f32 %v8533_v27  ;;  %v6829_v53 = vor.u32 1.1754944e-38, %v6828_v31  ;;  %vm6598_vm10 = vweird.f32 %v15087_v45 }
 0x683   :  { %v15257_v19 = vpop.eup %8759  ;;  %v5804_v50 = vmul.f32 %v15249_v0, %v15249_v0  ;;  %v6590_v4 = vsel %vm6587_vm0, %v6589_v6, %v6585_v30  ;;  %v6825_v20 = vsel %vm6824_vm9, %v15077_v10, %v6821_v52  ;;  %v6595_v57 = vmul.f32 %v15087_v45, %v6594_v5 }
 0x684   :  { %v15264_v28 = vpop.eup %8761  ;;  %v6603_v34 = vand.u32 2147483648, %v15034_v48  ;;  %v6234_v58 = vmul.f32 %v15240_v42, %v6233_v37  ;;  %v7039_v24 = vmul.f32 %v14726_v14, %v6590_v4  ;;  %v6830_v60 = vsel %vm15269_vm1, %v6829_v53, %v6825_v20 }
 0x685   :  { %v5864_v43 = vsel %vm204_vm4, %v5804_v50, 0.0  ;;  %v6601_v21 = vand.u32 2147483647, %v15034_v48  ;;  %v7055_v49 = vmul.f32 %v15051_v61, %v6830_v60  ;;  %v6596_v15 = vadd.f32 %v15087_v45, %v6595_v57 }
 0x686   :  { %5865 = vadd.xlane.f32.xlu0 %v5864_v43  ;;  %vm6597_vm6 = vweird.f32 %v15034_v48  ;;  %v6834_v10 = vsub.f32 1.0, %v15222_v18  ;;  %v15295_v1 = vadd.f32 1.0, %v8758_v23  ;;  %8562 = vmatmul.msk.f32.gmra.mxu1 %vm204_vm4, %v7039_v24  ;;  %v15306_v40 = vperm.slane %v7013_v22, 0 }
 0x687   :  { %vm15300_vm7 = vmor %vm6597_vm6, %vm6598_vm10  ;;  %v15310_v61 = vperm.slane %v7017_v16, 0  ;;  %v6608_v48 = vmul.f32 %v15257_v19, %v15197_v32  ;;  %8578 = vmatmul.msk.f32.gmra.mxu3 %vm204_vm4, %v7055_v49  ;;  %v6604_v62 = vor.u32 1.1754944e-38, %v6603_v34  ;;  %vm6838_vm2 = vweird.f32 %v15059_v44  ;;  %v5845_v34 = vpop.xlane.xlu1 %5844 }
 0x688   :  { %v6600_v18 = vsel %vm15300_vm7, %v15087_v45, %v6596_v15  ;;  %v6835_v23 = vmul.f32 %v15059_v44, %v6834_v10  ;;  %v8764_v22 = vpop.eup %8763  ;;  %vm6602_vm11 = vcmp.eq.f32.partialorder %v6601_v21, 8.507059e+37  ;;  %vm6837_vm12 = vweird.f32 %v15009_v12 }
 0x689   :  { %vm15323_vm15 = vcmp.eq.f32.partialorder %v6841_v26, 8.507059e+37  ;;  %v6609_v36 = vsub.f32 1.0, %v6608_v48  ;;  %v6235_v31 = vmul.f32 0.5, %v6234_v58  ;;  %v6605_v27 = vsel %vm6602_vm11, %v6604_v62, %v6600_v18  ;;  %vm6839_vm13 = vmor %vm6837_vm12, %vm6838_vm2 }
 0x68a   :  { %v6836_v45 = vadd.f32 %v15059_v44, %v6835_v23  ;;  %v6844_v11 = vor.u32 1.1754944e-38, %v6843_v41  ;;  %vm6612_vm5 = vweird.f32 %v15197_v32  ;;  %vm6613_vm14 = vweird.f32 %v15257_v19 }
 0x68b   :  { %v6610_v50 = vmul.f32 %v15257_v19, %v6609_v36  ;;  %v6848_v26 = vmul.f32 %v15235_v17, %v15049_v39  ;;  %v15335_v35 = vadd.f32 1.0, %v8764_v22  ;;  %v6616_v47 = vand.u32 2147483647, %v15197_v32  ;;  %vm15345_vm8 = vmor %vm6612_vm5, %vm6613_vm14 }
 0x68c   :  { %v6840_v37 = vsel %vm6839_vm13, %v15059_v44, %v6836_v45  ;;  %v6618_v63 = vand.u32 2147483648, %v15197_v32  ;;  %v7040_v12 = vmul.f32 %v15306_v40, %v6605_v27  ;;  %vm6853_vm0 = vweird.f32 %v15235_v17  ;;  %v17399_v45 = vld [vmem:[#allocation63_spill] sm:$0xff] }
 0x68d   :  { %v6845_v41 = vsel %vm15323_vm15, %v6844_v11, %v6840_v37  ;;  %v6611_v6 = vadd.f32 %v15257_v19, %v6610_v50  ;;  %v6849_v52 = vsub.f32 1.0, %v6848_v26  ;;  %v6858_v44 = vand.u32 2147483648, %v15049_v39 }
 0x68e   :  { %v7056_v43 = vmul.f32 %v15310_v61, %v6845_v41  ;;  %8563 = vmatmul.msk.f32.gmra.mxu1 %vm204_vm4, %v7040_v12  ;;  %v6856_v53 = vand.u32 2147483647, %v15049_v39  ;;  %v6863_v4 = vmul.f32 %v15264_v28, %v15206_v55  ;;  %8765 = vrcp.f32 %v15295_v1 }
 0x68f   :  { %v6615_v32 = vsel %vm15345_vm8, %v15257_v19, %v6611_v6  ;;  %v6850_v30 = vmul.f32 %v15235_v17, %v6849_v52  ;;  %v6236_v20 = vsub.f32 1.5, %v6235_v31  ;;  %vm6617_vm1 = vcmp.eq.f32.partialorder %v6616_v47, 8.507059e+37 }
 0x690   :  { %8579 = vmatmul.msk.f32.gmra.mxu3 %vm204_vm4, %v7056_v43  ;;  %v6619_v57 = vor.u32 1.1754944e-38, %v6618_v63  ;;  %8767 = vrcp.f32 %v15335_v35  ;;  %vm6852_vm3 = vweird.f32 %v15049_v39  ;;  %v6864_v19 = vsub.f32 1.0, %v6863_v4  ;;  %v15388_v63 = vpop.f32.mrf.mxu1 }
 0x691   :  { %v6851_v58 = vadd.f32 %v15235_v17, %v6850_v30  ;;  %vm6854_vm9 = vmor %vm6852_vm3, %vm6853_vm0  ;;  %v6859_v60 = vor.u32 1.1754944e-38, %v6858_v44  ;;  %vm6239_vm10 = vweird.f32 %v15240_v42  ;;  %vm6857_vm6 = vcmp.eq.f32.partialorder %v6856_v53, 8.507059e+37  ;;  %v17400_v53 = vld [vmem:[#allocation72_spill] sm:$0xff] }
 0x692   :  { %v6620_v24 = vsel %vm6617_vm1, %v6619_v57, %v6615_v32  ;;  %v6865_v49 = vmul.f32 %v15264_v28, %v6864_v19  ;;  %v6237_v15 = vmul.f32 %v15240_v42, %v6236_v20  ;;  %vm6868_vm7 = vweird.f32 %v15264_v28  ;;  %v5896_v19 = vpop.xlane.xlu2 %5895 }
 0x693   :  { %v6855_v21 = vsel %vm6854_vm9, %v15235_v17, %v6851_v58  ;;  %vm6238_vm2 = vweird.f32 %v15199_v9  ;;  %v7041_v39 = vmul.f32 %v15306_v40, %v6620_v24  ;;  %v6873_v48 = vand.u32 2147483648, %v15206_v55 }
 0x694   :  { %v6860_v10 = vsel %vm6857_vm6, %v6859_v60, %v6855_v21  ;;  %v6866_v14 = vadd.f32 %v15264_v28, %v6865_v49  ;;  %v8766_v18 = vpop.eup %8765  ;;  %vm6240_vm11 = vmor %vm6238_vm2, %vm6239_vm10  ;;  %vm6867_vm12 = vweird.f32 %v15206_v55  ;;  %v6871_v62 = vand.u32 2147483647, %v15206_v55 }
 0x695   :  { %v7057_v17 = vmul.f32 %v15310_v61, %v6860_v10  ;;  %vm6869_vm15 = vmor %vm6867_vm12, %vm6868_vm7  ;;  %v6241_v9 = vsel %vm6240_vm11, %v15240_v42, %v6237_v15  ;;  %v6874_v16 = vor.u32 1.1754944e-38, %v6873_v48  ;;  %v6878_v36 = vmul.f32 %v8766_v18, %v15295_v1 }
 0x696   :  { %v8768_v23 = vpop.eup %8767  ;;  %8564 = vmatmul.msk.f32.gmra.mxu1 %vm204_vm4, %v7041_v39  ;;  %v6870_v22 = vsel %vm6869_vm15, %v15264_v28, %v6866_v14  ;;  %vm6872_vm13 = vcmp.eq.f32.partialorder %v6871_v62, 8.507059e+37  ;;  %v6327_v11 = vmul.f32 %v6241_v9, %v17399_v45  ;;  %v5925_v26 = vmul.f32 %v5845_v34, %v14353_v7 }
 0x697   :  { %v6623_v31 = vmul.f32 %v8768_v23, %v15335_v35  ;;  %v6875_v55 = vsel %vm6872_vm13, %v6874_v16, %v6870_v22  ;;  %v6879_v50 = vsub.f32 1.0, %v6878_v36  ;;  %v6886_v42 = vand.u32 2147483647, %v15295_v1 }
 0x698   :  { %8580 = vmatmul.msk.f32.gmra.mxu3 %vm204_vm4, %v7057_v17  ;;  %v6633_v28 = vand.u32 2147483648, %v15335_v35  ;;  %vm6883_vm5 = vweird.f32 %v8766_v18  ;;  %v6888_v41 = vand.u32 2147483648, %v15295_v1  ;;  %v7058_v6 = vmul.f32 %v15310_v61, %v6875_v55  ;;  %v15416_v17 = vld [vmem:[%s16842_s14] ss:$0 sm:$0xff] }
 0x699   :  { %v6624_v37 = vsub.f32 1.0, %v6623_v31  ;;  %v6880_v12 = vmul.f32 %v8766_v18, %v6879_v50  ;;  %vm6628_vm14 = vweird.f32 %v8768_v23  ;;  %v6631_v43 = vand.u32 2147483647, %v15335_v35 }
 0x69a   :  { %v6362_v5 = vmul.f32 %v15228_v46, %v6327_v11  ;;  %vm6882_vm8 = vweird.f32 %v15295_v1  ;;  %v15397_v32 = vadd.f32 1e-05, %v5925_v26  ;;  %vm6627_vm0 = vweird.f32 %v15335_v35  ;;  %v5671_v22 = vpop.xlane.xlu2 %5670 }
 0x69b   :  { %v6625_v52 = vmul.f32 %v8768_v23, %v6624_v37  ;;  %v6881_v44 = vadd.f32 %v8766_v18, %v6880_v12  ;;  %vm6884_vm1 = vmor %vm6882_vm8, %vm6883_vm5  ;;  %v6634_v20 = vor.u32 1.1754944e-38, %v6633_v28  ;;  %v6889_v34 = vor.u32 1.1754944e-38, %v6888_v41 }
 0x69c   :  { %vm6629_vm3 = vmor %vm6627_vm0, %vm6628_vm14  ;;  %vm6632_vm9 = vcmp.eq.f32.partialorder %v6631_v43, 8.507059e+37  ;;  %vm6887_vm10 = vcmp.eq.f32.partialorder %v6886_v42, 8.507059e+37  ;;  %v6397_v1 = vadd.f32 %v15245_v54, %v6362_v5  ;;  %8769 = vrsqrt.f32 %v15397_v32 }
 0x69d   :  { %v6626_v30 = vadd.f32 %v8768_v23, %v6625_v52  ;;  %v6885_v57 = vsel %vm6884_vm1, %v8766_v18, %v6881_v44  ;;  %v5942_v15 = vmul.f32 %v5896_v19, %v14353_v7  ;;  %v7196_v18 = vpop.f32.mrf.mxu1  ;;  %v5739_v36 = vmul.f32 %v5671_v22, %v14353_v7 }
 0x69e   :  { %v6890_v60 = vsel %vm6887_vm10, %v6889_v34, %v6885_v57  ;;  %v8552_v48 = vmul.f32 -1.442695, %v6397_v1  ;;  %v15422_v9 = vadd.f32 %v15416_v17, %v7196_v18  ;;  %v15447_v52 = vadd.f32 %v15416_v17, %v15388_v63  ;;  %v17402_v18 = vld [vmem:[#allocation62_spill] sm:$0xff] }
 0x69f   :  { %v6630_v58 = vsel %vm6629_vm3, %v8768_v23, %v6626_v30  ;;  %v7059_v10 = vmul.f32 %v15310_v61, %v6890_v60  ;;  %v15419_v62 = vadd.f32 1e-05, %v5942_v15  ;;  %vm6058_vm7 = vweird.f32 %v15397_v32 }
 0x6a0   :  { %8581 = vmatmul.msk.f32.gmra.mxu3 %vm204_vm4, %v7058_v6  ;;  %v6635_v24 = vsel %vm6632_vm9, %v6634_v20, %v6630_v58  ;;  %8771 = vpow2.f32 %v8552_v48  ;;  %v7294_v31 = vsel %vm204_vm4, %v15422_v9, 0.0  ;;  %v7291_v20 = vsel %vm204_vm4, %v15447_v52, 0.0 }
 0x6a1   :  { %v7042_v35 = vmul.f32 %v15306_v40, %v6635_v24  ;;  %8773 = vrsqrt.f32 %v15419_v62  ;;  %vm6228_vm11 = vweird.f32 %v15419_v62 }
 0x6a2   :  { %v8770_v23 = vpop.eup %8769 }
 0x6a3   :  { %v5725_v27 = vpop.xlane.xlu1 %5724  ;;  %8565 = vmatmul.msk.f32.gmra.mxu1 %vm204_vm4, %v7042_v35  ;;  %v6053_v16 = vmul.f32 %v8770_v23, %v15397_v32  ;;  %vm6059_vm6 = vweird.f32 %v8770_v23  ;;  %v7018_v35 = vrot.slane %v14721_v59, 6 }
 0x6a4   :  { %v5757_v47 = vmul.f32 %v5725_v27, %v14353_v7  ;;  %v17401_v27 = vld [vmem:[#allocation71_spill] sm:$0xff]  ;;  %vm6060_vm2 = vmor %vm6058_vm7, %vm6059_vm6 }
 0x6a5   :  { %v15433_v45 = vsub.f32 %v17401_v27, %v5739_v36  ;;  %v6054_v55 = vmul.f32 %v8770_v23, %v6053_v16  ;;  %v15470_v32 = vperm.slane %v7018_v35, 0 }
 0x6a6   :  { %v15401_v4 = vsub.f32 %v17400_v53, %v5757_v47  ;;  %v8772_v11 = vpop.eup %8771 }
 0x6a7   :  { %v5803_v50 = vmul.f32 %v15433_v45, %v15433_v45  ;;  %v15437_v26 = vpop.eup %8773  ;;  %v6525_v47 = vadd.f32 1.0, %v8772_v11  ;;  %v6055_v12 = vmul.f32 0.5, %v6054_v55 }
 0x6a8   :  { %v5821_v21 = vmul.f32 %v15401_v4, %v15401_v4  ;;  %8582 = vmatmul.msk.f32.gmra.mxu3 %vm204_vm4, %v7059_v10  ;;  %v6223_v6 = vmul.f32 %v15437_v26, %v15419_v62  ;;  %vm6229_vm12 = vweird.f32 %v15437_v26 }
 0x6a9   :  { %v5861_v37 = vsel %vm204_vm4, %v5803_v50, 0.0  ;;  %v6056_v44 = vsub.f32 1.5, %v6055_v12  ;;  %v6918_v27 = vand.u32 2147483648, %v6525_v47  ;;  %vm6912_vm14 = vweird.f32 %v6525_v47  ;;  %vm15485_vm1 = vmor %vm6228_vm11, %vm6229_vm12 }
 0x6aa   :  { %v5915_v39 = vsel %vm204_vm4, %v5821_v21, 0.0  ;;  %5862 = vadd.xlane.f32.xlu1 %v5861_v37  ;;  %v6224_v30 = vmul.f32 %v15437_v26, %v6223_v6 }
 0x6ab   :  { %v5902_v49 = vpop.xlane.xlu1 %5901  ;;  %5916 = vadd.xlane.f32.xlu2 %v5915_v39  ;;  %v6057_v63 = vmul.f32 %v8770_v23, %v6056_v44  ;;  %v6919_v44 = vor.u32 1.1754944e-38, %v6918_v27 }
 0x6ac   :  { %v5944_v14 = vmul.f32 %v5902_v49, %v14353_v7  ;;  %v6225_v19 = vmul.f32 0.5, %v6224_v30 }
 0x6ad   :  { %v6061_v49 = vsel %vm6060_vm2, %v8770_v23, %v6057_v63 }
 0x6ae   :  { %v15424_v61 = vadd.f32 1e-05, %v5944_v14  ;;  %v6226_v10 = vsub.f32 1.5, %v6225_v19  ;;  %v6309_v22 = vmul.f32 %v6061_v49, %v17402_v18  ;;  %v17406_v49 = vld [vmem:[#allocation20_spill] sm:$0xff] }
 0x6b0   :  { %8775 = vrsqrt.f32 %v15424_v61  ;;  %v6227_v55 = vmul.f32 %v15437_v26, %v6226_v10  ;;  %vm6248_vm13 = vweird.f32 %v15424_v61  ;;  %v6344_v6 = vmul.f32 %v15228_v46, %v6309_v22 }
 0x6b1   :  { %v5848_v28 = vpop.xlane.xlu2 %5847  ;;  %8777 = vrcp.f32 %v6525_v47 }
 0x6b2   :  { %v5926_v41 = vmul.f32 %v5848_v28, %v14353_v7  ;;  %7292 = vadd.xlane.f32.xlu1 %v7291_v20  ;;  %v6231_v20 = vsel %vm15485_vm1, %v15437_v26, %v6227_v55  ;;  %v17405_v26 = vld [vmem:[#allocation69_spill] sm:$0xff] }
 0x6b3   :  { %7295 = vadd.xlane.f32.xlu2 %v7294_v31  ;;  %v6916_v31 = vand.u32 2147483647, %v6525_v47  ;;  %v6326_v35 = vmul.f32 %v6231_v20, %v17405_v26 }
 0x6b4   :  { %v15451_v5 = vadd.f32 1e-05, %v5926_v41 }
 0x6b5   :  { %vm6917_vm0 = vcmp.eq.f32.partialorder %v6916_v31, 8.507059e+37  ;;  %v6361_v22 = vmul.f32 %v15228_v46, %v6326_v35 }
 0x6b6   :  { %v15440_v42 = vpop.eup %8775  ;;  %8779 = vrsqrt.f32 %v15451_v5  ;;  %vm6068_vm10 = vweird.f32 %v15451_v5 }
 0x6b7   :  { %v6243_v43 = vmul.f32 %v15440_v42, %v15424_v61  ;;  %v8778_v58 = vpop.eup %8777  ;;  %vm6249_vm5 = vweird.f32 %v15440_v42 }
 0x6b8   :  { %v6908_v15 = vmul.f32 %v8778_v58, %v6525_v47  ;;  %vm6913_vm15 = vweird.f32 %v8778_v58  ;;  %vm6250_vm9 = vmor %vm6248_vm13, %vm6249_vm5 }
 0x6b9   :  { %v6244_v53 = vmul.f32 %v15440_v42, %v6243_v43  ;;  %vm6914_vm8 = vmor %vm6912_vm14, %vm6913_vm15 }
 0x6ba   :  { %v6909_v48 = vsub.f32 1.0, %v6908_v15 }
 0x6bb   :  { %v6245_v24 = vmul.f32 0.5, %v6244_v53 }
 0x6bc   :  { %v15459_v1 = vpop.eup %8779  ;;  %v6910_v11 = vmul.f32 %v8778_v58, %v6909_v48 }
 0x6bd   :  { %v6063_v21 = vmul.f32 %v15459_v1, %v15451_v5  ;;  %v6246_v14 = vsub.f32 1.5, %v6245_v24  ;;  %vm6069_vm3 = vweird.f32 %v15459_v1  ;;  %v6379_v24 = vadd.f32 %v15245_v54, %v6344_v6 }
 0x6be   :  { %v6911_v41 = vadd.f32 %v8778_v58, %v6910_v11  ;;  %vm6070_vm6 = vmor %vm6068_vm10, %vm6069_vm3 }
 0x6bf   :  { %v6064_v39 = vmul.f32 %v15459_v1, %v6063_v21  ;;  %v5851_v36 = vpop.xlane.xlu2 %5850  ;;  %v6247_v28 = vmul.f32 %v15440_v42, %v6246_v14  ;;  %v8534_v18 = vmul.f32 -1.442695, %v6379_v24 }
 0x6c0   :  { %v5854_v57 = vpop.xlane.xlu1 %5853  ;;  %v5927_v23 = vmul.f32 %v5851_v36, %v14353_v7  ;;  %v6915_v47 = vsel %vm6914_vm8, %v8778_v58, %v6911_v41 }
 0x6c1   :  { %v5928_v34 = vmul.f32 %v5854_v57, %v14353_v7  ;;  %v6065_v16 = vmul.f32 0.5, %v6064_v39  ;;  %v6920_v57 = vsel %vm6917_vm0, %v6919_v44, %v6915_v47  ;;  %v6251_v63 = vsel %vm6250_vm9, %v15440_v42, %v6247_v28 }
 0x6c2   :  { %v5959_v12 = vadd.f32 1e-05, %v5927_v23  ;;  %v6328_v15 = vmul.f32 %v6251_v63, %v17406_v49 }
 0x6c3   :  { %v15462_v60 = vadd.f32 1e-05, %v5928_v34  ;;  %v6066_v50 = vsub.f32 1.5, %v6065_v16  ;;  %v15501_v34 = vmul.f32 %v15470_v32, %v6920_v57 }
 0x6c4   :  { %vm6078_vm15 = vweird.f32 %v5959_v12 }
 0x6c5   :  { %8781 = vrsqrt.f32 %v15462_v60  ;;  %v6067_v53 = vmul.f32 %v15459_v1, %v6066_v50  ;;  %vm6088_vm2 = vweird.f32 %v15462_v60 }
 0x6c6   :  { %8783 = vrsqrt.f32 %v5959_v12  ;;  %v5905_v19 = vpop.xlane.xlu0 %5904 }
 0x6c7   :  { %v6071_v21 = vsel %vm6070_vm6, %v15459_v1, %v6067_v53  ;;  %v5945_v61 = vmul.f32 %v5905_v19, %v14353_v7  ;;  %v6363_v1 = vmul.f32 %v15228_v46, %v6328_v15 }
 0x6c8   :  { %v6310_v39 = vmul.f32 %v6071_v21, %v14910_v33  ;;  %v6396_v33 = vadd.f32 %v15245_v54, %v6361_v22 }
 0x6c9   :  { %v5977_v5 = vadd.f32 1e-05, %v5945_v61  ;;  %v6398_v55 = vadd.f32 %v15245_v54, %v6363_v1 }
 0x6ca   :  { %v6345_v27 = vmul.f32 %v15228_v46, %v6310_v39  ;;  %v8551_v44 = vmul.f32 -1.442695, %v6396_v33 }
 0x6cb   :  { %v8782_v37 = vpop.eup %8781  ;;  %8785 = vrsqrt.f32 %v5977_v5  ;;  %v8553_v30 = vmul.f32 -1.442695, %v6398_v55  ;;  %vm6258_vm14 = vweird.f32 %v5977_v5 }
 0x6cc   :  { %v6083_v43 = vmul.f32 %v8782_v37, %v15462_v60  ;;  %vm6089_vm7 = vweird.f32 %v8782_v37  ;;  %v8784_v42 = vpop.eup %8783  ;;  %8787 = vpow2.f32 %v8534_v18  ;;  %v6380_v6 = vadd.f32 %v15245_v54, %v6345_v27 }
 0x6cd   :  { %v6073_v48 = vmul.f32 %v8784_v42, %v5959_v12  ;;  %vm6090_vm11 = vmor %vm6088_vm2, %vm6089_vm7  ;;  %vm6079_vm12 = vweird.f32 %v8784_v42 }
 0x6ce   :  { %v6084_v62 = vmul.f32 %v8782_v37, %v6083_v43  ;;  %vm6080_vm13 = vmor %vm6078_vm15, %vm6079_vm12  ;;  %v8535_v63 = vmul.f32 -1.442695, %v6380_v6 }
 0x6cf   :  { %v6074_v36 = vmul.f32 %v8784_v42, %v6073_v48  ;;  %v5908_v11 = vpop.xlane.xlu2 %5907 }
 0x6d0   :  { %v6085_v58 = vmul.f32 0.5, %v6084_v62  ;;  %v5946_v60 = vmul.f32 %v5908_v11, %v14353_v7 }
 0x6d1   :  { %v6075_v23 = vmul.f32 0.5, %v6074_v36  ;;  %v8786_v41 = vpop.eup %8785 }
 0x6d2   :  { %v6086_v10 = vsub.f32 1.5, %v6085_v58  ;;  %v6253_v43 = vmul.f32 %v8786_v41, %v5977_v5  ;;  %v8788_v62 = vpop.eup %8787  ;;  %vm6259_vm5 = vweird.f32 %v8786_v41 }
 0x6d3   :  { %v6076_v28 = vsub.f32 1.5, %v6075_v23  ;;  %v15523_v61 = vadd.f32 1.0, %v8788_v62  ;;  %vm6260_vm8 = vmor %vm6258_vm14, %vm6259_vm5 }
 0x6d4   :  { %v6087_v14 = vmul.f32 %v8782_v37, %v6086_v10  ;;  %v6254_v20 = vmul.f32 %v8786_v41, %v6253_v43 }
 0x6d5   :  { %vm6642_vm2 = vweird.f32 %v15523_v61 }
 0x6d6   :  { %v6091_v16 = vsel %vm6090_vm11, %v8782_v37, %v6087_v14  ;;  %v5978_v37 = vadd.f32 1e-05, %v5946_v60  ;;  %v6255_v58 = vmul.f32 0.5, %v6254_v20  ;;  %v5911_v19 = vpop.xlane.xlu1 %5910 }
 0x6d7   :  { %v6312_v31 = vmul.f32 %v6091_v16, %v14975_v25  ;;  %v6077_v25 = vmul.f32 %v8784_v42, %v6076_v28  ;;  %v5947_v12 = vmul.f32 %v5911_v19, %v14353_v7  ;;  %v5860_v1 = vpop.xlane.xlu2 %5859 }
 0x6d8   :  { %8789 = vrsqrt.f32 %v5978_v37  ;;  %v6256_v35 = vsub.f32 1.5, %v6255_v58  ;;  %v5930_v16 = vmul.f32 %v5860_v1, %v14353_v7  ;;  %vm6268_vm1 = vweird.f32 %v5978_v37 }
 0x6d9   :  { %v6347_v50 = vmul.f32 %v15228_v46, %v6312_v31  ;;  %v6081_v47 = vsel %vm6080_vm13, %v8784_v42, %v6077_v25  ;;  %8791 = vpow2.f32 %v8551_v44  ;;  %v15525_v49 = vadd.f32 1e-05, %v5947_v12 }
 0x6da   :  { %v6311_v57 = vmul.f32 %v6081_v47, %v14971_v2  ;;  %8793 = vpow2.f32 %v8553_v30  ;;  %v6257_v15 = vmul.f32 %v8786_v41, %v6256_v35  ;;  %v15537_v60 = vadd.f32 1e-05, %v5930_v16 }
 0x6db   :  { %v6382_v53 = vadd.f32 %v15245_v54, %v6347_v50  ;;  %8795 = vpow2.f32 %v8535_v63  ;;  %vm6278_vm9 = vweird.f32 %v15525_v49 }
 0x6dc   :  { %v6346_v24 = vmul.f32 %v15228_v46, %v6311_v57  ;;  %8797 = vrsqrt.f32 %v15525_v49  ;;  %v6261_v42 = vsel %vm6260_vm8, %v8786_v41, %v6257_v15  ;;  %vm6108_vm11 = vweird.f32 %v15537_v60 }
 0x6dd   :  { %v8537_v26 = vmul.f32 -1.442695, %v6382_v53  ;;  %v6329_v48 = vmul.f32 %v6261_v42, %v15001_v3  ;;  %v5857_v53 = vpop.xlane.xlu0 %5856 }
 0x6de   :  { %v8790_v21 = vpop.eup %8789  ;;  %v6381_v2 = vadd.f32 %v15245_v54, %v6346_v24  ;;  %v5929_v62 = vmul.f32 %v5857_v53, %v14353_v7 }
 0x6df   :  { %v6263_v10 = vmul.f32 %v8790_v21, %v5978_v37  ;;  %8799 = vpow2.f32 %v8537_v26  ;;  %v8792_v14 = vpop.eup %8791  ;;  %vm6269_vm0 = vweird.f32 %v8790_v21  ;;  %v6364_v33 = vmul.f32 %v15228_v46, %v6329_v48 }
 0x6e0   :  { %8801 = vrcp.f32 %v15523_v61  ;;  %v8794_v18 = vpop.eup %8793  ;;  %v8536_v5 = vmul.f32 -1.442695, %v6381_v2  ;;  %v15532_v23 = vadd.f32 1.0, %v8792_v14  ;;  %vm6270_vm3 = vmor %vm6268_vm1, %vm6269_vm0  ;;  %v15556_v12 = vadd.f32 1e-05, %v5929_v62 }
 0x6e1   :  { %v6264_v39 = vmul.f32 %v8790_v21, %v6263_v10  ;;  %v8796_v36 = vpop.eup %8795  ;;  %v15534_v11 = vadd.f32 1.0, %v8794_v18  ;;  %v6399_v44 = vadd.f32 %v15245_v54, %v6364_v33  ;;  %v6648_v26 = vand.u32 2147483648, %v15523_v61 }
 0x6e2   :  { %v8798_v27 = vpop.eup %8797  ;;  %8803 = vpow2.f32 %v8536_v5  ;;  %v15540_v41 = vadd.f32 1.0, %v8796_v36  ;;  %v7014_v62 = vrot.slane %v14721_v59, 2  ;;  %vm6897_vm8 = vweird.f32 %v15532_v23 }
 0x6e3   :  { %v6265_v22 = vmul.f32 0.5, %v6264_v39  ;;  %v6273_v50 = vmul.f32 %v8798_v27, %v15525_v49  ;;  %8805 = vrsqrt.f32 %v15537_v60  ;;  %vm6279_vm10 = vweird.f32 %v8798_v27 }
 0x6e4   :  { %8807 = vrcp.f32 %v15532_v23  ;;  %v8554_v24 = vmul.f32 -1.442695, %v6399_v44  ;;  %vm6280_vm7 = vmor %vm6278_vm9, %vm6279_vm10  ;;  %v6649_v1 = vor.u32 1.1754944e-38, %v6648_v26  ;;  %v6903_v44 = vand.u32 2147483648, %v15532_v23 }
 0x6e5   :  { %v6266_v31 = vsub.f32 1.5, %v6265_v22  ;;  %v8800_v55 = vpop.eup %8799  ;;  %v6274_v25 = vmul.f32 %v8798_v27, %v6273_v50  ;;  %8809 = vrcp.f32 %v15534_v11  ;;  %vm6098_vm9 = vweird.f32 %v15556_v12 }
 0x6e6   :  { %v8802_v28 = vpop.eup %8801  ;;  %v15544_v43 = vadd.f32 1.0, %v8800_v55  ;;  %8811 = vrcp.f32 %v15540_v41 }
 0x6e7   :  { %v6267_v3 = vmul.f32 %v8790_v21, %v6266_v31  ;;  %v6275_v37 = vmul.f32 0.5, %v6274_v25  ;;  %v6638_v47 = vmul.f32 %v8802_v28, %v15523_v61  ;;  %vm6643_vm6 = vweird.f32 %v8802_v28 }
 0x6e8   :  { %v8804_v57 = vpop.eup %8803  ;;  %8813 = vrcp.f32 %v15544_v43  ;;  %vm6644_vm12 = vmor %vm6642_vm2, %vm6643_vm6  ;;  %v6901_v25 = vand.u32 2147483647, %v15532_v23  ;;  %vm6927_vm6 = vweird.f32 %v15534_v11 }
 0x6e9   :  { %v6271_v6 = vsel %vm6270_vm3, %v8790_v21, %v6267_v3  ;;  %v6276_v63 = vsub.f32 1.5, %v6275_v37  ;;  %v6639_v58 = vsub.f32 1.0, %v6638_v47  ;;  %v8806_v19 = vpop.eup %8805  ;;  %v15562_v10 = vadd.f32 1.0, %v8804_v57 }
 0x6ea   :  { %v6330_v30 = vmul.f32 %v6271_v6, %v15039_v51  ;;  %v6646_v51 = vand.u32 2147483647, %v15523_v61  ;;  %v6103_v21 = vmul.f32 %v8806_v19, %v15537_v60  ;;  %v15560_v15 = vpop.eup %8807  ;;  %8815 = vrsqrt.f32 %v15556_v12 }
 0x6eb   :  { %v6277_v35 = vmul.f32 %v8798_v27, %v6276_v63  ;;  %v6640_v2 = vmul.f32 %v8802_v28, %v6639_v58  ;;  %v15569_v39 = vpop.eup %8809  ;;  %8817 = vpow2.f32 %v8554_v24  ;;  %v6893_v36 = vmul.f32 %v15560_v15, %v15532_v23 }
 0x6ec   :  { %v6365_v20 = vmul.f32 %v15228_v46, %v6330_v30  ;;  %v6104_v48 = vmul.f32 %v8806_v19, %v6103_v21  ;;  %v15572_v5 = vpop.eup %8811  ;;  %vm6647_vm15 = vcmp.eq.f32.partialorder %v6646_v51, 8.507059e+37  ;;  %8819 = vrcp.f32 %v15562_v10 }
 0x6ed   :  { %v6281_v14 = vsel %vm6280_vm7, %v8798_v27, %v6277_v35  ;;  %v6641_v18 = vadd.f32 %v8802_v28, %v6640_v2  ;;  %vm6109_vm13 = vweird.f32 %v8806_v19  ;;  %v6894_v50 = vsub.f32 1.0, %v6893_v36 }
 0x6ee   :  { %v6400_v42 = vadd.f32 %v15245_v54, %v6365_v20  ;;  %v6331_v22 = vmul.f32 %v6281_v14, %v15090_v29  ;;  %v6105_v49 = vmul.f32 0.5, %v6104_v48  ;;  %v15578_v31 = vpop.eup %8813  ;;  %v5914_v29 = vpop.xlane.xlu0 %5913  ;;  %vm6898_vm5 = vweird.f32 %v15560_v15  ;;  %vm6110_vm14 = vmor %vm6108_vm11, %vm6109_vm13 }
 0x6ef   :  { %v6645_v16 = vsel %vm6644_vm12, %v8802_v28, %v6641_v18  ;;  %v5948_v30 = vmul.f32 %v5914_v29, %v14353_v7  ;;  %v6895_v47 = vmul.f32 %v15560_v15, %v6894_v50  ;;  %vm6899_vm0 = vmor %vm6897_vm8, %vm6898_vm5  ;;  %vm6902_vm1 = vcmp.eq.f32.partialorder %v6901_v25, 8.507059e+37 }
 0x6f0   :  { %v8555_v61 = vmul.f32 -1.442695, %v6400_v42  ;;  %v6366_v27 = vmul.f32 %v15228_v46, %v6331_v22  ;;  %v6650_v33 = vsel %vm6647_vm15, %v6649_v1, %v6645_v16  ;;  %v6106_v55 = vsub.f32 1.5, %v6105_v49  ;;  %v8816_v6 = vpop.eup %8815 }
 0x6f1   :  { %v7043_v3 = vmul.f32 %v15306_v40, %v6650_v33  ;;  %v6093_v53 = vmul.f32 %v8816_v6, %v15556_v12  ;;  %v15593_v20 = vadd.f32 1e-05, %v5948_v30  ;;  %v8818_v57 = vpop.eup %8817  ;;  %v6896_v51 = vadd.f32 %v15560_v15, %v6895_v47 }
 0x6f2   :  { %v6401_v28 = vadd.f32 %v15245_v54, %v6366_v27  ;;  %v6107_v37 = vmul.f32 %v8806_v19, %v6106_v55  ;;  %8821 = vpow2.f32 %v8555_v61  ;;  %v15598_v24 = vpop.eup %8819  ;;  %v6904_v60 = vor.u32 1.1754944e-38, %v6903_v44 }
 0x6f3   :  { %8566 = vmatmul.msk.f32.gmra.mxu1 %vm204_vm4, %v7043_v3  ;;  %v6094_v58 = vmul.f32 %v8816_v6, %v6093_v53  ;;  %v6900_v2 = vsel %vm6899_vm0, %v15560_v15, %v6896_v51  ;;  %v15607_v14 = vadd.f32 1.0, %v8818_v57  ;;  %8823 = vrsqrt.f32 %v15593_v20 }
 0x6f4   :  { %v7199_v40 = vpop.f32.mrf.mxu1  ;;  %v6111_v63 = vsel %vm6110_vm14, %v8806_v19, %v6107_v37  ;;  %v8556_v26 = vmul.f32 -1.442695, %v6401_v28  ;;  %v6923_v19 = vmul.f32 %v15569_v39, %v15534_v11  ;;  %v6905_v48 = vsel %vm6902_vm1, %v6904_v60, %v6900_v2 }
 0x6f5   :  { %v6314_v35 = vmul.f32 %v6111_v63, %v15084_v56  ;;  %v6095_v21 = vmul.f32 0.5, %v6094_v58  ;;  %v15603_v42 = vadd.f32 %v15416_v17, %v7199_v40  ;;  %vm6099_vm3 = vweird.f32 %v8816_v6 }
 0x6f6   :  { %v7060_v18 = vmul.f32 %v15470_v32, %v6905_v48  ;;  %v6931_v22 = vand.u32 2147483647, %v15534_v11  ;;  %8825 = vpow2.f32 %v8556_v26  ;;  %v15613_v1 = vperm.slane %v7014_v62, 0  ;;  %vm6100_vm10 = vmor %vm6098_vm9, %vm6099_vm3 }
 0x6f7   :  { %v6349_v23 = vmul.f32 %v15228_v46, %v6314_v35  ;;  %v6096_v56 = vsub.f32 1.5, %v6095_v21  ;;  %v6924_v49 = vsub.f32 1.0, %v6923_v19  ;;  %v7297_v36 = vsel %vm204_vm4, %v15603_v42, 0.0 }
 0x6f8   :  { %v8822_v15 = vpop.eup %8821  ;;  %8583 = vmatmul.msk.f32.gmra.mxu3 %vm204_vm4, %v7060_v18  ;;  %v6653_v61 = vmul.f32 %v15572_v5, %v15540_v41  ;;  %8827 = vrcp.f32 %v15607_v14  ;;  %7298 = vadd.xlane.f32.xlu0 %v7297_v36  ;;  %v6933_v33 = vand.u32 2147483648, %v15534_v11  ;;  %vm15628_vm7 = vcmp.eq.f32.partialorder %v6931_v22, 8.507059e+37 }
 0x6f9   :  { %v6097_v16 = vmul.f32 %v8816_v6, %v6096_v56  ;;  %v6384_v27 = vadd.f32 %v15245_v54, %v6349_v23  ;;  %v15625_v29 = vadd.f32 1.0, %v8822_v15  ;;  %v6925_v3 = vmul.f32 %v15569_v39, %v6924_v49  ;;  %v8824_v28 = vpop.eup %8823  ;;  %v5866_v37 = vpop.xlane.xlu0 %5865 }
 0x6fa   :  { %v6654_v55 = vsub.f32 1.0, %v6653_v61  ;;  %v6661_v44 = vand.u32 2147483647, %v15540_v41  ;;  %v6663_v30 = vand.u32 2147483648, %v15540_v41  ;;  %vm6928_vm2 = vweird.f32 %v15569_v39 }
 0x6fb   :  { %v6101_v12 = vsel %vm6100_vm10, %v8816_v6, %v6097_v16  ;;  %v6283_v53 = vmul.f32 %v8824_v28, %v15593_v20  ;;  %vm6288_vm11 = vweird.f32 %v15593_v20  ;;  %vm6658_vm12 = vweird.f32 %v15572_v5  ;;  %vm15646_vm13 = vmor %vm6927_vm6, %vm6928_vm2 }
 0x6fc   :  { %v6313_v25 = vmul.f32 %v6101_v12, %v15093_v8  ;;  %v6655_v6 = vmul.f32 %v15572_v5, %v6654_v55  ;;  %v8826_v47 = vpop.eup %8825  ;;  %v8539_v40 = vmul.f32 -1.442695, %v6384_v27  ;;  %v6926_v8 = vadd.f32 %v15569_v39, %v6925_v3 }
 0x6fd   :  { %v6934_v57 = vor.u32 1.1754944e-38, %v6933_v33  ;;  %v6284_v63 = vmul.f32 %v8824_v28, %v6283_v53  ;;  %vm6657_vm15 = vweird.f32 %v15540_v41  ;;  %v5932_v26 = vmul.f32 %v5866_v37, %v14353_v7 }
 0x6fe   :  { %v6348_v62 = vmul.f32 %v15228_v46, %v6313_v25  ;;  %v6656_v58 = vadd.f32 %v15572_v5, %v6655_v6  ;;  %v15651_v35 = vpop.eup %8827  ;;  %8829 = vrcp.f32 %v15625_v29  ;;  %vm6659_vm5 = vmor %vm6657_vm15, %vm6658_vm12  ;;  %vm6662_vm14 = vcmp.eq.f32.partialorder %v6661_v44, 8.507059e+37 }
 0x6ff   :  { %v6664_v60 = vor.u32 1.1754944e-38, %v6663_v30  ;;  %v15655_v21 = vadd.f32 1.0, %v8826_v47  ;;  %v6285_v41 = vmul.f32 0.5, %v6284_v63  ;;  %v6930_v2 = vsel %vm15646_vm13, %v15569_v39, %v6926_v8  ;;  %v15720_v63 = vld [vmem:[%s16840_s12] ss:$0 sm:$0xff] }
 0x700   :  { %v6383_v46 = vadd.f32 %v15245_v54, %v6348_v62  ;;  %8584 = vmatmul.msk.f32.gmra.mxu3 %vm204_vm4, %v15501_v34  ;;  %v6660_v11 = vsel %vm6659_vm5, %v15572_v5, %v6656_v58  ;;  %8831 = vpow2.f32 %v8539_v40  ;;  %vm6289_vm8 = vweird.f32 %v8824_v28 }
 0x701   :  { %v6665_v23 = vsel %vm6662_vm14, %v6664_v60, %v6660_v11  ;;  %v6286_v54 = vsub.f32 1.5, %v6285_v41  ;;  %v15664_v56 = vadd.f32 1e-05, %v5932_v26  ;;  %v6668_v18 = vmul.f32 %v15598_v24, %v15562_v10  ;;  %vm6290_vm0 = vmor %vm6288_vm11, %vm6289_vm8 }
 0x702   :  { %v8538_v19 = vmul.f32 -1.442695, %v6383_v46  ;;  %v7044_v48 = vmul.f32 %v15613_v1, %v6665_v23  ;;  %v6935_v34 = vsel %vm15628_vm7, %v6934_v57, %v6930_v2  ;;  %v6676_v5 = vand.u32 2147483647, %v15562_v10 }
 0x703   :  { %v7202_v22 = vpop.f32.mrf.mxu1  ;;  %v6287_v15 = vmul.f32 %v8824_v28, %v6286_v54  ;;  %v6669_v49 = vsub.f32 1.0, %v6668_v18  ;;  %v6678_v16 = vand.u32 2147483648, %v15562_v10  ;;  %v6683_v36 = vmul.f32 %v15578_v31, %v15544_v43 }
 0x704   :  { %8833 = vpow2.f32 %v8538_v19  ;;  %v15672_v39 = vadd.f32 %v15416_v17, %v7202_v22  ;;  %8567 = vmatmul.msk.f32.gmra.mxu1 %vm204_vm4, %v7044_v48  ;;  %v15678_v61 = vpop.eup %8829  ;;  %v7062_v12 = vmul.f32 %v15470_v32, %v6935_v34  ;;  %vm6673_vm1 = vweird.f32 %v15598_v24 }
 0x705   :  { %8835 = vrcp.f32 %v15655_v21  ;;  %v6291_v33 = vsel %vm6290_vm0, %v8824_v28, %v6287_v15  ;;  %v6670_v55 = vmul.f32 %v15598_v24, %v6669_v49  ;;  %vm6672_vm3 = vweird.f32 %v15562_v10 }
 0x706   :  { %v7300_v27 = vsel %vm204_vm4, %v15672_v39, 0.0  ;;  %v8832_v3 = vpop.eup %8831  ;;  %v6332_v50 = vmul.f32 %v6291_v33, %v15170_v38  ;;  %8837 = vrsqrt.f32 %v15664_v56  ;;  %v6684_v20 = vsub.f32 1.0, %v6683_v36  ;;  %v15703_v38 = vld [vmem:[%s16839_s11] ss:$0 sm:$0xff]  ;;  %vm6674_vm10 = vmor %vm6672_vm3, %vm6673_vm1 }
 0x707   :  { %7301 = vadd.xlane.f32.xlu1 %v7300_v27  ;;  %v6671_v25 = vadd.f32 %v15598_v24, %v6670_v55  ;;  %vm15694_vm9 = vcmp.eq.f32.partialorder %v6676_v5, 8.507059e+37  ;;  %v6679_v44 = vor.u32 1.1754944e-38, %v6678_v16  ;;  %v6938_v30 = vmul.f32 %v15651_v35, %v15607_v14 }
 0x708   :  { %8585 = vmatmul.msk.f32.gmra.mxu3 %vm204_vm4, %v7062_v12  ;;  %v6367_v10 = vmul.f32 %v15703_v38, %v6332_v50  ;;  %v6685_v53 = vmul.f32 %v15578_v31, %v6684_v20  ;;  %vm6687_vm6 = vweird.f32 %v15544_v43  ;;  %vm6688_vm7 = vweird.f32 %v15578_v31 }
 0x709   :  { %v6675_v47 = vsel %vm6674_vm10, %v15598_v24, %v6671_v25  ;;  %v6691_v40 = vand.u32 2147483647, %v15544_v43  ;;  %v6939_v62 = vsub.f32 1.0, %v6938_v30  ;;  %v6693_v24 = vand.u32 2147483648, %v15544_v43  ;;  %vm15739_vm11 = vmor %vm6687_vm6, %vm6688_vm7 }
 0x70a   :  { %v8834_v37 = vpop.eup %8833  ;;  %v6402_v58 = vadd.f32 %v15720_v63, %v6367_v10  ;;  %v6680_v51 = vsel %vm15694_vm9, %v6679_v44, %v6675_v47  ;;  %v6686_v26 = vadd.f32 %v15578_v31, %v6685_v53  ;;  %vm6943_vm2 = vweird.f32 %v15651_v35 }
 0x70b   :  { %v15711_v6 = vadd.f32 1.0, %v8834_v37  ;;  %v7205_v8 = vpop.f32.mrf.mxu1  ;;  %v15715_v57 = vpop.eup %8835  ;;  %v7045_v46 = vmul.f32 %v15613_v1, %v6680_v51  ;;  %v6940_v60 = vmul.f32 %v15651_v35, %v6939_v62  ;;  %v15733_v11 = vadd.f32 1.0, %v8832_v3 }
 0x70c   :  { %v15731_v41 = vpop.eup %8837  ;;  %v8557_v2 = vmul.f32 -1.442695, %v6402_v58  ;;  %v6946_v23 = vand.u32 2147483647, %v15607_v14  ;;  %v6948_v54 = vand.u32 2147483648, %v15607_v14  ;;  %v6690_v48 = vsel %vm15739_vm11, %v15578_v31, %v6686_v26 }
 0x70d   :  { %8839 = vrcp.f32 %v15711_v6  ;;  %8568 = vmatmul.msk.f32.gmra.mxu1 %vm204_vm4, %v7045_v46  ;;  %v6941_v18 = vadd.f32 %v15651_v35, %v6940_v60  ;;  %vm6942_vm12 = vweird.f32 %v15607_v14  ;;  %v15752_v43 = vadd.f32 %v15416_v17, %v7205_v8 }
 0x70e   :  { %8841 = vpow2.f32 %v8557_v2  ;;  %vm6692_vm15 = vcmp.eq.f32.partialorder %v6691_v40, 8.507059e+37  ;;  %v6694_v22 = vor.u32 1.1754944e-38, %v6693_v24  ;;  %vm6944_vm13 = vmor %vm6942_vm12, %vm6943_vm2  ;;  %v6949_v34 = vor.u32 1.1754944e-38, %v6948_v54 }
 0x70f   :  { %v6945_v5 = vsel %vm6944_vm13, %v15651_v35, %v6941_v18  ;;  %vm6947_vm5 = vcmp.eq.f32.partialorder %v6946_v23, 8.507059e+37  ;;  %v7303_v31 = vsel %vm204_vm4, %v15752_v43, 0.0  ;;  %v6953_v15 = vmul.f32 %v15678_v61, %v15625_v29 }
 0x710   :  { %v6695_v14 = vsel %vm6692_vm15, %v6694_v22, %v6690_v48  ;;  %v6950_v49 = vsel %vm6947_vm5, %v6949_v34, %v6945_v5  ;;  %7304 = vadd.xlane.f32.xlu2 %v7303_v31  ;;  %8843 = vrcp.f32 %v15733_v11  ;;  %v6963_v12 = vand.u32 2147483648, %v15625_v29 }
 0x711   :  { %v7063_v36 = vmul.f32 %v15470_v32, %v6950_v49  ;;  %v6954_v27 = vsub.f32 1.0, %v6953_v15  ;;  %v7019_v35 = vrot.slane %v14721_v59, 7  ;;  %v7046_v50 = vmul.f32 %v15613_v1, %v6695_v14 }
 0x712   :  { %vm6958_vm14 = vweird.f32 %v15678_v61  ;;  %v6961_v32 = vand.u32 2147483647, %v15625_v29  ;;  %v6123_v28 = vmul.f32 %v15731_v41, %v15664_v56  ;;  %vm6957_vm8 = vweird.f32 %v15625_v29 }
 0x713   :  { %v8840_v16 = vpop.eup %8839  ;;  %v7208_v33 = vpop.f32.mrf.mxu1  ;;  %8586 = vmatmul.msk.f32.gmra.mxu3 %vm204_vm4, %v7063_v36  ;;  %v6955_v20 = vmul.f32 %v15678_v61, %v6954_v27  ;;  %v6708_v10 = vand.u32 2147483648, %v15711_v6  ;;  %vm6959_vm1 = vmor %vm6957_vm8, %vm6958_vm14  ;;  %v6964_v53 = vor.u32 1.1754944e-38, %v6963_v12  ;;  %v6706_v40 = vand.u32 2147483647, %v15711_v6 }
 0x714   :  { %v15766_v55 = vadd.f32 %v15416_v17, %v7208_v33  ;;  %v6698_v3 = vmul.f32 %v8840_v16, %v15711_v6  ;;  %v8842_v25 = vpop.eup %8841  ;;  %vm6703_vm0 = vweird.f32 %v8840_v16  ;;  %v6968_v29 = vmul.f32 %v15715_v57, %v15655_v21 }
 0x715   :  { %v15779_v30 = vadd.f32 1.0, %v8842_v25  ;;  %8569 = vmatmul.msk.f32.gmra.mxu1 %vm204_vm4, %v7046_v50  ;;  %v6956_v37 = vadd.f32 %v15678_v61, %v6955_v20  ;;  %vm6962_vm3 = vcmp.eq.f32.partialorder %v6961_v32, 8.507059e+37  ;;  %v15789_v58 = vperm.slane %v7019_v35, 0 }
 0x716   :  { %v7306_v59 = vsel %vm204_vm4, %v15766_v55, 0.0  ;;  %v6699_v44 = vsub.f32 1.0, %v6698_v3  ;;  %v8844_v62 = vpop.eup %8843  ;;  %v6124_v51 = vmul.f32 %v15731_v41, %v6123_v28  ;;  %vm6702_vm9 = vweird.f32 %v15711_v6 }
 0x717   :  { %7307 = vadd.xlane.f32.xlu0 %v7306_v59  ;;  %8845 = vrcp.f32 %v15779_v30  ;;  %v6960_v8 = vsel %vm6959_vm1, %v15678_v61, %v6956_v37  ;;  %vm6704_vm10 = vmor %vm6702_vm9, %vm6703_vm0  ;;  %v6709_v60 = vor.u32 1.1754944e-38, %v6708_v10  ;;  %v6969_v2 = vsub.f32 1.0, %v6968_v29 }
 0x718   :  { %v6700_v47 = vmul.f32 %v8840_v16, %v6699_v44  ;;  %v6965_v26 = vsel %vm6962_vm3, %v6964_v53, %v6960_v8  ;;  %vm6707_vm6 = vcmp.eq.f32.partialorder %v6706_v40, 8.507059e+37  ;;  %v6978_v23 = vand.u32 2147483648, %v15655_v21 }
 0x719   :  { %v7064_v46 = vmul.f32 %v15789_v58, %v6965_v26  ;;  %v6713_v61 = vmul.f32 %v8844_v62, %v15733_v11  ;;  %v6970_v18 = vmul.f32 %v15715_v57, %v6969_v2  ;;  %vm6973_vm7 = vweird.f32 %v15715_v57 }
 0x71a   :  { %v6701_v24 = vadd.f32 %v8840_v16, %v6700_v47  ;;  %v6976_v6 = vand.u32 2147483647, %v15655_v21  ;;  %v6125_v22 = vmul.f32 0.5, %v6124_v51  ;;  %v6721_v31 = vand.u32 2147483647, %v15733_v11 }
 0x71b   :  { %8587 = vmatmul.msk.f32.gmra.mxu3 %vm204_vm4, %v7064_v46  ;;  %v6714_v5 = vsub.f32 1.0, %v6713_v61  ;;  %v6971_v14 = vadd.f32 %v15715_v57, %v6970_v18  ;;  %vm6972_vm2 = vweird.f32 %v15655_v21  ;;  %v6723_v49 = vand.u32 2147483648, %v15733_v11 }
 0x71c   :  { %v6705_v19 = vsel %vm6704_vm10, %v8840_v16, %v6701_v24  ;;  %vm6974_vm11 = vmor %vm6972_vm2, %vm6973_vm7  ;;  %v6979_v36 = vor.u32 1.1754944e-38, %v6978_v23  ;;  %vm6718_vm12 = vweird.f32 %v8844_v62  ;;  %vm6977_vm15 = vcmp.eq.f32.partialorder %v6976_v6, 8.507059e+37 }
 0x71d   :  { %v6710_v48 = vsel %vm6707_vm6, %v6709_v60, %v6705_v19  ;;  %v8846_v15 = vpop.eup %8845  ;;  %v6715_v27 = vmul.f32 %v8844_v62, %v6714_v5  ;;  %v6975_v33 = vsel %vm6974_vm11, %v15715_v57, %v6971_v14  ;;  %vm6717_vm13 = vweird.f32 %v15733_v11  ;;  %v5863_v51 = vpop.xlane.xlu1 %5862 }
 0x71e   :  { %v7047_v34 = vmul.f32 %v15613_v1, %v6710_v48  ;;  %v6983_v1 = vmul.f32 %v8846_v15, %v15779_v30  ;;  %v5917_v12 = vpop.xlane.xlu2 %5916  ;;  %v6980_v35 = vsel %vm6977_vm15, %v6979_v36, %v6975_v33  ;;  %vm6722_vm5 = vcmp.eq.f32.partialorder %v6721_v31, 8.507059e+37  ;;  %vm6719_vm14 = vmor %vm6717_vm13, %vm6718_vm12 }
 0x71f   :  { %v7065_v50 = vmul.f32 %v15789_v58, %v6980_v35  ;;  %v6724_v20 = vor.u32 1.1754944e-38, %v6723_v49  ;;  %vm6988_vm8 = vweird.f32 %v8846_v15  ;;  %v6993_v32 = vand.u32 2147483648, %v15779_v30 }
 0x720   :  { %v7211_v54 = vpop.f32.mrf.mxu1  ;;  %8570 = vmatmul.msk.f32.gmra.mxu1 %vm204_vm4, %v7047_v34  ;;  %v6984_v3 = vsub.f32 1.0, %v6983_v1  ;;  %v6991_v11 = vand.u32 2147483647, %v15779_v30  ;;  %v5949_v28 = vmul.f32 %v5917_v12, %v14353_v7  ;;  %v6126_v59 = vsub.f32 1.5, %v6125_v22 }
 0x721   :  { %v15807_v16 = vadd.f32 %v15416_v17, %v7211_v54  ;;  %v6716_v17 = vadd.f32 %v8844_v62, %v6715_v27  ;;  %vm6987_vm0 = vweird.f32 %v15779_v30  ;;  %v6994_v47 = vor.u32 1.1754944e-38, %v6993_v32 }
 0x722   :  { %v6985_v25 = vmul.f32 %v8846_v15, %v6984_v3  ;;  %v5981_v53 = vadd.f32 1e-05, %v5949_v28  ;;  %vm6989_vm1 = vmor %vm6987_vm0, %vm6988_vm8  ;;  %vm6992_vm3 = vcmp.eq.f32.partialorder %v6991_v11, 8.507059e+37  ;;  %v6127_v29 = vmul.f32 %v15731_v41, %v6126_v59 }
 0x723   :  { %v7309_v21 = vsel %vm204_vm4, %v15807_v16, 0.0  ;;  %v6720_v57 = vsel %vm6719_vm14, %v8844_v62, %v6716_v17  ;;  %8588 = vmatmul.msk.f32.gmra.mxu3 %vm204_vm4, %v7065_v50  ;;  %vm6129_vm9 = vweird.f32 %v15731_v41  ;;  %vm6128_vm10 = vweird.f32 %v15664_v56 }
 0x724   :  { %7310 = vadd.xlane.f32.xlu1 %v7309_v21  ;;  %v6725_v44 = vsel %vm6722_vm5, %v6724_v20, %v6720_v57  ;;  %v6986_v10 = vadd.f32 %v8846_v15, %v6985_v25  ;;  %8847 = vrsqrt.f32 %v5981_v53  ;;  %vm6130_vm6 = vmor %vm6128_vm10, %vm6129_vm9  ;;  %v5931_v30 = vmul.f32 %v5863_v51, %v14353_v7 }
 0x725   :  { %v7048_v37 = vmul.f32 %v15046_v13, %v6725_v44  ;;  %v6131_v26 = vsel %vm6130_vm6, %v15731_v41, %v6127_v29  ;;  %vm6298_vm2 = vweird.f32 %v5981_v53 }
 0x726   :  { %v6990_v40 = vsel %vm6989_vm1, %v8846_v15, %v6986_v10  ;;  %v5963_v46 = vadd.f32 1e-05, %v5931_v30  ;;  %v6316_v2 = vmul.f32 %v6131_v26, %v15249_v0 }
 0x727   :  { %v6995_v62 = vsel %vm6992_vm3, %v6994_v47, %v6990_v40 }
 0x728   :  { %8571 = vmatmul.msk.f32.gmra.mxu1 %vm204_vm4, %v7048_v37  ;;  %v7066_v8 = vmul.f32 %v15789_v58, %v6995_v62  ;;  %8849 = vrsqrt.f32 %v5963_v46  ;;  %v6351_v61 = vmul.f32 %v15703_v38, %v6316_v2  ;;  %vm6118_vm15 = vweird.f32 %v5963_v46 }
 0x72a   :  { %v8848_v24 = vpop.eup %8847  ;;  %v6386_v41 = vadd.f32 %v15720_v63, %v6351_v61 }
 0x72b   :  { %8589 = vmatmul.msk.f32.gmra.mxu3 %vm204_vm4, %v7066_v8  ;;  %v6293_v60 = vmul.f32 %v8848_v24, %v5981_v53  ;;  %vm6299_vm7 = vweird.f32 %v8848_v24 }
 0x72c   :  { %vm6300_vm11 = vmor %vm6298_vm2, %vm6299_vm7  ;;  %v8541_v0 = vmul.f32 -1.442695, %v6386_v41 }
 0x72d   :  { %v6294_v19 = vmul.f32 %v8848_v24, %v6293_v60 }
 0x72e   :  { %v8850_v56 = vpop.eup %8849  ;;  %8851 = vpow2.f32 %v8541_v0 }
 0x72f   :  { %v6295_v23 = vmul.f32 0.5, %v6294_v19  ;;  %v6113_v18 = vmul.f32 %v8850_v56, %v5963_v46  ;;  %vm6119_vm12 = vweird.f32 %v8850_v56 }
 0x730   :  { %vm6120_vm13 = vmor %vm6118_vm15, %vm6119_vm12 }
 0x731   :  { %v6296_v54 = vsub.f32 1.5, %v6295_v23  ;;  %v6114_v22 = vmul.f32 %v8850_v56, %v6113_v18 }
 0x733   :  { %v6297_v48 = vmul.f32 %v8848_v24, %v6296_v54  ;;  %v6115_v5 = vmul.f32 0.5, %v6114_v22 }
 0x735   :  { %v6301_v6 = vsel %vm6300_vm11, %v8848_v24, %v6297_v48  ;;  %v6116_v15 = vsub.f32 1.5, %v6115_v5 }
 0x736   :  { %v6333_v34 = vmul.f32 %v6301_v6, %v15401_v4  ;;  %v8852_v4 = vpop.eup %8851  ;;  %v15848_v6 = vld [vmem:[%s16842_s14] ss:$0 sm:$0xff] }
 0x737   :  { %v6117_v49 = vmul.f32 %v8850_v56, %v6116_v15  ;;  %v6514_v17 = vadd.f32 1.0, %v8852_v4  ;;  %v7238_v15 = vpop.f32.mrf.mxu3 }
 0x738   :  { %v6368_v31 = vmul.f32 %v15703_v38, %v6333_v34 }
 0x739   :  { %v6121_v27 = vsel %vm6120_vm13, %v8850_v56, %v6117_v49  ;;  %v6753_v23 = vand.u32 2147483648, %v6514_v17  ;;  %vm6747_vm7 = vweird.f32 %v6514_v17  ;;  %v6751_v61 = vand.u32 2147483647, %v6514_v17 }
 0x73a   :  { %v6403_v14 = vadd.f32 %v15720_v63, %v6368_v31  ;;  %v6315_v1 = vmul.f32 %v6121_v27, %v15433_v45 }
 0x73b   :  { %v6754_v56 = vor.u32 1.1754944e-38, %v6753_v23  ;;  %vm6752_vm11 = vcmp.eq.f32.partialorder %v6751_v61, 8.507059e+37 }
 0x73c   :  { %v8558_v36 = vmul.f32 -1.442695, %v6403_v14  ;;  %v6350_v33 = vmul.f32 %v15703_v38, %v6315_v1 }
 0x73e   :  { %8853 = vpow2.f32 %v8558_v36  ;;  %v6385_v21 = vadd.f32 %v15720_v63, %v6350_v33 }
 0x73f   :  { %v7241_v1 = vpop.f32.mrf.mxu3 }
 0x740   :  { %v8540_v35 = vmul.f32 -1.442695, %v6385_v21 }
 0x742   :  { %8855 = vpow2.f32 %v8540_v35 }
 0x744   :  { %v8854_v12 = vpop.eup %8853 }
 0x745   :  { %v6531_v3 = vadd.f32 1.0, %v8854_v12 }
 0x747   :  { %8857 = vrcp.f32 %v6531_v3  ;;  %v7008_v45 = vand.u32 2147483648, %v6531_v3  ;;  %v7006_v38 = vand.u32 2147483647, %v6531_v3  ;;  %vm7002_vm14 = vweird.f32 %v6531_v3  ;;  %v15872_v35 = vpop.f32.mrf.mxu3 }
 0x748   :  { %8859 = vrcp.f32 %v6514_v17  ;;  %v8856_v50 = vpop.eup %8855 }
 0x749   :  { %v6513_v32 = vadd.f32 1.0, %v8856_v50  ;;  %v7009_v37 = vor.u32 1.1754944e-38, %v7008_v45  ;;  %vm7007_vm0 = vcmp.eq.f32.partialorder %v7006_v38, 8.507059e+37 }
 0x74b   :  { %8861 = vrcp.f32 %v6513_v32  ;;  %v6738_v8 = vand.u32 2147483648, %v6513_v32  ;;  %v6736_v30 = vand.u32 2147483647, %v6513_v32  ;;  %vm6732_vm3 = vweird.f32 %v6513_v32 }
 0x74d   :  { %v8858_v20 = vpop.eup %8857  ;;  %v6739_v46 = vor.u32 1.1754944e-38, %v6738_v8  ;;  %vm6737_vm10 = vcmp.eq.f32.partialorder %v6736_v30, 8.507059e+37 }
 0x74e   :  { %v6998_v57 = vmul.f32 %v8858_v20, %v6531_v3  ;;  %v8860_v25 = vpop.eup %8859  ;;  %vm7003_vm5 = vweird.f32 %v8858_v20 }
 0x74f   :  { %v6743_v59 = vmul.f32 %v8860_v25, %v6514_v17  ;;  %vm7004_vm8 = vmor %vm7002_vm14, %vm7003_vm5  ;;  %vm6748_vm6 = vweird.f32 %v8860_v25 }
 0x750   :  { %v6999_v11 = vsub.f32 1.0, %v6998_v57  ;;  %vm6749_vm2 = vmor %vm6747_vm7, %vm6748_vm6  ;;  %v15880_v57 = vadd.f32 %v15848_v6, %v7238_v15 }
 0x751   :  { %v8862_v44 = vpop.eup %8861  ;;  %v6744_v47 = vsub.f32 1.0, %v6743_v59 }
 0x752   :  { %v7000_v28 = vmul.f32 %v8858_v20, %v6999_v11  ;;  %v6728_v53 = vmul.f32 %v8862_v44, %v6513_v32  ;;  %vm6733_vm1 = vweird.f32 %v8862_v44  ;;  %v7247_v32 = vpop.f32.mrf.mxu3  ;;  %v7336_v45 = vsel %vm204_vm4, %v15880_v57, 0.0 }
 0x753   :  { %v6745_v26 = vmul.f32 %v8860_v25, %v6744_v47  ;;  %vm6734_vm9 = vmor %vm6732_vm3, %vm6733_vm1 }
 0x754   :  { %v7001_v63 = vadd.f32 %v8858_v20, %v7000_v28  ;;  %v6729_v62 = vsub.f32 1.0, %v6728_v53 }
 0x755   :  { %v6746_v2 = vadd.f32 %v8860_v25, %v6745_v26 }
 0x756   :  { %v7005_v10 = vsel %vm7004_vm8, %v8858_v20, %v7001_v63  ;;  %v6730_v51 = vmul.f32 %v8862_v44, %v6729_v62  ;;  %v7296_v20 = vpop.xlane.xlu2 %7295 }
 0x757   :  { %v7010_v40 = vsel %vm7007_vm0, %v7009_v37, %v7005_v10  ;;  %v6750_v54 = vsel %vm6749_vm2, %v8860_v25, %v6746_v2  ;;  %v7388_v25 = vmul.f32 %v7296_v20, %v14353_v7  ;;  %v7293_v2 = vpop.xlane.xlu1 %7292 }
 0x758   :  { %v7067_v29 = vmul.f32 %v15789_v58, %v7010_v40  ;;  %v6731_v24 = vadd.f32 %v8862_v44, %v6730_v51  ;;  %v6755_v48 = vsel %vm6752_vm11, %v6754_v56, %v6750_v54  ;;  %v7387_v61 = vmul.f32 %v7293_v2, %v14353_v7 }
 0x759   :  { %v7050_v18 = vmul.f32 %v15046_v13, %v6755_v48  ;;  %v15884_v11 = vsub.f32 %v15422_v9, %v7388_v25 }
 0x75a   :  { %8590 = vmatmul.msk.f32.gmra.mxu3 %vm204_vm4, %v7067_v29  ;;  %v6735_v60 = vsel %vm6734_vm9, %v8862_v44, %v6731_v24  ;;  %v7250_v38 = vpop.f32.mrf.mxu3  ;;  %v15892_v44 = vadd.f32 %v15848_v6, %v7247_v32 }
 0x75b   :  { %v6740_v19 = vsel %vm6737_vm10, %v6739_v46, %v6735_v60  ;;  %v7452_v28 = vmul.f32 %v15884_v11, %v15884_v11 }
 0x75c   :  { %v7049_v58 = vmul.f32 %v15046_v13, %v6740_v19  ;;  %v7345_v53 = vsel %vm204_vm4, %v15892_v44, 0.0 }
 0x75d   :  { %v7486_v59 = vsel %vm204_vm4, %v7452_v28, 0.0 }
 0x75e   :  { %8572 = vmatmul.msk.f32.gmra.mxu1 %vm204_vm4, %v7049_v58  ;;  %v15921_v58 = vadd.f32 %v15848_v6, %v7241_v1 }
 0x762   :  { %v15895_v10 = vpop.f32.mrf.mxu3 }
 0x766   :  { %8573 = vmatmul.msk.f32.gmra.mxu1 %vm204_vm4, %v7050_v18 }
 0x76a   :  { %v7256_v29 = vpop.f32.mrf.mxu3 }
 0x76b   :  { %v15906_v62 = vadd.f32 %v15848_v6, %v7256_v29  ;;  %v7299_v19 = vpop.xlane.xlu0 %7298 }
 0x76c   :  { %v7389_v54 = vmul.f32 %v7299_v19, %v14353_v7 }
 0x76d   :  { %v7354_v8 = vsel %vm204_vm4, %v15906_v62, 0.0 }
 0x770   :  { %v7214_v41 = vpop.f32.mrf.mxu1 }
 0x771   :  { %v7215_v22 = vadd.f32 %v15848_v6, %v7214_v41 }
 0x773   :  { %v7312_v34 = vsel %vm204_vm4, %v7215_v22, 0.0 }
 0x774   :  { %7313 = vadd.xlane.f32.xlu2 %v7312_v34 }
 0x781   :  { %v7217_v5 = vpop.f32.mrf.mxu1 }
 0x782   :  { %v15853_v0 = vadd.f32 %v15848_v6, %v7217_v5  ;;  %v15935_v5 = vsub.f32 %v15603_v42, %v7389_v54 }
 0x783   :  { %v7305_v63 = vpop.xlane.xlu2 %7304 }
 0x784   :  { %v7315_v13 = vsel %vm204_vm4, %v15853_v0, 0.0  ;;  %v7391_v37 = vmul.f32 %v7305_v63, %v14353_v7 }
 0x785   :  { %7316 = vadd.xlane.f32.xlu0 %v7315_v13 }
 0x786   :  { %v15898_v9 = vsub.f32 %v15752_v43, %v7391_v37  ;;  %v7259_v43 = vpop.f32.mrf.mxu3 }
 0x788   :  { %v7455_v47 = vmul.f32 %v15898_v9, %v15898_v9 }
 0x78a   :  { %v7220_v31 = vpop.f32.mrf.mxu1  ;;  %v7495_v40 = vsel %vm204_vm4, %v7455_v47, 0.0  ;;  %v15982_v47 = vadd.f32 %v15848_v6, %v7259_v43 }
 0x78b   :  { %v15858_v14 = vadd.f32 %v15848_v6, %v7220_v31  ;;  %v7339_v31 = vsel %vm204_vm4, %v15921_v58, 0.0 }
 0x78c   :  { %v7357_v2 = vsel %vm204_vm4, %v15982_v47, 0.0 }
 0x78d   :  { %v7318_v49 = vsel %vm204_vm4, %v15858_v14, 0.0 }
 0x78e   :  { %7319 = vadd.xlane.f32.xlu1 %v7318_v49  ;;  %v15913_v26 = vpop.f32.mrf.mxu3 }
 0x792   :  { %v7223_v36 = vpop.f32.mrf.mxu1 }
 0x793   :  { %v15863_v27 = vadd.f32 %v15848_v6, %v7223_v36 }
 0x795   :  { %v7321_v33 = vsel %vm204_vm4, %v15863_v27, 0.0 }
 0x796   :  { %7322 = vadd.xlane.f32.xlu2 %v7321_v33  ;;  %v7265_v34 = vpop.f32.mrf.mxu3  ;;  %v7302_v33 = vpop.xlane.xlu1 %7301 }
 0x797   :  { %v15942_v15 = vadd.f32 %v15848_v6, %v7265_v34 }
 0x799   :  { %v7363_v42 = vsel %vm204_vm4, %v15942_v15, 0.0 }
 0x79d   :  { %v7226_v4 = vpop.f32.mrf.mxu1 }
 0x79e   :  { %v15868_v21 = vadd.f32 %v15848_v6, %v7226_v4  ;;  %v7308_v4 = vpop.xlane.xlu0 %7307  ;;  %v7268_v28 = vpop.f32.mrf.mxu3 }
 0x79f   :  { %v7392_v20 = vmul.f32 %v7308_v4, %v14353_v7  ;;  %v7311_v63 = vpop.xlane.xlu1 %7310 }
 0x7a0   :  { %v7324_v12 = vsel %vm204_vm4, %v15868_v21, 0.0 }
 0x7a1   :  { %7325 = vadd.xlane.f32.xlu0 %v7324_v12  ;;  %v15954_v12 = vadd.f32 %v15848_v6, %v15872_v35  ;;  %v15965_v25 = vsub.f32 %v15766_v55, %v7392_v20 }
 0x7a5   :  { %v7229_v17 = vpop.f32.mrf.mxu1 }
 0x7a6   :  { %v15875_v3 = vadd.f32 %v15848_v6, %v7229_v17  ;;  %v15957_v17 = vadd.f32 %v15848_v6, %v7250_v38 }
 0x7a8   :  { %v7327_v50 = vsel %vm204_vm4, %v15875_v3, 0.0  ;;  %v7348_v35 = vsel %vm204_vm4, %v15957_v17, 0.0 }
 0x7a9   :  { %7328 = vadd.xlane.f32.xlu1 %v7327_v50  ;;  %v7390_v50 = vmul.f32 %v7302_v33, %v14353_v7 }
 0x7ab   :  { %v15962_v32 = vsub.f32 %v15672_v39, %v7390_v50 }
 0x7ad   :  { %v7454_v38 = vmul.f32 %v15962_v32, %v15962_v32 }
 0x7af   :  { %v7492_v39 = vsel %vm204_vm4, %v7454_v38, 0.0 }
 0x7b1   :  { %7337 = vadd.xlane.f32.xlu1 %v7336_v45  ;;  %v7342_v45 = vsel %vm204_vm4, %v15954_v12, 0.0 }
 0x7b9   :  { %7487 = vadd.xlane.f32.xlu1 %v7486_v59  ;;  %v7456_v59 = vmul.f32 %v15965_v25, %v15965_v25 }
 0x7bb   :  { %v7498_v55 = vsel %vm204_vm4, %v7456_v59, 0.0 }
 0x7c1   :  { %7346 = vadd.xlane.f32.xlu1 %v7345_v53  ;;  %v15979_v53 = vadd.f32 %v15848_v6, %v15895_v10 }
 0x7c9   :  { %7496 = vadd.xlane.f32.xlu1 %v7495_v40  ;;  %v7393_v40 = vmul.f32 %v7311_v63, %v14353_v7 }
 0x7d1   :  { %7355 = vadd.xlane.f32.xlu1 %v7354_v8  ;;  %v7271_v8 = vpop.f32.mrf.mxu3 }
 0x7d9   :  { %v7274_v54 = vpop.f32.mrf.mxu3 }
 0x7db   :  { %v7232_v51 = vpop.f32.mrf.mxu1 }
 0x7dc   :  { %v15911_v30 = vadd.f32 %v15848_v6, %v7232_v51 }
 0x7de   :  { %v7330_v60 = vsel %vm204_vm4, %v15911_v30, 0.0 }
 0x7df   :  { %7331 = vadd.xlane.f32.xlu2 %v7330_v60  ;;  %v15990_v60 = vsub.f32 %v15807_v16, %v7393_v40 }
 0x7e1   :  { %v7457_v16 = vmul.f32 %v15990_v60, %v15990_v60 }
 0x7e3   :  { %v7235_v48 = vpop.f32.mrf.mxu1 }
 0x7e4   :  { %v15929_v41 = vadd.f32 %v15848_v6, %v7235_v48  ;;  %v7501_v48 = vsel %vm204_vm4, %v7457_v16, 0.0 }
 0x7e6   :  { %v7333_v13 = vsel %vm204_vm4, %v15929_v41, 0.0 }
 0x7e7   :  { %v7314_v24 = vpop.xlane.xlu2 %7313  ;;  %7334 = vadd.xlane.f32.xlu0 %v7333_v13  ;;  %7340 = vadd.xlane.f32.xlu2 %v7339_v31  ;;  %v16014_v13 = vadd.f32 %v15848_v6, %v15913_v26  ;;  %v16017_v31 = vadd.f32 %v15848_v6, %v7268_v28  ;;  %v16040_v28 = vadd.f32 %v15848_v6, %v7271_v8 }
 0x7e8   :  { %v7394_v46 = vmul.f32 %v7314_v24, %v14353_v7 }
 0x7e9   :  { %v7360_v26 = vsel %vm204_vm4, %v16014_v13, 0.0  ;;  %v7366_v4 = vsel %vm204_vm4, %v16017_v31, 0.0 }
 0x7ea   :  { %v15918_v23 = vsub.f32 %v7215_v22, %v7394_v46  ;;  %v15932_v22 = vsub.f32 %v15447_v52, %v7387_v61  ;;  %v7453_v52 = vmul.f32 %v15935_v5, %v15935_v5  ;;  %v7351_v46 = vsel %vm204_vm4, %v15979_v53, 0.0 }
 0x7ec   :  { %v7458_v56 = vmul.f32 %v15918_v23, %v15918_v23  ;;  %v7451_v49 = vmul.f32 %v15932_v22, %v15932_v22  ;;  %v7489_v1 = vsel %vm204_vm4, %v7453_v52, 0.0 }
 0x7ee   :  { %v7504_v18 = vsel %vm204_vm4, %v7458_v56, 0.0  ;;  %v7483_v36 = vsel %vm204_vm4, %v7451_v49, 0.0  ;;  %v16008_v56 = vadd.f32 %v15848_v6, %v7274_v54 }
 0x7ef   :  { %7505 = vadd.xlane.f32.xlu1 %v7504_v18  ;;  %7484 = vadd.xlane.f32.xlu0 %v7483_v36 }
 0x7f0   :  { %7490 = vadd.xlane.f32.xlu2 %v7489_v1 }
 0x7f7   :  { %7364 = vadd.xlane.f32.xlu1 %v7363_v42  ;;  %7343 = vadd.xlane.f32.xlu0 %v7342_v45  ;;  %v7372_v42 = vsel %vm204_vm4, %v16008_v56, 0.0 }
 0x7f8   :  { %7349 = vadd.xlane.f32.xlu2 %v7348_v35  ;;  %v7317_v37 = vpop.xlane.xlu0 %7316  ;;  %v7277_v35 = vpop.f32.mrf.mxu3 }
 0x7f9   :  { %v7395_v29 = vmul.f32 %v7317_v37, %v14353_v7  ;;  %v16043_v38 = vadd.f32 %v15848_v6, %v7277_v35  ;;  %v7369_v37 = vsel %vm204_vm4, %v16040_v28, 0.0 }
 0x7fb   :  { %v15993_v10 = vsub.f32 %v15853_v0, %v7395_v29  ;;  %v7375_v40 = vsel %vm204_vm4, %v16043_v38, 0.0 }
 0x7fd   :  { %v7459_v0 = vmul.f32 %v15993_v10, %v15993_v10 }
 0x7ff   :  { %7493 = vadd.xlane.f32.xlu0 %v7492_v39  ;;  %v7507_v18 = vsel %vm204_vm4, %v7459_v0, 0.0 }
 0x800   :  { %7499 = vadd.xlane.f32.xlu2 %v7498_v55 }
 0x807   :  { %7352 = vadd.xlane.f32.xlu0 %v7351_v46  ;;  %v7280_v46 = vpop.f32.mrf.mxu3 }
 0x808   :  { %7358 = vadd.xlane.f32.xlu2 %v7357_v2  ;;  %v16058_v2 = vadd.f32 %v15848_v6, %v7280_v46 }
 0x809   :  { %v7323_v51 = vpop.xlane.xlu2 %7322 }
 0x80a   :  { %v7397_v24 = vmul.f32 %v7323_v51, %v14353_v7 }
 0x80c   :  { %v15996_v43 = vsub.f32 %v15863_v27, %v7397_v24  ;;  %v7320_v27 = vpop.xlane.xlu1 %7319 }
 0x80d   :  { %v7396_v49 = vmul.f32 %v7320_v27, %v14353_v7  ;;  %v7378_v27 = vsel %vm204_vm4, %v16058_v2, 0.0 }
 0x80e   :  { %v7461_v19 = vmul.f32 %v15996_v43, %v15996_v43 }
 0x80f   :  { %7502 = vadd.xlane.f32.xlu0 %v7501_v48  ;;  %v16024_v1 = vsub.f32 %v15858_v14, %v7396_v49 }
 0x810   :  { %v7513_v61 = vsel %vm204_vm4, %v7461_v19, 0.0  ;;  %7508 = vadd.xlane.f32.xlu2 %v7507_v18 }
 0x811   :  { %7514 = vadd.xlane.f32.xlu1 %v7513_v61  ;;  %v7460_v50 = vmul.f32 %v16024_v1, %v16024_v1 }
 0x813   :  { %v7510_v14 = vsel %vm204_vm4, %v7460_v50, 0.0  ;;  %v16081_v50 = vld [vmem:[%s16843_s15] ss:$0 sm:$0xff] }
 0x814   :  { %v7326_v34 = vpop.xlane.xlu0 %7325 }
 0x815   :  { %v7398_v52 = vmul.f32 %v7326_v34, %v14353_v7 }
 0x817   :  { %v16027_v33 = vsub.f32 %v15868_v21, %v7398_v52  ;;  %7361 = vadd.xlane.f32.xlu0 %v7360_v26 }
 0x818   :  { %7367 = vadd.xlane.f32.xlu2 %v7366_v4 }
 0x819   :  { %7373 = vadd.xlane.f32.xlu1 %v7372_v42  ;;  %v7462_v20 = vmul.f32 %v16027_v33, %v16027_v33 }
 0x81b   :  { %v7516_v21 = vsel %vm204_vm4, %v7462_v20, 0.0 }
 0x81c   :  { %v7329_v36 = vpop.xlane.xlu1 %7328 }
 0x81d   :  { %v7399_v59 = vmul.f32 %v7329_v36, %v14353_v7 }
 0x81f   :  { %7511 = vadd.xlane.f32.xlu0 %v7510_v14  ;;  %v16048_v63 = vsub.f32 %v15875_v3, %v7399_v59  ;;  %v16095_v59 = vld [vmem:[%s16845_s17] ss:$0 sm:$0xff] }
 0x820   :  { %7517 = vadd.xlane.f32.xlu2 %v7516_v21 }
 0x821   :  { %v7463_v8 = vmul.f32 %v16048_v63, %v16048_v63 }
 0x823   :  { %v7519_v51 = vsel %vm204_vm4, %v7463_v8, 0.0 }
 0x824   :  { %v7338_v45 = vpop.xlane.xlu1 %7337 }
 0x825   :  { %v7402_v19 = vmul.f32 %v7338_v45, %v14353_v7  ;;  %v16088_v45 = vld [vmem:[%s16844_s16] ss:$0 sm:$0xff] }
 0x827   :  { %7370 = vadd.xlane.f32.xlu0 %v7369_v37  ;;  %v16062_v0 = vsub.f32 %v15880_v57, %v7402_v19 }
 0x828   :  { %7376 = vadd.xlane.f32.xlu2 %v7375_v40 }
 0x829   :  { %v7466_v34 = vmul.f32 %v16062_v0, %v16062_v0 }
 0x82b   :  { %v7528_v57 = vsel %vm204_vm4, %v7466_v34, 0.0 }
 0x82c   :  { %v7488_v39 = vpop.xlane.xlu1 %7487 }
 0x82d   :  { %v7580_v55 = vmul.f32 %v7488_v39, %v14353_v7 }
 0x82f   :  { %v7612_v29 = vadd.f32 1e-05, %v7580_v55  ;;  %7520 = vadd.xlane.f32.xlu0 %v7519_v51 }
 0x831   :  { %8863 = vrsqrt.f32 %v7612_v29  ;;  %vm7659_vm15 = vweird.f32 %v7612_v29 }
 0x834   :  { %v7347_v16 = vpop.xlane.xlu1 %7346 }
 0x835   :  { %v7405_v18 = vmul.f32 %v7347_v16, %v14353_v7 }
 0x837   :  { %v8864_v24 = vpop.eup %8863  ;;  %7379 = vadd.xlane.f32.xlu0 %v7378_v27  ;;  %v16070_v52 = vsub.f32 %v15892_v44, %v7405_v18 }
 0x838   :  { %v7654_v3 = vmul.f32 %v8864_v24, %v7612_v29  ;;  %vm7660_vm12 = vweird.f32 %v8864_v24 }
 0x839   :  { %vm7661_vm13 = vmor %vm7659_vm15, %vm7660_vm12  ;;  %v7469_v26 = vmul.f32 %v16070_v52, %v16070_v52 }
 0x83a   :  { %v7655_v61 = vmul.f32 %v8864_v24, %v7654_v3 }
 0x83b   :  { %v7537_v44 = vsel %vm204_vm4, %v7469_v26, 0.0 }
 0x83c   :  { %v7656_v54 = vmul.f32 0.5, %v7655_v61  ;;  %v16072_v42 = vpop.xlane.xlu1 %7496 }
 0x83e   :  { %v7657_v48 = vsub.f32 1.5, %v7656_v54 }
 0x83f   :  { %7529 = vadd.xlane.f32.xlu0 %v7528_v57 }
 0x840   :  { %v7658_v49 = vmul.f32 %v8864_v24, %v7657_v48 }
 0x842   :  { %v7662_v36 = vsel %vm7661_vm13, %v8864_v24, %v7658_v49 }
 0x843   :  { %v7964_v4 = vmul.f32 %v7662_v36, %v15884_v11 }
 0x844   :  { %v7356_v14 = vpop.xlane.xlu1 %7355 }
 0x845   :  { %v7999_v20 = vmul.f32 %v16081_v50, %v7964_v4  ;;  %v7408_v11 = vmul.f32 %v7356_v14, %v14353_v7 }
 0x847   :  { %7538 = vadd.xlane.f32.xlu0 %v7537_v44  ;;  %v8034_v21 = vadd.f32 %v16088_v45, %v7999_v20  ;;  %v16099_v55 = vsub.f32 %v15906_v62, %v7408_v11  ;;  %v7283_v62 = vpop.f32.mrf.mxu3 }
 0x848   :  { %v16116_v27 = vadd.f32 %v15848_v6, %v7283_v62 }
 0x849   :  { %v8066_v35 = vmax.f32 %v8034_v21, 0.0  ;;  %v7472_v8 = vmul.f32 %v16099_v55, %v16099_v55 }
 0x84a   :  { %v7381_v36 = vsel %vm204_vm4, %v16116_v27, 0.0 }
 0x84b   :  { %v8102_v39 = vmul.f32 %v16095_v59, %v8066_v35  ;;  %v7546_v24 = vsel %vm204_vm4, %v7472_v8, 0.0 }
 0x84d   :  { %v8136_v37 = vsel %vm204_vm4, %v8102_v39, 0.0 }
 0x84f   :  { %8137 = vadd.xlane.f32.xlu0 %v8136_v37  ;;  %v7286_v34 = vpop.f32.mrf.mxu3 }
 0x850   :  { %v16133_v14 = vadd.f32 %v15848_v6, %v7286_v34 }
 0x852   :  { %v7332_v40 = vpop.xlane.xlu2 %7331 }
 0x853   :  { %v7400_v29 = vmul.f32 %v7332_v40, %v14353_v7 }
 0x855   :  { %v16106_v51 = vsub.f32 %v15911_v30, %v7400_v29 }
 0x857   :  { %v7464_v46 = vmul.f32 %v16106_v51, %v16106_v51  ;;  %7547 = vadd.xlane.f32.xlu0 %v7546_v24 }
 0x859   :  { %v7522_v19 = vsel %vm204_vm4, %v7464_v46, 0.0 }
 0x85a   :  { %v7335_v61 = vpop.xlane.xlu0 %7334  ;;  %7523 = vadd.xlane.f32.xlu1 %v7522_v19  ;;  %v7341_v16 = vpop.xlane.xlu2 %7340 }
 0x85b   :  { %v7401_v54 = vmul.f32 %v7335_v61, %v14353_v7  ;;  %v7403_v29 = vmul.f32 %v7341_v16, %v14353_v7 }
 0x85d   :  { %v16119_v30 = vsub.f32 %v15929_v41, %v7401_v54  ;;  %v16143_v19 = vsub.f32 %v15921_v58, %v7403_v29 }
 0x85f   :  { %v7465_v48 = vmul.f32 %v16119_v30, %v16119_v30  ;;  %v7467_v16 = vmul.f32 %v16143_v19, %v16143_v19 }
 0x861   :  { %v7525_v57 = vsel %vm204_vm4, %v7465_v48, 0.0  ;;  %v7531_v58 = vsel %vm204_vm4, %v7467_v16, 0.0 }
 0x862   :  { %v16111_v3 = vpop.xlane.xlu1 %7505  ;;  %v7485_v26 = vpop.xlane.xlu0 %7484  ;;  %7526 = vadd.xlane.f32.xlu2 %v7525_v57  ;;  %7382 = vadd.xlane.f32.xlu1 %v7381_v36 }
 0x863   :  { %v7491_v4 = vpop.xlane.xlu2 %7490  ;;  %v7579_v41 = vmul.f32 %v7485_v26, %v14353_v7 }
 0x864   :  { %v7581_v20 = vmul.f32 %v7491_v4, %v14353_v7 }
 0x865   :  { %v7611_v11 = vadd.f32 1e-05, %v7579_v41 }
 0x866   :  { %v7613_v35 = vadd.f32 1e-05, %v7581_v20 }
 0x867   :  { %8865 = vrsqrt.f32 %v7611_v11  ;;  %vm7649_vm8 = vweird.f32 %v7611_v11 }
 0x868   :  { %8867 = vrsqrt.f32 %v7613_v35  ;;  %vm7669_vm1 = vweird.f32 %v7613_v35 }
 0x86a   :  { %v7365_v18 = vpop.xlane.xlu1 %7364  ;;  %v7344_v37 = vpop.xlane.xlu0 %7343  ;;  %7532 = vadd.xlane.f32.xlu1 %v7531_v58 }
 0x86b   :  { %v7411_v49 = vmul.f32 %v7365_v18, %v14353_v7  ;;  %v7404_v6 = vmul.f32 %v7344_v37, %v14353_v7  ;;  %v7350_v57 = vpop.xlane.xlu2 %7349 }
 0x86c   :  { %v7406_v4 = vmul.f32 %v7350_v57, %v14353_v7 }
 0x86d   :  { %v16128_v44 = vsub.f32 %v15942_v15, %v7411_v49  ;;  %v7384_v15 = vsel %vm204_vm4, %v16133_v14, 0.0  ;;  %v8866_v40 = vpop.eup %8865  ;;  %v16146_v54 = vsub.f32 %v15954_v12, %v7404_v6 }
 0x86e   :  { %7385 = vadd.xlane.f32.xlu2 %v7384_v15  ;;  %v8868_v8 = vpop.eup %8867  ;;  %v7644_v24 = vmul.f32 %v8866_v40, %v7611_v11  ;;  %vm7650_vm5 = vweird.f32 %v8866_v40  ;;  %v16156_v12 = vsub.f32 %v15957_v17, %v7406_v4 }
 0x86f   :  { %v7475_v21 = vmul.f32 %v16128_v44, %v16128_v44  ;;  %v7664_v46 = vmul.f32 %v8868_v8, %v7613_v35  ;;  %v7468_v26 = vmul.f32 %v16146_v54, %v16146_v54  ;;  %vm7670_vm14 = vweird.f32 %v8868_v8  ;;  %vm7651_vm0 = vmor %vm7649_vm8, %vm7650_vm5 }
 0x870   :  { %v7645_v62 = vmul.f32 %v8866_v40, %v7644_v24  ;;  %v7470_v15 = vmul.f32 %v16156_v12, %v16156_v12  ;;  %vm7671_vm3 = vmor %vm7669_vm1, %vm7670_vm14 }
 0x871   :  { %v7555_v39 = vsel %vm204_vm4, %v7475_v21, 0.0  ;;  %v7665_v61 = vmul.f32 %v8868_v8, %v7664_v46  ;;  %v7534_v41 = vsel %vm204_vm4, %v7468_v26, 0.0 }
 0x872   :  { %7556 = vadd.xlane.f32.xlu0 %v7555_v39  ;;  %v7646_v48 = vmul.f32 0.5, %v7645_v62  ;;  %v7494_v36 = vpop.xlane.xlu0 %7493  ;;  %v7540_v24 = vsel %vm204_vm4, %v7470_v15, 0.0 }
 0x873   :  { %v7666_v18 = vmul.f32 0.5, %v7665_v61  ;;  %v7582_v39 = vmul.f32 %v7494_v36, %v14353_v7  ;;  %v16162_v17 = vpop.xlane.xlu2 %7499  ;;  %7541 = vadd.xlane.f32.xlu1 %v7540_v24 }
 0x874   :  { %v7647_v34 = vsub.f32 1.5, %v7646_v48 }
 0x875   :  { %v7667_v49 = vsub.f32 1.5, %v7666_v18  ;;  %v7614_v6 = vadd.f32 1e-05, %v7582_v39 }
 0x876   :  { %7535 = vadd.xlane.f32.xlu2 %v7534_v41  ;;  %v7648_v20 = vmul.f32 %v8866_v40, %v7647_v34 }
 0x877   :  { %v7668_v21 = vmul.f32 %v8868_v8, %v7667_v49  ;;  %8869 = vrsqrt.f32 %v7614_v6  ;;  %vm7679_vm10 = vweird.f32 %v7614_v6 }
 0x878   :  { %v7652_v37 = vsel %vm7651_vm0, %v8866_v40, %v7648_v20 }
 0x879   :  { %v7672_v29 = vsel %vm7671_vm3, %v8868_v8, %v7668_v21  ;;  %v7963_v62 = vmul.f32 %v7652_v37, %v15932_v22 }
 0x87a   :  { %v7353_v46 = vpop.xlane.xlu0 %7352  ;;  %v7965_v61 = vmul.f32 %v7672_v29, %v15935_v5 }
 0x87b   :  { %v7998_v11 = vmul.f32 %v16081_v50, %v7963_v62  ;;  %v7359_v35 = vpop.xlane.xlu2 %7358  ;;  %v7407_v22 = vmul.f32 %v7353_v46, %v14353_v7 }
 0x87c   :  { %v8000_v48 = vmul.f32 %v16081_v50, %v7965_v61  ;;  %v7409_v5 = vmul.f32 %v7359_v35, %v14353_v7 }
 0x87d   :  { %v8033_v8 = vadd.f32 %v16088_v45, %v7998_v11  ;;  %v8870_v49 = vpop.eup %8869  ;;  %v16178_v41 = vsub.f32 %v15979_v53, %v7407_v22 }
 0x87e   :  { %v8035_v34 = vadd.f32 %v16088_v45, %v8000_v48  ;;  %v7674_v36 = vmul.f32 %v8870_v49, %v7614_v6  ;;  %v16181_v20 = vsub.f32 %v15982_v47, %v7409_v5  ;;  %vm7680_vm9 = vweird.f32 %v8870_v49 }
 0x87f   :  { %v8065_v16 = vmax.f32 %v8033_v8, 0.0  ;;  %v7471_v53 = vmul.f32 %v16178_v41, %v16178_v41  ;;  %vm7681_vm6 = vmor %vm7679_vm10, %vm7680_vm9 }
 0x880   :  { %v8067_v57 = vmax.f32 %v8035_v34, 0.0  ;;  %v7675_v29 = vmul.f32 %v8870_v49, %v7674_v36  ;;  %v7473_v47 = vmul.f32 %v16181_v20, %v16181_v20 }
 0x881   :  { %v8101_v4 = vmul.f32 %v16095_v59, %v8065_v16  ;;  %v7543_v35 = vsel %vm204_vm4, %v7471_v53, 0.0 }
 0x882   :  { %v7503_v18 = vpop.xlane.xlu0 %7502  ;;  %v8103_v58 = vmul.f32 %v16095_v59, %v8067_v57  ;;  %v7676_v46 = vmul.f32 0.5, %v7675_v29 }
 0x883   :  { %v7585_v40 = vmul.f32 %v7503_v18, %v14353_v7  ;;  %v16183_v21 = vpop.xlane.xlu2 %7508  ;;  %v8133_v39 = vsel %vm204_vm4, %v8101_v4, 0.0  ;;  %v7549_v18 = vsel %vm204_vm4, %v7473_v47, 0.0 }
 0x884   :  { %v8139_v15 = vsel %vm204_vm4, %v8103_v58, 0.0  ;;  %8134 = vadd.xlane.f32.xlu2 %v8133_v39  ;;  %v16195_v61 = vpop.xlane.xlu1 %7514  ;;  %v7677_v8 = vsub.f32 1.5, %v7676_v46 }
 0x885   :  { %v16173_v26 = vadd.f32 1e-05, %v7585_v40  ;;  %8140 = vadd.xlane.f32.xlu1 %v8139_v15 }
 0x886   :  { %v7678_v36 = vmul.f32 %v8870_v49, %v7677_v8 }
 0x887   :  { %8871 = vrsqrt.f32 %v16173_v26  ;;  %vm7709_vm2 = vweird.f32 %v16173_v26 }
 0x888   :  { %v7682_v29 = vsel %vm7681_vm6, %v8870_v49, %v7678_v36 }
 0x889   :  { %v7966_v6 = vmul.f32 %v7682_v29, %v15962_v32 }
 0x88a   :  { %v7362_v37 = vpop.xlane.xlu0 %7361 }
 0x88b   :  { %v7410_v24 = vmul.f32 %v7362_v37, %v14353_v7  ;;  %v7368_v48 = vpop.xlane.xlu2 %7367 }
 0x88c   :  { %v7412_v34 = vmul.f32 %v7368_v48, %v14353_v7  ;;  %7544 = vadd.xlane.f32.xlu2 %v7543_v35 }
 0x88d   :  { %v16193_v62 = vpop.eup %8871  ;;  %v16198_v11 = vsub.f32 %v16014_v13, %v7410_v24  ;;  %7550 = vadd.xlane.f32.xlu1 %v7549_v18  ;;  %v7374_v24 = vpop.xlane.xlu1 %7373 }
 0x88e   :  { %v7704_v57 = vmul.f32 %v16193_v62, %v16173_v26  ;;  %v16207_v22 = vsub.f32 %v16017_v31, %v7412_v34  ;;  %v7414_v35 = vmul.f32 %v7374_v24, %v14353_v7  ;;  %vm7710_vm7 = vweird.f32 %v16193_v62 }
 0x88f   :  { %v7474_v5 = vmul.f32 %v16198_v11, %v16198_v11  ;;  %vm7711_vm11 = vmor %vm7709_vm2, %vm7710_vm7 }
 0x890   :  { %v7476_v4 = vmul.f32 %v16207_v22, %v16207_v22  ;;  %v7705_v58 = vmul.f32 %v16193_v62, %v7704_v57 }
 0x891   :  { %v7552_v15 = vsel %vm204_vm4, %v7474_v5, 0.0 }
 0x892   :  { %v7512_v40 = vpop.xlane.xlu0 %7511  ;;  %v7558_v31 = vsel %vm204_vm4, %v7476_v4, 0.0  ;;  %v7706_v47 = vmul.f32 0.5, %v7705_v58 }
 0x893   :  { %v7588_v16 = vmul.f32 %v7512_v40, %v14353_v7  ;;  %v16214_v39 = vpop.xlane.xlu2 %7517 }
 0x894   :  { %7553 = vadd.xlane.f32.xlu2 %v7552_v15  ;;  %v7707_v8 = vsub.f32 1.5, %v7706_v47 }
 0x895   :  { %v7620_v13 = vadd.f32 1e-05, %v7588_v16  ;;  %7559 = vadd.xlane.f32.xlu1 %v7558_v31  ;;  %v16228_v16 = vsub.f32 %v16008_v56, %v7414_v35 }
 0x896   :  { %v7708_v58 = vmul.f32 %v16193_v62, %v7707_v8 }
 0x897   :  { %8873 = vrsqrt.f32 %v7620_v13  ;;  %v7478_v29 = vmul.f32 %v16228_v16, %v16228_v16  ;;  %vm7739_vm15 = vweird.f32 %v7620_v13 }
 0x899   :  { %v7564_v35 = vsel %vm204_vm4, %v7478_v29, 0.0 }
 0x89a   :  { %v7371_v37 = vpop.xlane.xlu0 %7370 }
 0x89b   :  { %v7413_v53 = vmul.f32 %v7371_v37, %v14353_v7  ;;  %v7377_v5 = vpop.xlane.xlu2 %7376  ;;  %v7583_v37 = vmul.f32 %v16072_v42, %v14353_v7 }
 0x89c   :  { %v7415_v32 = vmul.f32 %v7377_v5, %v14353_v7 }
 0x89d   :  { %v8874_v46 = vpop.eup %8873  ;;  %v16220_v48 = vsub.f32 %v16040_v28, %v7413_v53  ;;  %v8001_v28 = vmul.f32 %v16081_v50, %v7966_v6  ;;  %v16248_v42 = vadd.f32 1e-05, %v7583_v37 }
 0x89e   :  { %v7734_v18 = vmul.f32 %v8874_v46, %v7620_v13  ;;  %v16236_v31 = vsub.f32 %v16043_v38, %v7415_v32  ;;  %vm7740_vm12 = vweird.f32 %v8874_v46  ;;  %v7712_v38 = vsel %vm7711_vm11, %v16193_v62, %v7708_v58 }
 0x89f   :  { %v7477_v40 = vmul.f32 %v16220_v48, %v16220_v48  ;;  %v8036_v24 = vadd.f32 %v16088_v45, %v8001_v28  ;;  %vm7741_vm13 = vmor %vm7739_vm15, %vm7740_vm12  ;;  %vm7689_vm10 = vweird.f32 %v16248_v42 }
 0x8a0   :  { %v7735_v49 = vmul.f32 %v8874_v46, %v7734_v18  ;;  %v7479_v47 = vmul.f32 %v16236_v31, %v16236_v31 }
 0x8a1   :  { %v7561_v34 = vsel %vm204_vm4, %v7477_v40, 0.0  ;;  %v8068_v18 = vmax.f32 %v8036_v24, 0.0  ;;  %v7969_v40 = vmul.f32 %v7712_v38, %v15990_v60 }
 0x8a2   :  { %v7736_v57 = vmul.f32 0.5, %v7735_v49  ;;  %v7521_v36 = vpop.xlane.xlu0 %7520  ;;  %7562 = vadd.xlane.f32.xlu2 %v7561_v34  ;;  %v7567_v6 = vsel %vm204_vm4, %v7479_v47, 0.0 }
 0x8a3   :  { %v7591_v4 = vmul.f32 %v7521_v36, %v14353_v7  ;;  %7568 = vadd.xlane.f32.xlu0 %v7567_v6  ;;  %v8104_v5 = vmul.f32 %v16095_v59, %v8068_v18  ;;  %v8004_v60 = vmul.f32 %v16081_v50, %v7969_v40 }
 0x8a4   :  { %v7737_v15 = vsub.f32 1.5, %v7736_v57 }
 0x8a5   :  { %v7623_v56 = vadd.f32 1e-05, %v7591_v4  ;;  %v8039_v32 = vadd.f32 %v16088_v45, %v8004_v60  ;;  %v8142_v58 = vsel %vm204_vm4, %v8104_v5, 0.0  ;;  %v7589_v5 = vmul.f32 %v16195_v61, %v14353_v7 }
 0x8a6   :  { %v7738_v53 = vmul.f32 %v8874_v46, %v7737_v15  ;;  %v7586_v15 = vmul.f32 %v16111_v3, %v14353_v7  ;;  %v17415_v60 = vlaneseq }
 0x8a7   :  { %8875 = vrsqrt.f32 %v7623_v56  ;;  %v8071_v29 = vmax.f32 %v8039_v32, 0.0  ;;  %vm7769_vm14 = vweird.f32 %v7623_v56 }
 0x8a8   :  { %v7742_v8 = vsel %vm7741_vm13, %v8874_v46, %v7738_v53  ;;  %8877 = vrsqrt.f32 %v16248_v42  ;;  %v7584_v53 = vmul.f32 %v16162_v17, %v14353_v7  ;;  %v16277_v18 = vadd.f32 1e-05, %v7586_v15 }
 0x8a9   :  { %v7972_v13 = vmul.f32 %v7742_v8, %v16024_v1 }
 0x8aa   :  { %v7380_v26 = vpop.xlane.xlu0 %7379  ;;  %7565 = vadd.xlane.f32.xlu2 %v7564_v35  ;;  %v16279_v40 = vadd.f32 1e-05, %v7584_v53  ;;  %vm7719_vm13 = vweird.f32 %v16277_v18 }
 0x8ab   :  { %v7416_v49 = vmul.f32 %v7380_v26, %v14353_v7  ;;  %v8007_v1 = vmul.f32 %v16081_v50, %v7972_v13  ;;  %v8107_v26 = vmul.f32 %v16095_v59, %v8071_v29 }
 0x8ad   :  { %v8876_v34 = vpop.eup %8875  ;;  %v16254_v62 = vsub.f32 %v16058_v2, %v7416_v49  ;;  %v8042_v35 = vadd.f32 %v16088_v45, %v8007_v1  ;;  %v8151_v49 = vsel %vm204_vm4, %v8107_v26, 0.0  ;;  %v16299_v1 = vadd.f32 1e-05, %v7589_v5 }
 0x8ae   :  { %v7764_v57 = vmul.f32 %v8876_v34, %v7623_v56  ;;  %v16269_v24 = vpop.eup %8877  ;;  %vm7770_vm5 = vweird.f32 %v8876_v34  ;;  %v7587_v56 = vmul.f32 %v16183_v21, %v14353_v7 }
 0x8af   :  { %v7480_v36 = vmul.f32 %v16254_v62, %v16254_v62  ;;  %v7684_v3 = vmul.f32 %v16269_v24, %v16248_v42  ;;  %vm7771_vm8 = vmor %vm7769_vm14, %vm7770_vm5  ;;  %v8074_v13 = vmax.f32 %v8042_v35, 0.0  ;;  %vm7690_vm3 = vweird.f32 %v16269_v24 }
 0x8b0   :  { %v7765_v46 = vmul.f32 %v8876_v34, %v7764_v57  ;;  %v16302_v21 = vadd.f32 1e-05, %v7587_v56  ;;  %vm16344_vm6 = vmor %vm7689_vm10, %vm7690_vm3  ;;  %vm7699_vm5 = vweird.f32 %v16279_v40  ;;  %vm7749_vm3 = vweird.f32 %v16299_v1 }
 0x8b1   :  { %v7570_v28 = vsel %vm204_vm4, %v7480_v36, 0.0  ;;  %v7685_v57 = vmul.f32 %v16269_v24, %v7684_v3 }
 0x8b2   :  { %v7766_v4 = vmul.f32 0.5, %v7765_v46  ;;  %v7530_v2 = vpop.xlane.xlu0 %7529  ;;  %7571 = vadd.xlane.f32.xlu1 %v7570_v28  ;;  %8143 = vadd.xlane.f32.xlu2 %v8142_v58  ;;  %v16291_v46 = vand.u32 127, %v17415_v60 }
 0x8b3   :  { %v7594_v37 = vmul.f32 %v7530_v2, %v14353_v7  ;;  %v8110_v2 = vmul.f32 %v16095_v59, %v8074_v13  ;;  %v7686_v58 = vmul.f32 0.5, %v7685_v57 }
 0x8b4   :  { %v7767_v47 = vsub.f32 1.5, %v7766_v4  ;;  %v7590_v4 = vmul.f32 %v16214_v39, %v14353_v7  ;;  %v16312_v39 = vadd.s32 4294967288, %v16291_v46 }
 0x8b5   :  { %v7626_v38 = vadd.f32 1e-05, %v7594_v37  ;;  %v8160_v35 = vsel %vm204_vm4, %v8110_v2, 0.0  ;;  %v7687_v3 = vsub.f32 1.5, %v7686_v58 }
 0x8b6   :  { %v7768_v6 = vmul.f32 %v8876_v34, %v7767_v47  ;;  %v16317_v47 = vadd.f32 1e-05, %v7590_v4 }
 0x8b7   :  { %8879 = vrsqrt.f32 %v7626_v38  ;;  %vm7799_vm1 = vweird.f32 %v7626_v38  ;;  %v7688_v4 = vmul.f32 %v16269_v24, %v7687_v3 }
 0x8b8   :  { %v7772_v8 = vsel %vm7771_vm8, %v8876_v34, %v7768_v6  ;;  %8881 = vrsqrt.f32 %v16277_v18 }
 0x8b9   :  { %8883 = vrsqrt.f32 %v16279_v40  ;;  %v7975_v28 = vmul.f32 %v7772_v8, %v16048_v63  ;;  %v16307_v63 = vstv %s17416_s6 }
 0x8ba   :  { %v7539_v17 = vpop.xlane.xlu0 %7538  ;;  %8152 = vadd.xlane.f32.xlu2 %v8151_v49 }
 0x8bb   :  { %v7597_v36 = vmul.f32 %v7539_v17, %v14353_v7  ;;  %v8010_v29 = vmul.f32 %v16081_v50, %v7975_v28 }
 0x8bd   :  { %v8880_v34 = vpop.eup %8879  ;;  %v16294_v32 = vadd.f32 1e-05, %v7597_v36  ;;  %v8045_v17 = vadd.f32 %v16088_v45, %v8010_v29 }
 0x8be   :  { %v7794_v61 = vmul.f32 %v8880_v34, %v7626_v38  ;;  %v16309_v37 = vpop.eup %8881  ;;  %vm7800_vm0 = vweird.f32 %v8880_v34 }
 0x8bf   :  { %8885 = vrsqrt.f32 %v16294_v32  ;;  %v16315_v53 = vpop.eup %8883  ;;  %v7714_v49 = vmul.f32 %v16309_v37, %v16277_v18  ;;  %v8077_v56 = vmax.f32 %v8045_v17, 0.0  ;;  %vm7801_vm9 = vmor %vm7799_vm1, %vm7800_vm0  ;;  %vm7829_vm2 = vweird.f32 %v16294_v32 }
 0x8c0   :  { %v7795_v15 = vmul.f32 %v8880_v34, %v7794_v61  ;;  %8887 = vrsqrt.f32 %v16299_v1  ;;  %v7694_v5 = vmul.f32 %v16315_v53, %v16279_v40  ;;  %vm7720_vm12 = vweird.f32 %v16309_v37 }
 0x8c1   :  { %8889 = vrsqrt.f32 %v16302_v21  ;;  %v8113_v61 = vmul.f32 %v16095_v59, %v8077_v56  ;;  %v7715_v2 = vmul.f32 %v16309_v37, %v7714_v49  ;;  %vm7700_vm15 = vweird.f32 %v16315_v53  ;;  %vm16389_vm14 = vmor %vm7719_vm13, %vm7720_vm12 }
 0x8c2   :  { %v7796_v6 = vmul.f32 0.5, %v7795_v15  ;;  %v8138_v26 = vpop.xlane.xlu0 %8137  ;;  %8161 = vadd.xlane.f32.xlu2 %v8160_v35  ;;  %8891 = vrsqrt.f32 %v16317_v47  ;;  %vm16399_vm8 = vmor %vm7699_vm5, %vm7700_vm15 }
 0x8c3   :  { %v16322_v8 = vadd.f32 %v16307_v63, %v8138_v26  ;;  %v8169_v3 = vsel %vm204_vm4, %v8113_v61, 0.0 }
 0x8c4   :  { %v7797_v13 = vsub.f32 1.5, %v7796_v6  ;;  %v7695_v6 = vmul.f32 %v16315_v53, %v7694_v5  ;;  %v7716_v5 = vmul.f32 0.5, %v7715_v2 }
 0x8c5   :  { %v8886_v57 = vpop.eup %8885  ;;  %v8299_v36 = vperm.slane %v16322_v8, %v16312_v39 }
 0x8c6   :  { %v7798_v60 = vmul.f32 %v8880_v34, %v7797_v13  ;;  %v7824_v28 = vmul.f32 %v8886_v57, %v16294_v32  ;;  %v16338_v29 = vpop.eup %8887  ;;  %vm7830_vm7 = vweird.f32 %v8886_v57 }
 0x8c7   :  { %v16342_v38 = vpop.eup %8889  ;;  %v7744_v56 = vmul.f32 %v16338_v29, %v16299_v1  ;;  %vm7831_vm11 = vmor %vm7829_vm2, %vm7830_vm7  ;;  %vm7750_vm0 = vweird.f32 %v16338_v29  ;;  %vm7759_vm2 = vweird.f32 %v16317_v47 }
 0x8c8   :  { %v7802_v58 = vsel %vm7801_vm9, %v8880_v34, %v7798_v60  ;;  %v7825_v15 = vmul.f32 %v8886_v57, %v7824_v28  ;;  %v7692_v34 = vsel %vm16344_vm6, %v16269_v24, %v7688_v4  ;;  %v16354_v13 = vpop.eup %8891  ;;  %v7696_v28 = vmul.f32 0.5, %v7695_v6  ;;  %vm16428_vm10 = vmor %vm7749_vm3, %vm7750_vm0 }
 0x8c9   :  { %v7978_v49 = vmul.f32 %v7802_v58, %v16062_v0  ;;  %v7724_v61 = vmul.f32 %v16342_v38, %v16302_v21  ;;  %v7967_v24 = vmul.f32 %v7692_v34, %v15898_v9  ;;  %v7754_v4 = vmul.f32 %v16354_v13, %v16317_v47 }
 0x8ca   :  { %v7826_v35 = vmul.f32 0.5, %v7825_v15  ;;  %8170 = vadd.xlane.f32.xlu2 %v8169_v3  ;;  %v7717_v58 = vsub.f32 1.5, %v7716_v5  ;;  %v7745_v26 = vmul.f32 %v16338_v29, %v7744_v56  ;;  %v7548_v32 = vpop.xlane.xlu0 %7547  ;;  %vm7730_vm1 = vweird.f32 %v16342_v38 }
 0x8cb   :  { %v8013_v2 = vmul.f32 %v16081_v50, %v7978_v49  ;;  %v7725_v3 = vmul.f32 %v16342_v38, %v7724_v61  ;;  %vm7729_vm9 = vweird.f32 %v16302_v21  ;;  %vm7760_vm6 = vweird.f32 %v16354_v13 }
 0x8cc   :  { %v7827_v60 = vsub.f32 1.5, %v7826_v35  ;;  %v7697_v35 = vsub.f32 1.5, %v7696_v28  ;;  %v7718_v56 = vmul.f32 %v16309_v37, %v7717_v58  ;;  %v7746_v28 = vmul.f32 0.5, %v7745_v26  ;;  %vm16442_vm7 = vmor %vm7729_vm9, %vm7730_vm1 }
 0x8cd   :  { %v7524_v17 = vpop.xlane.xlu1 %7523  ;;  %v7600_v58 = vmul.f32 %v7548_v32, %v14353_v7 }
 0x8ce   :  { %v7592_v42 = vmul.f32 %v7524_v17, %v14353_v7  ;;  %v7828_v0 = vmul.f32 %v8886_v57, %v7827_v60  ;;  %v8048_v17 = vadd.f32 %v16088_v45, %v8013_v2  ;;  %v7755_v60 = vmul.f32 %v16354_v13, %v7754_v4 }
 0x8cf   :  { %v7698_v61 = vmul.f32 %v16315_v53, %v7697_v35 }
 0x8d0   :  { %v16360_v15 = vadd.f32 1e-05, %v7592_v42  ;;  %v7832_v6 = vsel %vm7831_vm11, %v8886_v57, %v7828_v0  ;;  %v8002_v42 = vmul.f32 %v16081_v50, %v7967_v24  ;;  %v8080_v49 = vmax.f32 %v8048_v17, 0.0  ;;  %vm7761_vm11 = vmor %vm7759_vm2, %vm7760_vm6 }
 0x8d1   :  { %v7981_v9 = vmul.f32 %v7832_v6, %v16070_v52  ;;  %v7726_v0 = vmul.f32 0.5, %v7725_v3  ;;  %v7756_v35 = vmul.f32 0.5, %v7755_v60  ;;  %v7722_v60 = vsel %vm16389_vm14, %v16309_v37, %v7718_v56 }
 0x8d2   :  { %8893 = vrsqrt.f32 %v16360_v15  ;;  %v8116_v24 = vmul.f32 %v16095_v59, %v8080_v49  ;;  %v8037_v32 = vadd.f32 %v16088_v45, %v8002_v42  ;;  %v7702_v49 = vsel %vm16399_vm8, %v16315_v53, %v7698_v61 }
 0x8d3   :  { %v8016_v57 = vmul.f32 %v16081_v50, %v7981_v9  ;;  %v7968_v61 = vmul.f32 %v7702_v49, %v15965_v25  ;;  %vm7779_vm15 = vweird.f32 %v16360_v15 }
 0x8d4   :  { %v8178_v9 = vsel %vm204_vm4, %v8116_v24, 0.0  ;;  %v7757_v24 = vsub.f32 1.5, %v7756_v35  ;;  %v8069_v56 = vmax.f32 %v8037_v32, 0.0 }
 0x8d5   :  { %v7527_v34 = vpop.xlane.xlu2 %7526  ;;  %v7383_v52 = vpop.xlane.xlu1 %7382  ;;  %v8051_v4 = vadd.f32 %v16088_v45, %v8016_v57  ;;  %8179 = vadd.xlane.f32.xlu2 %v8178_v9  ;;  %v16410_v57 = vadd.f32 1e-05, %v7600_v58  ;;  %v8003_v32 = vmul.f32 %v16081_v50, %v7968_v61 }
 0x8d6   :  { %v7593_v5 = vmul.f32 %v7527_v34, %v14353_v7  ;;  %v7417_v17 = vmul.f32 %v7383_v52, %v14353_v7  ;;  %v7747_v34 = vsub.f32 1.5, %v7746_v28  ;;  %v7758_v26 = vmul.f32 %v16354_v13, %v7757_v24 }
 0x8d7   :  { %v8083_v40 = vmax.f32 %v8051_v4, 0.0  ;;  %v7970_v4 = vmul.f32 %v7722_v60, %v15918_v23  ;;  %v8105_v60 = vmul.f32 %v16095_v59, %v8069_v56  ;;  %vm7859_vm1 = vweird.f32 %v16410_v57 }
 0x8d8   :  { %v16382_v2 = vpop.eup %8893  ;;  %v16387_v6 = vadd.f32 1e-05, %v7593_v5  ;;  %v7727_v5 = vsub.f32 1.5, %v7726_v0  ;;  %v16416_v42 = vsub.f32 %v16116_v27, %v7417_v17  ;;  %v7748_v37 = vmul.f32 %v16338_v29, %v7747_v34 }
 0x8d9   :  { %v7774_v3 = vmul.f32 %v16382_v2, %v16360_v15  ;;  %v8119_v52 = vmul.f32 %v16095_v59, %v8083_v40  ;;  %v8005_v34 = vmul.f32 %v16081_v50, %v7970_v4  ;;  %v7762_v49 = vsel %vm7761_vm11, %v16354_v13, %v7758_v26 }
 0x8da   :  { %8895 = vrsqrt.f32 %v16387_v6  ;;  %v7728_v0 = vmul.f32 %v16342_v38, %v7727_v5  ;;  %v7481_v35 = vmul.f32 %v16416_v42, %v16416_v42  ;;  %v7752_v21 = vsel %vm16428_vm10, %v16338_v29, %v7748_v37 }
 0x8db   :  { %v7775_v28 = vmul.f32 %v16382_v2, %v7774_v3  ;;  %v8187_v58 = vsel %vm204_vm4, %v8119_v52, 0.0  ;;  %8897 = vrsqrt.f32 %v16410_v57  ;;  %v7973_v52 = vmul.f32 %v7752_v21, %v15996_v43 }
 0x8dc   :  { %v7732_v18 = vsel %vm16442_vm7, %v16342_v38, %v7728_v0  ;;  %v7573_v40 = vsel %vm204_vm4, %v7481_v35, 0.0  ;;  %v8040_v4 = vadd.f32 %v16088_v45, %v8005_v34  ;;  %v8038_v37 = vadd.f32 %v16088_v45, %v8003_v32 }
 0x8dd   :  { %v7776_v23 = vmul.f32 0.5, %v7775_v28  ;;  %8188 = vadd.xlane.f32.xlu2 %v8187_v58  ;;  %7574 = vadd.xlane.f32.xlu0 %v7573_v40  ;;  %v7971_v24 = vmul.f32 %v7732_v18, %v15993_v10  ;;  %v7974_v13 = vmul.f32 %v7762_v49, %v16027_v33  ;;  %vm7780_vm12 = vweird.f32 %v16382_v2  ;;  %v7533_v61 = vpop.xlane.xlu1 %7532 }
 0x8de   :  { %v8145_v56 = vsel %vm204_vm4, %v8105_v60, 0.0  ;;  %v8072_v0 = vmax.f32 %v8040_v4, 0.0  ;;  %v8008_v58 = vmul.f32 %v16081_v50, %v7973_v52  ;;  %vm16482_vm13 = vmor %vm7779_vm15, %vm7780_vm12  ;;  %v7595_v26 = vmul.f32 %v7533_v61, %v14353_v7 }
 0x8df   :  { %v7777_v29 = vsub.f32 1.5, %v7776_v23  ;;  %v8006_v23 = vmul.f32 %v16081_v50, %v7971_v24  ;;  %v8009_v21 = vmul.f32 %v16081_v50, %v7974_v13  ;;  %vm7789_vm14 = vweird.f32 %v16387_v6 }
 0x8e0   :  { %v16437_v1 = vpop.eup %8895  ;;  %v16494_v34 = vadd.f32 1e-05, %v7595_v26  ;;  %v8043_v40 = vadd.f32 %v16088_v45, %v8008_v58  ;;  %vm8300_vm15 = vcmask 130112  }
 0x8e1   :  { %v7386_v3 = vpop.xlane.xlu2 %7385  ;;  %v7784_v28 = vmul.f32 %v16437_v1, %v16387_v6  ;;  %v16463_v47 = vpop.eup %8897  ;;  %v8041_v32 = vadd.f32 %v16088_v45, %v8006_v23  ;;  %vm7790_vm5 = vweird.f32 %v16437_v1 }
 0x8e2   :  { %v7418_v17 = vmul.f32 %v7386_v3, %v14353_v7  ;;  %v8070_v3 = vmax.f32 %v8038_v37, 0.0  ;;  %v8075_v13 = vmax.f32 %v8043_v40, 0.0  ;;  %vm16529_vm8 = vmor %vm7789_vm14, %vm7790_vm5  ;;  %vm7860_vm0 = vweird.f32 %v16463_v47 }
 0x8e3   :  { %v7785_v43 = vmul.f32 %v16437_v1, %v7784_v28  ;;  %v8044_v28 = vadd.f32 %v16088_v45, %v8009_v21  ;;  %vm16543_vm3 = vmor %vm7859_vm1, %vm7860_vm0  ;;  %vm7809_vm6 = vweird.f32 %v16494_v34  ;;  %vm8304_vm1 = vcmask 195712  }
 0x8e4   :  { %v16461_v38 = vsub.f32 %v16133_v14, %v7418_v17  ;;  %v7854_v14 = vmul.f32 %v16463_v47, %v16410_v57  ;;  %v8106_v49 = vmul.f32 %v16095_v59, %v8070_v3 }
 0x8e5   :  { %v7557_v53 = vpop.xlane.xlu0 %7556  ;;  %8146 = vadd.xlane.f32.xlu0 %v8145_v56  ;;  %v7786_v17 = vmul.f32 0.5, %v7785_v43 }
 0x8e6   :  { %v7603_v25 = vmul.f32 %v7557_v53, %v14353_v7  ;;  %v7778_v53 = vmul.f32 %v16382_v2, %v7777_v29  ;;  %v7482_v10 = vmul.f32 %v16461_v38, %v16461_v38  ;;  %v7855_v9 = vmul.f32 %v16463_v47, %v7854_v14  ;;  %v7542_v37 = vpop.xlane.xlu1 %7541 }
 0x8e7   :  { %v7787_v24 = vsub.f32 1.5, %v7786_v17  ;;  %v8148_v14 = vsel %vm204_vm4, %v8106_v49, 0.0 }
 0x8e8   :  { %v16456_v5 = vadd.f32 1e-05, %v7603_v25  ;;  %v7576_v25 = vsel %vm204_vm4, %v7482_v10, 0.0  ;;  %v7782_v15 = vsel %vm16482_vm13, %v16382_v2, %v7778_v53  ;;  %v8108_v2 = vmul.f32 %v16095_v59, %v8072_v0 }
 0x8e9   :  { %v7536_v33 = vpop.xlane.xlu2 %7535  ;;  %7577 = vadd.xlane.f32.xlu1 %v7576_v25  ;;  %v7976_v60 = vmul.f32 %v7782_v15, %v16106_v51  ;;  %v7856_v52 = vmul.f32 0.5, %v7855_v9  ;;  %v8073_v53 = vmax.f32 %v8041_v32, 0.0  ;;  %v7598_v51 = vmul.f32 %v7542_v37, %v14353_v7 }
 0x8ea   :  { %8899 = vrsqrt.f32 %v16456_v5  ;;  %v7596_v35 = vmul.f32 %v7536_v33, %v14353_v7  ;;  %v8154_v56 = vsel %vm204_vm4, %v8108_v2, 0.0  ;;  %v8076_v10 = vmax.f32 %v8044_v28, 0.0 }
 0x8eb   :  { %8901 = vrsqrt.f32 %v16494_v34  ;;  %v8011_v43 = vmul.f32 %v16081_v50, %v7976_v60  ;;  %v7857_v33 = vsub.f32 1.5, %v7856_v52  ;;  %v7788_v0 = vmul.f32 %v16437_v1, %v7787_v24 }
 0x8ec   :  { %v16496_v18 = vadd.f32 1e-05, %v7596_v35  ;;  %v16516_v58 = vadd.f32 1e-05, %v7598_v51  ;;  %v8111_v25 = vmul.f32 %v16095_v59, %v8075_v13  ;;  %v8109_v50 = vmul.f32 %v16095_v59, %v8073_v53 }
 0x8ed   :  { %8155 = vadd.xlane.f32.xlu0 %v8154_v56  ;;  %v8046_v3 = vadd.f32 %v16088_v45, %v8011_v43  ;;  %v8112_v9 = vmul.f32 %v16095_v59, %v8076_v10  ;;  %v7858_v17 = vmul.f32 %v16463_v47, %v7857_v33  ;;  %v7792_v6 = vsel %vm16529_vm8, %v16437_v1, %v7788_v0 }
 0x8ee   :  { %8903 = vrsqrt.f32 %v16496_v18  ;;  %v8163_v45 = vsel %vm204_vm4, %v8111_v25, 0.0  ;;  %v8157_v49 = vsel %vm204_vm4, %v8109_v50, 0.0  ;;  %v7977_v24 = vmul.f32 %v7792_v6, %v16119_v30 }
 0x8ef   :  { %8905 = vrsqrt.f32 %v16516_v58  ;;  %v8078_v28 = vmax.f32 %v8046_v3, 0.0  ;;  %v7862_v37 = vsel %vm16543_vm3, %v16463_v47, %v7858_v17  ;;  %v8166_v13 = vsel %vm204_vm4, %v8112_v9, 0.0  ;;  %v16584_v3 = vld [vmem:[%s16844_s16] ss:$0 sm:$0xff] }
 0x8f0   :  { %v16500_v29 = vpop.eup %8899  ;;  %vm7819_vm2 = vweird.f32 %v16496_v18  ;;  %vm7889_vm5 = vweird.f32 %v16456_v5  ;;  %vm7839_vm8 = vweird.f32 %v16516_v58 }
 0x8f1   :  { %v7884_v4 = vmul.f32 %v16500_v29, %v16456_v5  ;;  %8149 = vadd.xlane.f32.xlu1 %v8148_v14  ;;  %v8902_v61 = vpop.eup %8901  ;;  %v16558_v14 = vadd.s32 4294967280, %v16291_v46  ;;  %v8114_v47 = vmul.f32 %v16095_v59, %v8078_v28  ;;  %vm7890_vm11 = vweird.f32 %v16500_v29  ;;  %v16610_v5 = vld [vmem:[%s16845_s17] ss:$0 sm:$0xff]  ;;  %s9112_s17 = smov [#allocation12]  }
 0x8f2   :  { %v7804_v26 = vmul.f32 %v8902_v61, %v16494_v34  ;;  %vm7810_vm9 = vweird.f32 %v8902_v61  ;;  %vm16602_vm14 = vmor %vm7889_vm5, %vm7890_vm11  ;;  %s8381_s2 = sshll.u32 %s9112_s17, 4  ;;  %s8382_s2 = int_to_ptr.vmem [resolvable:$true] %s8381_s2 }
 0x8f3   :  { %v7885_v27 = vmul.f32 %v16500_v29, %v7884_v4  ;;  %vm7811_vm7 = vmor %vm7809_vm6, %vm7810_vm9 }
 0x8f4   :  { %v16518_v23 = vpop.eup %8903  ;;  %v7805_v21 = vmul.f32 %v8902_v61, %v7804_v26 }
 0x8f5   :  { %v7814_v35 = vmul.f32 %v16518_v23, %v16496_v18  ;;  %v7886_v32 = vmul.f32 0.5, %v7885_v27  ;;  %8164 = vadd.xlane.f32.xlu0 %v8163_v45  ;;  %v8906_v1 = vpop.eup %8905  ;;  %vm7820_vm10 = vweird.f32 %v16518_v23  ;;  %v16569_v27 = vld [vmem:[%s16843_s15] ss:$0 sm:$0xff]  ;;  %v7984_v45 = vmul.f32 %v7862_v37, %v16099_v55 }
 0x8f6   :  { %v7806_v60 = vmul.f32 0.5, %v7805_v21  ;;  %v7834_v30 = vmul.f32 %v8906_v1, %v16516_v58  ;;  %vm16562_vm12 = vmor %vm7819_vm2, %vm7820_vm10  ;;  %v8012_v18 = vmul.f32 %v16569_v27, %v7977_v24  ;;  %v8172_v21 = vsel %vm204_vm4, %v8114_v47, 0.0 }
 0x8f7   :  { %v7815_v40 = vmul.f32 %v16518_v23, %v7814_v35  ;;  %v7887_v53 = vsub.f32 1.5, %v7886_v32  ;;  %v8135_v0 = vpop.xlane.xlu2 %8134  ;;  %vm7840_vm13 = vweird.f32 %v8906_v1 }
 0x8f8   :  { %v7807_v4 = vsub.f32 1.5, %v7806_v60  ;;  %v7835_v10 = vmul.f32 %v8906_v1, %v7834_v30  ;;  %v8141_v34 = vpop.xlane.xlu1 %8140  ;;  %v8231_v25 = vadd.f32 %v16307_v63, %v8135_v0  ;;  %vm7841_vm0 = vmor %vm7839_vm8, %vm7840_vm13 }
 0x8f9   :  { %v7816_v2 = vmul.f32 0.5, %v7815_v40  ;;  %8158 = vadd.xlane.f32.xlu1 %v8157_v49  ;;  %v7888_v50 = vmul.f32 %v16500_v29, %v7887_v53 }
 0x8fa   :  { %v7808_v51 = vmul.f32 %v8902_v61, %v7807_v4  ;;  %v7836_v35 = vmul.f32 0.5, %v7835_v10 }
 0x8fb   :  { %v7817_v57 = vsub.f32 1.5, %v7816_v2  ;;  %v7892_v55 = vsel %vm16602_vm14, %v16500_v29, %v7888_v50 }
 0x8fc   :  { %v7812_v43 = vsel %vm7811_vm7, %v8902_v61, %v7808_v51  ;;  %v16577_v61 = vadd.f32 %v16307_v63, %v8141_v34  ;;  %v7837_v17 = vsub.f32 1.5, %v7836_v35  ;;  %v8019_v51 = vmul.f32 %v16569_v27, %v7984_v45 }
 0x8fd   :  { %v7818_v56 = vmul.f32 %v16518_v23, %v7817_v57  ;;  %v7979_v26 = vmul.f32 %v7812_v43, %v16143_v19  ;;  %v8047_v19 = vadd.f32 %v16584_v3, %v8012_v18  ;;  %8173 = vadd.xlane.f32.xlu0 %v8172_v21 }
 0x8fe   :  { %v8303_v15 = vperm.slane %v16577_v61, %v16558_v14  ;;  %v8054_v33 = vadd.f32 %v16584_v3, %v8019_v51 }
 0x8ff   :  { %v7822_v59 = vsel %vm16562_vm12, %v16518_v23, %v7818_v56  ;;  %v8297_v23 = vperm.slane %v8231_v25, %v16291_v46  ;;  %v8014_v9 = vmul.f32 %v16569_v27, %v7979_v26  ;;  %v8079_v40 = vmax.f32 %v8047_v19, 0.0  ;;  %v7545_v52 = vpop.xlane.xlu2 %7544 }
 0x900   :  { %v7980_v6 = vmul.f32 %v7822_v59, %v16146_v54  ;;  %v7838_v54 = vmul.f32 %v8906_v1, %v7837_v17  ;;  %v7551_v28 = vpop.xlane.xlu1 %7550  ;;  %v7599_v37 = vmul.f32 %v7545_v52, %v14353_v7  ;;  %v8086_v50 = vmax.f32 %v8054_v33, 0.0 }
 0x901   :  { %8167 = vadd.xlane.f32.xlu1 %v8166_v13  ;;  %v8301_v32 = vsel %vm8300_vm15, %v8299_v36, %v8297_v23  ;;  %v8049_v60 = vadd.f32 %v16584_v3, %v8014_v9  ;;  %v8115_v8 = vmul.f32 %v16610_v5, %v8079_v40  ;;  %v7601_v4 = vmul.f32 %v7551_v28, %v14353_v7 }
 0x902   :  { %v7842_v49 = vsel %vm7841_vm0, %v8906_v1, %v7838_v54  ;;  %v8015_v24 = vmul.f32 %v16569_v27, %v7980_v6  ;;  %v16624_v1 = vadd.f32 1e-05, %v7599_v37  ;;  %v16644_v9 = vsel %vm8304_vm1, %v8303_v15, %v8301_v32 }
 0x903   :  { %v8081_v36 = vmax.f32 %v8049_v60, 0.0  ;;  %v7982_v58 = vmul.f32 %v7842_v49, %v16156_v12  ;;  %v8175_v13 = vsel %vm204_vm4, %v8115_v8, 0.0  ;;  %v7633_v29 = vadd.f32 1e-05, %v7601_v4 }
 0x904   :  { %v8050_v53 = vadd.f32 %v16584_v3, %v8015_v24  ;;  %v7987_v12 = vmul.f32 %v7892_v55, %v16128_v44  ;;  %v8122_v54 = vmul.f32 %v16610_v5, %v8086_v50  ;;  %vm7849_vm7 = vweird.f32 %v16624_v1 }
 0x905   :  { %v8117_v57 = vmul.f32 %v16610_v5, %v8081_v36  ;;  %v8017_v56 = vmul.f32 %v16569_v27, %v7982_v58  ;;  %8907 = vrsqrt.f32 %v7633_v29  ;;  %vm7869_vm10 = vweird.f32 %v7633_v29 }
 0x906   :  { %v8082_v47 = vmax.f32 %v8050_v53, 0.0  ;;  %8909 = vrsqrt.f32 %v16624_v1  ;;  %v8022_v26 = vmul.f32 %v16569_v27, %v7987_v12  ;;  %v8196_v24 = vsel %vm204_vm4, %v8122_v54, 0.0 }
 0x907   :  { %v8181_v30 = vsel %vm204_vm4, %v8117_v57, 0.0  ;;  %v8052_v43 = vadd.f32 %v16584_v3, %v8017_v56  ;;  %v7554_v18 = vpop.xlane.xlu2 %7553  ;;  %v16680_v54 = vadd.s32 4294967272, %v16291_v46 }
 0x908   :  { %8182 = vadd.xlane.f32.xlu0 %v8181_v30  ;;  %v8118_v10 = vmul.f32 %v16610_v5, %v8082_v47  ;;  %v7560_v0 = vpop.xlane.xlu1 %7559  ;;  %v7602_v61 = vmul.f32 %v7554_v18, %v14353_v7  ;;  %v8057_v40 = vadd.f32 %v16584_v3, %v8022_v26 }
 0x909   :  { %8176 = vadd.xlane.f32.xlu1 %v8175_v13  ;;  %v8084_v34 = vmax.f32 %v8052_v43, 0.0  ;;  %v7604_v44 = vmul.f32 %v7560_v0, %v14353_v7 }
 0x90a   :  { %v8184_v25 = vsel %vm204_vm4, %v8118_v10, 0.0  ;;  %v16641_v21 = vadd.f32 1e-05, %v7602_v61  ;;  %v8089_v15 = vmax.f32 %v8057_v40, 0.0 }
 0x90b   :  { %v8120_v59 = vmul.f32 %v16610_v5, %v8084_v34  ;;  %v8908_v35 = vpop.eup %8907  ;;  %v16639_v23 = vadd.f32 1e-05, %v7604_v44 }
 0x90c   :  { %v8910_v17 = vpop.eup %8909  ;;  %v7864_v6 = vmul.f32 %v8908_v35, %v7633_v29  ;;  %vm7870_vm3 = vweird.f32 %v8908_v35  ;;  %v8125_v13 = vmul.f32 %v16610_v5, %v8089_v15  ;;  %vm7879_vm14 = vweird.f32 %v16641_v21 }
 0x90d   :  { %v8190_v19 = vsel %vm204_vm4, %v8120_v59, 0.0  ;;  %v7844_v60 = vmul.f32 %v8910_v17, %v16624_v1  ;;  %8911 = vrsqrt.f32 %v16639_v23  ;;  %vm7850_vm9 = vweird.f32 %v8910_v17  ;;  %vm7871_vm6 = vmor %vm7869_vm10, %vm7870_vm3 }
 0x90e   :  { %8191 = vadd.xlane.f32.xlu2 %v8190_v19  ;;  %v7865_v45 = vmul.f32 %v8908_v35, %v7864_v6  ;;  %8913 = vrsqrt.f32 %v16641_v21  ;;  %vm7851_vm2 = vmor %vm7849_vm7, %vm7850_vm9  ;;  %v8205_v18 = vsel %vm204_vm4, %v8125_v13, 0.0  ;;  %vm7899_vm13 = vweird.f32 %v16639_v23 }
 0x90f   :  { %v7845_v2 = vmul.f32 %v8910_v17, %v7844_v60  ;;  %vm8308_vm3 = vcmask 261312  }
 0x910   :  { %v7866_v8 = vmul.f32 0.5, %v7865_v45 }
 0x911   :  { %8185 = vadd.xlane.f32.xlu1 %v8184_v25  ;;  %v7846_v32 = vmul.f32 0.5, %v7845_v2 }
 0x912   :  { %v7867_v49 = vsub.f32 1.5, %v7866_v8 }
 0x913   :  { %v8912_v28 = vpop.eup %8911  ;;  %v7847_v52 = vsub.f32 1.5, %v7846_v32 }
 0x914   :  { %v8914_v4 = vpop.eup %8913  ;;  %v7868_v37 = vmul.f32 %v8908_v35, %v7867_v49  ;;  %v7894_v57 = vmul.f32 %v8912_v28, %v16639_v23  ;;  %vm7900_vm11 = vweird.f32 %v8912_v28 }
 0x915   :  { %v7563_v36 = vpop.xlane.xlu2 %7562  ;;  %v7848_v53 = vmul.f32 %v8910_v17, %v7847_v52  ;;  %v7874_v51 = vmul.f32 %v8914_v4, %v16641_v21  ;;  %vm7880_vm12 = vweird.f32 %v8914_v4  ;;  %vm7901_vm5 = vmor %vm7899_vm13, %vm7900_vm11 }
 0x916   :  { %v7605_v55 = vmul.f32 %v7563_v36, %v14353_v7  ;;  %v7872_v30 = vsel %vm7871_vm6, %v8908_v35, %v7868_v37  ;;  %v7895_v56 = vmul.f32 %v8912_v28, %v7894_v57  ;;  %v7569_v43 = vpop.xlane.xlu0 %7568  ;;  %vm7881_vm8 = vmor %vm7879_vm14, %vm7880_vm12 }
 0x917   :  { %v7985_v12 = vmul.f32 %v7872_v30, %v16181_v20  ;;  %v7852_v29 = vsel %vm7851_vm2, %v8910_v17, %v7848_v53  ;;  %v7875_v47 = vmul.f32 %v8914_v4, %v7874_v51  ;;  %v7607_v34 = vmul.f32 %v7569_v43, %v14353_v7 }
 0x918   :  { %v16653_v58 = vadd.f32 1e-05, %v7605_v55  ;;  %v7983_v10 = vmul.f32 %v7852_v29, %v16178_v41  ;;  %v7896_v33 = vmul.f32 0.5, %v7895_v56 }
 0x919   :  { %8197 = vadd.xlane.f32.xlu1 %v8196_v24  ;;  %v7876_v1 = vmul.f32 0.5, %v7875_v47  ;;  %v16666_v44 = vadd.f32 1e-05, %v7607_v34  ;;  %v8020_v41 = vmul.f32 %v16569_v27, %v7985_v12 }
 0x91a   :  { %8915 = vrsqrt.f32 %v16653_v58  ;;  %v7897_v59 = vsub.f32 1.5, %v7896_v33  ;;  %v8018_v20 = vmul.f32 %v16569_v27, %v7983_v10  ;;  %vm7909_vm0 = vweird.f32 %v16653_v58 }
 0x91b   :  { %v7877_v25 = vsub.f32 1.5, %v7876_v1  ;;  %8917 = vrsqrt.f32 %v16666_v44  ;;  %v8055_v8 = vadd.f32 %v16584_v3, %v8020_v41  ;;  %vm7929_vm2 = vweird.f32 %v16666_v44 }
 0x91c   :  { %v7898_v35 = vmul.f32 %v8912_v28, %v7897_v59  ;;  %v8053_v60 = vadd.f32 %v16584_v3, %v8018_v20 }
 0x91d   :  { %v7566_v0 = vpop.xlane.xlu2 %7565  ;;  %v7878_v17 = vmul.f32 %v8914_v4, %v7877_v25  ;;  %v8087_v53 = vmax.f32 %v8055_v8, 0.0 }
 0x91e   :  { %v7606_v26 = vmul.f32 %v7566_v0, %v14353_v7  ;;  %v7902_v6 = vsel %vm7901_vm5, %v8912_v28, %v7898_v35  ;;  %v8085_v21 = vmax.f32 %v8053_v60, 0.0 }
 0x91f   :  { %v7988_v45 = vmul.f32 %v7902_v6, %v16207_v22  ;;  %v7882_v2 = vsel %vm7881_vm8, %v8914_v4, %v7878_v17 }
 0x920   :  { %v8916_v61 = vpop.eup %8915  ;;  %v16669_v50 = vadd.f32 1e-05, %v7606_v26  ;;  %v7986_v36 = vmul.f32 %v7882_v2, %v16198_v11  ;;  %v8121_v24 = vmul.f32 %v16610_v5, %v8085_v21  ;;  %v8123_v26 = vmul.f32 %v16610_v5, %v8087_v53 }
 0x921   :  { %v7904_v19 = vmul.f32 %v8916_v61, %v16653_v58  ;;  %8206 = vadd.xlane.f32.xlu1 %v8205_v18  ;;  %v8023_v22 = vmul.f32 %v16569_v27, %v7988_v45  ;;  %v8918_v28 = vpop.eup %8917  ;;  %vm7910_vm9 = vweird.f32 %v8916_v61 }
 0x922   :  { %8919 = vrsqrt.f32 %v16669_v50  ;;  %v7924_v37 = vmul.f32 %v8918_v28, %v16666_v44  ;;  %v8193_v56 = vsel %vm204_vm4, %v8121_v24, 0.0  ;;  %v8021_v12 = vmul.f32 %v16569_v27, %v7986_v36  ;;  %vm7911_vm10 = vmor %vm7909_vm0, %vm7910_vm9 }
 0x923   :  { %v7905_v40 = vmul.f32 %v8916_v61, %v7904_v19  ;;  %v8058_v13 = vadd.f32 %v16584_v3, %v8023_v22  ;;  %8194 = vadd.xlane.f32.xlu0 %v8193_v56  ;;  %vm7930_vm6 = vweird.f32 %v8918_v28  ;;  %vm7919_vm11 = vweird.f32 %v16669_v50 }
 0x924   :  { %v7925_v29 = vmul.f32 %v8918_v28, %v7924_v37  ;;  %v8056_v58 = vadd.f32 %v16584_v3, %v8021_v12  ;;  %vm7931_vm12 = vmor %vm7929_vm2, %vm7930_vm6  ;;  %v8199_v17 = vsel %vm204_vm4, %v8123_v26, 0.0  ;;  %vm8359_vm6 = vcmask 1041409  }
 0x925   :  { %v7572_v23 = vpop.xlane.xlu1 %7571  ;;  %v7906_v15 = vmul.f32 0.5, %v7905_v40  ;;  %v8144_v55 = vpop.xlane.xlu2 %8143  ;;  %v8090_v33 = vmax.f32 %v8058_v13, 0.0 }
 0x926   :  { %v7608_v32 = vmul.f32 %v7572_v23, %v14353_v7  ;;  %v8234_v49 = vadd.f32 %v16307_v63, %v8144_v55  ;;  %v7926_v34 = vmul.f32 0.5, %v7925_v29  ;;  %v8088_v6 = vmax.f32 %v8056_v58, 0.0 }
 0x927   :  { %v7907_v52 = vsub.f32 1.5, %v7906_v15  ;;  %v8126_v18 = vmul.f32 %v16610_v5, %v8090_v33 }
 0x928   :  { %v16689_v4 = vadd.f32 1e-05, %v7608_v32  ;;  %v8920_v11 = vpop.eup %8919  ;;  %v8307_v57 = vperm.slane %v8234_v49, %v16680_v54  ;;  %v7927_v59 = vsub.f32 1.5, %v7926_v34  ;;  %v8124_v36 = vmul.f32 %v16610_v5, %v8088_v6 }
 0x929   :  { %v7908_v51 = vmul.f32 %v8916_v61, %v7907_v52  ;;  %v7914_v30 = vmul.f32 %v8920_v11, %v16669_v50  ;;  %vm7920_vm7 = vweird.f32 %v8920_v11 }
 0x92a   :  { %8921 = vrsqrt.f32 %v16689_v4  ;;  %v16702_v47 = vsel %vm8308_vm3, %v8307_v57, %v16644_v9  ;;  %v8208_v9 = vsel %vm204_vm4, %v8126_v18, 0.0  ;;  %v7928_v41 = vmul.f32 %v8918_v28, %v7927_v59  ;;  %vm7921_vm13 = vmor %vm7919_vm11, %vm7920_vm7 }
 0x92b   :  { %v7912_v43 = vsel %vm7911_vm10, %v8916_v61, %v7908_v51  ;;  %v7915_v10 = vmul.f32 %v8920_v11, %v7914_v30  ;;  %8209 = vadd.xlane.f32.xlu2 %v8208_v9  ;;  %8200 = vadd.xlane.f32.xlu0 %v8199_v17  ;;  %vm7939_vm14 = vweird.f32 %v16689_v4 }
 0x92c   :  { %v7989_v0 = vmul.f32 %v7912_v43, %v16220_v48  ;;  %v7932_v40 = vsel %vm7931_vm12, %v8918_v28, %v7928_v41  ;;  %vm8361_vm12 = vcmask 1042434  }
 0x92d   :  { %v7916_v1 = vmul.f32 0.5, %v7915_v10  ;;  %v7991_v45 = vmul.f32 %v7932_v40, %v16236_v31  ;;  %v8153_v43 = vpop.xlane.xlu2 %8152 }
 0x92e   :  { %v8024_v20 = vmul.f32 %v16569_v27, %v7989_v0  ;;  %v8237_v9 = vadd.f32 %v16307_v63, %v8153_v43 }
 0x92f   :  { %v7917_v25 = vsub.f32 1.5, %v7916_v1  ;;  %v8026_v15 = vmul.f32 %v16569_v27, %v7991_v45 }
 0x930   :  { %v8922_v61 = vpop.eup %8921  ;;  %v8059_v48 = vadd.f32 %v16584_v3, %v8024_v20  ;;  %v8313_v40 = vperm.slane %v8237_v9, %v16558_v14 }
 0x931   :  { %v7918_v35 = vmul.f32 %v8920_v11, %v7917_v25  ;;  %v7934_v19 = vmul.f32 %v8922_v61, %v16689_v4  ;;  %vm7940_vm5 = vweird.f32 %v8922_v61  ;;  %v8061_v49 = vadd.f32 %v16584_v3, %v8026_v15 }
 0x932   :  { %v8091_v60 = vmax.f32 %v8059_v48, 0.0  ;;  %vm7941_vm8 = vmor %vm7939_vm14, %vm7940_vm5  ;;  %vm8367_vm5 = vcmask 1045509   ;;  %vm8369_vm14 = vcmask 1046534  }
 0x933   :  { %v7922_v2 = vsel %vm7921_vm13, %v8920_v11, %v7918_v35  ;;  %v7935_v44 = vmul.f32 %v8922_v61, %v7934_v19  ;;  %v8093_v28 = vmax.f32 %v8061_v49, 0.0  ;;  %vm8363_vm13 = vcmask 1043459  }
 0x934   :  { %v7990_v50 = vmul.f32 %v7922_v2, %v16228_v16  ;;  %v8127_v23 = vmul.f32 %v16610_v5, %v8091_v60  ;;  %v8202_v16 = vsel %vm204_vm4, %v8124_v36, 0.0 }
 0x935   :  { %v7936_v8 = vmul.f32 0.5, %v7935_v44  ;;  %8203 = vadd.xlane.f32.xlu0 %v8202_v16  ;;  %v8129_v11 = vmul.f32 %v16610_v5, %v8093_v28  ;;  %v8162_v20 = vpop.xlane.xlu2 %8161 }
 0x936   :  { %v8211_v21 = vsel %vm204_vm4, %v8127_v23, 0.0  ;;  %v8025_v32 = vmul.f32 %v16569_v27, %v7990_v50 }
 0x937   :  { %v7937_v55 = vsub.f32 1.5, %v7936_v8  ;;  %8212 = vadd.xlane.f32.xlu1 %v8211_v21  ;;  %v8217_v13 = vsel %vm204_vm4, %v8129_v11, 0.0 }
 0x938   :  { %v8060_v31 = vadd.f32 %v16584_v3, %v8025_v32  ;;  %8218 = vadd.xlane.f32.xlu2 %v8217_v13 }
 0x939   :  { %v7938_v22 = vmul.f32 %v8922_v61, %v7937_v55 }
 0x93a   :  { %v8092_v52 = vmax.f32 %v8060_v31, 0.0 }
 0x93b   :  { %v7942_v24 = vsel %vm7941_vm8, %v8922_v61, %v7938_v22  ;;  %vm8371_vm8 = vcmask 1047559  }
 0x93c   :  { %v7992_v37 = vmul.f32 %v7942_v24, %v16254_v62  ;;  %v8128_v57 = vmul.f32 %v16610_v5, %v8092_v52  ;;  %v8240_v52 = vadd.f32 %v16307_v63, %v8162_v20 }
 0x93d   :  { %v8171_v36 = vpop.xlane.xlu2 %8170 }
 0x93e   :  { %v8214_v53 = vsel %vm204_vm4, %v8128_v57, 0.0  ;;  %v8027_v4 = vmul.f32 %v16569_v27, %v7992_v37 }
 0x93f   :  { %8215 = vadd.xlane.f32.xlu1 %v8214_v53 }
 0x940   :  { %v8062_v51 = vadd.f32 %v16584_v3, %v8027_v4 }
 0x942   :  { %v8094_v30 = vmax.f32 %v8062_v51, 0.0 }
 0x944   :  { %v8130_v56 = vmul.f32 %v16610_v5, %v8094_v30 }
 0x946   :  { %v8220_v12 = vsel %vm204_vm4, %v8130_v56, 0.0 }
 0x947   :  { %8221 = vadd.xlane.f32.xlu0 %v8220_v12 }
 0x948   :  { %v8180_v51 = vpop.xlane.xlu2 %8179 }
 0x950   :  { %v7575_v29 = vpop.xlane.xlu0 %7574 }
 0x951   :  { %v7609_v62 = vmul.f32 %v7575_v29, %v14353_v7 }
 0x953   :  { %v7641_v10 = vadd.f32 1e-05, %v7609_v62 }
 0x955   :  { %8923 = vrsqrt.f32 %v7641_v10  ;;  %vm7949_vm9 = vweird.f32 %v7641_v10 }
 0x958   :  { %v8147_v33 = vpop.xlane.xlu0 %8146 }
 0x959   :  { %v8235_v0 = vadd.f32 %v16307_v63, %v8147_v33 }
 0x95b   :  { %v8924_v18 = vpop.eup %8923  ;;  %v8310_v26 = vperm.slane %v8235_v0, %v16291_v46 }
 0x95c   :  { %v7578_v34 = vpop.xlane.xlu1 %7577  ;;  %v7944_v59 = vmul.f32 %v8924_v18, %v7641_v10  ;;  %vm7950_vm0 = vweird.f32 %v8924_v18 }
 0x95d   :  { %v7610_v1 = vmul.f32 %v7578_v34, %v14353_v7  ;;  %vm7951_vm10 = vmor %vm7949_vm9, %vm7950_vm0  ;;  %vm8374_vm0 = vcmask 261120  }
 0x95e   :  { %v7945_v25 = vmul.f32 %v8924_v18, %v7944_v59 }
 0x95f   :  { %v7642_v58 = vadd.f32 1e-05, %v7610_v1 }
 0x960   :  { %v7946_v61 = vmul.f32 0.5, %v7945_v25  ;;  %v8156_v41 = vpop.xlane.xlu0 %8155 }
 0x961   :  { %8925 = vrsqrt.f32 %v7642_v58  ;;  %v8238_v35 = vadd.f32 %v16307_v63, %v8156_v41  ;;  %vm7959_vm2 = vweird.f32 %v7642_v58  ;;  %v8189_v41 = vpop.xlane.xlu2 %8188 }
 0x962   :  { %v7947_v17 = vsub.f32 1.5, %v7946_v61 }
 0x963   :  { %v8315_v2 = vperm.slane %v8238_v35, %v16680_v54 }
 0x964   :  { %v8150_v48 = vpop.xlane.xlu1 %8149  ;;  %v7948_v60 = vmul.f32 %v8924_v18, %v7947_v17 }
 0x965   :  { %v8236_v19 = vadd.f32 %v16307_v63, %v8150_v48 }
 0x966   :  { %v7952_v50 = vsel %vm7951_vm10, %v8924_v18, %v7948_v60 }
 0x967   :  { %v8926_v7 = vpop.eup %8925  ;;  %v8311_v6 = vperm.slane %v8236_v19, %v16312_v39  ;;  %v7993_v15 = vmul.f32 %v7952_v50, %v16416_v42 }
 0x968   :  { %v7954_v45 = vmul.f32 %v8926_v7, %v7642_v58  ;;  %v8165_v55 = vpop.xlane.xlu0 %8164  ;;  %vm7960_vm7 = vweird.f32 %v8926_v7 }
 0x969   :  { %v8312_v44 = vsel %vm8300_vm15, %v8311_v6, %v8310_v26  ;;  %v8028_v16 = vmul.f32 %v16569_v27, %v7993_v15  ;;  %v8241_v42 = vadd.f32 %v16307_v63, %v8165_v55  ;;  %vm7961_vm11 = vmor %vm7959_vm2, %vm7960_vm7  ;;  %v8243_v26 = vadd.f32 %v16307_v63, %v8171_v36 }
 0x96a   :  { %v7955_v23 = vmul.f32 %v8926_v7, %v7954_v45  ;;  %v8314_v8 = vsel %vm8304_vm1, %v8313_v40, %v8312_v44 }
 0x96b   :  { %v8316_v21 = vsel %vm8308_vm3, %v8315_v2, %v8314_v8  ;;  %v8063_v24 = vadd.f32 %v16584_v3, %v8028_v16  ;;  %v8320_v30 = vperm.slane %v8241_v42, %v16558_v14  ;;  %v8324_v61 = vperm.slane %v8243_v26, %v16291_v46 }
 0x96c   :  { %v7956_v32 = vmul.f32 0.5, %v7955_v23  ;;  %v8159_v49 = vpop.xlane.xlu1 %8158  ;;  %v8360_v31 = vsel %vm8359_vm6, %v8316_v21, %v16702_v47  ;;  %v8318_v47 = vperm.slane %v8240_v52, %v16312_v39  ;;  %v8249_v2 = vadd.f32 %v16307_v63, %v8189_v41 }
 0x96d   :  { %v8239_v22 = vadd.f32 %v16307_v63, %v8159_v49  ;;  %v8095_v57 = vmax.f32 %v8063_v24, 0.0 }
 0x96e   :  { %v7957_v28 = vsub.f32 1.5, %v7956_v32  ;;  %v8334_v15 = vperm.slane %v8249_v2, %v16558_v14 }
 0x96f   :  { %v8317_v37 = vperm.slane %v8239_v22, %v16291_v46  ;;  %v8131_v4 = vmul.f32 %v16610_v5, %v8095_v57 }
 0x970   :  { %v7958_v11 = vmul.f32 %v8926_v7, %v7957_v28  ;;  %v8174_v29 = vpop.xlane.xlu0 %8173 }
 0x971   :  { %v8319_v12 = vsel %vm8300_vm15, %v8318_v47, %v8317_v37  ;;  %v8223_v43 = vsel %vm204_vm4, %v8131_v4, 0.0  ;;  %v8244_v34 = vadd.f32 %v16307_v63, %v8174_v29 }
 0x972   :  { %v7962_v13 = vsel %vm7961_vm11, %v8926_v7, %v7958_v11  ;;  %8224 = vadd.xlane.f32.xlu2 %v8223_v43  ;;  %v8321_v0 = vsel %vm8304_vm1, %v8320_v30, %v8319_v12 }
 0x973   :  { %v7994_v53 = vmul.f32 %v7962_v13, %v16461_v38  ;;  %v8325_v20 = vperm.slane %v8244_v34, %v16312_v39 }
 0x974   :  { %v8168_v56 = vpop.xlane.xlu1 %8167 }
 0x975   :  { %v8242_v62 = vadd.f32 %v16307_v63, %v8168_v56  ;;  %v8029_v10 = vmul.f32 %v16569_v27, %v7994_v53  ;;  %v8246_v27 = vadd.f32 %v16307_v63, %v8180_v51  ;;  %v8326_v19 = vsel %vm8300_vm15, %v8325_v20, %v8324_v61 }
 0x977   :  { %v8322_v33 = vperm.slane %v8242_v62, %v16680_v54  ;;  %v8064_v38 = vadd.f32 %v16584_v3, %v8029_v10  ;;  %v8329_v35 = vperm.slane %v8246_v27, %v16680_v54 }
 0x979   :  { %v8323_v1 = vsel %vm8308_vm3, %v8322_v33, %v8321_v0  ;;  %v8096_v18 = vmax.f32 %v8064_v38, 0.0 }
 0x97a   :  { %v8362_v58 = vsel %vm8361_vm12, %v8323_v1, %v8360_v31 }
 0x97b   :  { %v8132_v59 = vmul.f32 %v16610_v5, %v8096_v18  ;;  %v8183_v5 = vpop.xlane.xlu0 %8182 }
 0x97c   :  { %v8177_v25 = vpop.xlane.xlu1 %8176  ;;  %v8247_v6 = vadd.f32 %v16307_v63, %v8183_v5 }
 0x97d   :  { %v8245_v9 = vadd.f32 %v16307_v63, %v8177_v25  ;;  %v8226_v3 = vsel %vm204_vm4, %v8132_v59, 0.0  ;;  %vm8365_vm4 = vcmask 1044484  }
 0x97e   :  { %8227 = vadd.xlane.f32.xlu0 %v8226_v3  ;;  %v8331_v50 = vperm.slane %v8247_v6, %v16291_v46 }
 0x97f   :  { %v8327_v48 = vperm.slane %v8245_v9, %v16558_v14 }
 0x981   :  { %v8328_v17 = vsel %vm8304_vm1, %v8327_v48, %v8326_v19  ;;  %v8192_v44 = vpop.xlane.xlu2 %8191 }
 0x982   :  { %v8330_v7 = vsel %vm8308_vm3, %v8329_v35, %v8328_v17  ;;  %v8250_v8 = vadd.f32 %v16307_v63, %v8192_v44 }
 0x983   :  { %v8364_v40 = vsel %vm8363_vm13, %v8330_v7, %v8362_v58 }
 0x984   :  { %v8186_v60 = vpop.xlane.xlu1 %8185  ;;  %v8336_v32 = vperm.slane %v8250_v8, %v16680_v54 }
 0x985   :  { %v8248_v45 = vadd.f32 %v16307_v63, %v8186_v60 }
 0x987   :  { %v8332_v23 = vperm.slane %v8248_v45, %v16312_v39 }
 0x989   :  { %v8333_v36 = vsel %vm8300_vm15, %v8332_v23, %v8331_v50 }
 0x98a   :  { %v8335_v21 = vsel %vm8304_vm1, %v8334_v15, %v8333_v36 }
 0x98b   :  { %v8337_v55 = vsel %vm8308_vm3, %v8336_v32, %v8335_v21 }
 0x98c   :  { %v8366_v49 = vsel %vm8365_vm4, %v8337_v55, %v8364_v40  ;;  %v8198_v22 = vpop.xlane.xlu1 %8197 }
 0x98d   :  { %v8252_v24 = vadd.f32 %v16307_v63, %v8198_v22 }
 0x98f   :  { %v8339_v13 = vperm.slane %v8252_v24, %v16312_v39 }
 0x994   :  { %v8207_v11 = vpop.xlane.xlu1 %8206 }
 0x995   :  { %v8255_v33 = vadd.f32 %v16307_v63, %v8207_v11 }
 0x996   :  { %v8195_v31 = vpop.xlane.xlu0 %8194 }
 0x997   :  { %v8251_v28 = vadd.f32 %v16307_v63, %v8195_v31  ;;  %v8345_v1 = vperm.slane %v8255_v33, %v16291_v46 }
 0x999   :  { %v8338_v42 = vperm.slane %v8251_v28, %v16291_v46 }
 0x99b   :  { %v8340_v53 = vsel %vm8300_vm15, %v8339_v13, %v8338_v42 }
 0x99e   :  { %v8201_v16 = vpop.xlane.xlu0 %8200  ;;  %v8210_v29 = vpop.xlane.xlu2 %8209 }
 0x99f   :  { %v8253_v52 = vadd.f32 %v16307_v63, %v8201_v16  ;;  %v8256_v43 = vadd.f32 %v16307_v63, %v8210_v29 }
 0x9a1   :  { %v8341_v37 = vperm.slane %v8253_v52, %v16558_v14  ;;  %v8346_v34 = vperm.slane %v8256_v43, %v16312_v39 }
 0x9a3   :  { %v8342_v51 = vsel %vm8304_vm1, %v8341_v37, %v8340_v53  ;;  %v8347_v26 = vsel %vm8300_vm15, %v8346_v34, %v8345_v1 }
 0x9a8   :  { %v8204_v57 = vpop.xlane.xlu0 %8203 }
 0x9a9   :  { %v8254_v47 = vadd.f32 %v16307_v63, %v8204_v57 }
 0x9aa   :  { %v8213_v12 = vpop.xlane.xlu1 %8212 }
 0x9ab   :  { %v8343_v4 = vperm.slane %v8254_v47, %v16680_v54  ;;  %v8257_v10 = vadd.f32 %v16307_v63, %v8213_v12  ;;  %v8219_v20 = vpop.xlane.xlu2 %8218 }
 0x9ac   :  { %v8259_v41 = vadd.f32 %v16307_v63, %v8219_v20 }
 0x9ad   :  { %v8344_v30 = vsel %vm8308_vm3, %v8343_v4, %v8342_v51  ;;  %v8348_v0 = vperm.slane %v8257_v10, %v16558_v14 }
 0x9ae   :  { %v8368_v56 = vsel %vm8367_vm5, %v8344_v30, %v8366_v49  ;;  %v8352_v5 = vperm.slane %v8259_v41, %v16291_v46 }
 0x9af   :  { %v8349_v58 = vsel %vm8304_vm1, %v8348_v0, %v8347_v26 }
 0x9b2   :  { %v8216_v62 = vpop.xlane.xlu1 %8215 }
 0x9b3   :  { %v8258_v38 = vadd.f32 %v16307_v63, %v8216_v62 }
 0x9b5   :  { %v8350_v18 = vperm.slane %v8258_v38, %v16680_v54 }
 0x9b7   :  { %v8351_v59 = vsel %vm8308_vm3, %v8350_v18, %v8349_v58 }
 0x9b8   :  { %v8370_v27 = vsel %vm8369_vm14, %v8351_v59, %v8368_v56 }
 0x9ba   :  { %v8222_v25 = vpop.xlane.xlu0 %8221 }
 0x9bb   :  { %v8260_v3 = vadd.f32 %v16307_v63, %v8222_v25 }
 0x9bd   :  { %v8353_v48 = vperm.slane %v8260_v3, %v16312_v39 }
 0x9bf   :  { %v8354_v7 = vsel %vm8300_vm15, %v8353_v48, %v8352_v5 }
 0x9e5   :  { %v8225_v9 = vpop.xlane.xlu2 %8224 }
 0x9e6   :  { %v8261_v61 = vadd.f32 %v16307_v63, %v8225_v9 }
 0x9e8   :  { %v8355_v35 = vperm.slane %v8261_v61, %v16558_v14 }
 0x9ea   :  { %v8356_v39 = vsel %vm8304_vm1, %v8355_v35, %v8354_v7 }
 0x9f1   :  { %v8228_v19 = vpop.xlane.xlu0 %8227 }
 0x9f2   :  { %v8262_v17 = vadd.f32 %v16307_v63, %v8228_v19 }
 0x9f4   :  { %v8357_v6 = vperm.slane %v8262_v17, %v16680_v54 }
 0x9f6   :  { %v8358_v14 = vsel %vm8308_vm3, %v8357_v6, %v8356_v39 }
 0x9f7   :  { %v8372_v46 = vsel %vm8371_vm8, %v8358_v14, %v8370_v27 }
 0x9f8   :  { %8375 = vst.msk [vmem:[#allocation12] sm:$0xff] %vm8374_vm0, %v8372_v46 }
 0x9f9   :  { %8386 = dma.vmem_to_hbm [thread:$0]  %s8382_s2, 128, %s8384_s23, [#allocation5]  }
 0x9fa   :  { %9095 = dma.done.wait [#allocation5], 128  }
 0x9fb   :  { %9096 = vsyncadd [#allocation5], 4294967168 }
 0x9fc   :  { %8391 = vsyncpa [#allocation4], 1 }
 0x9fd   :  { %8392 = vsyncpa [#allocation7], 1 }
 0x9fe   :  { %8393 = vsyncpa [#allocation10], 1 }
 0x9ff   :  { %8394 = vsyncpa [#allocation5], 1 }

</bundles_post_ra>
